<compile_context>
chip_gen: v7x
topology: tpu7x:2x2x1
jax: 0.10.0
libtpu: 0.0.40
codegen_flags: <defaults>
</compile_context>

<pallas_src>
import functools

import numpy as np
import jax
import jax.numpy as jnp
from jax.experimental import pallas as pl
from jax.experimental.pallas import tpu as pltpu

N_VIS = 784   # visible units (MNIST), fixed by the module
N_HID = 200   # hidden/latent units, fixed by the module


def _round_up(n, m):
    return ((n + m - 1) // m) * m


def _default_bf16_softplus():
    # bf16 EUP exists on v6e/v7x; keep the f32 path on v5e/older or unknown chips.
    try:
        kind = jax.devices()[0].device_kind.lower()
    except Exception:
        return False
    return ("v6" in kind) or ("v7" in kind)


def _leaky_relu(t):
    # nn.LeakyReLU() default negative_slope = 0.01
    return jnp.where(t > 0, t, 0.01 * t)


def _log_bernoulli(z, y, bf16_softplus):
    # elementwise -F.binary_cross_entropy_with_logits(z, y, reduce=False)
    # = y*z - max(z,0) - log1p(exp(-|z|))   (numerically stable)
    neg_abs = -jnp.abs(z)
    if bf16_softplus:
        # bf16 exp on the EUP (v6e/v7x); softplus term is bounded by ln2 so the
        # bf16 rounding is far inside the test tolerance.
        e = jnp.exp(neg_abs.astype(jnp.bfloat16)).astype(jnp.float32)
    else:
        e = jnp.exp(neg_abs)
    return y * z - jnp.maximum(z, 0.0) - jnp.log1p(e)


def model_kernel(x_ref, u_ref, w1_ref, wh_ref, w6_ref, bh_ref, b6_ref,
                 scores_ref, samples_ref, *, bf16_softplus):
    x_in = x_ref[...]                                 # (TB, 784), bf16 (or f32)
    x_bf = x_in.astype(jnp.bfloat16)                  # MXU operand
    x_f32 = x_in.astype(jnp.float32)                  # BCE target (exact for 0/1 data)

    def bias(k):                                      # (1, 200) row of the stacked biases
        return bh_ref[pl.ds(k, 1), :]

    # ---- q network: bf16 MXU matmuls, f32 accumulation / elementwise ----
    h = _leaky_relu(jnp.dot(x_bf, w1_ref[...],
                            preferred_element_type=jnp.float32) + bias(0))
    h = _leaky_relu(jnp.dot(h.astype(jnp.bfloat16), wh_ref[0],
                            preferred_element_type=jnp.float32) + bias(1))
    zq = jnp.dot(h.astype(jnp.bfloat16), wh_ref[1],
                 preferred_element_type=jnp.float32) + bias(2)          # (TB, 200) f32

    # ---- Bernoulli sample: sigmoid(zq) > u  <=>  zq > logit(u) (no sigmoid needed) ----
    u = u_ref[...]                                    # (TB, 200) f32
    lu = jnp.log(u) - jnp.log1p(-u)                   # logit(u); -inf at u==0 -> y=1 (matches torch)
    y = (zq > lu).astype(jnp.float32)                 # (TB, 200)

    # ---- log q(y|x) = sum_j -BCEWithLogits(zq, y) ----
    score_q = jnp.sum(_log_bernoulli(zq, y, bf16_softplus), axis=1, keepdims=True)

    # ---- p network on the samples ----
    y_bf = y.astype(jnp.bfloat16)
    h = _leaky_relu(jnp.dot(y_bf, wh_ref[2],
                            preferred_element_type=jnp.float32) + bias(3))
    h = _leaky_relu(jnp.dot(h.astype(jnp.bfloat16), wh_ref[3],
                            preferred_element_type=jnp.float32) + bias(4))
    zp = jnp.dot(h.astype(jnp.bfloat16), w6_ref[...],
                 preferred_element_type=jnp.float32) + b6_ref[...]      # (TB, 784) f32

    # ---- log p(y) + log p(x|y);  Bernoulli(0.5) prior -> 200*log(0.5) ----
    log_prior = jnp.float32(N_HID * np.log(0.5))
    score_p = log_prior + jnp.sum(_log_bernoulli(zp, x_f32, bf16_softplus),
                                  axis=1, keepdims=True)

    # merged (TB, 2) score block: col 0 = log_q, col 1 = log_p
    col = jax.lax.broadcasted_iota(jnp.int32, (1, 2), 1)
    scores_ref[...] = jnp.where(col == 0, score_q, score_p)

    samples_ref[...] = y_bf


def prepare_params(params):
    """Pack the 12 torch-layout params into 5 kernel operands (done once).

    params = [w1, b1, ..., w6, b6]; w: (in_features, out_features), b: (1, out_features), f32.
    Returns: w1 bf16 (784,200), w_hid bf16 (4,200,200), w6 bf16 (200,784),
             b_hid f32 (5,200), b6 f32 (1,784).
    """
    w = [params[2 * i] for i in range(6)]
    b = [params[2 * i + 1] for i in range(6)]
    w1 = jnp.asarray(w[0]).astype(jnp.bfloat16)                               # (784, 200)
    w_hid = jnp.stack([w[1], w[2], w[3], w[4]], axis=0).astype(jnp.bfloat16)  # (4, 200, 200)
    w6 = jnp.asarray(w[5]).astype(jnp.bfloat16)                               # (200, 784)
    b_hid = jnp.concatenate([b[0], b[1], b[2], b[3], b[4]], axis=0).astype(jnp.float32)  # (5, 200)
    b6 = jnp.asarray(b[5]).astype(jnp.float32)                                # (1, 784)
    return (w1, w_hid, w6, b_hid, b6)


def sample_q(x, u, prepped_params, *, tb=512, bf16_softplus=None):
    """Pallas forward pass of Model.sample_q.

    x: (B, 784) bf16 or f32 (bf16 preferred for binarized data: halves the x DMA),
    u: (B, 200) f32 uniforms in [0,1)  (the torch.rand_like noise, made explicit),
    prepped_params: output of prepare_params().
    Returns (log_q (B,), log_p (B,), samples (B, 200) f32).
    """
    B = x.shape[0]
    if bf16_softplus is None:
        bf16_softplus = _default_bf16_softplus()

    # batch tile: multiple of 16 (bf16 sublane packing); keep >= 2 grid steps
    # when the batch allows it (pipelining / megacore on v7x).
    tb = int(max(16, min(tb, _round_up(B, 16))))
    if _round_up(B, tb) // tb < 2 and _round_up(B, 16) >= 32:
        tb = _round_up(_round_up(B, 16) // 2, 16)
    B_pad = _round_up(B, tb)
    grid = (B_pad // tb,)

    if x.dtype not in (jnp.bfloat16, jnp.float32):
        x = x.astype(jnp.float32)
    if u.dtype != jnp.float32:
        u = u.astype(jnp.float32)
    if B_pad != B:   # batch padding only; no feature-lane padding anywhere
        x = jnp.pad(x, ((0, B_pad - B), (0, 0)))
        u = jnp.pad(u, ((0, B_pad - B), (0, 0)), constant_values=0.5)

    w1, w_hid, w6, b_hid, b6 = prepped_params

    in_specs = [
        pl.BlockSpec((tb, N_VIS), lambda i: (i, 0)),          # x,   tiled over batch
        pl.BlockSpec((tb, N_HID), lambda i: (i, 0)),          # u,   tiled over batch
        pl.BlockSpec((N_VIS, N_HID), lambda i: (0, 0)),       # w1       (resident)
        pl.BlockSpec((4, N_HID, N_HID), lambda i: (0, 0, 0)), # w2..w5   (resident)
        pl.BlockSpec((N_HID, N_VIS), lambda i: (0, 0)),       # w6       (resident)
        pl.BlockSpec((5, N_HID), lambda i: (0, 0)),           # b1..b5   (resident)
        pl.BlockSpec((1, N_VIS), lambda i: (0, 0)),           # b6       (resident)
    ]
    out_specs = [
        pl.BlockSpec((tb, 2), lambda i: (i, 0)),              # [log_q, log_p]
        pl.BlockSpec((tb, N_HID), lambda i: (i, 0)),          # samples (bf16, 0/1 exact)
    ]
    out_shape = [
        jax.ShapeDtypeStruct((B_pad, 2), jnp.float32),
        jax.ShapeDtypeStruct((B_pad, N_HID), jnp.bfloat16),
    ]

    kernel = functools.partial(model_kernel, bf16_softplus=bool(bf16_softplus))
    scores, samples = pl.pallas_call(
        kernel,
        grid=grid,
        in_specs=in_specs,
        out_specs=out_specs,
        out_shape=out_shape,
        compiler_params=pltpu.CompilerParams(
            dimension_semantics=("parallel",),
            vmem_limit_bytes=48 * 1024 * 1024,
        ),
    )(x, u, w1, w_hid, w6, b_hid, b6)

    log_q = scores[:B, 0]
    log_p = scores[:B, 1]
    samples = samples[:B].astype(jnp.float32)
    return log_q, log_p, samples


def init_params(key):
    """Deterministic init mimicking torch.nn.Linear default (uniform +-1/sqrt(fan_in))."""
    layer_dims = [
        (N_VIS, N_HID), (N_HID, N_HID), (N_HID, N_HID),   # q_layers
        (N_HID, N_HID), (N_HID, N_HID), (N_HID, N_VIS),   # p_layers
    ]
    params = []
    for din, dout in layer_dims:
        key, kw, kb = jax.random.split(key, 3)
        bound = 1.0 / np.sqrt(din)
        w = jax.random.uniform(kw, (din, dout), jnp.float32, -bound, bound)
        b = jax.random.uniform(kb, (1, dout), jnp.float32, -bound, bound)
        params += [w, b]
    return params


if __name__ == "__main__":
    key = jax.random.PRNGKey(0)
    kx, ku, kp = jax.random.split(key, 3)

    B = 256   # small demo batch; tb=128 -> 2-step grid (production default tb=512)
    # binarized MNIST-like visible input in {0, 1}; shipped as bf16 (exact for 0/1)
    x = (jax.random.uniform(kx, (B, N_VIS)) > 0.5).astype(jnp.bfloat16)
    # uniform noise for the Bernoulli sampling (torch.rand_like made explicit)
    u = jax.random.uniform(ku, (B, N_HID), dtype=jnp.float32)

    params = init_params(kp)
    prepped = prepare_params(params)

    log_q, log_p, samples = sample_q(x, u, prepped, tb=128)
    jax.block_until_ready((log_q, log_p, samples))

    assert log_q.shape == (B,) and log_p.shape == (B,) and samples.shape == (B, N_HID)
    assert bool(jnp.all((samples == 0.0) | (samples == 1.0)))
    assert bool(jnp.all(jnp.isfinite(log_q))) and bool(jnp.all(jnp.isfinite(log_p)))

    # Pure-JAX f32 reference. Uses the kernel's samples as the BCE target so the
    # check isolates the bf16-matmul path from the (discontinuous) sampling
    # threshold, which is verified separately away from the boundary.
    x32 = x.astype(jnp.float32)

    def ref_forward(xv, params, y):
        def lin(h, i):
            return h @ params[2 * i] + params[2 * i + 1]
        lrelu = lambda t: jnp.where(t > 0, t, 0.01 * t)
        lb = lambda z, t: t * z - jnp.maximum(z, 0.0) - jnp.log1p(jnp.exp(-jnp.abs(z)))
        h = lrelu(lin(xv, 0)); h = lrelu(lin(h, 1)); zq = lin(h, 2)
        log_q_ref = jnp.sum(lb(zq, y), axis=1)
        h = lrelu(lin(y, 3)); h = lrelu(lin(h, 4)); zp = lin(h, 5)
        log_p_ref = N_HID * np.log(0.5) + jnp.sum(lb(zp, xv), axis=1)
        return zq, log_q_ref, log_p_ref

    zq_ref, log_q_ref, log_p_ref = ref_forward(x32, params, samples)
    assert np.allclose(np.asarray(log_q), np.asarray(log_q_ref), rtol=5e-2, atol=2.0)
    assert np.allclose(np.asarray(log_p), np.asarray(log_p_ref), rtol=5e-2, atol=2.0)

    # sampling rule agrees with sigmoid(zq) > u wherever zq is far from the boundary
    logit_u = jnp.log(u) - jnp.log1p(-u)
    far = jnp.abs(zq_ref - logit_u) > 1.0
    ref_y = (zq_ref > logit_u).astype(jnp.float32)
    assert bool(jnp.all(jnp.where(far, samples == ref_y, True)))

    print("KERNEL_OK")
</pallas_src>

<mosaic_0001>
module attributes {stable_mosaic.version = 11 : i64} {
  func.func @model_kernel(%arg0: i32, %arg1: memref<128x784xbf16, #tpu.memory_space<vmem>>, %arg2: memref<128x200xf32, #tpu.memory_space<vmem>>, %arg3: memref<784x200xbf16, #tpu.memory_space<vmem>>, %arg4: memref<4x200x200xbf16, #tpu.memory_space<vmem>>, %arg5: memref<200x784xbf16, #tpu.memory_space<vmem>>, %arg6: memref<5x200xf32, #tpu.memory_space<vmem>>, %arg7: memref<1x784xf32, #tpu.memory_space<vmem>>, %arg8: memref<128x2xf32, #tpu.memory_space<vmem>>, %arg9: memref<128x200xbf16, #tpu.memory_space<vmem>>) attributes {dimension_semantics = [#tpu.dimension_semantics<parallel>], iteration_bounds = array<i64: 2>, scalar_prefetch = 0 : i64, scratch_operands = 0 : i64, tpu.core_type = #tpu.core_type<tc>, window_params = [{transform_indices = @transform_0, window_bounds = array<i64: 128, 784>}, {transform_indices = @transform_1, window_bounds = array<i64: 128, 200>}, {pipeline_mode = #tpu.pipeline_mode<synchronous>, transform_indices = @transform_2, window_bounds = array<i64: 784, 200>}, {pipeline_mode = #tpu.pipeline_mode<synchronous>, transform_indices = @transform_3, window_bounds = array<i64: 4, 200, 200>}, {pipeline_mode = #tpu.pipeline_mode<synchronous>, transform_indices = @transform_4, window_bounds = array<i64: 200, 784>}, {pipeline_mode = #tpu.pipeline_mode<synchronous>, transform_indices = @transform_5, window_bounds = array<i64: 5, 200>}, {pipeline_mode = #tpu.pipeline_mode<synchronous>, transform_indices = @transform_6, window_bounds = array<i64: 1, 784>}, {transform_indices = @transform_7, window_bounds = array<i64: 128, 2>}, {transform_indices = @transform_8, window_bounds = array<i64: 128, 200>}]} {
    %c0 = arith.constant 0 : index
    %c0_0 = arith.constant 0 : index
    %0 = vector.load %arg1[%c0, %c0_0] : memref<128x784xbf16, #tpu.memory_space<vmem>>, vector<128x784xbf16>
    %1 = arith.extf %0 : vector<128x784xbf16> to vector<128x784xf32>
    %c0_1 = arith.constant 0 : index
    %c0_2 = arith.constant 0 : index
    %2 = vector.load %arg3[%c0_1, %c0_2] : memref<784x200xbf16, #tpu.memory_space<vmem>>, vector<784x200xbf16>
    %cst = arith.constant dense<0.000000e+00> : vector<128x200xf32>
    %3 = tpu.matmul %0, %2, %cst {dimension_numbers = #tpu.dot_dimension_numbers<[1], [0], [0], [1], [0, 0, 1, 1], [], []>} : vector<128x784xbf16>, vector<784x200xbf16>, vector<128x200xf32> -> vector<128x200xf32>
    %c0_3 = arith.constant 0 : index
    %c0_4 = arith.constant 0 : index
    %4 = vector.load %arg6[%c0_3, %c0_4] : memref<5x200xf32, #tpu.memory_space<vmem>>, vector<1x200xf32>
    %5 = vector.broadcast %4 : vector<1x200xf32> to vector<128x200xf32>
    %6 = arith.addf %3, %5 : vector<128x200xf32>
    %cst_5 = arith.constant 0.000000e+00 : f32
    %7 = vector.broadcast %cst_5 : f32 to vector<128x200xf32>
    %8 = arith.cmpf ogt, %6, %7 : vector<128x200xf32>
    %cst_6 = arith.constant 0.00999999977 : f32
    %9 = vector.broadcast %cst_6 : f32 to vector<128x200xf32>
    %10 = arith.mulf %9, %6 : vector<128x200xf32>
    %11 = arith.select %8, %6, %10 : vector<128x200xi1>, vector<128x200xf32>
    %12 = arith.truncf %11 : vector<128x200xf32> to vector<128x200xbf16>
    %c0_7 = arith.constant 0 : index
    %c0_8 = arith.constant 0 : index
    %c0_9 = arith.constant 0 : index
    %13 = vector.load %arg4[%c0_7, %c0_8, %c0_9] : memref<4x200x200xbf16, #tpu.memory_space<vmem>>, vector<1x200x200xbf16>
    %14 = vector.shape_cast %13 : vector<1x200x200xbf16> to vector<200x200xbf16>
    %cst_10 = arith.constant dense<0.000000e+00> : vector<128x200xf32>
    %15 = tpu.matmul %12, %14, %cst_10 {dimension_numbers = #tpu.dot_dimension_numbers<[1], [0], [0], [1], [0, 0, 1, 1], [], []>} : vector<128x200xbf16>, vector<200x200xbf16>, vector<128x200xf32> -> vector<128x200xf32>
    %c1 = arith.constant 1 : index
    %c0_11 = arith.constant 0 : index
    %16 = vector.load %arg6[%c1, %c0_11] : memref<5x200xf32, #tpu.memory_space<vmem>>, vector<1x200xf32>
    %17 = vector.broadcast %16 : vector<1x200xf32> to vector<128x200xf32>
    %18 = arith.addf %15, %17 : vector<128x200xf32>
    %cst_12 = arith.constant 0.000000e+00 : f32
    %19 = vector.broadcast %cst_12 : f32 to vector<128x200xf32>
    %20 = arith.cmpf ogt, %18, %19 : vector<128x200xf32>
    %cst_13 = arith.constant 0.00999999977 : f32
    %21 = vector.broadcast %cst_13 : f32 to vector<128x200xf32>
    %22 = arith.mulf %21, %18 : vector<128x200xf32>
    %23 = arith.select %20, %18, %22 : vector<128x200xi1>, vector<128x200xf32>
    %24 = arith.truncf %23 : vector<128x200xf32> to vector<128x200xbf16>
    %c1_14 = arith.constant 1 : index
    %c0_15 = arith.constant 0 : index
    %c0_16 = arith.constant 0 : index
    %25 = vector.load %arg4[%c1_14, %c0_15, %c0_16] : memref<4x200x200xbf16, #tpu.memory_space<vmem>>, vector<1x200x200xbf16>
    %26 = vector.shape_cast %25 : vector<1x200x200xbf16> to vector<200x200xbf16>
    %cst_17 = arith.constant dense<0.000000e+00> : vector<128x200xf32>
    %27 = tpu.matmul %24, %26, %cst_17 {dimension_numbers = #tpu.dot_dimension_numbers<[1], [0], [0], [1], [0, 0, 1, 1], [], []>} : vector<128x200xbf16>, vector<200x200xbf16>, vector<128x200xf32> -> vector<128x200xf32>
    %c2 = arith.constant 2 : index
    %c0_18 = arith.constant 0 : index
    %28 = vector.load %arg6[%c2, %c0_18] : memref<5x200xf32, #tpu.memory_space<vmem>>, vector<1x200xf32>
    %29 = vector.broadcast %28 : vector<1x200xf32> to vector<128x200xf32>
    %30 = arith.addf %27, %29 : vector<128x200xf32>
    %c0_19 = arith.constant 0 : index
    %c0_20 = arith.constant 0 : index
    %31 = vector.load %arg2[%c0_19, %c0_20] : memref<128x200xf32, #tpu.memory_space<vmem>>, vector<128x200xf32>
    %32 = math.log %31 : vector<128x200xf32>
    %cst_21 = arith.constant 0.000000e+00 : f32
    %33 = vector.broadcast %cst_21 : f32 to vector<128x200xf32>
    %34 = arith.subf %33, %31 : vector<128x200xf32>
    %35 = math.log1p %34 : vector<128x200xf32>
    %36 = arith.subf %32, %35 : vector<128x200xf32>
    %37 = arith.cmpf ogt, %30, %36 : vector<128x200xf32>
    %38 = arith.extui %37 : vector<128x200xi1> to vector<128x200xi32>
    %39 = arith.sitofp %38 : vector<128x200xi32> to vector<128x200xf32>
    %40 = math.absf %30 : vector<128x200xf32>
    %cst_22 = arith.constant 0.000000e+00 : f32
    %41 = vector.broadcast %cst_22 : f32 to vector<128x200xf32>
    %42 = arith.subf %41, %40 : vector<128x200xf32>
    %43 = math.exp %42 : vector<128x200xf32>
    %44 = arith.mulf %39, %30 : vector<128x200xf32>
    %cst_23 = arith.constant 0.000000e+00 : f32
    %45 = vector.broadcast %cst_23 : f32 to vector<128x200xf32>
    %46 = arith.maximumf %30, %45 : vector<128x200xf32>
    %47 = arith.subf %44, %46 : vector<128x200xf32>
    %48 = math.log1p %43 : vector<128x200xf32>
    %49 = arith.subf %47, %48 : vector<128x200xf32>
    %cst_24 = arith.constant dense<0.000000e+00> : vector<128xf32>
    %50 = vector.multi_reduction <add>, %49, %cst_24 [1] : vector<128x200xf32> to vector<128xf32>
    %51 = vector.shape_cast %50 : vector<128xf32> to vector<128x1xf32>
    %52 = arith.truncf %39 : vector<128x200xf32> to vector<128x200xbf16>
    %c2_25 = arith.constant 2 : index
    %c0_26 = arith.constant 0 : index
    %c0_27 = arith.constant 0 : index
    %53 = vector.load %arg4[%c2_25, %c0_26, %c0_27] : memref<4x200x200xbf16, #tpu.memory_space<vmem>>, vector<1x200x200xbf16>
    %54 = vector.shape_cast %53 : vector<1x200x200xbf16> to vector<200x200xbf16>
    %cst_28 = arith.constant dense<0.000000e+00> : vector<128x200xf32>
    %55 = tpu.matmul %52, %54, %cst_28 {dimension_numbers = #tpu.dot_dimension_numbers<[1], [0], [0], [1], [0, 0, 1, 1], [], []>} : vector<128x200xbf16>, vector<200x200xbf16>, vector<128x200xf32> -> vector<128x200xf32>
    %c3 = arith.constant 3 : index
    %c0_29 = arith.constant 0 : index
    %56 = vector.load %arg6[%c3, %c0_29] : memref<5x200xf32, #tpu.memory_space<vmem>>, vector<1x200xf32>
    %57 = vector.broadcast %56 : vector<1x200xf32> to vector<128x200xf32>
    %58 = arith.addf %55, %57 : vector<128x200xf32>
    %cst_30 = arith.constant 0.000000e+00 : f32
    %59 = vector.broadcast %cst_30 : f32 to vector<128x200xf32>
    %60 = arith.cmpf ogt, %58, %59 : vector<128x200xf32>
    %cst_31 = arith.constant 0.00999999977 : f32
    %61 = vector.broadcast %cst_31 : f32 to vector<128x200xf32>
    %62 = arith.mulf %61, %58 : vector<128x200xf32>
    %63 = arith.select %60, %58, %62 : vector<128x200xi1>, vector<128x200xf32>
    %64 = arith.truncf %63 : vector<128x200xf32> to vector<128x200xbf16>
    %c3_32 = arith.constant 3 : index
    %c0_33 = arith.constant 0 : index
    %c0_34 = arith.constant 0 : index
    %65 = vector.load %arg4[%c3_32, %c0_33, %c0_34] : memref<4x200x200xbf16, #tpu.memory_space<vmem>>, vector<1x200x200xbf16>
    %66 = vector.shape_cast %65 : vector<1x200x200xbf16> to vector<200x200xbf16>
    %cst_35 = arith.constant dense<0.000000e+00> : vector<128x200xf32>
    %67 = tpu.matmul %64, %66, %cst_35 {dimension_numbers = #tpu.dot_dimension_numbers<[1], [0], [0], [1], [0, 0, 1, 1], [], []>} : vector<128x200xbf16>, vector<200x200xbf16>, vector<128x200xf32> -> vector<128x200xf32>
    %c4 = arith.constant 4 : index
    %c0_36 = arith.constant 0 : index
    %68 = vector.load %arg6[%c4, %c0_36] : memref<5x200xf32, #tpu.memory_space<vmem>>, vector<1x200xf32>
    %69 = vector.broadcast %68 : vector<1x200xf32> to vector<128x200xf32>
    %70 = arith.addf %67, %69 : vector<128x200xf32>
    %cst_37 = arith.constant 0.000000e+00 : f32
    %71 = vector.broadcast %cst_37 : f32 to vector<128x200xf32>
    %72 = arith.cmpf ogt, %70, %71 : vector<128x200xf32>
    %cst_38 = arith.constant 0.00999999977 : f32
    %73 = vector.broadcast %cst_38 : f32 to vector<128x200xf32>
    %74 = arith.mulf %73, %70 : vector<128x200xf32>
    %75 = arith.select %72, %70, %74 : vector<128x200xi1>, vector<128x200xf32>
    %76 = arith.truncf %75 : vector<128x200xf32> to vector<128x200xbf16>
    %c0_39 = arith.constant 0 : index
    %c0_40 = arith.constant 0 : index
    %77 = vector.load %arg5[%c0_39, %c0_40] : memref<200x784xbf16, #tpu.memory_space<vmem>>, vector<200x784xbf16>
    %cst_41 = arith.constant dense<0.000000e+00> : vector<128x784xf32>
    %78 = tpu.matmul %76, %77, %cst_41 {dimension_numbers = #tpu.dot_dimension_numbers<[1], [0], [0], [1], [0, 0, 1, 1], [], []>} : vector<128x200xbf16>, vector<200x784xbf16>, vector<128x784xf32> -> vector<128x784xf32>
    %c0_42 = arith.constant 0 : index
    %c0_43 = arith.constant 0 : index
    %79 = vector.load %arg7[%c0_42, %c0_43] : memref<1x784xf32, #tpu.memory_space<vmem>>, vector<1x784xf32>
    %80 = vector.broadcast %79 : vector<1x784xf32> to vector<128x784xf32>
    %81 = arith.addf %78, %80 : vector<128x784xf32>
    %82 = math.absf %81 : vector<128x784xf32>
    %cst_44 = arith.constant 0.000000e+00 : f32
    %83 = vector.broadcast %cst_44 : f32 to vector<128x784xf32>
    %84 = arith.subf %83, %82 : vector<128x784xf32>
    %85 = math.exp %84 : vector<128x784xf32>
    %86 = arith.mulf %1, %81 : vector<128x784xf32>
    %cst_45 = arith.constant 0.000000e+00 : f32
    %87 = vector.broadcast %cst_45 : f32 to vector<128x784xf32>
    %88 = arith.maximumf %81, %87 : vector<128x784xf32>
    %89 = arith.subf %86, %88 : vector<128x784xf32>
    %90 = math.log1p %85 : vector<128x784xf32>
    %91 = arith.subf %89, %90 : vector<128x784xf32>
    %cst_46 = arith.constant dense<0.000000e+00> : vector<128xf32>
    %92 = vector.multi_reduction <add>, %91, %cst_46 [1] : vector<128x784xf32> to vector<128xf32>
    %93 = vector.shape_cast %92 : vector<128xf32> to vector<128x1xf32>
    %cst_47 = arith.constant -138.62944 : f32
    %94 = vector.broadcast %cst_47 : f32 to vector<128x1xf32>
    %95 = arith.addf %94, %93 : vector<128x1xf32>
    %96 = tpu.iota {dimensions = array<i32: 1>} : vector<1x2xi32>
    %c0_i32 = arith.constant 0 : i32
    %97 = vector.broadcast %c0_i32 : i32 to vector<1x2xi32>
    %98 = arith.cmpi eq, %96, %97 : vector<1x2xi32>
    %99 = vector.shape_cast %98 : vector<1x2xi1> to vector<1x2xi1>
    %100 = vector.broadcast %99 : vector<1x2xi1> to vector<128x2xi1>
    %101 = vector.shape_cast %51 : vector<128x1xf32> to vector<128x1xf32>
    %102 = vector.broadcast %101 : vector<128x1xf32> to vector<128x2xf32>
    %103 = vector.shape_cast %95 : vector<128x1xf32> to vector<128x1xf32>
    %104 = vector.broadcast %103 : vector<128x1xf32> to vector<128x2xf32>
    %105 = arith.select %100, %102, %104 : vector<128x2xi1>, vector<128x2xf32>
    %c0_48 = arith.constant 0 : index
    %c0_49 = arith.constant 0 : index
    %106 = vector.load %arg8[%c0_48, %c0_49] : memref<128x2xf32, #tpu.memory_space<vmem>>, vector<128x2xf32>
    tpu.vector_store %arg8[%c0_48, %c0_49], %105 {strides = array<i32>} : memref<128x2xf32, #tpu.memory_space<vmem>>, vector<128x2xf32>,
    %c0_50 = arith.constant 0 : index
    %c0_51 = arith.constant 0 : index
    %107 = vector.load %arg9[%c0_50, %c0_51] : memref<128x200xbf16, #tpu.memory_space<vmem>>, vector<128x200xbf16>
    tpu.vector_store %arg9[%c0_50, %c0_51], %52 {strides = array<i32>} : memref<128x200xbf16, #tpu.memory_space<vmem>>, vector<128x200xbf16>,
    return
  }
  func.func @transform_0(%arg0: i32) -> (i32, i32) {
    %c0_i32 = arith.constant 0 : i32
    %c0_i32_0 = arith.constant 0 : i32
    return %arg0, %c0_i32 : i32, i32
  }
  func.func @transform_1(%arg0: i32) -> (i32, i32) {
    %c0_i32 = arith.constant 0 : i32
    %c0_i32_0 = arith.constant 0 : i32
    return %arg0, %c0_i32 : i32, i32
  }
  func.func @transform_2(%arg0: i32) -> (i32, i32) {
    %c0_i32 = arith.constant 0 : i32
    %c0_i32_0 = arith.constant 0 : i32
    %c0_i32_1 = arith.constant 0 : i32
    return %c0_i32, %c0_i32_0 : i32, i32
  }
  func.func @transform_3(%arg0: i32) -> (i32, i32, i32) {
    %c0_i32 = arith.constant 0 : i32
    %c0_i32_0 = arith.constant 0 : i32
    %c0_i32_1 = arith.constant 0 : i32
    %c0_i32_2 = arith.constant 0 : i32
    return %c0_i32, %c0_i32_0, %c0_i32_1 : i32, i32, i32
  }
  func.func @transform_4(%arg0: i32) -> (i32, i32) {
    %c0_i32 = arith.constant 0 : i32
    %c0_i32_0 = arith.constant 0 : i32
    %c0_i32_1 = arith.constant 0 : i32
    return %c0_i32, %c0_i32_0 : i32, i32
  }
  func.func @transform_5(%arg0: i32) -> (i32, i32) {
    %c0_i32 = arith.constant 0 : i32
    %c0_i32_0 = arith.constant 0 : i32
    %c0_i32_1 = arith.constant 0 : i32
    return %c0_i32, %c0_i32_0 : i32, i32
  }
  func.func @transform_6(%arg0: i32) -> (i32, i32) {
    %c0_i32 = arith.constant 0 : i32
    %c0_i32_0 = arith.constant 0 : i32
    %c0_i32_1 = arith.constant 0 : i32
    return %c0_i32, %c0_i32_0 : i32, i32
  }
  func.func @transform_7(%arg0: i32) -> (i32, i32) {
    %c0_i32 = arith.constant 0 : i32
    %c0_i32_0 = arith.constant 0 : i32
    return %arg0, %c0_i32 : i32, i32
  }
  func.func @transform_8(%arg0: i32) -> (i32, i32) {
    %c0_i32 = arith.constant 0 : i32
    %c0_i32_0 = arith.constant 0 : i32
    return %arg0, %c0_i32 : i32, i32
  }
}

</mosaic_0001>

<bundles_post_ra>
// kernel: tpu_custom_call.1
= control target key start
LH: loop header
LB: loop body
LE: loop exit
PB: predicated region body
PF: predicated region fallthrough
CT: control target
= control target key end

     0   :  { %s10159_s27 = smov 0   ;;  %s16018_s0 = inlined_call_operand.vmem [shape: bf16[256,784], index: 0, kind: input, shape index: {}]   ;;  %s16019_s1 = inlined_call_operand.vmem [shape: f32[256,200], index: 1, kind: input, shape index: {}]   ;;  %s16020_s2 = inlined_call_operand.vmem [shape: bf16[784,200], index: 2, kind: input, shape index: {}]   ;;  %s16021_s3 = inlined_call_operand.vmem [shape: bf16[4,200,200], index: 3, kind: input, shape index: {}]   ;;  %s16022_s4 = inlined_call_operand.vmem [shape: bf16[200,784], index: 4, kind: input, shape index: {}]   ;;  %s16023_s5 = inlined_call_operand.vmem [shape: f32[5,200], index: 5, kind: input, shape index: {}]   ;;  %s16024_s6 = inlined_call_operand.vmem [shape: f32[1,784], index: 6, kind: input, shape index: {}]   ;;  %s16025_s7 = inlined_call_operand.vmem [shape: f32[256,2], index: 7, kind: output, shape index: {0}]   ;;  %s16026_s8 = inlined_call_operand.vmem [shape: bf16[256,200], index: 8, kind: output, shape index: {1}]  }
   0x1 LB: > { %s8104_s28 = sadd.s32 4294967295, %s10109_s27   ;;  %p8108_p0 = scmp.ge.s32.totalorder %s10109_s27, 1  ;;  %s10109_s27 = sphi %s10159_s27, %s19_s27  }
   0x2   : > { %p279_p1 = scmp.lt.s32.totalorder %s10109_s27, 3 }
   0x4   : > { %p280_p2 = pnand %p8108_p0, %p279_p1 }
   0x6   : > { %283 = sbr.rel (%p280_p2) target bundleno = 2318 (0x90e), region = 48 }
   0xd   : > { %v8852_v0 = vld [vmem:[%s16020_s2 + $0x4] ss:$8 sps:$4 sm:$0xff]   ;;  %v8854_v1 = vld [vmem:[%s16020_s2] ss:$8 sps:$4 sm:$0xff]   ;;  %v8855_v2 = vld [vmem:[%s16020_s2 + $0x14] ss:$8 sps:$4 sm:$0xff]  }
   0xe   : > { %1435 = vmatprep.subr.bf16.mxu0 %v8852_v0  ;;  %v8857_v3 = vld [vmem:[%s16020_s2 + $0x10] ss:$8 sps:$4 sm:$0xff]   ;;  %s8109_s15 = sshll.u32 %s8104_s28, 4  ;;  %v8858_v4 = vld [vmem:[%s16020_s2 + $0x24] ss:$8 sps:$4 sm:$0xff]   ;;  %vm1410_vm0 = vcmask 130048  }
   0xf   : > { %1436 = vmatpush1.bf16.msra.mxu0 %v8854_v1  ;;  %p327_p3 = scmp.lt.s32.totalorder %s8109_s15, 31  ;;  %v8860_v5 = vld [vmem:[%s16020_s2 + $0x20] ss:$8 sps:$4 sm:$0xff]   ;;  %v8861_v6 = vld [vmem:[%s16020_s2 + $0x34] ss:$8 sps:$4 sm:$0xff]   ;;  %vm2187_vm1 = vcmask 1043456  }
  0x10   : > { %1437 = vmatprep.subr.bf16.mxu0 %v8855_v2  ;;  %v8863_v7 = vld [vmem:[%s16020_s2 + $0x30] ss:$8 sps:$4 sm:$0xff]   ;;  %v8864_v8 = vld [vmem:[%s16020_s2 + $0x44] ss:$8 sps:$4 sm:$0xff]   ;;  %v8866_v9 = vld [vmem:[%s16020_s2 + $0x40] ss:$8 sps:$4 sm:$0xff]  }
  0x11   : > { %s16912_s15 = smov (!%p327_p3, %s8109_s15), 31  ;;  %v8867_v10 = vld [vmem:[%s16020_s2 + $0x54] ss:$8 sps:$4 sm:$0xff]   ;;  %v8869_v11 = vld [vmem:[%s16020_s2 + $0x50] ss:$8 sps:$4 sm:$0xff]   ;;  %vm2162_vm10 = vcmask 588800  }
  0x12   : > { %s8840_s26 = smul.u32 28, %s16912_s15  ;;  %v8870_v12 = vld [vmem:[%s16020_s2 + $0x64] ss:$8 sps:$4 sm:$0xff]   ;;  %v8872_v16 = vld [vmem:[%s16020_s2 + $0x60] ss:$8 sps:$4 sm:$0xff]   ;;  %s8692_s19 = sshll.u32 %s16912_s15, 4 }
  0x13   : > { %1438 = vmatpush1.bf16.msra.mxu0 %v8857_v3  ;;  %v8873_v17 = vld [vmem:[%s16020_s2 + $0x74] ss:$8 sps:$4 sm:$0xff]   ;;  %v8875_v18 = vld [vmem:[%s16020_s2 + $0x70] ss:$8 sps:$4 sm:$0xff]   ;;  %v8876_v19 = vld [vmem:[%s16020_s2 + $0x84] ss:$8 sps:$4 sm:$0xff]   ;;  %s10917_s22 = scalar_lea.vmem %s16019_s1, %s8692_s19 }
  0x14   : > { %1439 = vmatprep.subr.bf16.mxu0 %v8858_v4  ;;  %s10206_s12 = scalar_lea.vmem %s16018_s0, %s8840_s26  ;;  %v8878_v20 = vld [vmem:[%s16020_s2 + $0x80] ss:$8 sps:$4 sm:$0xff]   ;;  %v8879_v21 = vld [vmem:[%s16020_s2 + $0x94] ss:$8 sps:$4 sm:$0xff]   ;;  %v8881_v22 = vld [vmem:[%s16020_s2 + $0x90] ss:$8 sps:$4 sm:$0xff]  }
  0x15   : > { %v354_v13 = vld [vmem:[%s10206_s12] sm:$0xff]  ;;  %v8885_v25 = vld [vmem:[%s16020_s2 + $0xb4] ss:$8 sps:$4 sm:$0xff]   ;;  %v8887_v26 = vld [vmem:[%s16020_s2 + $0xb0] ss:$8 sps:$4 sm:$0xff]   ;;  %s8115_s25 = sshll.u32 %s16912_s15, 3 }
  0x16   : > { %v358_v14 = vld [vmem:[%s10206_s12 + $0x1c] sm:$0xff]  ;;  %v8882_v23 = vld [vmem:[%s16020_s2 + $0xa4] ss:$8 sps:$4 sm:$0xff]   ;;  %v8893_v30 = vld [vmem:[%s16020_s2 + $0xd0] ss:$8 sps:$4 sm:$0xff]   ;;  %s11558_s29 = scalar_lea.vmem %s16026_s8, %s8115_s25  ;;  %s15912_s10 = scalar_lea.vmem %s16025_s7, %s8115_s25 }
  0x17   : > { %1440 = vmatpush1.bf16.msra.mxu0 %v8860_v5  ;;  %v8120_v15 = vcombine.high %v354_v13, %v358_v14  ;;  %v8884_v24 = vld [vmem:[%s16020_s2 + $0xa0] ss:$8 sps:$4 sm:$0xff]   ;;  %v8888_v27 = vld [vmem:[%s16020_s2 + $0xc4] ss:$8 sps:$4 sm:$0xff]   ;;  %v8891_v29 = vld [vmem:[%s16020_s2 + $0xd4] ss:$8 sps:$4 sm:$0xff]   ;;  %v8119_v38 = vcombine.low %v354_v13, %v358_v14 }
  0x18   : > { %1441 = vmatprep.subr.bf16.mxu0 %v8861_v6  ;;  %v8890_v28 = vld [vmem:[%s16020_s2 + $0xc0] ss:$8 sps:$4 sm:$0xff]   ;;  %v8894_v31 = vld [vmem:[%s16020_s2 + $0xe4] ss:$8 sps:$4 sm:$0xff]   ;;  %v8897_v33 = vld [vmem:[%s16020_s2 + $0xf4] ss:$8 sps:$4 sm:$0xff]  }
  0x19   : > { %1467 = vmatprep.mubr.bf16.mxu0 %v8120_v15  ;;  %v8896_v32 = vld [vmem:[%s16020_s2 + $0xe0] ss:$8 sps:$4 sm:$0xff]   ;;  %v8899_v34 = vld [vmem:[%s16020_s2 + $0xf0] ss:$8 sps:$4 sm:$0xff]   ;;  %v8904_v35 = vld [vmem:[%s16020_s2 + $0x104] ss:$8 sps:$4 sm:$0xff]  }
  0x1a   : > { %v362_v36 = vld [vmem:[%s10206_s12 + $0x38] sm:$0xff]  ;;  %v8902_v39 = vld [vmem:[%s16020_s2 + $0x100] ss:$8 sps:$4 sm:$0xff]   ;;  %v8912_v43 = vld [vmem:[%s16020_s2 + $0x124] ss:$8 sps:$4 sm:$0xff]  }
  0x1b   : > { %1442 = vmatpush1.bf16.msra.mxu0 %v8863_v7  ;;  %v366_v37 = vld [vmem:[%s10206_s12 + $0x54] sm:$0xff]  ;;  %v374_v45 = vld [vmem:[%s10206_s12 + $0x8c] sm:$0xff]  ;;  %v8910_v47 = vld [vmem:[%s16020_s2 + $0x120] ss:$8 sps:$4 sm:$0xff]  }
  0x1c   : > { %1443 = vmatprep.subr.bf16.mxu0 %v8864_v8  ;;  %v8127_v40 = vcombine.high %v362_v36, %v366_v37  ;;  %v8907_v41 = vld [vmem:[%s16020_s2 + $0x114] ss:$8 sps:$4 sm:$0xff]   ;;  %v8905_v42 = vld [vmem:[%s16020_s2 + $0x110] ss:$8 sps:$4 sm:$0xff]   ;;  %v8126_v46 = vcombine.low %v362_v36, %v366_v37  ;;  %v8920_v51 = vld [vmem:[%s16020_s2 + $0x144] ss:$8 sps:$4 sm:$0xff]  }
  0x1d   : > { %v370_v44 = vld [vmem:[%s10206_s12 + $0x70] sm:$0xff]  ;;  %v378_v52 = vld [vmem:[%s10206_s12 + $0xa8] sm:$0xff]  ;;  %v386_v62 = vld [vmem:[%s10206_s12 + $0xe0] sm:$0xff] }
  0x1e   : > { %v8134_v48 = vcombine.high %v370_v44, %v374_v45  ;;  %v8915_v49 = vld [vmem:[%s16020_s2 + $0x134] ss:$8 sps:$4 sm:$0xff]   ;;  %v8913_v50 = vld [vmem:[%s16020_s2 + $0x130] ss:$8 sps:$4 sm:$0xff]   ;;  %v382_v53 = vld [vmem:[%s10206_s12 + $0xc4] sm:$0xff]  ;;  %v8133_v57 = vcombine.low %v370_v44, %v374_v45 }
  0x1f   : > { %1444 = vmatpush1.bf16.msra.mxu0 %v8866_v9  ;;  %v10309_v54 = vld [vmem:[%s16020_s2 + $0x300] ss:$8 sps:$4 sm:$0xff]   ;;  %v10314_v55 = vld [vmem:[%s16020_s2 + $0x304] ss:$8 sps:$4 sm:$0xff]   ;;  %v8923_v58 = vld [vmem:[%s16020_s2 + $0x154] ss:$8 sps:$4 sm:$0xff]   ;;  %v8141_v59 = vcombine.high %v378_v52, %v382_v53  ;;  %v8140_v1 = vcombine.low %v378_v52, %v382_v53 }
  0x20   : > { %1445 = vmatprep.subr.bf16.mxu0 %v8867_v10  ;;  %v8918_v56 = vld [vmem:[%s16020_s2 + $0x140] ss:$8 sps:$4 sm:$0xff]   ;;  %8710 = vmatprep.subr.bf16.mxu1 %v10314_v55  ;;  %v8921_v60 = vld [vmem:[%s16020_s2 + $0x150] ss:$8 sps:$4 sm:$0xff]   ;;  %v8928_v61 = vld [vmem:[%s16020_s2 + $0x164] ss:$8 sps:$4 sm:$0xff]  }
  0x21   : > { %8711 = vmatpush1.bf16.msra.mxu1 %v10309_v54  ;;  %v390_v63 = vld [vmem:[%s10206_s12 + $0xfc] sm:$0xff]  ;;  %v8929_v4 = vld [vmem:[%s16020_s2 + $0x170] ss:$8 sps:$4 sm:$0xff]   ;;  %v8936_v5 = vld [vmem:[%s16020_s2 + $0x184] ss:$8 sps:$4 sm:$0xff]  }
  0x22   : > { %v8926_v0 = vld [vmem:[%s16020_s2 + $0x160] ss:$8 sps:$4 sm:$0xff]   ;;  %v8931_v2 = vld [vmem:[%s16020_s2 + $0x174] ss:$8 sps:$4 sm:$0xff]   ;;  %v8148_v3 = vcombine.high %v386_v62, %v390_v63  ;;  %v8147_v9 = vcombine.low %v386_v62, %v390_v63  ;;  %v8944_v13 = vld [vmem:[%s16020_s2 + $0x1a4] ss:$8 sps:$4 sm:$0xff]  }
  0x23   : > { %1446 = vmatpush1.bf16.msra.mxu0 %v8869_v11  ;;  %v394_v6 = vld [vmem:[%s10206_s12 + $0x118] sm:$0xff]  ;;  %v8934_v8 = vld [vmem:[%s16020_s2 + $0x180] ss:$8 sps:$4 sm:$0xff]   ;;  %v402_v14 = vld [vmem:[%s10206_s12 + $0x150] sm:$0xff] }
  0x24   : > { %1447 = vmatprep.subr.bf16.mxu0 %v8870_v12  ;;  %v398_v7 = vld [vmem:[%s10206_s12 + $0x134] sm:$0xff]  ;;  %v406_v15 = vld [vmem:[%s10206_s12 + $0x16c] sm:$0xff]  ;;  %v413_v37 = vld [vmem:[%s10206_s12 + $0x1a0] sm:$0xf] }
  0x25   : > { %v8939_v10 = vld [vmem:[%s16020_s2 + $0x194] ss:$8 sps:$4 sm:$0xff]   ;;  %v8155_v11 = vcombine.high %v394_v6, %v398_v7  ;;  %v8937_v12 = vld [vmem:[%s16020_s2 + $0x190] ss:$8 sps:$4 sm:$0xff]   ;;  %v8966_v44 = vld [vmem:[%s16020_s2 + $0x200] ss:$8 sps:$4 sm:$0xff]  }
  0x26   : > { %v8961_v36 = vld [vmem:[%s16020_s2 + $0x1f0] ss:$8 sps:$4 sm:$0xff]   ;;  %v8974_v52 = vld [vmem:[%s16020_s2 + $0x220] ss:$8 sps:$4 sm:$0xff]  }
  0x27   : > { %1448 = vmatpush1.bf16.msra.mxu0 %v8872_v16  ;;  %v8942_v16 = vld [vmem:[%s16020_s2 + $0x1a0] ss:$8 sps:$4 sm:$0xff]  }
  0x28   : > { %1449 = vmatprep.subr.bf16.mxu0 %v8873_v17  ;;  %v8154_v17 = vcombine.low %v394_v6, %v398_v7  ;;  %v8982_v62 = vld [vmem:[%s16020_s2 + $0x240] ss:$8 sps:$4 sm:$0xff]  }
  0x29   : > { %v8990_v7 = vld [vmem:[%s16020_s2 + $0x260] ss:$8 sps:$4 sm:$0xff]  }
  0x2b   : > { %1450 = vmatpush1.bf16.msra.mxu0 %v8875_v18  ;;  %v8947_v18 = vld [vmem:[%s16020_s2 + $0x1b4] ss:$8 sps:$4 sm:$0xff]  }
  0x2c   : > { %1451 = vmatprep.subr.bf16.mxu0 %v8876_v19  ;;  %v8162_v19 = vcombine.high %v402_v14, %v406_v15 }
  0x2f   : > { %1452 = vmatpush1.bf16.msra.mxu0 %v8878_v20  ;;  %v8945_v20 = vld [vmem:[%s16020_s2 + $0x1b0] ss:$8 sps:$4 sm:$0xff]  }
  0x30   : > { %1453 = vmatprep.subr.bf16.mxu0 %v8879_v21  ;;  %v8952_v21 = vld [vmem:[%s16020_s2 + $0x1c4] ss:$8 sps:$4 sm:$0xff]  }
  0x33   : > { %1454 = vmatpush1.bf16.msra.mxu0 %v8881_v22  ;;  %v410_v22 = vld [vmem:[%s10206_s12 + $0x188] sm:$0xff] }
  0x34   : > { %1455 = vmatprep.subr.bf16.mxu0 %v8882_v23  ;;  %v414_v23 = vld [vmem:[%s10206_s12 + $0x1a4] sm:$0xff] }
  0x37   : > { %1456 = vmatpush1.bf16.msra.mxu0 %v8884_v24  ;;  %v8950_v24 = vld [vmem:[%s16020_s2 + $0x1c0] ss:$8 sps:$4 sm:$0xff]  }
  0x38   : > { %1457 = vmatprep.subr.bf16.mxu0 %v8885_v25  ;;  %v8161_v25 = vcombine.low %v402_v14, %v406_v15  ;;  %v8998_v15 = vld [vmem:[%s16020_s2 + $0x280] ss:$8 sps:$4 sm:$0xff]  }
  0x3b   : > { %1458 = vmatpush1.bf16.msra.mxu0 %v8887_v26  ;;  %v8955_v26 = vld [vmem:[%s16020_s2 + $0x1d4] ss:$8 sps:$4 sm:$0xff]  }
  0x3c   : > { %1459 = vmatprep.subr.bf16.mxu0 %v8888_v27  ;;  %v8169_v27 = vcombine.high %v410_v22, %v414_v23 }
  0x3f   : > { %1460 = vmatpush1.bf16.msra.mxu0 %v8890_v28  ;;  %v8953_v28 = vld [vmem:[%s16020_s2 + $0x1d0] ss:$8 sps:$4 sm:$0xff]  }
  0x40   : > { %1461 = vmatprep.subr.bf16.mxu0 %v8891_v29  ;;  %v8960_v29 = vld [vmem:[%s16020_s2 + $0x1e4] ss:$8 sps:$4 sm:$0xff]  }
  0x43   : > { %1462 = vmatpush1.bf16.msra.mxu0 %v8893_v30  ;;  %v355_v30 = vld [vmem:[%s10206_s12 + $0x8] sm:$0xff] }
  0x44   : > { %1463 = vmatprep.subr.bf16.mxu0 %v8894_v31  ;;  %v359_v31 = vld [vmem:[%s10206_s12 + $0x24] sm:$0xff] }
  0x45   : > { %v8121_v45 = vcombine.low %v355_v30, %v359_v31 }
  0x47   : > { %1464 = vmatpush1.bf16.msra.mxu0 %v8896_v32  ;;  %v8958_v32 = vld [vmem:[%s16020_s2 + $0x1e0] ss:$8 sps:$4 sm:$0xff]  }
  0x48   : > { %1465 = vmatprep.subr.bf16.mxu0 %v8897_v33  ;;  %v8168_v33 = vcombine.low %v410_v22, %v414_v23  ;;  %v9006_v23 = vld [vmem:[%s16020_s2 + $0x2a0] ss:$8 sps:$4 sm:$0xff]  }
  0x4b   : > { %1466 = vmatpush1.bf16.msra.mxu0 %v8899_v34  ;;  %v8963_v34 = vld [vmem:[%s16020_s2 + $0x1f4] ss:$8 sps:$4 sm:$0xff]  }
  0x4c   : > { %1548 = vmatprep.subr.bf16.mxu0 %v8904_v35  ;;  %v8122_v35 = vcombine.high %v355_v30, %v359_v31  ;;  %v9014_v31 = vld [vmem:[%s16020_s2 + $0x2c0] ss:$8 sps:$4 sm:$0xff]  }
  0x4e   : > { %1468 = vmatmul.mubr.bf16.vlgmr.msra.gmra.mrb[0].mxu0 %v8119_v38  ;;  %v417_v38 = vld [vmem:[%s10206_s12 + $0x1bc] sm:$0xf] }
  0x4f   : > { %1549 = vmatpush1.bf16.msra.mxu0 %v8902_v39  ;;  %1477 = vmatprep.mubr.bf16.mxu0 %v8127_v40  ;;  %v8968_v39 = vld [vmem:[%s16020_s2 + $0x204] ss:$8 sps:$4 sm:$0xff]   ;;  %v8174_v40 = vcombine.low %v413_v37, %v417_v38  ;;  %v9060_v37 = vld [vmem:[%s16021_s3 + $0x14] ss:$8 sps:$4 sm:$0xff]  }
  0x50   : > { %1550 = vmatprep.subr.bf16.mxu0 %v8907_v41  ;;  %v363_v41 = vld [vmem:[%s10206_s12 + $0x40] sm:$0xff] }
  0x51   : > { %v9024_v38 = vld [vmem:[%s16020_s2 + $0x2e4] ss:$8 sps:$4 sm:$0xff]  }
  0x53   : > { %1551 = vmatpush1.bf16.msra.mxu0 %v8905_v42  ;;  %v367_v42 = vld [vmem:[%s10206_s12 + $0x5c] sm:$0xff] }
  0x54   : > { %1552 = vmatprep.subr.bf16.mxu0 %v8912_v43  ;;  %v16028_v43 = vmov 0   ;;  %v8128_v53 = vcombine.low %v363_v41, %v367_v42 }
  0x55   : > { %1876 = vmatprep.mubr.bf16.mxu1 %v16028_v43 }
  0x56   : > { %1478 = vmatmul.mubr.bf16.gmra.mrb[4].mxu0 %v8126_v46  ;;  %8280 = vmatmul.mubr.msk.bf16.vlgmr.msra.gmra.mrb[0].mxu1 %vm1410_vm0, %v8174_v40  ;;  %v8971_v46 = vld [vmem:[%s16020_s2 + $0x214] ss:$8 sps:$4 sm:$0xff]   ;;  %v360_v40 = vld [vmem:[%s10206_s12 + $0x2c] sm:$0xff] }
  0x57   : > { %1553 = vmatpush1.bf16.msra.mxu0 %v8910_v47  ;;  %1487 = vmatprep.mubr.bf16.mxu0 %v8134_v48  ;;  %v8129_v47 = vcombine.high %v363_v41, %v367_v42  ;;  %v8969_v48 = vld [vmem:[%s16020_s2 + $0x210] ss:$8 sps:$4 sm:$0xff]  }
  0x58   : > { %1554 = vmatprep.subr.bf16.mxu0 %v8915_v49  ;;  %v8976_v49 = vld [vmem:[%s16020_s2 + $0x224] ss:$8 sps:$4 sm:$0xff]   ;;  %v9058_v41 = vld [vmem:[%s16021_s3 + $0x10] ss:$8 sps:$4 sm:$0xff]  }
  0x5b   : > { %1555 = vmatpush1.bf16.msra.mxu0 %v8913_v50  ;;  %v371_v50 = vld [vmem:[%s10206_s12 + $0x78] sm:$0xff] }
  0x5c   : > { %1556 = vmatprep.subr.bf16.mxu0 %v8920_v51  ;;  %v375_v51 = vld [vmem:[%s10206_s12 + $0x94] sm:$0xff] }
  0x5d   : > { %v8135_v63 = vcombine.low %v371_v50, %v375_v51 }
  0x5e   : > { %1488 = vmatmul.mubr.bf16.gmra.mrb[8].mxu0 %v8133_v57  ;;  %v8136_v57 = vcombine.high %v371_v50, %v375_v51  ;;  %v9025_v50 = vld [vmem:[%s16020_s2 + $0x2f0] ss:$8 sps:$4 sm:$0xff]   ;;  %v364_v51 = vld [vmem:[%s10206_s12 + $0x48] sm:$0xff] }
  0x5f   : > { %1557 = vmatpush1.bf16.msra.mxu0 %v8918_v56  ;;  %1497 = vmatprep.mubr.bf16.mxu0 %v8141_v59  ;;  %v8979_v56 = vld [vmem:[%s16020_s2 + $0x234] ss:$8 sps:$4 sm:$0xff]   ;;  %v8984_v59 = vld [vmem:[%s16020_s2 + $0x244] ss:$8 sps:$4 sm:$0xff]  }
  0x60   : > { %1558 = vmatprep.subr.bf16.mxu0 %v8923_v58  ;;  %v8977_v58 = vld [vmem:[%s16020_s2 + $0x230] ss:$8 sps:$4 sm:$0xff]  }
  0x63   : > { %1559 = vmatpush1.bf16.msra.mxu0 %v8921_v60  ;;  %v379_v60 = vld [vmem:[%s10206_s12 + $0xb0] sm:$0xff] }
  0x64   : > { %1560 = vmatprep.subr.bf16.mxu0 %v8928_v61  ;;  %v383_v61 = vld [vmem:[%s10206_s12 + $0xcc] sm:$0xff] }
  0x65   : > { %v8142_v6 = vcombine.low %v379_v60, %v383_v61 }
  0x66   : > { %1498 = vmatmul.mubr.bf16.gmra.mrb[12].mxu0 %v8140_v1  ;;  %v8143_v1 = vcombine.high %v379_v60, %v383_v61  ;;  %v9072_v60 = vld [vmem:[%s16021_s3 + $0x54] ss:$8 sps:$4 sm:$0xff]   ;;  %v372_v61 = vld [vmem:[%s10206_s12 + $0x80] sm:$0xff] }
  0x67   : > { %1561 = vmatpush1.bf16.msra.mxu0 %v8926_v0  ;;  %1507 = vmatprep.mubr.bf16.mxu0 %v8148_v3  ;;  %v8987_v0 = vld [vmem:[%s16020_s2 + $0x254] ss:$8 sps:$4 sm:$0xff]   ;;  %v8992_v3 = vld [vmem:[%s16020_s2 + $0x264] ss:$8 sps:$4 sm:$0xff]  }
  0x68   : > { %1562 = vmatprep.subr.bf16.mxu0 %v8931_v2  ;;  %v8985_v2 = vld [vmem:[%s16020_s2 + $0x250] ss:$8 sps:$4 sm:$0xff]  }
  0x6b   : > { %1563 = vmatpush1.bf16.msra.mxu0 %v8929_v4  ;;  %v387_v4 = vld [vmem:[%s10206_s12 + $0xe8] sm:$0xff] }
  0x6c   : > { %1564 = vmatprep.subr.bf16.mxu0 %v8936_v5  ;;  %v391_v5 = vld [vmem:[%s10206_s12 + $0x104] sm:$0xff] }
  0x6d   : > { %v8149_v14 = vcombine.low %v387_v4, %v391_v5 }
  0x6e   : > { %1508 = vmatmul.mubr.bf16.gmra.mrb[16].mxu0 %v8147_v9  ;;  %v8995_v9 = vld [vmem:[%s16020_s2 + $0x274] ss:$8 sps:$4 sm:$0xff]  }
  0x6f   : > { %1565 = vmatpush1.bf16.msra.mxu0 %v8934_v8  ;;  %1517 = vmatprep.mubr.bf16.mxu0 %v8155_v11  ;;  %v8150_v8 = vcombine.high %v387_v4, %v391_v5  ;;  %v9000_v11 = vld [vmem:[%s16020_s2 + $0x284] ss:$8 sps:$4 sm:$0xff]   ;;  %v384_v4 = vld [vmem:[%s10206_s12 + $0xd4] sm:$0xff] }
  0x70   : > { %1566 = vmatprep.subr.bf16.mxu0 %v8939_v10  ;;  %v8993_v10 = vld [vmem:[%s16020_s2 + $0x270] ss:$8 sps:$4 sm:$0xff]  }
  0x71   : > { %v9076_v5 = vld [vmem:[%s16021_s3 + $0x70] ss:$8 sps:$4 sm:$0xff]  }
  0x73   : > { %1567 = vmatpush1.bf16.msra.mxu0 %v8937_v12  ;;  %v395_v12 = vld [vmem:[%s10206_s12 + $0x120] sm:$0xff] }
  0x74   : > { %1568 = vmatprep.subr.bf16.mxu0 %v8944_v13  ;;  %v399_v13 = vld [vmem:[%s10206_s12 + $0x13c] sm:$0xff] }
  0x75   : > { %v8156_v22 = vcombine.low %v395_v12, %v399_v13 }
  0x76   : > { %1518 = vmatmul.mubr.bf16.gmra.mrb[20].mxu0 %v8154_v17  ;;  %v9003_v17 = vld [vmem:[%s16020_s2 + $0x294] ss:$8 sps:$4 sm:$0xff]  }
  0x77   : > { %1569 = vmatpush1.bf16.msra.mxu0 %v8942_v16  ;;  %1527 = vmatprep.mubr.bf16.mxu0 %v8162_v19  ;;  %v8157_v16 = vcombine.high %v395_v12, %v399_v13  ;;  %v9008_v19 = vld [vmem:[%s16020_s2 + $0x2a4] ss:$8 sps:$4 sm:$0xff]  }
  0x78   : > { %1570 = vmatprep.subr.bf16.mxu0 %v8947_v18  ;;  %v9001_v18 = vld [vmem:[%s16020_s2 + $0x290] ss:$8 sps:$4 sm:$0xff]   ;;  %v396_v12 = vld [vmem:[%s10206_s12 + $0x128] sm:$0xff] }
  0x79   : > { %v400_v13 = vld [vmem:[%s10206_s12 + $0x144] sm:$0xff] }
  0x7b   : > { %1571 = vmatpush1.bf16.msra.mxu0 %v8945_v20  ;;  %v403_v20 = vld [vmem:[%s10206_s12 + $0x158] sm:$0xff] }
  0x7c   : > { %1572 = vmatprep.subr.bf16.mxu0 %v8952_v21  ;;  %v407_v21 = vld [vmem:[%s10206_s12 + $0x174] sm:$0xff] }
  0x7d   : > { %v8163_v30 = vcombine.low %v403_v20, %v407_v21 }
  0x7e   : > { %1528 = vmatmul.mubr.bf16.gmra.mrb[24].mxu0 %v8161_v25  ;;  %v9011_v25 = vld [vmem:[%s16020_s2 + $0x2b4] ss:$8 sps:$4 sm:$0xff]  }
  0x7f   : > { %1573 = vmatpush1.bf16.msra.mxu0 %v8950_v24  ;;  %1537 = vmatprep.mubr.bf16.mxu0 %v8169_v27  ;;  %v8164_v24 = vcombine.high %v403_v20, %v407_v21  ;;  %v9016_v27 = vld [vmem:[%s16020_s2 + $0x2c4] ss:$8 sps:$4 sm:$0xff]   ;;  %v412_v20 = vld [vmem:[%s10206_s12 + $0x198] sm:$0xff] }
  0x80   : > { %1574 = vmatprep.subr.bf16.mxu0 %v8955_v26  ;;  %v9009_v26 = vld [vmem:[%s16020_s2 + $0x2b0] ss:$8 sps:$4 sm:$0xff]  }
  0x81   : > { %v416_v21 = vld [vmem:[%s10206_s12 + $0x1b4] sm:$0xff] }
  0x83   : > { %1575 = vmatpush1.bf16.msra.mxu0 %v8953_v28  ;;  %v411_v28 = vld [vmem:[%s10206_s12 + $0x190] sm:$0xff] }
  0x84   : > { %1576 = vmatprep.subr.bf16.mxu0 %v8960_v29  ;;  %v415_v29 = vld [vmem:[%s10206_s12 + $0x1ac] sm:$0xff] }
  0x85   : > { %v8170_v42 = vcombine.low %v411_v28, %v415_v29 }
  0x86   : > { %1538 = vmatmul.mubr.bf16.gmra.mrb[28].mxu0 %v8168_v33  ;;  %v9019_v33 = vld [vmem:[%s16020_s2 + $0x2d4] ss:$8 sps:$4 sm:$0xff]  }
  0x87   : > { %1577 = vmatpush1.bf16.msra.mxu0 %v8958_v32  ;;  %1580 = vmatprep.mubr.bf16.mxu0 %v8122_v35  ;;  %v8171_v32 = vcombine.high %v411_v28, %v415_v29  ;;  %v9057_v35 = vld [vmem:[%s16021_s3 + $0x4] ss:$8 sps:$4 sm:$0xff]   ;;  %v365_v28 = vld [vmem:[%s10206_s12 + $0x50] sm:$0xf] }
  0x88   : > { %1578 = vmatprep.subr.bf16.mxu0 %v8963_v34  ;;  %v9055_v34 = vld [vmem:[%s16021_s3] ss:$8 sps:$4 sm:$0xff]   ;;  %2194 = vmatprep.subr.bf16.mxu1 %v9057_v35  ;;  %v369_v29 = vld [vmem:[%s10206_s12 + $0x6c] sm:$0xf]  ;;  %v385_v35 = vld [vmem:[%s10206_s12 + $0xdc] sm:$0xf] }
  0x89   : > { %2195 = vmatpush1.bf16.msra.mxu1 %v9055_v34  ;;  %v381_v34 = vld [vmem:[%s10206_s12 + $0xc0] sm:$0xf] }
  0x8a   : > { %2196 = vmatprep.subr.bf16.mxu1 %v9060_v37  ;;  %v389_v37 = vld [vmem:[%s10206_s12 + $0xf8] sm:$0xf] }
  0x8b   : > { %1579 = vmatpush1.bf16.msra.mxu0 %v8961_v36  ;;  %v9017_v36 = vld [vmem:[%s16020_s2 + $0x2d0] ss:$8 sps:$4 sm:$0xff]  }
  0x8c   : > { %1661 = vmatprep.subr.bf16.mxu0 %v8968_v39  ;;  %v356_v39 = vld [vmem:[%s10206_s12 + $0x10] sm:$0xff] }
  0x8d   : > { %2197 = vmatpush1.bf16.msra.mxu1 %v9058_v41  ;;  %v401_v41 = vld [vmem:[%s10206_s12 + $0x14c] sm:$0xf] }
  0x8e   : > { %1581 = vmatmul.mubr.bf16.vlgmr.msra.gmra.mrb[0].mxu0 %v8121_v45  ;;  %v9022_v45 = vld [vmem:[%s16020_s2 + $0x2e0] ss:$8 sps:$4 sm:$0xff]  }
  0x8f   : > { %1662 = vmatpush1.bf16.msra.mxu0 %v8966_v44  ;;  %1590 = vmatprep.mubr.bf16.mxu0 %v8129_v47  ;;  %v9063_v44 = vld [vmem:[%s16021_s3 + $0x24] ss:$8 sps:$4 sm:$0xff]   ;;  %v9027_v47 = vld [vmem:[%s16020_s2 + $0x2f4] ss:$8 sps:$4 sm:$0xff]  }
  0x90   : > { %1663 = vmatprep.subr.bf16.mxu0 %v8971_v46  ;;  %v8124_v46 = vcombine.high %v356_v39, %v360_v40  ;;  %2198 = vmatprep.subr.bf16.mxu1 %v9063_v44  ;;  %v405_v44 = vld [vmem:[%s10206_s12 + $0x168] sm:$0xf] }
  0x93   : > { %1664 = vmatpush1.bf16.msra.mxu0 %v8969_v48  ;;  %v9061_v48 = vld [vmem:[%s16021_s3 + $0x20] ss:$8 sps:$4 sm:$0xff]  }
  0x94   : > { %1665 = vmatprep.subr.bf16.mxu0 %v8976_v49  ;;  %v9066_v49 = vld [vmem:[%s16021_s3 + $0x34] ss:$8 sps:$4 sm:$0xff]   ;;  %2199 = vmatpush1.bf16.msra.mxu1 %v9061_v48  ;;  %v9079_v48 = vld [vmem:[%s16021_s3 + $0x80] ss:$8 sps:$4 sm:$0xff]  }
  0x95   : > { %2200 = vmatprep.subr.bf16.mxu1 %v9066_v49  ;;  %v9084_v49 = vld [vmem:[%s16021_s3 + $0x94] ss:$8 sps:$4 sm:$0xff]  }
  0x96   : > { %1591 = vmatmul.mubr.bf16.gmra.mrb[4].mxu0 %v8128_v53  ;;  %v9064_v53 = vld [vmem:[%s16021_s3 + $0x30] ss:$8 sps:$4 sm:$0xff]  }
  0x97   : > { %1666 = vmatpush1.bf16.msra.mxu0 %v8974_v52  ;;  %1600 = vmatprep.mubr.bf16.mxu0 %v8136_v57  ;;  %v368_v52 = vld [vmem:[%s10206_s12 + $0x64] sm:$0xff] }
  0x98   : > { %1667 = vmatprep.subr.bf16.mxu0 %v8979_v56  ;;  %v8123_v56 = vcombine.low %v356_v39, %v360_v40  ;;  %v9069_v57 = vld [vmem:[%s16021_s3 + $0x44] ss:$8 sps:$4 sm:$0xff]   ;;  %2201 = vmatpush1.bf16.msra.mxu1 %v9064_v53  ;;  %v397_v40 = vld [vmem:[%s10206_s12 + $0x130] sm:$0xf] }
  0x99   : > { %2202 = vmatprep.subr.bf16.mxu1 %v9069_v57  ;;  %v9087_v57 = vld [vmem:[%s16021_s3 + $0xa4] ss:$8 sps:$4 sm:$0xff]  }
  0x9b   : > { %1668 = vmatpush1.bf16.msra.mxu0 %v8977_v58  ;;  %v8131_v58 = vcombine.high %v364_v51, %v368_v52 }
  0x9c   : > { %1669 = vmatprep.subr.bf16.mxu0 %v8984_v59  ;;  %v9067_v59 = vld [vmem:[%s16021_s3 + $0x40] ss:$8 sps:$4 sm:$0xff]  }
  0x9d   : > { %2203 = vmatpush1.bf16.msra.mxu1 %v9067_v59  ;;  %v9090_v59 = vld [vmem:[%s16021_s3 + $0xb4] ss:$8 sps:$4 sm:$0xff]  }
  0x9e   : > { %1601 = vmatmul.mubr.bf16.gmra.mrb[8].mxu0 %v8135_v63  ;;  %v8130_v63 = vcombine.low %v364_v51, %v368_v52  ;;  %2204 = vmatprep.subr.bf16.mxu1 %v9072_v60  ;;  %v9082_v51 = vld [vmem:[%s16021_s3 + $0x90] ss:$8 sps:$4 sm:$0xff]  }
  0x9f   : > { %1670 = vmatpush1.bf16.msra.mxu0 %v8982_v62  ;;  %1610 = vmatprep.mubr.bf16.mxu0 %v8143_v1  ;;  %v376_v62 = vld [vmem:[%s10206_s12 + $0x9c] sm:$0xff]  ;;  %v9088_v60 = vld [vmem:[%s16021_s3 + $0xb0] ss:$8 sps:$4 sm:$0xff]  }
  0xa0   : > { %1671 = vmatprep.subr.bf16.mxu0 %v8987_v0  ;;  %v9075_v0 = vld [vmem:[%s16021_s3 + $0x64] ss:$8 sps:$4 sm:$0xff]   ;;  %v8138_v1 = vcombine.high %v372_v61, %v376_v62 }
  0xa3   : > { %1672 = vmatpush1.bf16.msra.mxu0 %v8985_v2  ;;  %v9078_v2 = vld [vmem:[%s16021_s3 + $0x74] ss:$8 sps:$4 sm:$0xff]  }
  0xa4   : > { %1673 = vmatprep.subr.bf16.mxu0 %v8992_v3  ;;  %v380_v3 = vld [vmem:[%s10206_s12 + $0xb8] sm:$0xff] }
  0xa6   : > { %1611 = vmatmul.mubr.bf16.gmra.mrb[12].mxu0 %v8142_v6  ;;  %v8137_v6 = vcombine.low %v372_v61, %v376_v62  ;;  %v2023_v61 = vld [vmem:[%s16021_s3 + $0xc0] sm:$0xff] }
  0xa7   : > { %1674 = vmatpush1.bf16.msra.mxu0 %v8990_v7  ;;  %1620 = vmatprep.mubr.bf16.mxu0 %v8150_v8  ;;  %v8145_v7 = vcombine.high %v380_v3, %v384_v4  ;;  %v388_v8 = vld [vmem:[%s10206_s12 + $0xf0] sm:$0xff]  ;;  %v8307_v62 = vcombine.high %v2023_v61, %v2023_v61 }
  0xa8   : > { %1675 = vmatprep.subr.bf16.mxu0 %v8995_v9  ;;  %v392_v9 = vld [vmem:[%s10206_s12 + $0x10c] sm:$0xff] }
  0xab   : > { %1676 = vmatpush1.bf16.msra.mxu0 %v8993_v10  ;;  %v8144_v10 = vcombine.low %v380_v3, %v384_v4  ;;  %v628_v3 = vld [vmem:[%s16023_s5] ss:$8 sm:$0x3] }
  0xac   : > { %1677 = vmatprep.subr.bf16.mxu0 %v9000_v11  ;;  %v8152_v11 = vcombine.high %v388_v8, %v392_v9 }
  0xae   : > { %1621 = vmatmul.mubr.bf16.gmra.mrb[16].mxu0 %v8149_v14  ;;  %v8151_v14 = vcombine.low %v388_v8, %v392_v9 }
  0xaf   : > { %1678 = vmatpush1.bf16.msra.mxu0 %v8998_v15  ;;  %1630 = vmatprep.mubr.bf16.mxu0 %v8157_v16  ;;  %v8159_v15 = vcombine.high %v396_v12, %v400_v13  ;;  %v404_v16 = vld [vmem:[%s10206_s12 + $0x160] sm:$0xff] }
  0xb0   : > { %1679 = vmatprep.subr.bf16.mxu0 %v9003_v17  ;;  %v408_v17 = vld [vmem:[%s10206_s12 + $0x17c] sm:$0xff] }
  0xb3   : > { %1680 = vmatpush1.bf16.msra.mxu0 %v9001_v18  ;;  %v8158_v18 = vcombine.low %v396_v12, %v400_v13 }
  0xb4   : > { %1681 = vmatprep.subr.bf16.mxu0 %v9008_v19  ;;  %v8166_v19 = vcombine.high %v404_v16, %v408_v17 }
  0xb6   : > { %1631 = vmatmul.mubr.bf16.gmra.mrb[20].mxu0 %v8156_v22  ;;  %v8165_v22 = vcombine.low %v404_v16, %v408_v17 }
  0xb7   : > { %1682 = vmatpush1.bf16.msra.mxu0 %v9006_v23  ;;  %1640 = vmatprep.mubr.bf16.mxu0 %v8164_v24  ;;  %v8173_v23 = vcombine.high %v412_v20, %v416_v21  ;;  %v8172_v24 = vcombine.low %v412_v20, %v416_v21 }
  0xb8   : > { %1683 = vmatprep.subr.bf16.mxu0 %v9011_v25  ;;  %v357_v25 = vld [vmem:[%s10206_s12 + $0x18] sm:$0xf] }
  0xbb   : > { %1684 = vmatpush1.bf16.msra.mxu0 %v9009_v26  ;;  %v361_v26 = vld [vmem:[%s10206_s12 + $0x34] sm:$0xf] }
  0xbc   : > { %1685 = vmatprep.subr.bf16.mxu0 %v9016_v27  ;;  %v8125_v27 = vcombine.low %v357_v25, %v361_v26 }
  0xbe   : > { %1641 = vmatmul.mubr.bf16.gmra.mrb[24].mxu0 %v8163_v30  ;;  %v8132_v30 = vcombine.low %v365_v28, %v369_v29 }
  0xbf   : > { %1686 = vmatpush1.bf16.msra.mxu0 %v9014_v31  ;;  %1650 = vmatprep.mubr.bf16.mxu0 %v8171_v32  ;;  %v373_v31 = vld [vmem:[%s10206_s12 + $0x88] sm:$0xf]  ;;  %v377_v32 = vld [vmem:[%s10206_s12 + $0xa4] sm:$0xf] }
  0xc0   : > { %1687 = vmatprep.subr.bf16.mxu0 %v9019_v33  ;;  %v8139_v33 = vcombine.low %v373_v31, %v377_v32 }
  0xc3   : > { %1688 = vmatpush1.bf16.msra.mxu0 %v9017_v36  ;;  %v8146_v36 = vcombine.low %v381_v34, %v385_v35 }
  0xc4   : > { %1689 = vmatprep.subr.bf16.mxu0 %v9024_v38  ;;  %v393_v38 = vld [vmem:[%s10206_s12 + $0x114] sm:$0xf] }
  0xc5   : > { %v8153_v39 = vcombine.low %v389_v37, %v393_v38 }
  0xc6   : > { %1651 = vmatmul.mubr.bf16.gmra.mrb[28].mxu0 %v8170_v42  ;;  %v8160_v42 = vcombine.low %v397_v40, %v401_v41 }
  0xc7   : > { %1690 = vmatpush1.bf16.msra.mxu0 %v9022_v45  ;;  %1693 = vmatprep.mubr.bf16.mxu0 %v8124_v46  ;;  %v409_v45 = vld [vmem:[%s10206_s12 + $0x184] sm:$0xf] }
  0xc8   : > { %1691 = vmatprep.subr.bf16.mxu0 %v9027_v47  ;;  %v8167_v46 = vcombine.low %v405_v44, %v409_v45  ;;  %v9081_v47 = vld [vmem:[%s16021_s3 + $0x84] ss:$8 sps:$4 sm:$0xff]  }
  0xcb   : > { %1692 = vmatpush1.bf16.msra.mxu0 %v9025_v50 }
  0xcc   : > { %1774 = vmatprep.subr.bf16.mxu0 %v10314_v55  ;;  %v9070_v55 = vld [vmem:[%s16021_s3 + $0x50] ss:$8 sps:$4 sm:$0xff]  }
  0xcd   : > { %2205 = vmatpush1.bf16.msra.mxu1 %v9070_v55  ;;  %v8306_v55 = vcombine.low %v2023_v61, %v2023_v61 }
  0xce   : > { %1694 = vmatmul.mubr.bf16.vlgmr.msra.gmra.mrb[0].mxu0 %v8123_v56  ;;  %2206 = vmatprep.subr.bf16.mxu1 %v9075_v0  ;;  %v9095_v0 = vld [vmem:[%s16021_s3 + $0xcc] ss:$8 sps:$4 sm:$0xff]  }
  0xcf   : > { %1775 = vmatpush1.bf16.msra.mxu0 %v10309_v54  ;;  %1703 = vmatprep.mubr.bf16.mxu0 %v8131_v58  ;;  %v9073_v54 = vld [vmem:[%s16021_s3 + $0x60] ss:$8 sps:$4 sm:$0xff]  }
  0xd0   : > { %v9085_v58 = vld [vmem:[%s16021_s3 + $0xa0] ss:$8 sps:$4 sm:$0xff]  }
  0xd1   : > { %2207 = vmatpush1.bf16.msra.mxu1 %v9073_v54 }
  0xd2   : > { %2208 = vmatprep.subr.bf16.mxu1 %v9078_v2 }
  0xd5   : > { %2209 = vmatpush1.bf16.msra.mxu1 %v9076_v5 }
  0xd6   : > { %1704 = vmatmul.mubr.bf16.gmra.mrb[4].mxu0 %v8130_v63  ;;  %2210 = vmatprep.subr.bf16.mxu1 %v9081_v47  ;;  %v2189_v63 = vsel %vm2187_vm1, %v8306_v55, 0  ;;  %v9096_v55 = vld [vmem:[%s16021_s3 + $0xd8] ss:$8 sps:$4 sm:$0xff]  }
  0xd7   : > { %1713 = vmatprep.mubr.bf16.mxu0 %v8138_v1  ;;  %v16027_v1 = vlaneseq }
  0xd9   : > { %2211 = vmatpush1.bf16.msra.mxu1 %v9079_v48  ;;  %v10638_v54 = vshrl.u32 %v16027_v1, 7 }
  0xda   : > { %2212 = vmatprep.subr.bf16.mxu1 %v9084_v49 }
  0xdb   : > { %16131 = vst [vmem:[#allocation2_spill] sm:$0xff] %v10638_v54  ;;  %v10641_v2 = vsub.s32 0, %v10638_v54  ;;  %v10647_v4 = vsub.s32 1, %v10638_v54 }
  0xdd   : > { %2213 = vmatpush1.bf16.msra.mxu1 %v9082_v51  ;;  %16132 = vst [vmem:[#allocation3_spill] sm:$0xff] %v10641_v2  ;;  %16133 = vst [vmem:[#allocation4_spill] sm:$0xff] %v10647_v4  ;;  %v10650_v5 = vrot.slane %v628_v3, %v10641_v2  ;;  %v9093_v51 = vld [vmem:[%s16021_s3 + $0xc8] ss:$8 sps:$4 sm:$0xff]  }
  0xde   : > { %1714 = vmatmul.mubr.bf16.gmra.mrb[8].mxu0 %v8137_v6  ;;  %2214 = vmatprep.subr.bf16.mxu1 %v9087_v57  ;;  %v10653_v6 = vrot.slane %v628_v3, %v10647_v4 }
  0xdf   : > { %1723 = vmatprep.mubr.bf16.mxu0 %v8145_v7 }
  0xe1   : > { %2215 = vmatpush1.bf16.msra.mxu1 %v9085_v58 }
  0xe2   : > { %2216 = vmatprep.subr.bf16.mxu1 %v9090_v59 }
  0xe5   : > { %2217 = vmatpush1.bf16.msra.mxu1 %v9088_v60 }
  0xe6   : > { %1724 = vmatmul.mubr.bf16.gmra.mrb[12].mxu0 %v8144_v10  ;;  %8308 = vmatprep.subr.msk.bf16.mxu1 %vm2187_vm1, %v8307_v62 }
  0xe7   : > { %1733 = vmatprep.mubr.bf16.mxu0 %v8152_v11 }
  0xe9   : > { %2219 = vmatpush1.bf16.msra.mxu1 %v2189_v63 }
  0xea   : > { %2613 = vmatprep.subr.bf16.mxu1 %v9095_v0  ;;  %v9101_v0 = vld [vmem:[%s16021_s3 + $0xec] ss:$8 sps:$4 sm:$0xff]  }
  0xee   : > { %1734 = vmatmul.mubr.bf16.gmra.mrb[16].mxu0 %v8151_v14 }
  0xef   : > { %1743 = vmatprep.mubr.bf16.mxu0 %v8159_v15 }
  0xf6   : > { %1744 = vmatmul.mubr.bf16.gmra.mrb[20].mxu0 %v8158_v18 }
  0xf7   : > { %1753 = vmatprep.mubr.bf16.mxu0 %v8166_v19 }
  0xfe   : > { %1754 = vmatmul.mubr.bf16.gmra.mrb[24].mxu0 %v8165_v22 }
  0xff   : > { %1763 = vmatprep.mubr.bf16.mxu0 %v8173_v23 }
 0x106   : > { %1764 = vmatmul.mubr.bf16.gmra.mrb[28].mxu0 %v8172_v24 }
 0x107   : > { %1806 = vmatprep.mubr.bf16.mxu0 %v16028_v43 }
 0x10e   : > { %8273 = vmatmul.mubr.msk.bf16.vlgmr.msra.gmra.mrb[0].mxu0 %vm1410_vm0, %v8125_v27 }
 0x10f   : > { %1816 = vmatprep.mubr.bf16.mxu0 %v16028_v43 }
 0x116   : > { %8274 = vmatmul.mubr.msk.bf16.gmra.mrb[4].mxu0 %vm1410_vm0, %v8132_v30 }
 0x117   : > { %1826 = vmatprep.mubr.bf16.mxu0 %v16028_v43 }
 0x11e   : > { %8275 = vmatmul.mubr.msk.bf16.gmra.mrb[8].mxu0 %vm1410_vm0, %v8139_v33 }
 0x11f   : > { %1836 = vmatprep.mubr.bf16.mxu0 %v16028_v43 }
 0x126   : > { %8276 = vmatmul.mubr.msk.bf16.gmra.mrb[12].mxu0 %vm1410_vm0, %v8146_v36 }
 0x127   : > { %1846 = vmatprep.mubr.bf16.mxu0 %v16028_v43 }
 0x129   : > { %v1878_v50 = vpop.f32.mrb[0].mxu1 }
 0x12a   : > { %v1880_v52 = vpop.f32.mrb[1].mxu1 }
 0x12b   : > { %v1882_v53 = vpop.f32.mrb[2].mxu1 }
 0x12c   : > { %v1884_v56 = vpop.f32.mrb[3].mxu1 }
 0x12e   : > { %8277 = vmatmul.mubr.msk.bf16.gmra.mrb[16].mxu0 %vm1410_vm0, %v8153_v39 }
 0x12f   : > { %1856 = vmatprep.mubr.bf16.mxu0 %v16028_v43 }
 0x136   : > { %8278 = vmatmul.mubr.msk.bf16.gmra.mrb[20].mxu0 %vm1410_vm0, %v8160_v42 }
 0x137   : > { %1866 = vmatprep.mubr.bf16.mxu0 %v16028_v43 }
 0x13e   : > { %8279 = vmatmul.mubr.msk.bf16.gmra.mrb[24].mxu0 %vm1410_vm0, %v8167_v46 }
 0x1d9   : > { %v1765_v7 = vpop.f32.mrb[28].mxu0 }
 0x1da   : > { %v8740_v8 = vadd.f32 %v1765_v7, %v10650_v5  ;;  %v1767_v9 = vpop.f32.mrb[29].mxu0 }
 0x1db   : > { %v8742_v10 = vadd.f32 %v1767_v9, %v10653_v6  ;;  %v1769_v11 = vpop.f32.mrb[30].mxu0 }
 0x1dc   : > { %v8744_v12 = vadd.f32 %v1769_v11, %v10650_v5  ;;  %v8741_v13 = vadd.f32 %v8740_v8, %v1878_v50  ;;  %v1771_v14 = vpop.f32.mrb[31].mxu0 }
 0x1dd   : > { %v8746_v15 = vadd.f32 %v1771_v14, %v10653_v6  ;;  %v8743_v16 = vadd.f32 %v8742_v10, %v1880_v52 }
 0x1de   : > { %v1947_v17 = vmul.f32 0.01, %v8741_v13  ;;  %v8745_v18 = vadd.f32 %v8744_v12, %v1882_v53  ;;  %vm1915_vm2 = vcmp.gt.f32.partialorder %v8741_v13, 0.0 }
 0x1df   : > { %v1948_v19 = vmul.f32 0.01, %v8743_v16  ;;  %v8747_v20 = vadd.f32 %v8746_v15, %v1884_v56  ;;  %vm1916_vm3 = vcmp.gt.f32.partialorder %v8743_v16, 0.0  ;;  %v9098_v56 = vld [vmem:[%s16021_s3 + $0xdc] ss:$8 sps:$4 sm:$0xff]  }
 0x1e0   : > { %vm1917_vm4 = vcmp.gt.f32.partialorder %v8745_v18, 0.0  ;;  %v1949_v21 = vmul.f32 0.01, %v8745_v18  ;;  %v10660_v26 = vsel %vm1915_vm2, %v8741_v13, %v1947_v17  ;;  %v9099_v15 = vld [vmem:[%s16021_s3 + $0xe8] ss:$8 sps:$4 sm:$0xff]  }
 0x1e1   : > { %vm1918_vm5 = vcmp.gt.f32.partialorder %v8747_v20, 0.0  ;;  %v1950_v22 = vmul.f32 0.01, %v8747_v20  ;;  %v1808_v23 = vpop.f32.mrb[0].mxu0  ;;  %v10664_v28 = vsel %vm1916_vm3, %v8743_v16, %v1948_v19 }
 0x1e2   : > { %v8712_v24 = vadd.f32 %v1808_v23, %v10650_v5  ;;  %v1810_v25 = vpop.f32.mrb[1].mxu0  ;;  %v10662_v27 = vsel %vm1917_vm4, %v8745_v18, %v1949_v21  ;;  %v9104_v18 = vld [vmem:[%s16021_s3 + $0xfc] ss:$8 sps:$4 sm:$0xff]  }
 0x1e3   : > { %v10666_v29 = vsel %vm1918_vm5, %v8747_v20, %v1950_v22  ;;  %v8713_v30 = vadd.f32 %v1810_v25, %v10653_v6  ;;  %v1812_v31 = vpop.f32.mrb[2].mxu0  ;;  %v1997_v32 = vpack.c.bf16 %v10662_v27, %v10660_v26  ;;  %v9102_v25 = vld [vmem:[%s16021_s3 + $0xf8] ss:$8 sps:$4 sm:$0xff]   ;;  %v9133_v27 = vld [vmem:[%s16021_s3 + $0x194] ss:$8 sps:$4 sm:$0xff]  }
 0x1e4   : > { %v1998_v33 = vpack.c.bf16 %v10666_v29, %v10664_v28  ;;  %v1919_v34 = vmul.f32 0.01, %v8712_v24  ;;  %v8714_v35 = vadd.f32 %v1812_v31, %v10650_v5  ;;  %v1814_v36 = vpop.f32.mrb[3].mxu0  ;;  %vm1887_vm6 = vcmp.gt.f32.partialorder %v8712_v24, 0.0  ;;  %v9107_v31 = vld [vmem:[%s16021_s3 + $0x10c] ss:$8 sps:$4 sm:$0xff]  }
 0x1e5   : > { %v1920_v37 = vmul.f32 0.01, %v8713_v30  ;;  %v8715_v38 = vadd.f32 %v1814_v36, %v10653_v6  ;;  %vm1888_vm7 = vcmp.gt.f32.partialorder %v8713_v30, 0.0  ;;  %v8341_v28 = vld [vmem:[%s16021_s3 + $0x188] sm:$0xff] }
 0x1e6   : > { %vm1889_vm8 = vcmp.gt.f32.partialorder %v8714_v35, 0.0  ;;  %v1921_v39 = vmul.f32 0.01, %v8714_v35  ;;  %v1951_v41 = vsel %vm1887_vm6, %v8712_v24, %v1919_v34  ;;  %v8368_v29 = vcombine.high %v8341_v28, %v8341_v28 }
 0x1e7   : > { %vm1890_vm9 = vcmp.gt.f32.partialorder %v8715_v38, 0.0  ;;  %v1922_v40 = vmul.f32 0.01, %v8715_v38  ;;  %v1952_v44 = vsel %vm1888_vm7, %v8713_v30, %v1920_v37 }
 0x1e8   : > { %v1953_v42 = vsel %vm1889_vm8, %v8714_v35, %v1921_v39 }
 0x1e9   : > { %v1983_v45 = vpack.c.bf16 %v1953_v42, %v1951_v41  ;;  %v1954_v46 = vsel %vm1890_vm9, %v8715_v38, %v1922_v40  ;;  %v1818_v47 = vpop.f32.mrb[4].mxu0 }
 0x1ea   : > { %v1984_v48 = vpack.c.bf16 %v1954_v46, %v1952_v44  ;;  %v8716_v49 = vadd.f32 %v1818_v47, %v10650_v5  ;;  %v1820_v50 = vpop.f32.mrb[5].mxu0  ;;  %v9105_v44 = vld [vmem:[%s16021_s3 + $0x108] ss:$8 sps:$4 sm:$0xff]   ;;  %v9110_v47 = vld [vmem:[%s16021_s3 + $0x11c] ss:$8 sps:$4 sm:$0xff]  }
 0x1eb   : > { %v8717_v52 = vadd.f32 %v1820_v50, %v10653_v6  ;;  %v1822_v53 = vpop.f32.mrb[6].mxu0 }
 0x1ec   : > { %v1923_v57 = vmul.f32 0.01, %v8716_v49  ;;  %v8718_v58 = vadd.f32 %v1822_v53, %v10650_v5  ;;  %v1824_v59 = vpop.f32.mrb[7].mxu0  ;;  %8309 = vmatprep.mubr.msk.bf16.mxu1 %vm2162_vm10, %v1984_v48  ;;  %vm1891_vm11 = vcmp.gt.f32.partialorder %v8716_v49, 0.0 }
 0x1ed   : > { %v1924_v60 = vmul.f32 0.01, %v8717_v52  ;;  %v8719_v61 = vadd.f32 %v1824_v59, %v10653_v6  ;;  %2227 = vmatmul.mubr.bf16.vlgmr.msra.gmra.mrb[4].mxu1 %v1983_v45  ;;  %vm1892_vm12 = vcmp.gt.f32.partialorder %v8717_v52, 0.0 }
 0x1ee   : > { %vm1893_vm13 = vcmp.gt.f32.partialorder %v8718_v58, 0.0  ;;  %v1925_v62 = vmul.f32 0.01, %v8718_v58  ;;  %2614 = vmatpush1.bf16.msra.mxu1 %v9093_v51  ;;  %v1955_v3 = vsel %vm1891_vm11, %v8716_v49, %v1923_v57 }
 0x1ef   : > { %vm1894_vm14 = vcmp.gt.f32.partialorder %v8719_v61, 0.0  ;;  %v1926_v63 = vmul.f32 0.01, %v8719_v61  ;;  %2615 = vmatprep.subr.bf16.mxu1 %v9098_v56  ;;  %v1956_v8 = vsel %vm1892_vm12, %v8717_v52, %v1924_v60  ;;  %v9108_v56 = vld [vmem:[%s16021_s3 + $0x118] ss:$8 sps:$4 sm:$0xff]  }
 0x1f0   : > { %v1957_v7 = vsel %vm1893_vm13, %v8718_v58, %v1925_v62  ;;  %v9113_v58 = vld [vmem:[%s16021_s3 + $0x12c] ss:$8 sps:$4 sm:$0xff]  }
 0x1f1   : > { %v1958_v9 = vsel %vm1894_vm14, %v8719_v61, %v1926_v63  ;;  %v1828_v10 = vpop.f32.mrb[8].mxu0  ;;  %v1985_v11 = vpack.c.bf16 %v1957_v7, %v1955_v3 }
 0x1f2   : > { %v1986_v12 = vpack.c.bf16 %v1958_v9, %v1956_v8  ;;  %v8720_v13 = vadd.f32 %v1828_v10, %v10650_v5  ;;  %v1830_v14 = vpop.f32.mrb[9].mxu0  ;;  %2616 = vmatpush1.bf16.msra.mxu1 %v9096_v55  ;;  %v9111_v8 = vld [vmem:[%s16021_s3 + $0x128] ss:$8 sps:$4 sm:$0xff]  }
 0x1f3   : > { %v8721_v16 = vadd.f32 %v1830_v14, %v10653_v6  ;;  %v1832_v17 = vpop.f32.mrb[10].mxu0  ;;  %2617 = vmatprep.subr.bf16.mxu1 %v9101_v0 }
 0x1f4   : > { %v1927_v19 = vmul.f32 0.01, %v8720_v13  ;;  %v8722_v20 = vadd.f32 %v1832_v17, %v10650_v5  ;;  %v1834_v21 = vpop.f32.mrb[11].mxu0  ;;  %8310 = vmatprep.mubr.msk.bf16.mxu1 %vm2162_vm10, %v1986_v12  ;;  %vm1895_vm15 = vcmp.gt.f32.partialorder %v8720_v13, 0.0 }
 0x1f5   : > { %v1928_v22 = vmul.f32 0.01, %v8721_v16  ;;  %v8723_v23 = vadd.f32 %v1834_v21, %v10653_v6  ;;  %2237 = vmatmul.mubr.bf16.gmra.mrb[8].mxu1 %v1985_v11  ;;  %vm1896_vm2 = vcmp.gt.f32.partialorder %v8721_v16, 0.0  ;;  %v9116_v11 = vld [vmem:[%s16021_s3 + $0x13c] ss:$8 sps:$4 sm:$0xff]  }
 0x1f6   : > { %vm1897_vm3 = vcmp.gt.f32.partialorder %v8722_v20, 0.0  ;;  %v1929_v24 = vmul.f32 0.01, %v8722_v20  ;;  %2618 = vmatpush1.bf16.msra.mxu1 %v9099_v15  ;;  %v1959_v34 = vsel %vm1895_vm15, %v8720_v13, %v1927_v19 }
 0x1f7   : > { %vm1898_vm4 = vcmp.gt.f32.partialorder %v8723_v23, 0.0  ;;  %v1930_v30 = vmul.f32 0.01, %v8723_v23  ;;  %2619 = vmatprep.subr.bf16.mxu1 %v9104_v18  ;;  %v1960_v36 = vsel %vm1896_vm2, %v8721_v16, %v1928_v22  ;;  %v9114_v18 = vld [vmem:[%s16021_s3 + $0x138] ss:$8 sps:$4 sm:$0xff]  }
 0x1f8   : > { %v1961_v35 = vsel %vm1897_vm3, %v8722_v20, %v1929_v24  ;;  %v9119_v20 = vld [vmem:[%s16021_s3 + $0x14c] ss:$8 sps:$4 sm:$0xff]  }
 0x1f9   : > { %v1962_v37 = vsel %vm1898_vm4, %v8723_v23, %v1930_v30  ;;  %v1838_v38 = vpop.f32.mrb[12].mxu0  ;;  %v1987_v39 = vpack.c.bf16 %v1961_v35, %v1959_v34 }
 0x1fa   : > { %v1988_v40 = vpack.c.bf16 %v1962_v37, %v1960_v36  ;;  %v8724_v41 = vadd.f32 %v1838_v38, %v10650_v5  ;;  %v1840_v42 = vpop.f32.mrb[13].mxu0  ;;  %2620 = vmatpush1.bf16.msra.mxu1 %v9102_v25  ;;  %v9117_v36 = vld [vmem:[%s16021_s3 + $0x148] ss:$8 sps:$4 sm:$0xff]  }
 0x1fb   : > { %v8725_v45 = vadd.f32 %v1840_v42, %v10653_v6  ;;  %v1842_v46 = vpop.f32.mrb[14].mxu0  ;;  %2621 = vmatprep.subr.bf16.mxu1 %v9107_v31 }
 0x1fc   : > { %v1931_v48 = vmul.f32 0.01, %v8724_v41  ;;  %v8726_v49 = vadd.f32 %v1842_v46, %v10650_v5  ;;  %v1844_v50 = vpop.f32.mrb[15].mxu0  ;;  %8311 = vmatprep.mubr.msk.bf16.mxu1 %vm2162_vm10, %v1988_v40  ;;  %vm1899_vm5 = vcmp.gt.f32.partialorder %v8724_v41, 0.0 }
 0x1fd   : > { %v1932_v51 = vmul.f32 0.01, %v8725_v45  ;;  %v8727_v52 = vadd.f32 %v1844_v50, %v10653_v6  ;;  %2247 = vmatmul.mubr.bf16.gmra.mrb[12].mxu1 %v1987_v39  ;;  %vm1900_vm6 = vcmp.gt.f32.partialorder %v8725_v45, 0.0  ;;  %v9122_v39 = vld [vmem:[%s16021_s3 + $0x15c] ss:$8 sps:$4 sm:$0xff]  }
 0x1fe   : > { %vm1901_vm7 = vcmp.gt.f32.partialorder %v8726_v49, 0.0  ;;  %v1933_v53 = vmul.f32 0.01, %v8726_v49  ;;  %2622 = vmatpush1.bf16.msra.mxu1 %v9105_v44  ;;  %v1963_v59 = vsel %vm1899_vm5, %v8724_v41, %v1931_v48 }
 0x1ff   : > { %vm1902_vm8 = vcmp.gt.f32.partialorder %v8727_v52, 0.0  ;;  %v1934_v57 = vmul.f32 0.01, %v8727_v52  ;;  %2623 = vmatprep.subr.bf16.mxu1 %v9110_v47  ;;  %v1964_v61 = vsel %vm1900_vm6, %v8725_v45, %v1932_v51  ;;  %v9120_v47 = vld [vmem:[%s16021_s3 + $0x158] ss:$8 sps:$4 sm:$0xff]  }
 0x200   : > { %v1965_v60 = vsel %vm1901_vm7, %v8726_v49, %v1933_v53  ;;  %v9125_v49 = vld [vmem:[%s16021_s3 + $0x16c] ss:$8 sps:$4 sm:$0xff]  }
 0x201   : > { %v1966_v62 = vsel %vm1902_vm8, %v8727_v52, %v1934_v57  ;;  %v1848_v55 = vpop.f32.mrb[16].mxu0  ;;  %v1989_v63 = vpack.c.bf16 %v1965_v60, %v1963_v59 }
 0x202   : > { %v1990_v0 = vpack.c.bf16 %v1966_v62, %v1964_v61  ;;  %v8728_v3 = vadd.f32 %v1848_v55, %v10650_v5  ;;  %v1850_v7 = vpop.f32.mrb[17].mxu0  ;;  %2624 = vmatpush1.bf16.msra.mxu1 %v9108_v56  ;;  %v9123_v61 = vld [vmem:[%s16021_s3 + $0x168] ss:$8 sps:$4 sm:$0xff]  }
 0x203   : > { %v8729_v9 = vadd.f32 %v1850_v7, %v10653_v6  ;;  %v1852_v10 = vpop.f32.mrb[18].mxu0  ;;  %2625 = vmatprep.subr.bf16.mxu1 %v9113_v58 }
 0x204   : > { %v1935_v12 = vmul.f32 0.01, %v8728_v3  ;;  %v8730_v13 = vadd.f32 %v1852_v10, %v10650_v5  ;;  %v1854_v14 = vpop.f32.mrb[19].mxu0  ;;  %8312 = vmatprep.mubr.msk.bf16.mxu1 %vm2162_vm10, %v1990_v0  ;;  %vm1903_vm9 = vcmp.gt.f32.partialorder %v8728_v3, 0.0 }
 0x205   : > { %v1936_v15 = vmul.f32 0.01, %v8729_v9  ;;  %v8731_v16 = vadd.f32 %v1854_v14, %v10653_v6  ;;  %2257 = vmatmul.mubr.bf16.gmra.mrb[16].mxu1 %v1989_v63  ;;  %vm1904_vm11 = vcmp.gt.f32.partialorder %v8729_v9, 0.0 }
 0x206   : > { %vm1905_vm12 = vcmp.gt.f32.partialorder %v8730_v13, 0.0  ;;  %v1937_v17 = vmul.f32 0.01, %v8730_v13  ;;  %2626 = vmatpush1.bf16.msra.mxu1 %v9111_v8  ;;  %v1967_v21 = vsel %vm1903_vm9, %v8728_v3, %v1935_v12 }
 0x207   : > { %vm1906_vm13 = vcmp.gt.f32.partialorder %v8731_v16, 0.0  ;;  %v1938_v19 = vmul.f32 0.01, %v8731_v16  ;;  %2627 = vmatprep.subr.bf16.mxu1 %v9116_v11  ;;  %v1968_v23 = vsel %vm1904_vm11, %v8729_v9, %v1936_v15 }
 0x208   : > { %v1969_v22 = vsel %vm1905_vm12, %v8730_v13, %v1937_v17 }
 0x209   : > { %v1970_v24 = vsel %vm1906_vm13, %v8731_v16, %v1938_v19  ;;  %v1858_v25 = vpop.f32.mrb[20].mxu0  ;;  %v1991_v30 = vpack.c.bf16 %v1969_v22, %v1967_v21  ;;  %v9126_v16 = vld [vmem:[%s16021_s3 + $0x178] ss:$8 sps:$4 sm:$0xff]  }
 0x20a   : > { %v1992_v31 = vpack.c.bf16 %v1970_v24, %v1968_v23  ;;  %v8732_v34 = vadd.f32 %v1858_v25, %v10650_v5  ;;  %v1860_v35 = vpop.f32.mrb[21].mxu0  ;;  %2628 = vmatpush1.bf16.msra.mxu1 %v9114_v18 }
 0x20b   : > { %v8733_v37 = vadd.f32 %v1860_v35, %v10653_v6  ;;  %v1862_v38 = vpop.f32.mrb[22].mxu0  ;;  %2629 = vmatprep.subr.bf16.mxu1 %v9119_v20 }
 0x20c   : > { %v1939_v40 = vmul.f32 0.01, %v8732_v34  ;;  %v8734_v41 = vadd.f32 %v1862_v38, %v10650_v5  ;;  %v1864_v42 = vpop.f32.mrb[23].mxu0  ;;  %8313 = vmatprep.mubr.msk.bf16.mxu1 %vm2162_vm10, %v1992_v31  ;;  %vm1907_vm14 = vcmp.gt.f32.partialorder %v8732_v34, 0.0 }
 0x20d   : > { %v1940_v44 = vmul.f32 0.01, %v8733_v37  ;;  %v8735_v45 = vadd.f32 %v1864_v42, %v10653_v6  ;;  %2267 = vmatmul.mubr.bf16.gmra.mrb[20].mxu1 %v1991_v30  ;;  %vm1908_vm15 = vcmp.gt.f32.partialorder %v8733_v37, 0.0 }
 0x20e   : > { %vm1909_vm2 = vcmp.gt.f32.partialorder %v8734_v41, 0.0  ;;  %v1941_v46 = vmul.f32 0.01, %v8734_v41  ;;  %2630 = vmatpush1.bf16.msra.mxu1 %v9117_v36  ;;  %v1971_v50 = vsel %vm1907_vm14, %v8732_v34, %v1939_v40 }
 0x20f   : > { %vm1910_vm3 = vcmp.gt.f32.partialorder %v8735_v45, 0.0  ;;  %v1942_v48 = vmul.f32 0.01, %v8735_v45  ;;  %2631 = vmatprep.subr.bf16.mxu1 %v9122_v39  ;;  %v1972_v52 = vsel %vm1908_vm15, %v8733_v37, %v1940_v44 }
 0x210   : > { %v1973_v51 = vsel %vm1909_vm2, %v8734_v41, %v1941_v46 }
 0x211   : > { %v1974_v53 = vsel %vm1910_vm3, %v8735_v45, %v1942_v48  ;;  %v1868_v56 = vpop.f32.mrb[24].mxu0  ;;  %v1993_v57 = vpack.c.bf16 %v1973_v51, %v1971_v50  ;;  %v9136_v50 = vld [vmem:[%s16021_s3 + $0x1a4] ss:$8 sps:$4 sm:$0xff]  }
 0x212   : > { %v1994_v58 = vpack.c.bf16 %v1974_v53, %v1972_v52  ;;  %v8736_v59 = vadd.f32 %v1868_v56, %v10650_v5  ;;  %v1870_v60 = vpop.f32.mrb[25].mxu0  ;;  %2632 = vmatpush1.bf16.msra.mxu1 %v9120_v47  ;;  %v9131_v47 = vld [vmem:[%s16021_s3 + $0x190] ss:$8 sps:$4 sm:$0xff]  }
 0x213   : > { %v8737_v62 = vadd.f32 %v1870_v60, %v10653_v6  ;;  %v1872_v55 = vpop.f32.mrb[26].mxu0  ;;  %2633 = vmatprep.subr.bf16.mxu1 %v9125_v49 }
 0x214   : > { %v1943_v63 = vmul.f32 0.01, %v8736_v59  ;;  %v8738_v0 = vadd.f32 %v1872_v55, %v10650_v5  ;;  %v1874_v3 = vpop.f32.mrb[27].mxu0  ;;  %8314 = vmatprep.mubr.msk.bf16.mxu1 %vm2162_vm10, %v1994_v58  ;;  %vm1911_vm4 = vcmp.gt.f32.partialorder %v8736_v59, 0.0 }
 0x215   : > { %v1944_v7 = vmul.f32 0.01, %v8737_v62  ;;  %v8739_v8 = vadd.f32 %v1874_v3, %v10653_v6  ;;  %2277 = vmatmul.mubr.bf16.gmra.mrb[24].mxu1 %v1993_v57  ;;  %vm1912_vm5 = vcmp.gt.f32.partialorder %v8737_v62, 0.0  ;;  %v9128_v6 = vld [vmem:[%s16021_s3 + $0x17c] ss:$8 sps:$4 sm:$0xff]  }
 0x216   : > { %vm1913_vm6 = vcmp.gt.f32.partialorder %v8738_v0, 0.0  ;;  %v1945_v9 = vmul.f32 0.01, %v8738_v0  ;;  %2634 = vmatpush1.bf16.msra.mxu1 %v9123_v61  ;;  %v1975_v11 = vsel %vm1911_vm4, %v8736_v59, %v1943_v63  ;;  %v9134_v59 = vld [vmem:[%s16021_s3 + $0x1a0] ss:$8 sps:$4 sm:$0xff]  }
 0x217   : > { %vm1914_vm7 = vcmp.gt.f32.partialorder %v8739_v8, 0.0  ;;  %v1946_v10 = vmul.f32 0.01, %v8739_v8  ;;  %v1976_v13 = vsel %vm1912_vm5, %v8737_v62, %v1944_v7  ;;  %2635 = vmatprep.subr.bf16.mxu1 %v9128_v6  ;;  %v9139_v61 = vld [vmem:[%s16021_s3 + $0x1b4] ss:$8 sps:$4 sm:$0xff]  }
 0x218   : > { %v1977_v12 = vsel %vm1913_vm6, %v8738_v0, %v1945_v9 }
 0x219   : > { %v1978_v14 = vsel %vm1914_vm7, %v8739_v8, %v1946_v10  ;;  %v1995_v15 = vpack.c.bf16 %v1977_v12, %v1975_v11  ;;  %v9137_v11 = vld [vmem:[%s16021_s3 + $0x1b0] ss:$8 sps:$4 sm:$0xff]  }
 0x21a   : > { %v1996_v5 = vpack.c.bf16 %v1978_v14, %v1976_v13  ;;  %2636 = vmatpush1.bf16.msra.mxu1 %v9126_v16  ;;  %v9142_v14 = vld [vmem:[%s16021_s3 + $0x1c4] ss:$8 sps:$4 sm:$0xff]  }
 0x21b   : > { %8369 = vmatprep.subr.msk.bf16.mxu1 %vm2187_vm1, %v8368_v29 }
 0x21c   : > { %8315 = vmatprep.mubr.msk.bf16.mxu1 %vm2162_vm10, %v1996_v5 }
 0x21d   : > { %2287 = vmatmul.mubr.bf16.gmra.mrb[28].mxu1 %v1995_v15 }
 0x21e   : > { %8316 = vmatprep.mubr.msk.bf16.mxu1 %vm2162_vm10, %v1998_v33  ;;  %v8367_v33 = vcombine.low %v8341_v28, %v8341_v28 }
 0x220   : > { %v2608_v26 = vsel %vm2187_vm1, %v8367_v33, 0  ;;  %v9140_v33 = vld [vmem:[%s16021_s3 + $0x1c0] ss:$8 sps:$4 sm:$0xff]  }
 0x221   : > { %2638 = vmatpush1.bf16.msra.mxu1 %v2608_v26 }
 0x222   : > { %4088 = vmatprep.subr.bf16.mxu1 %v9133_v27  ;;  %v9145_v27 = vld [vmem:[%s16021_s3 + $0x1d4] ss:$8 sps:$4 sm:$0xff]  }
 0x225   : > { %2297 = vmatmul.mubr.bf16.gmra.mrb[32].mxu1 %v1997_v32  ;;  %v8281_v32 = vld [vmem:[%s16023_s5 + $0x1] ss:$8 sm:$0x3] }
 0x226   : > { %v10794_v17 = vrot.slane %v8281_v32, %v10641_v2  ;;  %v10797_v18 = vrot.slane %v8281_v32, %v10647_v4 }
 0x2c0   : > { %v2228_v19 = vpop.f32.mrb[4].mxu1 }
 0x2c1   : > { %v2229_v20 = vadd.f32 %v2228_v19, %v10794_v17  ;;  %v2230_v21 = vpop.f32.mrb[5].mxu1 }
 0x2c2   : > { %v2231_v22 = vadd.f32 %v2230_v21, %v10797_v18  ;;  %v2232_v23 = vpop.f32.mrb[6].mxu1 }
 0x2c3   : > { %v2339_v24 = vmul.f32 0.01, %v2229_v20  ;;  %v2233_v25 = vadd.f32 %v2232_v23, %v10794_v17  ;;  %v2234_v30 = vpop.f32.mrb[7].mxu1  ;;  %vm2307_vm8 = vcmp.gt.f32.partialorder %v2229_v20, 0.0 }
 0x2c4   : > { %v2340_v31 = vmul.f32 0.01, %v2231_v22  ;;  %v2235_v34 = vadd.f32 %v2234_v30, %v10797_v18  ;;  %vm2308_vm9 = vcmp.gt.f32.partialorder %v2231_v22, 0.0 }
 0x2c5   : > { %vm2309_vm11 = vcmp.gt.f32.partialorder %v2233_v25, 0.0  ;;  %v2341_v35 = vmul.f32 0.01, %v2233_v25  ;;  %v2371_v37 = vsel %vm2307_vm8, %v2229_v20, %v2339_v24 }
 0x2c6   : > { %vm2310_vm12 = vcmp.gt.f32.partialorder %v2235_v34, 0.0  ;;  %v2342_v36 = vmul.f32 0.01, %v2235_v34  ;;  %v2372_v39 = vsel %vm2308_vm9, %v2231_v22, %v2340_v31  ;;  %v9143_v31 = vld [vmem:[%s16021_s3 + $0x1d0] ss:$8 sps:$4 sm:$0xff]  }
 0x2c7   : > { %v2373_v38 = vsel %vm2309_vm11, %v2233_v25, %v2341_v35 }
 0x2c8   : > { %v2403_v40 = vpack.c.bf16 %v2373_v38, %v2371_v37  ;;  %v2374_v41 = vsel %vm2310_vm12, %v2235_v34, %v2342_v36  ;;  %v2238_v42 = vpop.f32.mrb[8].mxu1  ;;  %v9148_v36 = vld [vmem:[%s16021_s3 + $0x1e4] ss:$8 sps:$4 sm:$0xff]  }
 0x2c9   : > { %v2404_v44 = vpack.c.bf16 %v2374_v41, %v2372_v39  ;;  %v2239_v45 = vadd.f32 %v2238_v42, %v10794_v17  ;;  %v2240_v46 = vpop.f32.mrb[9].mxu1 }
 0x2ca   : > { %v2241_v48 = vadd.f32 %v2240_v46, %v10797_v18  ;;  %v2242_v49 = vpop.f32.mrb[10].mxu1  ;;  %v9151_v46 = vld [vmem:[%s16021_s3 + $0x1f4] ss:$8 sps:$4 sm:$0xff]  }
 0x2cb   : > { %v2343_v51 = vmul.f32 0.01, %v2239_v45  ;;  %v2243_v52 = vadd.f32 %v2242_v49, %v10794_v17  ;;  %v2244_v53 = vpop.f32.mrb[11].mxu1  ;;  %8370 = vmatprep.mubr.msk.bf16.mxu1 %vm2162_vm10, %v2404_v44  ;;  %vm2311_vm13 = vcmp.gt.f32.partialorder %v2239_v45, 0.0  ;;  %v9146_v44 = vld [vmem:[%s16021_s3 + $0x1e0] ss:$8 sps:$4 sm:$0xff]  }
 0x2cc   : > { %v2344_v56 = vmul.f32 0.01, %v2241_v48  ;;  %v2245_v57 = vadd.f32 %v2244_v53, %v10797_v18  ;;  %2646 = vmatmul.mubr.bf16.vlgmr.msra.gmra.mrb[36].mxu1 %v2403_v40  ;;  %vm2312_vm14 = vcmp.gt.f32.partialorder %v2241_v48, 0.0 }
 0x2cd   : > { %vm2313_vm15 = vcmp.gt.f32.partialorder %v2243_v52, 0.0  ;;  %v2345_v58 = vmul.f32 0.01, %v2243_v52  ;;  %4089 = vmatpush1.bf16.msra.mxu1 %v9131_v47  ;;  %v2375_v62 = vsel %vm2311_vm13, %v2239_v45, %v2343_v51 }
 0x2ce   : > { %vm2314_vm2 = vcmp.gt.f32.partialorder %v2245_v57, 0.0  ;;  %v2346_v60 = vmul.f32 0.01, %v2245_v57  ;;  %4090 = vmatprep.subr.bf16.mxu1 %v9136_v50  ;;  %v2376_v63 = vsel %vm2312_vm14, %v2241_v48, %v2344_v56 }
 0x2cf   : > { %v2377_v55 = vsel %vm2313_vm15, %v2243_v52, %v2345_v58  ;;  %v9149_v58 = vld [vmem:[%s16021_s3 + $0x1f0] ss:$8 sps:$4 sm:$0xff]  }
 0x2d0   : > { %v2378_v0 = vsel %vm2314_vm2, %v2245_v57, %v2346_v60  ;;  %v2248_v3 = vpop.f32.mrb[12].mxu1  ;;  %v2405_v7 = vpack.c.bf16 %v2377_v55, %v2375_v62 }
 0x2d1   : > { %v2406_v8 = vpack.c.bf16 %v2378_v0, %v2376_v63  ;;  %v2249_v9 = vadd.f32 %v2248_v3, %v10794_v17  ;;  %v2250_v10 = vpop.f32.mrb[13].mxu1  ;;  %4091 = vmatpush1.bf16.msra.mxu1 %v9134_v59 }
 0x2d2   : > { %v2251_v12 = vadd.f32 %v2250_v10, %v10797_v18  ;;  %v2252_v13 = vpop.f32.mrb[14].mxu1  ;;  %4092 = vmatprep.subr.bf16.mxu1 %v9139_v61  ;;  %v9154_v61 = vld [vmem:[%s16021_s3 + $0x204] ss:$8 sps:$4 sm:$0xff]   ;;  %v9157_v10 = vld [vmem:[%s16021_s3 + $0x214] ss:$8 sps:$4 sm:$0xff]  }
 0x2d3   : > { %v2347_v15 = vmul.f32 0.01, %v2249_v9  ;;  %v2253_v5 = vadd.f32 %v2252_v13, %v10794_v17  ;;  %v2254_v6 = vpop.f32.mrb[15].mxu1  ;;  %8371 = vmatprep.mubr.msk.bf16.mxu1 %vm2162_vm10, %v2406_v8  ;;  %vm2315_vm3 = vcmp.gt.f32.partialorder %v2249_v9, 0.0  ;;  %v9152_v8 = vld [vmem:[%s16021_s3 + $0x200] ss:$8 sps:$4 sm:$0xff]  }
 0x2d4   : > { %v2348_v16 = vmul.f32 0.01, %v2251_v12  ;;  %v2255_v28 = vadd.f32 %v2254_v6, %v10797_v18  ;;  %2656 = vmatmul.mubr.bf16.gmra.mrb[40].mxu1 %v2405_v7  ;;  %vm2316_vm4 = vcmp.gt.f32.partialorder %v2251_v12, 0.0 }
 0x2d5   : > { %vm2317_vm5 = vcmp.gt.f32.partialorder %v2253_v5, 0.0  ;;  %v2349_v29 = vmul.f32 0.01, %v2253_v5  ;;  %4093 = vmatpush1.bf16.msra.mxu1 %v9137_v11  ;;  %v2379_v32 = vsel %vm2315_vm3, %v2249_v9, %v2347_v15 }
 0x2d6   : > { %vm2318_vm6 = vcmp.gt.f32.partialorder %v2255_v28, 0.0  ;;  %v2350_v26 = vmul.f32 0.01, %v2255_v28  ;;  %4094 = vmatprep.subr.bf16.mxu1 %v9142_v14  ;;  %v2380_v20 = vsel %vm2316_vm4, %v2251_v12, %v2348_v16 }
 0x2d7   : > { %v2381_v19 = vsel %vm2317_vm5, %v2253_v5, %v2349_v29  ;;  %v9155_v29 = vld [vmem:[%s16021_s3 + $0x210] ss:$8 sps:$4 sm:$0xff]  }
 0x2d8   : > { %v2382_v21 = vsel %vm2318_vm6, %v2255_v28, %v2350_v26  ;;  %v2258_v22 = vpop.f32.mrb[16].mxu1  ;;  %v2407_v23 = vpack.c.bf16 %v2381_v19, %v2379_v32 }
 0x2d9   : > { %v2408_v24 = vpack.c.bf16 %v2382_v21, %v2380_v20  ;;  %v2259_v25 = vadd.f32 %v2258_v22, %v10794_v17  ;;  %v2260_v30 = vpop.f32.mrb[17].mxu1  ;;  %4095 = vmatpush1.bf16.msra.mxu1 %v9140_v33 }
 0x2da   : > { %v2261_v34 = vadd.f32 %v2260_v30, %v10797_v18  ;;  %v2262_v35 = vpop.f32.mrb[18].mxu1  ;;  %4096 = vmatprep.subr.bf16.mxu1 %v9145_v27  ;;  %v9160_v27 = vld [vmem:[%s16021_s3 + $0x224] ss:$8 sps:$4 sm:$0xff]   ;;  %v9163_v30 = vld [vmem:[%s16021_s3 + $0x234] ss:$8 sps:$4 sm:$0xff]  }
 0x2db   : > { %v2351_v37 = vmul.f32 0.01, %v2259_v25  ;;  %v2263_v38 = vadd.f32 %v2262_v35, %v10794_v17  ;;  %v2264_v39 = vpop.f32.mrb[19].mxu1  ;;  %8372 = vmatprep.mubr.msk.bf16.mxu1 %vm2162_vm10, %v2408_v24  ;;  %vm2319_vm7 = vcmp.gt.f32.partialorder %v2259_v25, 0.0  ;;  %v9158_v24 = vld [vmem:[%s16021_s3 + $0x220] ss:$8 sps:$4 sm:$0xff]  }
 0x2dc   : > { %v2352_v40 = vmul.f32 0.01, %v2261_v34  ;;  %v2265_v41 = vadd.f32 %v2264_v39, %v10797_v18  ;;  %2666 = vmatmul.mubr.bf16.gmra.mrb[44].mxu1 %v2407_v23  ;;  %vm2320_vm8 = vcmp.gt.f32.partialorder %v2261_v34, 0.0 }
 0x2dd   : > { %vm2321_vm9 = vcmp.gt.f32.partialorder %v2263_v38, 0.0  ;;  %v2353_v42 = vmul.f32 0.01, %v2263_v38  ;;  %4097 = vmatpush1.bf16.msra.mxu1 %v9143_v31  ;;  %v2383_v47 = vsel %vm2319_vm7, %v2259_v25, %v2351_v37 }
 0x2de   : > { %vm2322_vm11 = vcmp.gt.f32.partialorder %v2265_v41, 0.0  ;;  %v2354_v45 = vmul.f32 0.01, %v2265_v41  ;;  %4098 = vmatprep.subr.bf16.mxu1 %v9148_v36  ;;  %v2384_v49 = vsel %vm2320_vm8, %v2261_v34, %v2352_v40 }
 0x2df   : > { %v2385_v48 = vsel %vm2321_vm9, %v2263_v38, %v2353_v42  ;;  %v9161_v42 = vld [vmem:[%s16021_s3 + $0x230] ss:$8 sps:$4 sm:$0xff]  }
 0x2e0   : > { %v2386_v50 = vsel %vm2322_vm11, %v2265_v41, %v2354_v45  ;;  %v2268_v51 = vpop.f32.mrb[20].mxu1  ;;  %v2409_v52 = vpack.c.bf16 %v2385_v48, %v2383_v47 }
 0x2e1   : > { %v2410_v53 = vpack.c.bf16 %v2386_v50, %v2384_v49  ;;  %v2269_v56 = vadd.f32 %v2268_v51, %v10794_v17  ;;  %v2270_v57 = vpop.f32.mrb[21].mxu1  ;;  %4099 = vmatpush1.bf16.msra.mxu1 %v9146_v44 }
 0x2e2   : > { %v2271_v59 = vadd.f32 %v2270_v57, %v10797_v18  ;;  %v2272_v60 = vpop.f32.mrb[22].mxu1  ;;  %4100 = vmatprep.subr.bf16.mxu1 %v9151_v46 }
 0x2e3   : > { %v2355_v62 = vmul.f32 0.01, %v2269_v56  ;;  %v2273_v55 = vadd.f32 %v2272_v60, %v10794_v17  ;;  %v2274_v63 = vpop.f32.mrb[23].mxu1  ;;  %8373 = vmatprep.mubr.msk.bf16.mxu1 %vm2162_vm10, %v2410_v53  ;;  %vm2323_vm12 = vcmp.gt.f32.partialorder %v2269_v56, 0.0 }
 0x2e4   : > { %v2356_v0 = vmul.f32 0.01, %v2271_v59  ;;  %v2275_v3 = vadd.f32 %v2274_v63, %v10797_v18  ;;  %2676 = vmatmul.mubr.bf16.gmra.mrb[48].mxu1 %v2409_v52  ;;  %vm2324_vm13 = vcmp.gt.f32.partialorder %v2271_v59, 0.0 }
 0x2e5   : > { %vm2325_vm14 = vcmp.gt.f32.partialorder %v2273_v55, 0.0  ;;  %v2357_v7 = vmul.f32 0.01, %v2273_v55  ;;  %4101 = vmatpush1.bf16.msra.mxu1 %v9149_v58  ;;  %v2387_v11 = vsel %vm2323_vm12, %v2269_v56, %v2355_v62 }
 0x2e6   : > { %vm2326_vm15 = vcmp.gt.f32.partialorder %v2275_v3, 0.0  ;;  %v2358_v9 = vmul.f32 0.01, %v2275_v3  ;;  %4102 = vmatprep.subr.bf16.mxu1 %v9154_v61  ;;  %v2388_v13 = vsel %vm2324_vm13, %v2271_v59, %v2356_v0 }
 0x2e7   : > { %v2389_v12 = vsel %vm2325_vm14, %v2273_v55, %v2357_v7 }
 0x2e8   : > { %v2390_v14 = vsel %vm2326_vm15, %v2275_v3, %v2358_v9  ;;  %v2278_v15 = vpop.f32.mrb[24].mxu1  ;;  %v2411_v5 = vpack.c.bf16 %v2389_v12, %v2387_v11 }
 0x2e9   : > { %v2412_v6 = vpack.c.bf16 %v2390_v14, %v2388_v13  ;;  %v2279_v16 = vadd.f32 %v2278_v15, %v10794_v17  ;;  %v2280_v28 = vpop.f32.mrb[25].mxu1  ;;  %4103 = vmatpush1.bf16.msra.mxu1 %v9152_v8 }
 0x2ea   : > { %v2281_v33 = vadd.f32 %v2280_v28, %v10797_v18  ;;  %v2282_v26 = vpop.f32.mrb[26].mxu1  ;;  %4104 = vmatprep.subr.bf16.mxu1 %v9157_v10  ;;  %v8434_v28 = vld [vmem:[%s16021_s3 + $0x250] sm:$0xff] }
 0x2eb   : > { %v2359_v32 = vmul.f32 0.01, %v2279_v16  ;;  %v2283_v19 = vadd.f32 %v2282_v26, %v10794_v17  ;;  %v2284_v20 = vpop.f32.mrb[27].mxu1  ;;  %8374 = vmatprep.mubr.msk.bf16.mxu1 %vm2162_vm10, %v2412_v6  ;;  %vm2327_vm2 = vcmp.gt.f32.partialorder %v2279_v16, 0.0 }
 0x2ec   : > { %v2360_v21 = vmul.f32 0.01, %v2281_v33  ;;  %v2285_v22 = vadd.f32 %v2284_v20, %v10797_v18  ;;  %2686 = vmatmul.mubr.bf16.gmra.mrb[52].mxu1 %v2411_v5  ;;  %vm2328_vm3 = vcmp.gt.f32.partialorder %v2281_v33, 0.0 }
 0x2ed   : > { %vm2329_vm4 = vcmp.gt.f32.partialorder %v2283_v19, 0.0  ;;  %v2361_v23 = vmul.f32 0.01, %v2283_v19  ;;  %4105 = vmatpush1.bf16.msra.mxu1 %v9155_v29  ;;  %v2391_v31 = vsel %vm2327_vm2, %v2279_v16, %v2359_v32  ;;  %v9164_v16 = vld [vmem:[%s16021_s3 + $0x240] ss:$8 sps:$4 sm:$0xff]   ;;  %v8461_v29 = vcombine.high %v8434_v28, %v8434_v28 }
 0x2ee   : > { %vm2330_vm5 = vcmp.gt.f32.partialorder %v2285_v22, 0.0  ;;  %v2362_v25 = vmul.f32 0.01, %v2285_v22  ;;  %4106 = vmatprep.subr.bf16.mxu1 %v9160_v27  ;;  %v2392_v35 = vsel %vm2328_vm3, %v2281_v33, %v2360_v21  ;;  %v8460_v33 = vcombine.low %v8434_v28, %v8434_v28  ;;  %v2726_v27 = vld [vmem:[%s10917_s22] sm:$0xff]  ;;  %v2727_v32 = vld [vmem:[%s10917_s22 + $0x8] sm:$0xff]  ;;  %v2728_v21 = vld [vmem:[%s10917_s22 + $0x10] sm:$0xff] }
 0x2ef   : > { %v2393_v34 = vsel %vm2329_vm4, %v2283_v19, %v2361_v23  ;;  %v2822_v19 = vsub.f32 0.0, %v2726_v27  ;;  %v2823_v20 = vsub.f32 0.0, %v2727_v32  ;;  %v2737_v28 = vld [vmem:[%s10917_s22 + $0x58] sm:$0xff] }
 0x2f0   : > { %v2394_v36 = vsel %vm2330_vm5, %v2285_v22, %v2362_v25  ;;  %v2288_v37 = vpop.f32.mrb[28].mxu1  ;;  %v2413_v38 = vpack.c.bf16 %v2393_v34, %v2391_v31  ;;  %v4083_v26 = vsel %vm2187_vm1, %v8460_v33, 0  ;;  %v2729_v22 = vld [vmem:[%s10917_s22 + $0x18] sm:$0xff]  ;;  %v2731_v31 = vld [vmem:[%s10917_s22 + $0x28] sm:$0xff] }
 0x2f1   : > { %v2414_v39 = vpack.c.bf16 %v2394_v36, %v2392_v35  ;;  %v2289_v40 = vadd.f32 %v2288_v37, %v10794_v17  ;;  %v2290_v41 = vpop.f32.mrb[29].mxu1  ;;  %4107 = vmatpush1.bf16.msra.mxu1 %v9158_v24  ;;  %v2854_v23 = vadd.f32 1.0, %v2822_v19  ;;  %v10923_v24 = vsub.f32 0.0, %v2728_v21 }
 0x2f2   : > { %v2291_v44 = vadd.f32 %v2290_v41, %v10797_v18  ;;  %v2292_v45 = vpop.f32.mrb[30].mxu1  ;;  %4108 = vmatprep.subr.bf16.mxu1 %v9163_v30  ;;  %v2863_v25 = vadd.f32 1.0, %v2823_v20  ;;  %v10925_v30 = vsub.f32 0.0, %v2729_v22  ;;  %v10930_v36 = vsub.f32 0.0, %v2731_v31  ;;  %v2733_v41 = vld [vmem:[%s10917_s22 + $0x38] sm:$0xff] }
 0x2f3   : > { %v2363_v46 = vmul.f32 0.01, %v2289_v40  ;;  %v2293_v47 = vadd.f32 %v2292_v45, %v10794_v17  ;;  %v2294_v48 = vpop.f32.mrb[31].mxu1  ;;  %8375 = vmatprep.mubr.msk.bf16.mxu1 %vm2162_vm10, %v2414_v39  ;;  %vm2331_vm6 = vcmp.gt.f32.partialorder %v2289_v40, 0.0  ;;  %9334 = vlog2.f32 %v2854_v23 }
 0x2f4   : > { %v2364_v49 = vmul.f32 0.01, %v2291_v44  ;;  %v2295_v50 = vadd.f32 %v2294_v48, %v10797_v18  ;;  %2696 = vmatmul.mubr.bf16.gmra.mrb[56].mxu1 %v2413_v38  ;;  %vm2332_vm7 = vcmp.gt.f32.partialorder %v2291_v44, 0.0  ;;  %v2872_v34 = vadd.f32 1.0, %v10923_v24  ;;  %v10933_v38 = vld [vmem:[%s10917_s22 + $0x20] sm:$0xff] }
 0x2f5   : > { %vm2333_vm8 = vcmp.gt.f32.partialorder %v2293_v47, 0.0  ;;  %v2365_v51 = vmul.f32 0.01, %v2293_v47  ;;  %4109 = vmatpush1.bf16.msra.mxu1 %v9161_v42  ;;  %v2395_v53 = vsel %vm2331_vm6, %v2289_v40, %v2363_v46  ;;  %9336 = vlog2.f32 %v2863_v25  ;;  %v8342_v42 = vld [vmem:[%s16023_s5 + $0x2] ss:$8 sm:$0x3] }
 0x2f6   : > { %vm2334_vm9 = vcmp.gt.f32.partialorder %v2295_v50, 0.0  ;;  %v2366_v52 = vmul.f32 0.01, %v2295_v50  ;;  %v2396_v57 = vsel %vm2332_vm7, %v2291_v44, %v2364_v49  ;;  %v2881_v35 = vadd.f32 1.0, %v10925_v30 }
 0x2f7   : > { %v2397_v56 = vsel %vm2333_vm8, %v2293_v47, %v2365_v51  ;;  %9338 = vlog2.f32 %v2726_v27  ;;  %v2857_v37 = vmul.f32 -0.5, %v2822_v19  ;;  %v2866_v39 = vmul.f32 -0.5, %v2823_v20 }
 0x2f8   : > { %v2398_v58 = vsel %vm2334_vm9, %v2295_v50, %v2366_v52  ;;  %v2298_v59 = vpop.f32.mrb[32].mxu1  ;;  %v2415_v60 = vpack.c.bf16 %v2397_v56, %v2395_v53  ;;  %9340 = vlog2.f32 %v2727_v32  ;;  %v2899_v40 = vadd.f32 1.0, %v10930_v36  ;;  %v10947_v50 = vld [vmem:[%s10917_s22 + $0x30] sm:$0xff] }
 0x2f9   : > { %v2416_v61 = vpack.c.bf16 %v2398_v58, %v2396_v57  ;;  %v2299_v62 = vadd.f32 %v2298_v59, %v10794_v17  ;;  %v2300_v55 = vpop.f32.mrb[33].mxu1  ;;  %9342 = vlog2.f32 %v2872_v34  ;;  %v2858_v44 = vadd.f32 1.0, %v2857_v37 }
 0x2fa   : > { %v2301_v63 = vadd.f32 %v2300_v55, %v10797_v18  ;;  %v2302_v0 = vpop.f32.mrb[34].mxu1  ;;  %9344 = vlog2.f32 %v2881_v35  ;;  %v10941_v45 = vsub.f32 0.0, %v10933_v38  ;;  %v2860_v47 = vand.u32 2147483647, %v2822_v19 }
 0x2fb   : > { %v2367_v3 = vmul.f32 0.01, %v2299_v62  ;;  %v2303_v7 = vadd.f32 %v2302_v0, %v10794_v17  ;;  %v2304_v8 = vpop.f32.mrb[35].mxu1  ;;  %8376 = vmatprep.mubr.msk.bf16.mxu1 %vm2162_vm10, %v2416_v61  ;;  %vm2335_vm11 = vcmp.gt.f32.partialorder %v2299_v62, 0.0  ;;  %9346 = vlog2.f32 %v2728_v21  ;;  %v2735_v61 = vld [vmem:[%s10917_s22 + $0x48] sm:$0xff] }
 0x2fc   : > { %v2368_v9 = vmul.f32 0.01, %v2301_v63  ;;  %v2305_v10 = vadd.f32 %v2304_v8, %v10797_v18  ;;  %2706 = vmatmul.mubr.bf16.gmra.mrb[60].mxu1 %v2415_v60  ;;  %vm2336_vm12 = vcmp.gt.f32.partialorder %v2301_v63, 0.0  ;;  %v9166_v18 = vld [vmem:[%s16021_s3 + $0x244] ss:$8 sps:$4 sm:$0xff]   ;;  %v2875_v48 = vmul.f32 -0.5, %v10923_v24 }
 0x2fd   : > { %vm2337_vm13 = vcmp.gt.f32.partialorder %v2303_v7, 0.0  ;;  %v2369_v11 = vmul.f32 0.01, %v2303_v7  ;;  %v2399_v13 = vsel %vm2335_vm11, %v2299_v62, %v2367_v3  ;;  %4110 = vmatprep.subr.bf16.mxu1 %v9166_v18  ;;  %v9335_v46 = vpop.eup %9334  ;;  %9348 = vlog2.f32 %v2729_v22  ;;  %v2736_v22 = vld [vmem:[%s10917_s22 + $0x50] sm:$0xff] }
 0x2fe   : > { %vm2338_vm14 = vcmp.gt.f32.partialorder %v2305_v10, 0.0  ;;  %v2370_v12 = vmul.f32 0.01, %v2305_v10  ;;  %v2400_v15 = vsel %vm2336_vm12, %v2301_v63, %v2368_v9  ;;  %4111 = vmatpush1.bf16.msra.mxu1 %v9164_v16  ;;  %v10944_v49 = vsub.f32 0.0, %v2733_v41 }
 0x2ff   : > { %v2401_v14 = vsel %vm2337_vm13, %v2303_v7, %v2369_v11  ;;  %8462 = vmatprep.subr.msk.bf16.mxu1 %vm2187_vm1, %v8461_v29  ;;  %v2867_v51 = vadd.f32 1.0, %v2866_v39  ;;  %v2884_v52 = vmul.f32 -0.5, %v10925_v30  ;;  %9350 = vlog2.f32 %v2899_v40  ;;  %v9337_v53 = vpop.eup %9336 }
 0x300   : > { %v2402_v5 = vsel %vm2338_vm14, %v2305_v10, %v2370_v12  ;;  %v2417_v6 = vpack.c.bf16 %v2401_v14, %v2399_v13  ;;  %v10951_v56 = vrot.slane %v8342_v42, %v10641_v2  ;;  %v2869_v57 = vand.u32 2147483647, %v2823_v20 }
 0x301   : > { %v2418_v17 = vpack.c.bf16 %v2402_v5, %v2400_v15  ;;  %v9339_v58 = vpop.eup %9338  ;;  %v2856_v59 = vmul.f32 0.6931472, %v9335_v46  ;;  %v2859_v60 = vmul.f32 %v2858_v44, %v2822_v19  ;;  %v10955_v62 = vsub.f32 0.0, %v10947_v50 }
 0x302   : > { %4113 = vmatpush1.bf16.msra.mxu1 %v4083_v26  ;;  %v2890_v55 = vadd.f32 1.0, %v10941_v45  ;;  %v9341_v63 = vpop.eup %9340  ;;  %vm10958_vm15 = vcmp.lt.f32.partialorder %v2860_v47, 0.0004427343  ;;  %v2876_v3 = vadd.f32 1.0, %v2875_v48  ;;  %v2878_v7 = vand.u32 2147483647, %v10923_v24 }
 0x303   : > { %8377 = vmatprep.mubr.msk.bf16.mxu1 %vm2162_vm10, %v2418_v17  ;;  %v2917_v8 = vadd.f32 1.0, %v10944_v49  ;;  %v9343_v9 = vpop.eup %9342  ;;  %v2865_v10 = vmul.f32 0.6931472, %v9337_v53  ;;  %v2868_v11 = vmul.f32 %v2867_v51, %v2823_v20  ;;  %v2885_v12 = vadd.f32 1.0, %v2884_v52 }
 0x304   : > { %2716 = vmatmul.mubr.bf16.gmra.mrb[64].mxu1 %v2417_v6  ;;  %9352 = vlog2.f32 %v2731_v31  ;;  %v9345_v13 = vpop.eup %9344  ;;  %vm10964_vm2 = vcmp.lt.f32.partialorder %v2869_v57, 0.0004427343  ;;  %v2887_v15 = vand.u32 2147483647, %v10925_v30  ;;  %v2902_v5 = vmul.f32 -0.5, %v10930_v36 }
 0x305   : > { %v10970_v6 = vsub.f32 0.0, %v2735_v61  ;;  %v2759_v17 = vmul.f32 0.6931472, %v9339_v58  ;;  %v2862_v18 = vsel %vm10958_vm15, %v2859_v60, %v2856_v59  ;;  %v2761_v16 = vmul.f32 0.6931472, %v9341_v63  ;;  %v9347_v29 = vpop.eup %9346 }
 0x306   : > { %9354 = vlog2.f32 %v2890_v55  ;;  %v2874_v33 = vmul.f32 0.6931472, %v9343_v9  ;;  %v2877_v26 = vmul.f32 %v2876_v3, %v10923_v24  ;;  %vm10976_vm3 = vcmp.lt.f32.partialorder %v2878_v7, 0.0004427343 }
 0x307   : > { %9356 = vlog2.f32 %v2917_v8  ;;  %v2871_v32 = vsel %vm10964_vm2, %v2868_v11, %v2865_v10  ;;  %v2883_v19 = vmul.f32 0.6931472, %v9345_v13  ;;  %v2886_v20 = vmul.f32 %v2885_v12, %v10925_v30  ;;  %v9349_v21 = vpop.eup %9348 }
 0x308   : > { %9358 = vlog2.f32 %v2733_v41  ;;  %vm10983_vm4 = vcmp.lt.f32.partialorder %v2887_v15, 0.0004427343  ;;  %v2903_v23 = vadd.f32 1.0, %v2902_v5  ;;  %v2935_v24 = vadd.f32 1.0, %v10970_v6 }
 0x309   : > { %v10988_v25 = vsub.f32 0.0, %v2737_v28  ;;  %v9351_v31 = vpop.eup %9350  ;;  %v10991_v34 = vrot.slane %v8342_v42, %v10647_v4  ;;  %v2763_v35 = vmul.f32 0.6931472, %v9347_v29  ;;  %v2905_v37 = vand.u32 2147483647, %v10930_v36  ;;  %v2739_v42 = vld [vmem:[%s10917_s22 + $0x68] sm:$0xff] }
 0x30a   : > { %v2908_v30 = vadd.f32 1.0, %v10955_v62  ;;  %v10995_v39 = vsub.f32 %v2759_v17, %v2862_v18  ;;  %v2880_v40 = vsel %vm10976_vm3, %v2877_v26, %v2874_v33  ;;  %v2920_v41 = vmul.f32 -0.5, %v10944_v49  ;;  %v2734_v18 = vld [vmem:[%s10917_s22 + $0x40] sm:$0xff] }
 0x30b   : > { %v11000_v44 = vsub.f32 %v2761_v16, %v2871_v32  ;;  %v2765_v46 = vmul.f32 0.6931472, %v9349_v21  ;;  %v2889_v47 = vsel %vm10983_vm4, %v2886_v20, %v2883_v19  ;;  %9360 = vlog2.f32 %v2735_v61 }
 0x30c   : > { %v2901_v48 = vmul.f32 0.6931472, %v9351_v31  ;;  %v2904_v51 = vmul.f32 %v2903_v23, %v10930_v36  ;;  %9362 = vlog2.f32 %v2935_v24  ;;  %v2953_v52 = vadd.f32 1.0, %v10988_v25  ;;  %v2741_v36 = vld [vmem:[%s10917_s22 + $0x78] sm:$0xff]  ;;  %v2747_v31 = vld [vmem:[%s10917_s22 + $0xa8] sm:$0xff] }
 0x30d   : > { %v11007_v57 = vsub.f32 %v2763_v35, %v2880_v40  ;;  %vm11009_vm5 = vcmp.lt.f32.partialorder %v2905_v37, 0.0004427343  ;;  %9364 = vlog2.f32 %v2737_v28  ;;  %v2893_v59 = vmul.f32 -0.5, %v10941_v45  ;;  %v11055_v37 = vld [vmem:[%s10917_s22 + $0x88] sm:$0xff] }
 0x30e   : > { %v9353_v53 = vpop.eup %9352  ;;  %v2921_v60 = vadd.f32 1.0, %v2920_v41  ;;  %v2938_v61 = vmul.f32 -0.5, %v10970_v6  ;;  %9366 = vlog2.f32 %v2908_v30  ;;  %v11015_v55 = vsub.f32 0.0, %v2739_v42 }
 0x30f   : > { %v11018_v0 = vsub.f32 %v2765_v46, %v2889_v47  ;;  %v2923_v3 = vand.u32 2147483647, %v10944_v49  ;;  %v2956_v7 = vmul.f32 -0.5, %v10988_v25  ;;  %9368 = vlog2.f32 %v10933_v38 }
 0x310   : > { %v9355_v63 = vpop.eup %9354  ;;  %v2769_v9 = vmul.f32 0.6931472, %v9353_v53  ;;  %v2907_v10 = vsel %vm11009_vm5, %v2904_v51, %v2901_v48  ;;  %9370 = vlog2.f32 %v2953_v52  ;;  %v2894_v12 = vadd.f32 1.0, %v2893_v59 }
 0x311   : > { %v9357_v8 = vpop.eup %9356  ;;  %9372 = vlog2.f32 %v10947_v50  ;;  %v2896_v13 = vand.u32 2147483647, %v10941_v45  ;;  %v11027_v14 = vsub.f32 0.0, %v2741_v36  ;;  %v2922_v15 = vmul.f32 %v2921_v60, %v10944_v49 }
 0x312   : > { %v9359_v11 = vpop.eup %9358  ;;  %v2939_v5 = vadd.f32 1.0, %v2938_v61  ;;  %v2941_v17 = vand.u32 2147483647, %v10970_v6  ;;  %v2971_v38 = vadd.f32 1.0, %v11015_v55  ;;  %v2919_v16 = vmul.f32 0.6931472, %v9357_v8 }
 0x313   : > { %vm11033_vm6 = vcmp.lt.f32.partialorder %v2923_v3, 0.0004427343  ;;  %v2957_v50 = vadd.f32 1.0, %v2956_v7  ;;  %v2911_v29 = vmul.f32 -0.5, %v10955_v62  ;;  %v11038_v33 = vsub.f32 %v2769_v9, %v2907_v10 }
 0x314   : > { %v2773_v26 = vmul.f32 0.6931472, %v9359_v11  ;;  %v2959_v49 = vand.u32 2147483647, %v10988_v25  ;;  %v2892_v27 = vmul.f32 0.6931472, %v9355_v63  ;;  %v2895_v19 = vmul.f32 %v2894_v12, %v10941_v45 }
 0x315   : > { %v9361_v32 = vpop.eup %9360  ;;  %vm11042_vm7 = vcmp.lt.f32.partialorder %v2896_v13, 0.0004427343  ;;  %9374 = vlog2.f32 %v2739_v42  ;;  %v2989_v21 = vadd.f32 1.0, %v11027_v14  ;;  %v2940_v24 = vmul.f32 %v2939_v5, %v10970_v6  ;;  %v2745_v13 = vld [vmem:[%s10917_s22 + $0x98] sm:$0xff] }
 0x316   : > { %v9363_v23 = vpop.eup %9362  ;;  %vm11049_vm8 = vcmp.lt.f32.partialorder %v2941_v17, 0.0004427343  ;;  %v2914_v35 = vand.u32 2147483647, %v10955_v62  ;;  %9376 = vlog2.f32 %v2971_v38  ;;  %v2925_v30 = vsel %vm11033_vm6, %v2922_v15, %v2919_v16 }
 0x317   : > { %v9365_v45 = vpop.eup %9364  ;;  %v11060_v40 = vmul.f32 %v2957_v50, %v10988_v25  ;;  %v2912_v41 = vadd.f32 1.0, %v2911_v29  ;;  %v11062_v46 = vsub.f32 0.0, %v2734_v18  ;;  %vm11064_vm9 = vcmp.lt.f32.partialorder %v2959_v49, 0.0004427343  ;;  %v2738_v49 = vld [vmem:[%s10917_s22 + $0x60] sm:$0xff] }
 0x318   : > { %v9367_v6 = vpop.eup %9366  ;;  %v2974_v42 = vmul.f32 -0.5, %v11015_v55  ;;  %9378 = vlog2.f32 %v2741_v36  ;;  %v11069_v48 = vsub.f32 0.0, %v2736_v22  ;;  %v2937_v52 = vmul.f32 0.6931472, %v9363_v23 }
 0x319   : > { %v9369_v51 = vpop.eup %9368  ;;  %v2898_v53 = vsel %vm11042_vm7, %v2895_v19, %v2892_v27  ;;  %9380 = vlog2.f32 %v2989_v21  ;;  %v11074_v25 = vsub.f32 0.0, %v11055_v37  ;;  %v11076_v59 = vsub.f32 %v2773_v26, %v2925_v30  ;;  %v2740_v21 = vld [vmem:[%s10917_s22 + $0x70] sm:$0xff] }
 0x31a   : > { %v9371_v58 = vpop.eup %9370  ;;  %v2777_v60 = vmul.f32 0.6931472, %v9361_v32  ;;  %vm11078_vm11 = vcmp.lt.f32.partialorder %v2914_v35, 0.0004427343  ;;  %v2992_v36 = vmul.f32 -0.5, %v11027_v14  ;;  %v2913_v8 = vmul.f32 %v2912_v41, %v10955_v62 }
 0x31b   : > { %v9373_v63 = vpop.eup %9372  ;;  %v2781_v3 = vmul.f32 0.6931472, %v9365_v45  ;;  %v2910_v7 = vmul.f32 0.6931472, %v9367_v6  ;;  %v2926_v9 = vadd.f32 1.0, %v11062_v46  ;;  %v2975_v11 = vadd.f32 1.0, %v2974_v42 }
 0x31c   : > { %v2767_v10 = vmul.f32 0.6931472, %v9369_v51  ;;  %9382 = vlog2.f32 %v2734_v18  ;;  %v2944_v12 = vadd.f32 1.0, %v11069_v48  ;;  %v2943_v15 = vsel %vm11049_vm8, %v2940_v24, %v2937_v52 }
 0x31d   : > { %v2955_v5 = vmul.f32 0.6931472, %v9371_v58  ;;  %v2977_v17 = vand.u32 2147483647, %v11015_v55  ;;  %v3007_v38 = vadd.f32 1.0, %v11074_v25  ;;  %v2993_v62 = vadd.f32 1.0, %v2992_v36 }
 0x31e   : > { %v2771_v16 = vmul.f32 0.6931472, %v9373_v63  ;;  %9384 = vlog2.f32 %v2736_v22  ;;  %v2929_v28 = vmul.f32 -0.5, %v11062_v46  ;;  %v2916_v18 = vsel %vm11078_vm11, %v2913_v8, %v2910_v7 }
 0x31f   : > { %v9375_v50 = vpop.eup %9374  ;;  %v2995_v29 = vand.u32 2147483647, %v11027_v14  ;;  %9386 = vlog2.f32 %v2926_v9  ;;  %v11095_v26 = vsub.f32 0.0, %v2745_v13  ;;  %v11098_v32 = vsub.f32 %v2777_v60, %v2943_v15 }
 0x320   : > { %v9377_v27 = vpop.eup %9376  ;;  %v11100_v19 = vsub.f32 %v2767_v10, %v2898_v53  ;;  %v2976_v20 = vmul.f32 %v2975_v11, %v11015_v55  ;;  %9388 = vlog2.f32 %v2944_v12  ;;  %v2961_v22 = vsel %vm11064_vm9, %v11060_v40, %v2955_v5 }
 0x321   : > { %vm11107_vm12 = vcmp.lt.f32.partialorder %v2977_v17, 0.0004427343  ;;  %v2947_v24 = vmul.f32 -0.5, %v11069_v48  ;;  %9390 = vlog2.f32 %v3007_v38  ;;  %v11113_v45 = vsub.f32 %v2771_v16, %v2916_v18 }
 0x322   : > { %v9379_v35 = vpop.eup %9378  ;;  %v2785_v30 = vmul.f32 0.6931472, %v9375_v50  ;;  %v2994_v55 = vmul.f32 %v2993_v62, %v11027_v14  ;;  %v11116_v41 = vsub.f32 0.0, %v2738_v49  ;;  %v2973_v42 = vmul.f32 0.6931472, %v9377_v27  ;;  %v11150_v62 = vld [vmem:[%s10917_s22 + $0x80] sm:$0xff] }
 0x323   : > { %v9381_v6 = vpop.eup %9380  ;;  %vm11118_vm13 = vcmp.lt.f32.partialorder %v2995_v29, 0.0004427343  ;;  %v3025_v47 = vadd.f32 1.0, %v11095_v26  ;;  %v11123_v51 = vsub.f32 0.0, %v2740_v21  ;;  %v2930_v52 = vadd.f32 1.0, %v2929_v28 }
 0x324   : > { %v2932_v53 = vand.u32 2147483647, %v11062_v46  ;;  %9392 = vlog2.f32 %v11055_v37  ;;  %v11127_v58 = vsub.f32 0.0, %v2747_v31  ;;  %v11129_v14 = vsub.f32 %v2781_v3, %v2961_v22 }
 0x325   : > { %v2789_v60 = vmul.f32 0.6931472, %v9379_v35  ;;  %v2948_v61 = vadd.f32 1.0, %v2947_v24  ;;  %v2950_v36 = vand.u32 2147483647, %v11069_v48  ;;  %v3010_v8 = vmul.f32 -0.5, %v11074_v25 }
 0x326   : > { %v9383_v63 = vpop.eup %9382  ;;  %v2991_v7 = vmul.f32 0.6931472, %v9381_v6  ;;  %9394 = vlog2.f32 %v2745_v13  ;;  %v2962_v9 = vadd.f32 1.0, %v11116_v41  ;;  %v2979_v10 = vsel %vm11107_vm12, %v2976_v20, %v2973_v42 }
 0x327   : > { %v3013_v37 = vand.u32 2147483647, %v11074_v25  ;;  %9396 = vlog2.f32 %v3025_v47  ;;  %v2980_v3 = vadd.f32 1.0, %v11123_v51  ;;  %v2931_v12 = vmul.f32 %v2930_v52, %v11062_v46 }
 0x328   : > { %v9385_v11 = vpop.eup %9384  ;;  %vm11139_vm14 = vcmp.lt.f32.partialorder %v2932_v53, 0.0004427343  ;;  %9398 = vlog2.f32 %v2738_v49  ;;  %v3043_v13 = vadd.f32 1.0, %v11127_v58  ;;  %v2775_v17 = vmul.f32 0.6931472, %v9383_v63 }
 0x329   : > { %v9387_v5 = vpop.eup %9386  ;;  %vm11144_vm15 = vcmp.lt.f32.partialorder %v2950_v36, 0.0004427343  ;;  %v3028_v16 = vmul.f32 -0.5, %v11095_v26  ;;  %9400 = vlog2.f32 %v2740_v21  ;;  %v11152_v28 = vsub.f32 %v2785_v30, %v2979_v10  ;;  %v11163_v21 = vld [vmem:[%s10917_s22 + $0x90] sm:$0xff] }
 0x32a   : > { %v9389_v46 = vpop.eup %9388  ;;  %v2949_v50 = vmul.f32 %v2948_v61, %v11069_v48  ;;  %v3011_v18 = vadd.f32 1.0, %v3010_v8  ;;  %9402 = vlog2.f32 %v2962_v9  ;;  %v2997_v49 = vsel %vm11118_vm13, %v2994_v55, %v2991_v7  ;;  %v2749_v8 = vld [vmem:[%s10917_s22 + $0xb8] sm:$0xff] }
 0x32b   : > { %v9391_v29 = vpop.eup %9390  ;;  %vm11157_vm2 = vcmp.lt.f32.partialorder %v3013_v37, 0.0004427343  ;;  %v3031_v20 = vand.u32 2147483647, %v11095_v26  ;;  %9404 = vlog2.f32 %v2980_v3  ;;  %v2928_v22 = vmul.f32 0.6931472, %v9387_v5 }
 0x32c   : > { %v2965_v23 = vmul.f32 -0.5, %v11116_v41  ;;  %9406 = vlog2.f32 %v3043_v13  ;;  %v11167_v48 = vsub.f32 0.0, %v11150_v62  ;;  %v3029_v24 = vadd.f32 1.0, %v3028_v16 }
 0x32d   : > { %v2968_v35 = vand.u32 2147483647, %v11116_v41  ;;  %v2983_v30 = vmul.f32 -0.5, %v11123_v51  ;;  %9408 = vlog2.f32 %v2747_v31  ;;  %v2946_v6 = vmul.f32 0.6931472, %v9389_v46  ;;  %v11201_v46 = vld [vmem:[%s10917_s22 + $0xa0] sm:$0xff] }
 0x32e   : > { %v9393_v55 = vpop.eup %9392  ;;  %v3009_v42 = vmul.f32 0.6931472, %v9391_v29  ;;  %v3012_v40 = vmul.f32 %v3011_v18, %v11074_v25  ;;  %v11173_v47 = vsub.f32 0.0, %v11163_v21  ;;  %v11175_v52 = vsub.f32 %v2789_v60, %v2997_v49 }
 0x32f   : > { %v2779_v53 = vmul.f32 0.6931472, %v9385_v11  ;;  %vm11177_vm3 = vcmp.lt.f32.partialorder %v3031_v20, 0.0004427343  ;;  %v2986_v36 = vand.u32 2147483647, %v11123_v51  ;;  %v2934_v31 = vsel %vm11139_vm14, %v2931_v12, %v2928_v22 }
 0x330   : > { %v9395_v63 = vpop.eup %9394  ;;  %v2966_v7 = vadd.f32 1.0, %v2965_v23  ;;  %v3046_v25 = vmul.f32 -0.5, %v11127_v58  ;;  %v2998_v9 = vadd.f32 1.0, %v11167_v48  ;;  %v2793_v10 = vmul.f32 0.6931472, %v9393_v55 }
 0x331   : > { %v9397_v60 = vpop.eup %9396  ;;  %v11188_v37 = vmul.f32 %v3029_v24, %v11095_v26  ;;  %vm11190_vm4 = vcmp.lt.f32.partialorder %v2968_v35, 0.0004427343  ;;  %v2984_v11 = vadd.f32 1.0, %v2983_v30  ;;  %v2952_v12 = vsel %vm11144_vm15, %v2949_v50, %v2946_v6  ;;  %v2751_v50 = vld [vmem:[%s10917_s22 + $0xc8] sm:$0xff]  ;;  %v11214_v24 = vld [vmem:[%s10917_s22 + $0xb0] sm:$0xff] }
 0x332   : > { %v9399_v15 = vpop.eup %9398  ;;  %v3015_v13 = vsel %vm11157_vm2, %v3012_v40, %v3009_v42  ;;  %v3049_v5 = vand.u32 2147483647, %v11127_v58  ;;  %v3016_v16 = vadd.f32 1.0, %v11173_v47  ;;  %v11203_v18 = vsub.f32 %v2775_v17, %v2934_v31 }
 0x333   : > { %v9401_v26 = vpop.eup %9400  ;;  %v2797_v29 = vmul.f32 0.6931472, %v9395_v63  ;;  %vm11205_vm5 = vcmp.lt.f32.partialorder %v2986_v36, 0.0004427343  ;;  %v11209_v38 = vsub.f32 0.0, %v2749_v8  ;;  %v2967_v22 = vmul.f32 %v2966_v7, %v11116_v41 }
 0x334   : > { %v9403_v27 = vpop.eup %9402  ;;  %v3027_v20 = vmul.f32 0.6931472, %v9397_v60  ;;  %v3047_v23 = vadd.f32 1.0, %v3046_v25  ;;  %9410 = vlog2.f32 %v2998_v9  ;;  %v11216_v30 = vsub.f32 %v2779_v53, %v2952_v12  ;;  %v11241_v60 = vld [vmem:[%s10917_s22 + $0xd8] sm:$0xff] }
 0x335   : > { %v9405_v35 = vpop.eup %9404  ;;  %v11218_v17 = vsub.f32 %v2793_v10, %v3015_v13  ;;  %v2985_v55 = vmul.f32 %v2984_v11, %v11123_v51  ;;  %v11222_v6 = vsub.f32 0.0, %v11201_v46  ;;  %v2783_v40 = vmul.f32 0.6931472, %v9399_v15 }
 0x336   : > { %v9407_v42 = vpop.eup %9406  ;;  %vm11224_vm6 = vcmp.lt.f32.partialorder %v3049_v5, 0.0004427343  ;;  %9412 = vlog2.f32 %v3016_v16  ;;  %v11228_v41 = vsub.f32 0.0, %v2751_v50  ;;  %v2964_v53 = vmul.f32 0.6931472, %v9403_v27 }
 0x337   : > { %v9409_v63 = vpop.eup %9408  ;;  %v3061_v31 = vadd.f32 1.0, %v11209_v38  ;;  %9414 = vlog2.f32 %v11150_v62  ;;  %v11233_v51 = vsub.f32 0.0, %v11214_v24  ;;  %v3033_v7 = vsel %vm11177_vm3, %v11188_v37, %v3027_v20 }
 0x338   : > { %v2982_v25 = vmul.f32 0.6931472, %v9405_v35  ;;  %v3048_v9 = vmul.f32 %v3047_v23, %v11127_v58  ;;  %9416 = vlog2.f32 %v11163_v21  ;;  %v3045_v10 = vmul.f32 0.6931472, %v9407_v42  ;;  %v2750_v42 = vld [vmem:[%s10917_s22 + $0xc0] sm:$0xff] }
 0x339   : > { %9418 = vlog2.f32 %v2749_v8  ;;  %v3001_v11 = vmul.f32 -0.5, %v11167_v48  ;;  %v3034_v62 = vadd.f32 1.0, %v11222_v6  ;;  %v2787_v15 = vmul.f32 0.6931472, %v9401_v26 }
 0x33a   : > { %v2801_v12 = vmul.f32 0.6931472, %v9409_v63  ;;  %v3019_v13 = vmul.f32 -0.5, %v11173_v47  ;;  %v3079_v61 = vadd.f32 1.0, %v11228_v41  ;;  %v2970_v37 = vsel %vm11190_vm4, %v2967_v22, %v2964_v53 }
 0x33b   : > { %9420 = vlog2.f32 %v3061_v31  ;;  %v11250_v58 = vsub.f32 0.0, %v11241_v60  ;;  %v3052_v21 = vadd.f32 1.0, %v11233_v51  ;;  %v2988_v8 = vsel %vm11205_vm5, %v2985_v55, %v2982_v25 }
 0x33c   : > { %v3004_v5 = vand.u32 2147483647, %v11167_v48  ;;  %v3022_v16 = vand.u32 2147483647, %v11173_v47  ;;  %9422 = vlog2.f32 %v2751_v50  ;;  %v3051_v26 = vsel %vm11224_vm6, %v3048_v9, %v3045_v10 }
 0x33d   : > { %v3064_v3 = vmul.f32 -0.5, %v11209_v38  ;;  %v3002_v27 = vadd.f32 1.0, %v3001_v11  ;;  %9424 = vlog2.f32 %v3034_v62  ;;  %v11260_v22 = vsub.f32 %v2797_v29, %v3033_v7  ;;  %v11290_v11 = vld [vmem:[%s10917_s22 + $0xd0] sm:$0xff] }
 0x33e   : > { %v9411_v20 = vpop.eup %9410  ;;  %v3067_v49 = vand.u32 2147483647, %v11209_v38  ;;  %v3020_v23 = vadd.f32 1.0, %v3019_v13  ;;  %9426 = vlog2.f32 %v3079_v61  ;;  %v11263_v35 = vsub.f32 %v2783_v40, %v2970_v37  ;;  %v11281_v40 = vld [vmem:[%s10917_s22 + $0xe8] sm:$0xff] }
 0x33f   : > { %v11265_v55 = vsub.f32 %v2787_v15, %v2988_v8  ;;  %v3097_v50 = vadd.f32 1.0, %v11250_v58  ;;  %9428 = vlog2.f32 %v3052_v21  ;;  %v11269_v63 = vsub.f32 %v2801_v12, %v3051_v26 }
 0x340   : > { %v9413_v36 = vpop.eup %9412  ;;  %vm11271_vm7 = vcmp.lt.f32.partialorder %v3004_v5, 0.0004427343  ;;  %vm11275_vm8 = vcmp.lt.f32.partialorder %v3022_v16, 0.0004427343  ;;  %9430 = vlog2.f32 %v11201_v46  ;;  %v3065_v7 = vadd.f32 1.0, %v3064_v3 }
 0x341   : > { %v9415_v31 = vpop.eup %9414  ;;  %v11283_v25 = vmul.f32 0.6931472, %v9411_v20  ;;  %v11286_v9 = vmul.f32 %v3002_v27, %v11167_v48  ;;  %v3082_v10 = vmul.f32 -0.5, %v11228_v41  ;;  %vm11292_vm9 = vcmp.lt.f32.partialorder %v3067_v49, 0.0004427343 }
 0x342   : > { %v9417_v62 = vpop.eup %9416  ;;  %v11297_v46 = vmul.f32 %v3020_v23, %v11173_v47  ;;  %9432 = vlog2.f32 %v11214_v24  ;;  %v11300_v12 = vsub.f32 0.0, %v2750_v42  ;;  %v11302_v61 = vmul.f32 0.6931472, %v9413_v36 }
 0x343   : > { %v9419_v13 = vpop.eup %9418  ;;  %9434 = vlog2.f32 %v3097_v50  ;;  %v3037_v48 = vmul.f32 -0.5, %v11222_v6  ;;  %v11306_v37 = vsub.f32 0.0, %v11281_v40  ;;  %v2791_v21 = vmul.f32 0.6931472, %v9415_v31 }
 0x344   : > { %v3085_v8 = vand.u32 2147483647, %v11228_v41  ;;  %v3055_v5 = vmul.f32 -0.5, %v11233_v51  ;;  %v11311_v47 = vsub.f32 0.0, %v11290_v11  ;;  %v3066_v16 = vmul.f32 %v3065_v7, %v11209_v38 }
 0x345   : > { %v9421_v24 = vpop.eup %9420  ;;  %v2795_v26 = vmul.f32 0.6931472, %v9417_v62  ;;  %v3006_v3 = vsel %vm11271_vm7, %v11286_v9, %v11283_v25  ;;  %v3083_v27 = vadd.f32 1.0, %v3082_v10  ;;  %v2805_v49 = vmul.f32 0.6931472, %v9419_v13  ;;  %v11328_v25 = vld [vmem:[%s10917_s22 + $0xf8] sm:$0xff] }
 0x346   : > { %v9423_v20 = vpop.eup %9422  ;;  %9436 = vlog2.f32 %v11241_v60  ;;  %v3100_v23 = vmul.f32 -0.5, %v11250_v58  ;;  %v3070_v50 = vadd.f32 1.0, %v11300_v12  ;;  %v3024_v38 = vsel %vm11275_vm8, %v11297_v46, %v11302_v61 }
 0x347   : > { %v9425_v36 = vpop.eup %9424  ;;  %v3038_v31 = vadd.f32 1.0, %v3037_v48  ;;  %v3040_v7 = vand.u32 2147483647, %v11222_v6  ;;  %v3115_v53 = vadd.f32 1.0, %v11306_v37  ;;  %v3063_v10 = vmul.f32 0.6931472, %v9421_v24 }
 0x348   : > { %v9427_v9 = vpop.eup %9426  ;;  %vm11330_vm11 = vcmp.lt.f32.partialorder %v3085_v8, 0.0004427343  ;;  %v3056_v62 = vadd.f32 1.0, %v3055_v5  ;;  %v3088_v13 = vadd.f32 1.0, %v11311_v47  ;;  %v2809_v43 = vmul.f32 0.6931472, %v9423_v20 }
 0x349   : > { %v9429_v1 = vpop.eup %9428  ;;  %v3084_v29 = vmul.f32 %v3083_v27, %v11228_v41  ;;  %v3058_v46 = vand.u32 2147483647, %v11233_v51  ;;  %9438 = vlog2.f32 %v2750_v42  ;;  %v3101_v48 = vadd.f32 1.0, %v3100_v23 }
 0x34a   : > { %v9431_v61 = vpop.eup %9430  ;;  %v3036_v54 = vmul.f32 0.6931472, %v9425_v36  ;;  %v11338_v4 = vsub.f32 0.0, %v11328_v25  ;;  %9440 = vlog2.f32 %v3070_v50  ;;  %v3081_v8 = vmul.f32 0.6931472, %v9427_v9 }
 0x34b   : > { %v3039_v24 = vmul.f32 %v3038_v31, %v11222_v6  ;;  %vm11341_vm12 = vcmp.lt.f32.partialorder %v3040_v7, 0.0004427343  ;;  %9442 = vlog2.f32 %v3115_v53  ;;  %v3054_v41 = vmul.f32 0.6931472, %v9429_v1 }
 0x34c   : > { %v9433_v20 = vpop.eup %9432  ;;  %v3057_v27 = vmul.f32 %v3056_v62, %v11233_v51  ;;  %v3118_v42 = vmul.f32 -0.5, %v11306_v37  ;;  %9444 = vlog2.f32 %v3088_v13  ;;  %v3069_v36 = vsel %vm11292_vm9, %v3066_v16, %v3063_v10 }
 0x34d   : > { %v9435_v23 = vpop.eup %9434  ;;  %v3103_v50 = vand.u32 2147483647, %v11250_v58  ;;  %v2799_v9 = vmul.f32 0.6931472, %v9431_v61  ;;  %vm11350_vm13 = vcmp.lt.f32.partialorder %v3058_v46, 0.0004427343  ;;  %v11355_v31 = vmul.f32 %v3101_v48, %v11250_v58 }
 0x34e   : > { %9446 = vlog2.f32 %v11281_v40  ;;  %v3133_v1 = vadd.f32 1.0, %v11338_v4  ;;  %v3073_v51 = vmul.f32 -0.5, %v11300_v12  ;;  %v3087_v15 = vsel %vm11330_vm11, %v3084_v29, %v3081_v8 }
 0x34f   : > { %v2803_v16 = vmul.f32 0.6931472, %v9433_v20  ;;  %v3042_v7 = vsel %vm11341_vm12, %v3039_v24, %v3036_v54  ;;  %9448 = vlog2.f32 %v11290_v11  ;;  %v3099_v10 = vmul.f32 0.6931472, %v9435_v23 }
 0x350   : > { %v9437_v53 = vpop.eup %9436  ;;  %v3060_v58 = vsel %vm11350_vm13, %v3057_v27, %v3054_v41  ;;  %v3119_v62 = vadd.f32 1.0, %v3118_v42  ;;  %v3121_v40 = vand.u32 2147483647, %v11306_v37  ;;  %v11368_v13 = vsub.f32 %v2791_v21, %v3006_v3 }
 0x351   : > { %v11370_v46 = vsub.f32 %v2795_v26, %v3024_v38  ;;  %vm11372_vm14 = vcmp.lt.f32.partialorder %v3103_v50, 0.0004427343  ;;  %v3091_v54 = vmul.f32 -0.5, %v11311_v47  ;;  %v11377_v29 = vsub.f32 %v2805_v49, %v3069_v36 }
 0x352   : > { %v11379_v11 = vsub.f32 %v2799_v9, %v3042_v7  ;;  %9450 = vlog2.f32 %v3133_v1  ;;  %v3074_v61 = vadd.f32 1.0, %v3073_v51  ;;  %v11381_v24 = vsub.f32 %v2809_v43, %v3087_v15  ;;  %v11405_v9 = vld [vmem:[%s10917_s22 + $0xe0] sm:$0xff] }
 0x353   : > { %v9439_v48 = vpop.eup %9438  ;;  %v2813_v21 = vmul.f32 0.6931472, %v9437_v53  ;;  %v11383_v26 = vsub.f32 %v2803_v16, %v3060_v58  ;;  %v3076_v3 = vand.u32 2147483647, %v11300_v12  ;;  %v3105_v20 = vsel %vm11372_vm14, %v11355_v31, %v3099_v10 }
 0x354   : > { %16186 = vst [vmem:[#allocation5_spill] sm:$0xff] %v11381_v24  ;;  %v9441_v38 = vpop.eup %9440  ;;  %v11393_v41 = vmul.f32 %v3119_v62, %v11306_v37  ;;  %vm11395_vm15 = vcmp.lt.f32.partialorder %v3121_v40, 0.0004427343  ;;  %9452 = vlog2.f32 %v11328_v25  ;;  %v3136_v36 = vmul.f32 -0.5, %v11338_v4 }
 0x355   : > { %v9443_v27 = vpop.eup %9442  ;;  %v3092_v50 = vadd.f32 1.0, %v3091_v54  ;;  %v3139_v1 = vand.u32 2147483647, %v11338_v4  ;;  %v3075_v51 = vmul.f32 %v3074_v61, %v11300_v12  ;;  %v3094_v15 = vand.u32 2147483647, %v11311_v47 }
 0x356   : > { %v9445_v6 = vpop.eup %9444  ;;  %v3072_v16 = vmul.f32 0.6931472, %v9441_v38  ;;  %vm11418_vm3 = vcmp.lt.f32.partialorder %v3076_v3, 0.0004427343  ;;  %v3117_v12 = vmul.f32 0.6931472, %v9443_v27  ;;  %v11460_v27 = vsub.f32 %v2813_v21, %v3105_v20 }
 0x357   : > { %v11427_v10 = vsub.f32 0.0, %v11405_v9  ;;  %v2807_v40 = vmul.f32 0.6931472, %v9439_v48  ;;  %v3090_v60 = vmul.f32 0.6931472, %v9445_v6  ;;  %v3093_v54 = vmul.f32 %v3092_v50, %v11311_v47 }
 0x358   : > { %v9447_v53 = vpop.eup %9446  ;;  %v16034_v61 = vmov 0.0   ;;  %v3137_v3 = vadd.f32 1.0, %v3136_v36  ;;  %vm11451_vm8 = vcmp.lt.f32.partialorder %v3094_v15, 0.0004427343  ;;  %vm7982_vm9 = vcmask 588804   ;;  %16195 = vst [vmem:[#allocation6_spill] sm:$0xff] %v11460_v27 }
 0x359   : > { %v9449_v58 = vpop.eup %9448  ;;  %vm11475_vm11 = vcmp.lt.f32.partialorder %v3139_v1, 0.0004427343  ;;  %v16038_v7 = vmov 1.0|1.0  }
 0x35a   : > { %v2811_v15 = vmul.f32 0.6931472, %v9449_v58  ;;  %v3138_v1 = vmul.f32 %v3137_v3, %v11338_v4 }
 0x35c   : > { %v9451_v50 = vpop.eup %9450 }
 0x39f   : > { %v2647_v8 = vpop.f32.mrb[36].mxu1 }
 0x3a0   : > { %v11387_v5 = vadd.f32 %v2647_v8, %v10951_v56  ;;  %v2649_v49 = vpop.f32.mrb[37].mxu1 }
 0x3a1   : > { %v11400_v42 = vadd.f32 %v2649_v49, %v10991_v34  ;;  %v2651_v23 = vpop.f32.mrb[38].mxu1  ;;  %v11456_v49 = vld [vmem:[%s10917_s22 + $0xf0] sm:$0xff] }
 0x3a2   : > { %v11408_v37 = vadd.f32 %v2651_v23, %v10951_v56  ;;  %v2653_v31 = vpop.f32.mrb[39].mxu1  ;;  %vm3174_vm4 = vcmp.gt.f32.partialorder %v11387_v5, %v10995_v39  ;;  %v3078_v23 = vsel %vm11418_vm3, %v3075_v51, %v3072_v16  ;;  %v3096_v51 = vsel %vm11451_vm8, %v3093_v54, %v3090_v60  ;;  %vm11566_vm3 = vmor %vm7982_vm9, %vm2187_vm1 }
 0x3a3   : > { %vm3175_vm2 = vcmp.gt.f32.partialorder %v11400_v42, %v11000_v44  ;;  %v11416_v25 = vadd.f32 %v2653_v31, %v10991_v34  ;;  %v2817_v44 = vmul.f32 0.6931472, %v9447_v53  ;;  %v3123_v31 = vsel %vm11395_vm15, %v11393_v41, %v3117_v12  ;;  %v9453_v12 = vpop.eup %9452 }
 0x3a4   : > { %vm3176_vm5 = vcmp.gt.f32.partialorder %v11408_v37, %v11007_v57  ;;  %v11482_v16 = vsub.f32 0.0, %v11456_v49  ;;  %v11493_v53 = vsub.f32 %v2807_v40, %v3078_v23  ;;  %v3135_v54 = vmul.f32 0.6931472, %v9451_v50 }
 0x3a5   : > { %vm3177_vm6 = vcmp.gt.f32.partialorder %v11416_v25, %v11018_v0  ;;  %vm11437_vm7 = vmpackc.low %vm3176_vm5, %vm3174_vm4  ;;  %v11446_v0 = vsel %vm3175_vm2, 1.0, %v16034_v61  ;;  %v11500_v60 = vsub.f32 %v2817_v44, %v3123_v31  ;;  %v3270_v62 = vand.u32 2147483647, %v11387_v5 }
 0x3a6   : > { %v11449_v8 = vsel %vm3177_vm6, 1.0, %v16034_v61  ;;  %v3106_v61 = vadd.f32 1.0, %v11427_v10  ;;  %16199 = vst [vmem:[#allocation8_spill] sm:$0xff] %v11493_v53  ;;  %v11505_v38 = vsub.f32 %v2811_v15, %v3096_v51  ;;  %v3271_v4 = vand.u32 2147483647, %v11400_v42 }
 0x3a7   : > { %v2657_v48 = vpop.f32.mrb[40].mxu1  ;;  %v3879_v47 = vpack.c.bf16 %v11449_v8, %v11446_v0  ;;  %16201 = vst [vmem:[#allocation10_spill] sm:$0xff] %v11500_v60  ;;  %v3272_v44 = vand.u32 2147483647, %v11408_v37  ;;  %v3302_v31 = vsub.f32 0.0, %v3270_v62 }
 0x3a8   : > { %v11465_v36 = vadd.f32 %v2657_v48, %v10951_v56  ;;  %v2659_v6 = vpop.f32.mrb[41].mxu1  ;;  %16202 = vst [vmem:[#allocation11_spill] sm:$0xff] %v11505_v38  ;;  %9454 = vlog2.f32 %v3106_v61 }
 0x3a9   : > { %v11472_v2 = vadd.f32 %v2659_v6, %v10991_v34  ;;  %v2661_v21 = vpop.f32.mrb[42].mxu1  ;;  %8463 = vmatprep.mubr.msk.bf16.mxu1 %vm2162_vm10, %v3879_v47  ;;  %v2821_v47 = vmul.f32 0.6931472, %v9453_v12  ;;  %v3141_v6 = vsel %vm11475_vm11, %v3138_v1, %v3135_v54  ;;  %9456 = vlog2.f32 %v11405_v9 }
 0x3aa   : > { %v11485_v41 = vadd.f32 %v2661_v21, %v10951_v56  ;;  %v2663_v43 = vpop.f32.mrb[43].mxu1  ;;  %8465 = vmatmul.mubr.msk.bf16.vlgmr.msra.gmra.mrb[68].mxu1 %vm11437_vm7, %v16038_v7  ;;  %vm3178_vm12 = vcmp.gt.f32.partialorder %v11465_v36, %v11100_v19  ;;  %v16210_v9 = vmov 1.0|1.0  }
 0x3ab   : > { %vm3179_vm13 = vcmp.gt.f32.partialorder %v11472_v2, %v11038_v33  ;;  %v11498_v58 = vadd.f32 %v2663_v43, %v10991_v34  ;;  %v16203_v33 = vmov 0.0   ;;  %v3303_v43 = vsub.f32 0.0, %v3271_v4 }
 0x3ac   : > { %16198 = vst [vmem:[#allocation7_spill] sm:$0xff] %v11485_v41  ;;  %vm3180_vm14 = vcmp.gt.f32.partialorder %v11485_v41, %v11113_v45  ;;  %v8382_v40 = vsel %vm3178_vm12, 1.0, %v16203_v33  ;;  %v3124_v45 = vadd.f32 1.0, %v11482_v16  ;;  %v11523_v61 = vsel %vm3179_vm13, 1.0, %v16203_v33 }
 0x3ad   : > { %16200 = vst [vmem:[#allocation9_spill] sm:$0xff] %v11498_v58  ;;  %vm3181_vm15 = vcmp.gt.f32.partialorder %v11498_v58, %v11076_v59  ;;  %vm11517_vm2 = vmpackc.low %vm3180_vm14, %vm3178_vm12  ;;  %v8384_v59 = vsel %vm3180_vm14, 1.0, %v16203_v33  ;;  %v11534_v50 = vmul.f32 %v8382_v40, %v11465_v36  ;;  %v8696_v20 = vpack.c.bf16 %v11523_v61, %v8382_v40 }
 0x3ae   : > { %v11526_v48 = vsel %vm3181_vm15, 1.0, %v16203_v33  ;;  %v11542_v51 = vmul.f32 %v8384_v59, %v11485_v41  ;;  %9458 = vlog2.f32 %v3124_v45  ;;  %v11570_v4 = vsub.f32 %v2821_v47, %v3141_v6 }
 0x3af   : > { %16206 = vst [vmem:[#allocation12_spill] sm:$0xff] %v11526_v48  ;;  %v2667_v23 = vpop.f32.mrb[44].mxu1  ;;  %v3881_v19 = vpack.c.bf16 %v11526_v48, %v11523_v61  ;;  %v8697_v62 = vpack.c.bf16 %v11526_v48, %v8384_v59  ;;  %9460 = vlog2.f32 %v11456_v49  ;;  %v3304_v40 = vsub.f32 0.0, %v3272_v44  ;;  %7986 = vst.msk [vmem:[%s11558_s29 + $0x10] sm:$0xff] %vm11566_vm3, %v8696_v20 }
 0x3b0   : > { %v11539_v15 = vadd.f32 %v2667_v23, %v10951_v56  ;;  %v2669_v21 = vpop.f32.mrb[45].mxu1  ;;  %16208 = vst [vmem:[#allocation14_spill] sm:$0xff] %v11542_v51  ;;  %16213 = vst [vmem:[#allocation16_spill] sm:$0xff] %v11570_v4  ;;  %v3273_v45 = vand.u32 2147483647, %v11416_v25  ;;  %v11589_v49 = vmul.f32 -0.5, %v11427_v10 }
 0x3b1   : > { %v11546_v12 = vadd.f32 %v2669_v21, %v10991_v34  ;;  %v2671_v7 = vpop.f32.mrb[46].mxu1  ;;  %8466 = vmatprep.mubr.msk.bf16.mxu1 %vm2162_vm10, %v3881_v19  ;;  %v3334_v59 = vmul.f32 1.442695, %v3302_v31  ;;  %v3274_v23 = vand.u32 2147483647, %v11465_v36 }
 0x3b2   : > { %16207 = vst [vmem:[#allocation13_spill] sm:$0xff] %v11539_v15  ;;  %v11551_v1 = vadd.f32 %v2671_v7, %v10951_v56  ;;  %v2673_v54 = vpop.f32.mrb[47].mxu1  ;;  %8468 = vmatmul.mubr.msk.bf16.gmra.mrb[72].mxu1 %vm11517_vm2, %v16210_v9  ;;  %7987 = vst.msk [vmem:[%s11558_s29 + $0x18] sm:$0xff] %vm11566_vm3, %v8697_v62  ;;  %vm3182_vm7 = vcmp.gt.f32.partialorder %v11539_v15, %v11203_v18  ;;  %v3336_v47 = vmul.f32 1.442695, %v3303_v43  ;;  %v11595_v19 = vpop.eup %9454  ;;  %v11612_v62 = vmul.f32 -0.5, %v11482_v16 }
 0x3b3   : > { %16209 = vst [vmem:[#allocation15_spill] sm:$0xff] %v11546_v12  ;;  %vm3183_vm6 = vcmp.gt.f32.partialorder %v11546_v12, %v11098_v32  ;;  %v11577_v3 = vadd.f32 %v2673_v54, %v10991_v34  ;;  %v3275_v32 = vand.u32 2147483647, %v11472_v2  ;;  %16215 = vst [vmem:[#allocation18_spill] sm:$0xff] %v11595_v19  ;;  %v8386_v21 = vsel %vm3182_vm7, 1.0, %v16203_v33 }
 0x3b4   : > { %v11598_v6 = vsel %vm3183_vm6, 1.0, %v16203_v33  ;;  %vm3184_vm9 = vcmp.gt.f32.partialorder %v11551_v1, %v11216_v30  ;;  %v3338_v43 = vmul.f32 1.442695, %v3304_v40  ;;  %9462 = vpow2.f32 %v3334_v59 }
 0x3b5   : > { %16214 = vst [vmem:[#allocation17_spill] sm:$0xff] %v11577_v3  ;;  %vm3185_vm8 = vcmp.gt.f32.partialorder %v11577_v3, %v11129_v14  ;;  %16216 = vst [vmem:[#allocation19_spill] sm:$0xff] %v11598_v6  ;;  %v3305_v14 = vsub.f32 0.0, %v3273_v45  ;;  %v3306_v44 = vsub.f32 0.0, %v3274_v23  ;;  %v3276_v19 = vand.u32 2147483647, %v11485_v41  ;;  %v11635_v23 = vpop.eup %9456 }
 0x3b6   : > { %v11601_v31 = vsel %vm3185_vm8, 1.0, %v16203_v33  ;;  %v11616_v4 = vmul.f32 %v8386_v21, %v11539_v15  ;;  %v3307_v38 = vsub.f32 0.0, %v3275_v32  ;;  %v3277_v53 = vand.u32 2147483647, %v11498_v58  ;;  %vm8470_vm11 = vmpackc.low %vm3184_vm9, %vm3182_vm7  ;;  %16220 = vst [vmem:[#allocation23_spill] sm:$0xff] %v11635_v23 }
 0x3b7   : > { %16217 = vst [vmem:[#allocation20_spill] sm:$0xff] %v11601_v31  ;;  %v2677_v20 = vpop.f32.mrb[48].mxu1  ;;  %v3883_v54 = vpack.c.bf16 %v11601_v31, %v11598_v6  ;;  %v11627_v59 = vsel %vm3184_vm9, 1.0, %v16203_v33  ;;  %9464 = vpow2.f32 %v3336_v47  ;;  %v3340_v30 = vmul.f32 1.442695, %v3305_v14 }
 0x3b8   : > { %v2679_v60 = vpop.f32.mrb[49].mxu1  ;;  %16218 = vst [vmem:[#allocation21_spill] sm:$0xff] %v11616_v4  ;;  %v8698_v4 = vpack.c.bf16 %v11598_v6, %v8386_v21  ;;  %v11645_v18 = vpop.eup %9458  ;;  %9466 = vpow2.f32 %v3338_v43  ;;  %v3308_v23 = vsub.f32 0.0, %v3276_v19  ;;  %v3278_v24 = vand.u32 2147483647, %v11539_v15 }
 0x3b9   : > { %v11620_v40 = vadd.f32 %v2679_v60, %v10991_v34  ;;  %v2681_v45 = vpop.f32.mrb[50].mxu1  ;;  %8469 = vmatprep.mubr.msk.bf16.mxu1 %vm2162_vm10, %v3883_v54  ;;  %v11638_v60 = vadd.f32 %v2677_v20, %v10951_v56  ;;  %16223 = vst [vmem:[#allocation26_spill] sm:$0xff] %v11645_v18  ;;  %v11652_v20 = vpop.eup %9460  ;;  %v8699_v21 = vpack.c.bf16 %v11601_v31, %v11627_v59  ;;  %v3344_v43 = vmul.f32 1.442695, %v3307_v38 }
 0x3ba   : > { %v11641_v32 = vadd.f32 %v2681_v45, %v10951_v56  ;;  %v2683_v54 = vpop.f32.mrb[51].mxu1  ;;  %8471 = vmatmul.mubr.msk.bf16.gmra.mrb[76].mxu1 %vm8470_vm11, %v16210_v9  ;;  %16225 = vst [vmem:[#allocation28_spill] sm:$0xff] %v11652_v20  ;;  %v3342_v45 = vmul.f32 1.442695, %v3306_v44  ;;  %7988 = vst.msk [vmem:[%s11558_s29 + $0x20] sm:$0xff] %vm11566_vm3, %v8698_v4  ;;  %v3309_v14 = vsub.f32 0.0, %v3277_v53  ;;  %9468 = vpow2.f32 %v3340_v30 }
 0x3bb   : > { %16219 = vst [vmem:[#allocation22_spill] sm:$0xff] %v11620_v40  ;;  %16221 = vst [vmem:[#allocation24_spill] sm:$0xff] %v11638_v60  ;;  %vm3187_vm12 = vcmp.gt.f32.partialorder %v11620_v40, %v11152_v28  ;;  %v11650_v47 = vadd.f32 %v2683_v54, %v10991_v34  ;;  %v3279_v18 = vand.u32 2147483647, %v11546_v12  ;;  %vm3186_vm14 = vcmp.gt.f32.partialorder %v11638_v60, %v11263_v35 }
 0x3bc   : > { %16222 = vst [vmem:[#allocation25_spill] sm:$0xff] %v11641_v32  ;;  %v11664_v28 = vsel %vm3187_vm12, 1.0, %v16203_v33  ;;  %7989 = vst.msk [vmem:[%s11558_s29 + $0x28] sm:$0xff] %vm11566_vm3, %v8699_v21  ;;  %vm3188_vm15 = vcmp.gt.f32.partialorder %v11641_v32, %v11265_v55  ;;  %v3280_v53 = vand.u32 2147483647, %v11551_v1  ;;  %9470 = vpow2.f32 %v3342_v45 }
 0x3bd   : > { %16224 = vst [vmem:[#allocation27_spill] sm:$0xff] %v11650_v47  ;;  %vm3189_vm13 = vcmp.gt.f32.partialorder %v11650_v47, %v11175_v52  ;;  %16226 = vst [vmem:[#allocation29_spill] sm:$0xff] %v11664_v28  ;;  %v3346_v19 = vmul.f32 1.442695, %v3308_v23  ;;  %v3310_v54 = vsub.f32 0.0, %v3278_v24  ;;  %v11684_v21 = vsel %vm3174_vm4, 1.0, %v16203_v33 }
 0x3be   : > { %v11667_v44 = vsel %vm3189_vm13, 1.0, %v16203_v33  ;;  %v3348_v31 = vmul.f32 1.442695, %v3309_v14  ;;  %v3281_v30 = vand.u32 2147483647, %v11577_v3  ;;  %v11695_v24 = vsel %vm3186_vm14, 1.0, %v16203_v33  ;;  %vm8473_vm4 = vmpackc.low %vm3188_vm15, %vm3186_vm14  ;;  %v11703_v39 = vpop.eup %9462 }
 0x3bf   : > { %16227 = vst [vmem:[#allocation30_spill] sm:$0xff] %v11667_v44  ;;  %v2687_v38 = vpop.f32.mrb[52].mxu1  ;;  %v3885_v52 = vpack.c.bf16 %v11667_v44, %v11664_v28  ;;  %9472 = vpow2.f32 %v3344_v43  ;;  %v3311_v23 = vsub.f32 0.0, %v3279_v18  ;;  %v11710_v14 = vsel %vm3188_vm15, 1.0, %v16203_v33 }
 0x3c0   : > { %v2689_v20 = vpop.f32.mrb[53].mxu1  ;;  %16229 = vst [vmem:[#allocation32_spill] sm:$0xff] %v11710_v14  ;;  %v3312_v35 = vsub.f32 0.0, %v3280_v53  ;;  %9474 = vpow2.f32 %v3346_v19  ;;  %v3350_v4 = vmul.f32 1.442695, %v3310_v54  ;;  %v11722_v55 = vadd.f32 %v2687_v38, %v10951_v56 }
 0x3c1   : > { %v11688_v6 = vadd.f32 %v2689_v20, %v10991_v34  ;;  %v2691_v12 = vpop.f32.mrb[54].mxu1  ;;  %8472 = vmatprep.mubr.msk.bf16.mxu1 %vm2162_vm10, %v3885_v52  ;;  %v3282_v20 = vand.u32 2147483647, %v11638_v60  ;;  %v3283_v52 = vand.u32 2147483647, %v11620_v40  ;;  %v11719_v43 = vpop.eup %9464  ;;  %v8700_v53 = vpack.c.bf16 %v11664_v28, %v11695_v24 }
 0x3c2   : > { %v2693_v45 = vpop.f32.mrb[55].mxu1  ;;  %8474 = vmatmul.mubr.msk.bf16.gmra.mrb[80].mxu1 %vm8473_vm4, %v16210_v9  ;;  %16231 = vst [vmem:[#allocation34_spill] sm:$0xff] %v11722_v55  ;;  %v11726_v3 = vpop.eup %9466  ;;  %v3313_v40 = vsub.f32 0.0, %v3281_v30  ;;  %v3352_v19 = vmul.f32 1.442695, %v3311_v23  ;;  %9476 = vpow2.f32 %v3348_v31  ;;  %v3128_v27 = vadd.f32 1.0, %v11612_v62 }
 0x3c3   : > { %16228 = vst [vmem:[#allocation31_spill] sm:$0xff] %v11688_v6  ;;  %vm3191_vm2 = vcmp.gt.f32.partialorder %v11688_v6, %v11218_v17  ;;  %v11717_v18 = vadd.f32 %v2693_v45, %v10991_v34  ;;  %v3284_v17 = vand.u32 2147483647, %v11641_v32  ;;  %v8701_v45 = vpack.c.bf16 %v11667_v44, %v11710_v14  ;;  %7990 = vst.msk [vmem:[%s11558_s29 + $0x30] sm:$0xff] %vm11566_vm3, %v8700_v53 }
 0x3c4   : > { %v3314_v54 = vsub.f32 0.0, %v3282_v20  ;;  %v11734_v15 = vsel %vm3191_vm2, 1.0, %v16203_v33  ;;  %v3354_v30 = vmul.f32 1.442695, %v3312_v35  ;;  %v3315_v28 = vsub.f32 0.0, %v3283_v52  ;;  %v11755_v52 = vpop.eup %9468 }
 0x3c5   : > { %16230 = vst [vmem:[#allocation33_spill] sm:$0xff] %v11717_v18  ;;  %vm3193_vm6 = vcmp.gt.f32.partialorder %v11717_v18, %v11260_v22  ;;  %16232 = vst [vmem:[#allocation35_spill] sm:$0xff] %v11734_v15  ;;  %v3285_v32 = vand.u32 2147483647, %v11650_v47  ;;  %v3286_v20 = vand.u32 2147483647, %v11722_v55  ;;  %9478 = vpow2.f32 %v3350_v4 }
 0x3c6   : > { %v11737_v38 = vsel %vm3193_vm6, 1.0, %v16203_v33  ;;  %7991 = vst.msk [vmem:[%s11558_s29 + $0x38] sm:$0xff] %vm11566_vm3, %v8701_v45  ;;  %v3494_v14 = vadd.f32 1.0, %v11703_v39  ;;  %v3110_v35 = vadd.f32 1.0, %v11589_v49  ;;  %v3356_v53 = vmul.f32 1.442695, %v3313_v40  ;;  %v11761_v31 = vpop.eup %9470 }
 0x3c7   : > { %16233 = vst [vmem:[#allocation36_spill] sm:$0xff] %v11737_v38  ;;  %v11746_v22 = vpop.f32.mrb[56].mxu1  ;;  %v3887_v23 = vpack.c.bf16 %v11737_v38, %v11734_v15  ;;  %v3316_v47 = vsub.f32 0.0, %v3284_v17  ;;  %9480 = vpow2.f32 %v3352_v19  ;;  %v3358_v51 = vmul.f32 1.442695, %v3314_v54 }
 0x3c8   : > { %v11751_v44 = vpop.f32.mrb[57].mxu1  ;;  %v3398_v41 = vmul.f32 %v11684_v21, %v11387_v5  ;;  %v3430_v49 = vmax.f32 %v11387_v5, 0.0  ;;  %9482 = vpow2.f32 %v3354_v30  ;;  %v3360_v4 = vmul.f32 1.442695, %v3315_v28 }
 0x3c9   : > { %v11757_v45 = vpop.f32.mrb[58].mxu1  ;;  %8475 = vmatprep.mubr.msk.bf16.mxu1 %vm2162_vm10, %v3887_v23  ;;  %v3317_v40 = vsub.f32 0.0, %v3285_v32  ;;  %v3399_v17 = vmul.f32 %v11446_v0, %v11400_v42  ;;  %v11768_v58 = vpop.eup %9472  ;;  %v3318_v23 = vsub.f32 0.0, %v3286_v20  ;;  %v3287_v62 = vand.u32 2147483647, %v11688_v6 }
 0x3ca   : > { %v2703_v48 = vpop.f32.mrb[59].mxu1  ;;  %v11772_v19 = vadd.f32 %v2691_v12, %v10951_v56  ;;  %9484 = vlog2.f32 %v3494_v14  ;;  %v3362_v54 = vmul.f32 1.442695, %v3316_v47  ;;  %v3431_v5 = vmax.f32 %v11400_v42, 0.0  ;;  %v11776_v32 = vpop.eup %9474 }
 0x3cb   : > { %9486 = vpow2.f32 %v3356_v53  ;;  %v3503_v28 = vadd.f32 1.0, %v11719_v43  ;;  %16235 = vst [vmem:[#allocation38_spill] sm:$0xff] %v11776_v32  ;;  %v8694_v30 = vpack.c.bf16 %v11446_v0, %v11684_v21  ;;  %v11781_v20 = vmul.f32 %v3110_v35, %v11427_v10  ;;  %v9169_v35 = vld [vmem:[%s16021_s3 + $0x258] ss:$8 sps:$4 sm:$0xff]  }
 0x3cc   : > { %16234 = vst [vmem:[#allocation37_spill] sm:$0xff] %v11772_v19  ;;  %9488 = vpow2.f32 %v3358_v51  ;;  %v11784_v12 = vmul.f32 %v3128_v27, %v11482_v16  ;;  %v3364_v14 = vmul.f32 1.442695, %v3317_v40  ;;  %v11786_v53 = vsub.f32 %v3398_v41, %v3430_v49  ;;  %v9171_v49 = vld [vmem:[%s16021_s3 + $0x25c] ss:$8 sps:$4 sm:$0xff]  }
 0x3cd   : > { %16236 = vst [vmem:[#allocation39_spill] sm:$0xff] %v11781_v20  ;;  %v11788_v47 = vsub.f32 %v3399_v17, %v3431_v5  ;;  %9490 = vlog2.f32 %v3503_v28  ;;  %v3366_v6 = vmul.f32 1.442695, %v3318_v23  ;;  %v3319_v51 = vsub.f32 0.0, %v3287_v62  ;;  %7984 = vst.msk [vmem:[%s11558_s29] sm:$0xff] %vm11566_vm3, %v8694_v30  ;;  %4507 = vmatprep.subr.bf16.mxu1 %v9171_v49 }
 0x3ce   : > { %16237 = vst [vmem:[#allocation40_spill] sm:$0xff] %v11784_v12  ;;  %9492 = vpow2.f32 %v3360_v4  ;;  %v3288_v32 = vand.u32 2147483647, %v11772_v19  ;;  %v11800_v27 = vmul.f32 %v11627_v59, %v11551_v1  ;;  %v3497_v41 = vmul.f32 -0.5, %v11703_v39  ;;  %v11813_v4 = vpop.eup %9476  ;;  %4508 = vmatpush1.bf16.msra.mxu1 %v9169_v35  ;;  %v9177_v35 = vld [vmem:[%s16021_s3 + $0x27c] ss:$8 sps:$4 sm:$0xff]  }
 0x3cf   : > { %v11790_v42 = vpop.f32.mrb[60].mxu1  ;;  %9494 = vpow2.f32 %v3362_v54  ;;  %vm3190_vm7 = vcmp.gt.f32.partialorder %v11722_v55, %v11368_v13  ;;  %v3506_v59 = vmul.f32 -0.5, %v11719_v43  ;;  %v11817_v40 = vadd.f32 %v2703_v48, %v10991_v34  ;;  %v11826_v23 = vpop.eup %9478 }
 0x3d0   : > { %v11796_v0 = vpop.f32.mrb[61].mxu1  ;;  %16238 = vst [vmem:[#allocation41_spill] sm:$0xff] %v11800_v27  ;;  %vm3192_vm8 = vcmp.gt.f32.partialorder %v11772_v19, %v11370_v46  ;;  %v11822_v13 = vsel %vm3190_vm7, 1.0, %v16203_v33  ;;  %9496 = vpow2.f32 %v3364_v14  ;;  %v3289_v62 = vand.u32 2147483647, %v11717_v18 }
 0x3d1   : > { %v11805_v21 = vpop.f32.mrb[62].mxu1  ;;  %16239 = vst [vmem:[#allocation42_spill] sm:$0xff] %v11817_v40  ;;  %16240 = vst [vmem:[#allocation43_spill] sm:$0xff] %v11822_v13  ;;  %v11830_v54 = vsel %vm3192_vm8, 1.0, %v16203_v33  ;;  %v8702_v48 = vpack.c.bf16 %v11734_v15, %v11822_v13  ;;  %v9174_v46 = vld [vmem:[%s16021_s3 + $0x26c] ss:$8 sps:$4 sm:$0xff]   ;;  %v11837_v5 = vpop.eup %9480  ;;  %v11841_v14 = vadd.f32 %v11751_v44, %v10991_v34  ;;  %9498 = vpow2.f32 %v3366_v6 }
 0x3d2   : > { %v11824_v17 = vpop.f32.mrb[63].mxu1  ;;  %16241 = vst [vmem:[#allocation44_spill] sm:$0xff] %v11830_v54  ;;  %vm8476_vm9 = vmpackc.low %vm3192_vm8, %vm3190_vm7  ;;  %v3368_v28 = vmul.f32 1.442695, %v3319_v51  ;;  %v3320_v30 = vsub.f32 0.0, %v3288_v32  ;;  %v8703_v18 = vpack.c.bf16 %v11737_v38, %v11830_v54  ;;  %v11846_v15 = vpop.eup %9482  ;;  %v3498_v49 = vadd.f32 1.0, %v3497_v41  ;;  %4509 = vmatprep.subr.bf16.mxu1 %v9174_v46 }
 0x3d3   : > { %8477 = vmatmul.mubr.msk.bf16.gmra.mrb[84].mxu1 %vm8476_vm9, %v16210_v9  ;;  %v3500_v19 = vand.u32 2147483647, %v11703_v39  ;;  %7992 = vst.msk [vmem:[%s11558_s29 + $0x40] sm:$0xff] %vm11566_vm3, %v8702_v48  ;;  %v3512_v32 = vadd.f32 1.0, %v11726_v3  ;;  %v9172_v44 = vld [vmem:[%s16021_s3 + $0x268] ss:$8 sps:$4 sm:$0xff]   ;;  %vm3197_vm11 = vcmp.gt.f32.partialorder %v11817_v40, %v11377_v29  ;;  %v11875_v48 = vmul.f32 %v11695_v24, %v11638_v60 }
 0x3d4   : > { %v9485_v51 = vpop.eup %9484  ;;  %v3507_v13 = vadd.f32 1.0, %v3506_v59  ;;  %7993 = vst.msk [vmem:[%s11558_s29 + $0x48] sm:$0xff] %vm11566_vm3, %v8703_v18  ;;  %v11865_v6 = vsel %vm3176_vm5, 1.0, %v16203_v33  ;;  %v3521_v41 = vadd.f32 1.0, %v11755_v52  ;;  %v3509_v38 = vand.u32 2147483647, %v11719_v43  ;;  %4510 = vmatpush1.bf16.msra.mxu1 %v9172_v44 }
 0x3d5   : > { %v11871_v59 = vpop.eup %9486  ;;  %16242 = vst [vmem:[#allocation45_spill] sm:$0xff] %v11875_v48  ;;  %v3496_v18 = vmul.f32 0.6931472, %v9485_v51  ;;  %9500 = vlog2.f32 %v3512_v32  ;;  %v3370_v55 = vmul.f32 1.442695, %v3320_v30  ;;  %v11882_v46 = vsub.f32 0.0, %v3289_v62  ;;  %4511 = vmatprep.subr.bf16.mxu1 %v9177_v35 }
 0x3d6   : > { %v11880_v54 = vpop.eup %9488  ;;  %vm3195_vm5 = vcmp.gt.f32.partialorder %v11841_v14, %v11269_v63  ;;  %9502 = vlog2.f32 %v3521_v41  ;;  %v11890_v24 = vadd.f32 %v11746_v22, %v10951_v56  ;;  %v3499_v32 = vmul.f32 %v11703_v39, %v3498_v49  ;;  %v9175_v22 = vld [vmem:[%s16021_s3 + $0x278] ss:$8 sps:$4 sm:$0xff]  }
 0x3d7   : > { %v11878_v57 = vpop.f32.mrb[64].mxu1  ;;  %v9491_v20 = vpop.eup %9490  ;;  %v11897_v30 = vsel %vm3197_vm11, 1.0, %v16203_v33  ;;  %v8695_v62 = vpack.c.bf16 %v11449_v8, %v11865_v6  ;;  %vm11908_vm12 = vcmp.lt.f32.partialorder %v3500_v19, 0.0004427343  ;;  %v3508_v49 = vmul.f32 %v11719_v43, %v3507_v13 }
 0x3d8   : > { %v11886_v12 = vpop.f32.mrb[65].mxu1  ;;  %16243 = vst [vmem:[#allocation46_spill] sm:$0xff] %v11897_v30  ;;  %v11906_v41 = vpop.eup %9492  ;;  %v3505_v29 = vmul.f32 0.6931472, %v9491_v20  ;;  %v3515_v48 = vmul.f32 -0.5, %v11726_v3  ;;  %v11922_v44 = vsel %vm3195_vm5, 1.0, %v16203_v33  ;;  %v3502_v19 = vsel %vm11908_vm12, %v3499_v32, %v3496_v18  ;;  %4512 = vmatpush1.bf16.msra.mxu1 %v9175_v22 }
 0x3d9   : > { %v11901_v51 = vpop.f32.mrb[66].mxu1  ;;  %v11916_v27 = vpop.eup %9494  ;;  %vm3510_vm13 = vcmp.lt.f32.partialorder %v3509_v38, 0.0004427343  ;;  %v3524_v20 = vmul.f32 -0.5, %v11755_v52  ;;  %7985 = vst.msk [vmem:[%s11558_s29 + $0x8] sm:$0xff] %vm11566_vm3, %v8695_v62  ;;  %9504 = vpow2.f32 %v3368_v28  ;;  %v3889_v13 = vpack.c.bf16 %v11897_v30, %v11922_v44 }
 0x3da   : > { %v11914_v60 = vpop.f32.mrb[67].mxu1  ;;  %v3511_v43 = vsel %vm3510_vm13, %v3508_v49, %v3505_v29  ;;  %v3403_v35 = vmul.f32 %v11523_v61, %v11472_v2  ;;  %v11934_v63 = vpop.eup %9496  ;;  %9506 = vpow2.f32 %v3370_v55  ;;  %v3290_v39 = vand.u32 2147483647, %v11890_v24 }
 0x3db   : > { %v3783_v38 = vsub.f32 %v11788_v47, %v3511_v43  ;;  %v3401_v18 = vmul.f32 %v11449_v8, %v11416_v25  ;;  %v3782_v28 = vsub.f32 %v11786_v53, %v3502_v19  ;;  %v3516_v32 = vadd.f32 1.0, %v3515_v48  ;;  %8478 = vmatprep.mubr.msk.bf16.mxu1 %vm2162_vm10, %v3889_v13  ;;  %v11944_v29 = vpop.eup %9498 }
 0x3dc   : > { %v3434_v62 = vmax.f32 %v11465_v36, 0.0  ;;  %v3435_v61 = vmax.f32 %v11472_v2, 0.0  ;;  %v3518_v49 = vand.u32 2147483647, %v11726_v3  ;;  %v3525_v47 = vadd.f32 1.0, %v3524_v20 }
 0x3dd   : > { %v3814_v55 = vsel %vm2162_vm10, %v3783_v38, 0.0  ;;  %v3530_v43 = vadd.f32 1.0, %v11761_v31  ;;  %v3527_v22 = vand.u32 2147483647, %v11755_v52  ;;  %v3291_v2 = vand.u32 2147483647, %v11841_v14 }
 0x3de   : > { %v3815_v8 = vadd.f32 %v3814_v55, %v3782_v28  ;;  %v11951_v53 = vsub.f32 %v11534_v50, %v3434_v62  ;;  %v11953_v48 = vsub.f32 %v3403_v35, %v3435_v61  ;;  %v11958_v19 = vadd.f32 %v11757_v45, %v10951_v56 }
 0x3df   : > { %v9501_v36 = vpop.eup %9500  ;;  %v3400_v20 = vmul.f32 %v11865_v6, %v11408_v37  ;;  %v3433_v13 = vmax.f32 %v11416_v25, 0.0  ;;  %v3517_v50 = vmul.f32 %v11726_v3, %v3516_v32  ;;  %9508 = vlog2.f32 %v3530_v43 }
 0x3e0   : > { %v9503_v38 = vpop.eup %9502  ;;  %3816 = vadd.xlane.f32.xlu0 %v3815_v8  ;;  %v3514_v28 = vmul.f32 0.6931472, %v9501_v36  ;;  %v3539_v35 = vadd.f32 1.0, %v11768_v58  ;;  %v3432_v62 = vmax.f32 %v11408_v37, 0.0  ;;  %vm11966_vm14 = vcmp.lt.f32.partialorder %v3518_v49, 0.0004427343 }
 0x3e1   : > { %v3523_v45 = vmul.f32 0.6931472, %v9503_v38  ;;  %v3526_v55 = vmul.f32 %v11755_v52, %v3525_v47  ;;  %v3465_v6 = vsub.f32 %v3401_v18, %v3433_v13  ;;  %vm3528_vm15 = vcmp.lt.f32.partialorder %v3527_v22, 0.0004427343  ;;  %v16249_v22 = vld [vmem:[#allocation12_spill] sm:$0xff] }
 0x3e2   : > { %v3520_v25 = vsel %vm11966_vm14, %v3517_v50, %v3514_v28  ;;  %v3533_v8 = vmul.f32 -0.5, %v11761_v31  ;;  %v11975_v3 = vmul.f32 1.442695, %v11882_v46  ;;  %v3464_v32 = vsub.f32 %v3400_v20, %v3432_v62  ;;  %v16248_v46 = vld [vmem:[#allocation9_spill] sm:$0xff] }
 0x3e3   : > { %v3529_v43 = vsel %vm3528_vm15, %v3526_v55, %v3523_v45  ;;  %9510 = vlog2.f32 %v3539_v35  ;;  %v11977_v37 = vpop.eup %9504  ;;  %v3322_v49 = vsub.f32 0.0, %v3290_v39  ;;  %v3323_v36 = vsub.f32 0.0, %v3291_v2 }
 0x3e4   : > { %v3292_v38 = vand.u32 2147483647, %v11958_v19  ;;  %v3785_v52 = vsub.f32 %v3465_v6, %v3529_v43  ;;  %v11980_v18 = vpop.eup %9506  ;;  %v3784_v47 = vsub.f32 %v3464_v32, %v3520_v25  ;;  %vm3194_vm4 = vcmp.gt.f32.partialorder %v11890_v24, %v11379_v11 }
 0x3e5   : > { %vm3196_vm2 = vcmp.gt.f32.partialorder %v11958_v19, %v11383_v26  ;;  %v3405_v20 = vmul.f32 %v16249_v22, %v16248_v46  ;;  %v3534_v28 = vadd.f32 1.0, %v3533_v8  ;;  %v3542_v39 = vmul.f32 -0.5, %v11768_v58  ;;  %v16250_v26 = vld [vmem:[#allocation7_spill] sm:$0xff]  ;;  %v16252_v8 = vld [vmem:[#allocation14_spill] sm:$0xff] }
 0x3e6   : > { %v3818_v13 = vsel %vm2162_vm10, %v3785_v52, 0.0  ;;  %v11992_v2 = vadd.f32 %v11824_v17, %v10991_v34  ;;  %vm8479_vm6 = vmpackc.low %vm3196_vm2, %vm3194_vm4  ;;  %v11995_v35 = vsel %vm3194_vm4, 1.0, %v16203_v33  ;;  %v11998_v11 = vsel %vm3196_vm2, 1.0, %v16203_v33  ;;  %v16254_v22 = vld [vmem:[#allocation6_spill] sm:$0xff] }
 0x3e7   : > { %v3819_v50 = vadd.f32 %v3818_v13, %v3784_v47  ;;  %8480 = vmatmul.mubr.msk.bf16.gmra.mrb[88].mxu1 %vm8479_vm6, %v16210_v9  ;;  %v3436_v62 = vmax.f32 %v16250_v26, 0.0  ;;  %v12004_v61 = vadd.f32 %v11790_v42, %v10951_v56  ;;  %v12008_v17 = vadd.f32 %v11796_v0, %v10991_v34  ;;  %v16253_v42 = vld [vmem:[#allocation38_spill] sm:$0xff] }
 0x3e8   : > { %v3536_v45 = vand.u32 2147483647, %v11761_v31  ;;  %v8704_v55 = vpack.c.bf16 %v11922_v44, %v11995_v35  ;;  %v8705_v6 = vpack.c.bf16 %v11897_v30, %v11998_v11  ;;  %v3437_v25 = vmax.f32 %v16248_v46, 0.0 }
 0x3e9   : > { %16251 = vst [vmem:[#allocation9_spill] sm:$0xff] %v12008_v17  ;;  %3820 = vadd.xlane.f32.xlu1 %v3819_v50  ;;  %v12017_v32 = vsub.f32 %v16252_v8, %v3436_v62  ;;  %v3548_v43 = vadd.f32 1.0, %v16253_v42  ;;  %v9509_v52 = vpop.eup %9508  ;;  %v3543_v0 = vadd.f32 1.0, %v3542_v39  ;;  %v3545_v47 = vand.u32 2147483647, %v11768_v58  ;;  %v16255_v8 = vld [vmem:[#allocation5_spill] sm:$0xff] }
 0x3ea   : > { %vm3201_vm7 = vcmp.gt.f32.partialorder %v11992_v2, %v16254_v22  ;;  %7994 = vst.msk [vmem:[%s11558_s29 + $0x50] sm:$0xff] %vm11566_vm3, %v8704_v55  ;;  %v3557_v13 = vadd.f32 1.0, %v11813_v4  ;;  %v3532_v50 = vmul.f32 0.6931472, %v9509_v52  ;;  %v3535_v46 = vmul.f32 %v11761_v31, %v3534_v28  ;;  %7995 = vst.msk [vmem:[%s11558_s29 + $0x58] sm:$0xff] %vm11566_vm3, %v8705_v6 }
 0x3eb   : > { %v12031_v26 = vsub.f32 %v3405_v20, %v3437_v25  ;;  %9512 = vlog2.f32 %v3548_v43  ;;  %v3374_v39 = vmul.f32 1.442695, %v3322_v49  ;;  %v3293_v62 = vand.u32 2147483647, %v11817_v40 }
 0x3ec   : > { %vm3199_vm8 = vcmp.gt.f32.partialorder %v12008_v17, %v16255_v8  ;;  %vm3537_vm9 = vcmp.lt.f32.partialorder %v3536_v45, 0.0004427343  ;;  %v3294_v55 = vand.u32 2147483647, %v12004_v61  ;;  %v12038_v52 = vsel %vm3201_vm7, 1.0, %v16203_v33 }
 0x3ed   : > { %v9511_v22 = vpop.eup %9510  ;;  %v3538_v30 = vsel %vm3537_vm9, %v3535_v46, %v3532_v50  ;;  %16256 = vst [vmem:[#allocation12_spill] sm:$0xff] %v12038_v52  ;;  %9514 = vlog2.f32 %v3557_v13  ;;  %v3544_v20 = vmul.f32 %v11768_v58, %v3543_v0  ;;  %v3551_v49 = vmul.f32 -0.5, %v16253_v42  ;;  %v16258_v58 = vld [vmem:[#allocation13_spill] sm:$0xff] }
 0x3ee   : > { %v3541_v31 = vmul.f32 0.6931472, %v9511_v22  ;;  %v3786_v28 = vsub.f32 %v11951_v53, %v3538_v30  ;;  %v3324_v6 = vsub.f32 0.0, %v3292_v38  ;;  %v12044_v25 = vsel %vm3199_vm8, 1.0, %v16203_v33 }
 0x3ef   : > { %v12048_v45 = vadd.f32 %v11805_v21, %v10951_v56  ;;  %vm3546_vm11 = vcmp.lt.f32.partialorder %v3545_v47, 0.0004427343  ;;  %v3560_v50 = vmul.f32 -0.5, %v11813_v4  ;;  %v3891_v13 = vpack.c.bf16 %v12038_v52, %v12044_v25  ;;  %v16259_v47 = vld [vmem:[#allocation21_spill] sm:$0xff] }
 0x3f0   : > { %v3547_v43 = vsel %vm3546_vm11, %v3544_v20, %v3541_v31  ;;  %v3438_v0 = vmax.f32 %v16258_v58, 0.0  ;;  %9516 = vpow2.f32 %v11975_v3  ;;  %v3376_v30 = vmul.f32 1.442695, %v3323_v36 }
 0x3f1   : > { %16257 = vst [vmem:[#allocation7_spill] sm:$0xff] %v12048_v45  ;;  %v3325_v53 = vsub.f32 0.0, %v3293_v62  ;;  %v3787_v38 = vsub.f32 %v11953_v48, %v3547_v43  ;;  %v3326_v46 = vsub.f32 0.0, %v3294_v55  ;;  %v3295_v8 = vand.u32 2147483647, %v12008_v17  ;;  %8481 = vmatprep.mubr.msk.bf16.mxu1 %vm2162_vm10, %v3891_v13 }
 0x3f2   : > { %v3552_v21 = vadd.f32 1.0, %v3551_v49  ;;  %v12059_v22 = vsub.f32 %v16259_v47, %v3438_v0  ;;  %v3296_v31 = vand.u32 2147483647, %v12048_v45  ;;  %v3554_v58 = vand.u32 2147483647, %v16253_v42 }
 0x3f3   : > { %v3822_v20 = vsel %vm2162_vm10, %v3787_v38, 0.0  ;;  %v3566_v3 = vadd.f32 1.0, %v11826_v23  ;;  %9518 = vpow2.f32 %v3374_v39  ;;  %v3378_v36 = vmul.f32 1.442695, %v3324_v6 }
 0x3f4   : > { %v3823_v48 = vadd.f32 %v3822_v20, %v3786_v28  ;;  %v3561_v62 = vadd.f32 1.0, %v3560_v50  ;;  %9520 = vpow2.f32 %v3376_v30  ;;  %v3380_v49 = vmul.f32 1.442695, %v3325_v53  ;;  %v9178_v53 = vld [vmem:[%s16021_s3 + $0x288] ss:$8 sps:$4 sm:$0xff]  }
 0x3f5   : > { %v9513_v55 = vpop.eup %9512  ;;  %v3563_v43 = vand.u32 2147483647, %v11813_v4  ;;  %v3575_v13 = vadd.f32 1.0, %v11837_v5  ;;  %v12067_v0 = vmul.f32 1.442695, %v3326_v46  ;;  %v3553_v38 = vmul.f32 %v16253_v42, %v3552_v21 }
 0x3f6   : > { %3824 = vadd.xlane.f32.xlu0 %v3823_v48  ;;  %v3550_v47 = vmul.f32 0.6931472, %v9513_v55  ;;  %9522 = vlog2.f32 %v3566_v3  ;;  %v3327_v40 = vsub.f32 0.0, %v3295_v8  ;;  %v3328_v39 = vsub.f32 0.0, %v3296_v31  ;;  %v9180_v42 = vld [vmem:[%s16021_s3 + $0x28c] ss:$8 sps:$4 sm:$0xff]  }
 0x3f7   : > { %v9515_v17 = vpop.eup %9514  ;;  %vm3555_vm5 = vcmp.lt.f32.partialorder %v3554_v58, 0.0004427343  ;;  %v3569_v28 = vmul.f32 -0.5, %v11826_v23  ;;  %9524 = vpow2.f32 %v3378_v36  ;;  %v3562_v30 = vmul.f32 %v11813_v4, %v3561_v62  ;;  %v16263_v31 = vld [vmem:[#allocation11_spill] sm:$0xff]  ;;  %4513 = vmatprep.subr.bf16.mxu1 %v9180_v42  ;;  %v9181_v3 = vld [vmem:[%s16021_s3 + $0x298] ss:$8 sps:$4 sm:$0xff]  }
 0x3f8   : > { %v3556_v6 = vsel %vm3555_vm5, %v3553_v38, %v3550_v47  ;;  %v3559_v50 = vmul.f32 0.6931472, %v9515_v17  ;;  %vm3564_vm12 = vcmp.lt.f32.partialorder %v3563_v43, 0.0004427343  ;;  %v12081_v8 = vadd.f32 %v11886_v12, %v10991_v34  ;;  %v16262_v17 = vld [vmem:[#allocation8_spill] sm:$0xff]  ;;  %4514 = vmatpush1.bf16.msra.mxu1 %v9178_v53  ;;  %v16266_v47 = vld [vmem:[#allocation15_spill] sm:$0xff] }
 0x3f9   : > { %v3788_v46 = vsub.f32 %v12017_v32, %v3556_v6  ;;  %9526 = vlog2.f32 %v3575_v13  ;;  %v12085_v4 = vadd.f32 %v11914_v60, %v10991_v34  ;;  %vm3198_vm13 = vcmp.gt.f32.partialorder %v12004_v61, %v16262_v17  ;;  %v9183_v32 = vld [vmem:[%s16021_s3 + $0x29c] ss:$8 sps:$4 sm:$0xff]   ;;  %v16265_v55 = vld [vmem:[#allocation16_spill] sm:$0xff]  ;;  %v16267_v38 = vld [vmem:[#allocation19_spill] sm:$0xff] }
 0x3fa   : > { %16260 = vst [vmem:[#allocation14_spill] sm:$0xff] %v12081_v8  ;;  %v3565_v21 = vsel %vm3564_vm12, %v3562_v30, %v3559_v50  ;;  %vm3200_vm14 = vcmp.gt.f32.partialorder %v12048_v45, %v16263_v31  ;;  %v12094_v20 = vpop.eup %9516  ;;  %v3578_v58 = vmul.f32 -0.5, %v11837_v5  ;;  %v12099_v34 = vsel %vm3198_vm13, 1.0, %v16203_v33  ;;  %4515 = vmatprep.subr.bf16.mxu1 %v9183_v32  ;;  %v16268_v42 = vld [vmem:[#allocation10_spill] sm:$0xff] }
 0x3fb   : > { %16261 = vst [vmem:[#allocation38_spill] sm:$0xff] %v12085_v4  ;;  %v3789_v12 = vsub.f32 %v12031_v26, %v3565_v21  ;;  %v12102_v60 = vsel %vm3200_vm14, 1.0, %v16203_v33  ;;  %vm8482_vm15 = vmpackc.low %vm3200_vm14, %vm3198_vm13  ;;  %9528 = vpow2.f32 %v3380_v49  ;;  %v12107_v36 = vmul.f32 1.442695, %v3327_v40 }
 0x3fc   : > { %16264 = vst [vmem:[#allocation6_spill] sm:$0xff] %v12102_v60  ;;  %v3297_v48 = vand.u32 2147483647, %v11992_v2  ;;  %v3570_v26 = vadd.f32 1.0, %v3569_v28  ;;  %8483 = vmatmul.mubr.msk.bf16.gmra.mrb[92].mxu1 %vm8482_vm15, %v16210_v9  ;;  %vm3205_vm4 = vcmp.gt.f32.partialorder %v12085_v4, %v16265_v55  ;;  %v8706_v43 = vpack.c.bf16 %v12044_v25, %v12099_v34 }
 0x3fd   : > { %v3826_v62 = vsel %vm2162_vm10, %v3789_v12, 0.0  ;;  %v8707_v40 = vpack.c.bf16 %v12038_v52, %v12102_v60  ;;  %v12118_v49 = vpop.eup %9518  ;;  %v3407_v28 = vmul.f32 %v16267_v38, %v16266_v47  ;;  %v3572_v6 = vand.u32 2147483647, %v11826_v23  ;;  %4516 = vmatpush1.bf16.msra.mxu1 %v9181_v3 }
 0x3fe   : > { %v3827_v13 = vadd.f32 %v3826_v62, %v3788_v46  ;;  %v3581_v50 = vand.u32 2147483647, %v11837_v5  ;;  %v12124_v30 = vpop.eup %9520  ;;  %v12126_v53 = vmul.f32 1.442695, %v3328_v39  ;;  %vm3203_vm2 = vcmp.gt.f32.partialorder %v12081_v8, %v16268_v42  ;;  %7996 = vst.msk [vmem:[%s11558_s29 + $0x60] sm:$0xff] %vm11566_vm3, %v8706_v43 }
 0x3ff   : > { %v3579_v21 = vadd.f32 1.0, %v3578_v58  ;;  %7997 = vst.msk [vmem:[%s11558_s29 + $0x68] sm:$0xff] %vm11566_vm3, %v8707_v40  ;;  %v3584_v46 = vadd.f32 1.0, %v11846_v15  ;;  %v12137_v31 = vsub.f32 0.0, %v3297_v48  ;;  %v3439_v39 = vmax.f32 %v16266_v47, 0.0 }
 0x400   : > { %v9523_v17 = vpop.eup %9522  ;;  %3828 = vadd.xlane.f32.xlu1 %v3827_v13  ;;  %v12144_v32 = vsel %vm3205_vm4, 1.0, %v16203_v33  ;;  %v3593_v12 = vadd.f32 1.0, %v11871_v59  ;;  %v3571_v62 = vmul.f32 %v11826_v23, %v3570_v26  ;;  %v3587_v3 = vmul.f32 -0.5, %v11846_v15 }
 0x401   : > { %v3568_v58 = vmul.f32 0.6931472, %v9523_v17  ;;  %9530 = vlog2.f32 %v3584_v46  ;;  %v12149_v43 = vpop.eup %9524  ;;  %v12155_v48 = vsel %vm3203_vm2, 1.0, %v16203_v33  ;;  %v3471_v40 = vsub.f32 %v3407_v28, %v3439_v39  ;;  %v16277_v46 = vld [vmem:[#allocation17_spill] sm:$0xff]  ;;  %v16278_v17 = vld [vmem:[#allocation20_spill] sm:$0xff] }
 0x402   : > { %vm3573_vm6 = vcmp.lt.f32.partialorder %v3572_v6, 0.0004427343  ;;  %vm12157_vm7 = vcmp.lt.f32.partialorder %v3581_v50, 0.0004427343  ;;  %v16271_v13 = vand.u32 2147483647, %v11427_v10  ;;  %v3580_v28 = vmul.f32 %v11837_v5, %v3579_v21 }
 0x403   : > { %v16274_v26 = vand.u32 2147483647, %v11482_v16  ;;  %v9527_v38 = vpop.eup %9526  ;;  %v3574_v42 = vsel %vm3573_vm6, %v3571_v62, %v3568_v58  ;;  %9532 = vlog2.f32 %v3593_v12  ;;  %v3893_v6 = vpack.c.bf16 %v12144_v32, %v12155_v48 }
 0x404   : > { %vm12163_vm8 = vcmp.lt.f32.partialorder %v16271_v13, 0.0004427343  ;;  %v3577_v50 = vmul.f32 0.6931472, %v9527_v38  ;;  %v3790_v10 = vsub.f32 %v12059_v22, %v3574_v42  ;;  %v3409_v39 = vmul.f32 %v16278_v17, %v16277_v46  ;;  %v16280_v38 = vld [vmem:[#allocation41_spill] sm:$0xff] }
 0x405   : > { %vm12169_vm9 = vcmp.lt.f32.partialorder %v16274_v26, 0.0004427343  ;;  %v3596_v16 = vmul.f32 -0.5, %v11871_v59  ;;  %v3440_v13 = vmax.f32 %v11551_v1, 0.0  ;;  %v3588_v26 = vadd.f32 1.0, %v3587_v3  ;;  %8484 = vmatprep.mubr.msk.bf16.mxu1 %vm2162_vm10, %v3893_v6  ;;  %v12184_v21 = vpop.eup %9528 }
 0x406   : > { %v3590_v4 = vand.u32 2147483647, %v11846_v15  ;;  %v3602_v5 = vadd.f32 1.0, %v11880_v54  ;;  %v12188_v12 = vadd.f32 %v11878_v57, %v10951_v56  ;;  %v3583_v22 = vsel %vm12157_vm7, %v3580_v28, %v3577_v50 }
 0x407   : > { %v3441_v58 = vmax.f32 %v16277_v46, 0.0  ;;  %v3611_v1 = vadd.f32 1.0, %v11906_v41  ;;  %v12196_v62 = vadd.f32 %v11901_v51, %v10951_v56  ;;  %v3791_v3 = vsub.f32 %v3471_v40, %v3583_v22  ;;  %v16283_v46 = vld [vmem:[#allocation23_spill] sm:$0xff]  ;;  %v16285_v22 = vld [vmem:[#allocation22_spill] sm:$0xff] }
 0x408   : > { %v3472_v42 = vsub.f32 %v16280_v38, %v3440_v13  ;;  %9534 = vlog2.f32 %v3602_v5  ;;  %v3597_v17 = vadd.f32 1.0, %v3596_v16  ;;  %v3599_v57 = vand.u32 2147483647, %v11871_v59 }
 0x409   : > { %16279 = vst [vmem:[#allocation5_spill] sm:$0xff] %v12196_v62  ;;  %v3473_v6 = vsub.f32 %v3409_v39, %v3441_v58  ;;  %9536 = vlog2.f32 %v3611_v1  ;;  %v3830_v55 = vsel %vm2162_vm10, %v3791_v3, 0.0  ;;  %v3589_v28 = vmul.f32 %v11846_v15, %v3588_v26  ;;  %v16284_v39 = vld [vmem:[#allocation28_spill] sm:$0xff]  ;;  %v16286_v58 = vld [vmem:[#allocation29_spill] sm:$0xff]  ;;  %v16287_v15 = vld [vmem:[#allocation18_spill] sm:$0xff] }
 0x40a   : > { %vm12202_vm11 = vcmp.lt.f32.partialorder %v3590_v4, 0.0004427343  ;;  %v3605_v56 = vmul.f32 -0.5, %v11880_v54  ;;  %v3831_v51 = vadd.f32 %v3830_v55, %v3790_v10  ;;  %v3608_v40 = vand.u32 2147483647, %v11880_v54  ;;  %v16288_v26 = vld [vmem:[#allocation26_spill] sm:$0xff] }
 0x40b   : > { %v2815_v13 = vmul.f32 0.6931472, %v16283_v46  ;;  %v2819_v16 = vmul.f32 0.6931472, %v16284_v39  ;;  %v9531_v5 = vpop.eup %9530  ;;  %v3411_v1 = vmul.f32 %v16286_v58, %v16285_v22  ;;  %v3614_v3 = vmul.f32 -0.5, %v11906_v41  ;;  %v16291_v46 = vld [vmem:[#allocation24_spill] sm:$0xff] }
 0x40c   : > { %v3108_v4 = vmul.f32 0.6931472, %v16287_v15  ;;  %v3126_v38 = vmul.f32 0.6931472, %v16288_v26  ;;  %3832 = vadd.xlane.f32.xlu0 %v3831_v51  ;;  %v3586_v8 = vmul.f32 0.6931472, %v9531_v5  ;;  %v3598_v10 = vmul.f32 %v11871_v59, %v3597_v17 }
 0x40d   : > { %vm12216_vm5 = vcmp.lt.f32.partialorder %v3599_v57, 0.0004427343  ;;  %v3442_v39 = vmax.f32 %v16291_v46, 0.0  ;;  %v9533_v60 = vpop.eup %9532  ;;  %v3443_v45 = vmax.f32 %v16285_v22, 0.0  ;;  %v16292_v58 = vld [vmem:[#allocation39_spill] sm:$0xff]  ;;  %v16293_v15 = vld [vmem:[#allocation40_spill] sm:$0xff] }
 0x40e   : > { %v3114_v52 = vsel %vm12163_vm8, %v16292_v58, %v3108_v4  ;;  %v3132_v51 = vsel %vm12169_vm9, %v16293_v15, %v3126_v38  ;;  %v3620_v5 = vadd.f32 1.0, %v11916_v27  ;;  %v9184_v59 = vld [vmem:[%s16021_s3 + $0x2a8] ss:$8 sps:$4 sm:$0xff]   ;;  %v9186_v17 = vld [vmem:[%s16021_s3 + $0x2ac] ss:$8 sps:$4 sm:$0xff]   ;;  %v3606_v22 = vadd.f32 1.0, %v3605_v56 }
 0x40f   : > { %v3595_v57 = vmul.f32 0.6931472, %v9533_v60  ;;  %v3170_v26 = vsub.f32 %v2815_v13, %v3114_v52  ;;  %v3172_v46 = vsub.f32 %v2819_v16, %v3132_v51  ;;  %v3592_v23 = vsel %vm12202_vm11, %v3589_v28, %v3586_v8  ;;  %4517 = vmatprep.subr.bf16.mxu1 %v9186_v17  ;;  %v16299_v51 = vld [vmem:[#allocation32_spill] sm:$0xff] }
 0x410   : > { %v3475_v4 = vsub.f32 %v3411_v1, %v3443_v45  ;;  %vm12237_vm12 = vcmp.lt.f32.partialorder %v3608_v40, 0.0004427343  ;;  %v3615_v38 = vadd.f32 1.0, %v3614_v3  ;;  %v3617_v15 = vand.u32 2147483647, %v11906_v41  ;;  %4518 = vmatpush1.bf16.msra.mxu1 %v9184_v59 }
 0x411   : > { %v3601_v58 = vsel %vm12216_vm5, %v3598_v10, %v3595_v57  ;;  %vm3202_vm13 = vcmp.gt.f32.partialorder %v12188_v12, %v3170_v26  ;;  %vm3204_vm14 = vcmp.gt.f32.partialorder %v12196_v62, %v3172_v46  ;;  %9538 = vlog2.f32 %v3620_v5  ;;  %v16300_v57 = vld [vmem:[#allocation34_spill] sm:$0xff]  ;;  %v16302_v46 = vld [vmem:[#allocation37_spill] sm:$0xff] }
 0x412   : > { %v9535_v52 = vpop.eup %9534  ;;  %v3793_v60 = vsub.f32 %v3473_v6, %v3601_v58  ;;  %v12247_v45 = vsel %vm3202_vm13, 1.0, %v16203_v33  ;;  %v12250_v8 = vsel %vm3204_vm14, 1.0, %v16203_v33  ;;  %vm8485_vm15 = vmpackc.low %vm3204_vm14, %vm3202_vm13  ;;  %v3792_v50 = vsub.f32 %v3472_v42, %v3592_v23  ;;  %v16303_v23 = vld [vmem:[#allocation44_spill] sm:$0xff]  ;;  %v16305_v58 = vld [vmem:[#allocation30_spill] sm:$0xff] }
 0x413   : > { %16296 = vst [vmem:[#allocation13_spill] sm:$0xff] %v12250_v8  ;;  %v9537_v28 = vpop.eup %9536  ;;  %v3604_v56 = vmul.f32 0.6931472, %v9535_v52  ;;  %v3607_v40 = vmul.f32 %v11880_v54, %v3606_v22  ;;  %8486 = vmatmul.mubr.msk.bf16.gmra.mrb[96].mxu1 %vm8485_vm15, %v16210_v9  ;;  %v8708_v6 = vpack.c.bf16 %v12155_v48, %v12247_v45  ;;  %v3616_v33 = vmul.f32 %v11906_v41, %v3615_v38  ;;  %v16297_v54 = vld [vmem:[#allocation45_spill] sm:$0xff]  ;;  %v16301_v22 = vld [vmem:[#allocation43_spill] sm:$0xff] }
 0x414   : > { %v3834_v13 = vsel %vm2162_vm10, %v3793_v60, 0.0  ;;  %v3613_v16 = vmul.f32 0.6931472, %v9537_v28  ;;  %v8709_v1 = vpack.c.bf16 %v12144_v32, %v12250_v8  ;;  %vm3618_vm4 = vcmp.lt.f32.partialorder %v3617_v15, 0.0004427343  ;;  %v16298_v41 = vld [vmem:[#allocation25_spill] sm:$0xff] }
 0x415   : > { %v3835_v3 = vadd.f32 %v3834_v13, %v3792_v50  ;;  %v3610_v42 = vsel %vm12237_vm12, %v3607_v40, %v3604_v56  ;;  %7998 = vst.msk [vmem:[%s11558_s29 + $0x70] sm:$0xff] %vm11566_vm3, %v8708_v6  ;;  %v3629_v9 = vadd.f32 1.0, %v11934_v63  ;;  %9540 = vpow2.f32 %v12067_v0  ;;  %v16304_v38 = vld [vmem:[#allocation27_spill] sm:$0xff]  ;;  %v9189_v60 = vld [vmem:[%s16021_s3 + $0x2bc] ss:$8 sps:$4 sm:$0xff]  }
 0x416   : > { %v3474_v10 = vsub.f32 %v16297_v54, %v3442_v39  ;;  %v3619_v55 = vsel %vm3618_vm4, %v3616_v33, %v3613_v16  ;;  %7999 = vst.msk [vmem:[%s11558_s29 + $0x78] sm:$0xff] %vm11566_vm3, %v8709_v1  ;;  %v3412_v5 = vmul.f32 %v16299_v51, %v16298_v41  ;;  %v3388_v59 = vmul.f32 1.442695, %v12137_v31  ;;  %v16306_v13 = vld [vmem:[#allocation31_spill] sm:$0xff]  ;;  %4519 = vmatprep.subr.bf16.mxu1 %v9189_v60 }
 0x417   : > { %3836 = vadd.xlane.f32.xlu1 %v3835_v3  ;;  %v3795_v17 = vsub.f32 %v3475_v4, %v3619_v55  ;;  %9542 = vlog2.f32 %v3629_v9  ;;  %v3414_v26 = vmul.f32 %v16301_v22, %v16300_v57  ;;  %v3638_v39 = vadd.f32 1.0, %v11944_v29  ;;  %v16307_v16 = vld [vmem:[#allocation35_spill] sm:$0xff] }
 0x418   : > { %9544 = vpow2.f32 %v12107_v36  ;;  %v3794_v0 = vsub.f32 %v3474_v10, %v3610_v42  ;;  %v12280_v7 = vmul.f32 %v16303_v23, %v16302_v46  ;;  %v3623_v31 = vmul.f32 -0.5, %v11916_v27  ;;  %v9187_v36 = vld [vmem:[%s16021_s3 + $0x2b8] ss:$8 sps:$4 sm:$0xff]  }
 0x419   : > { %9546 = vpow2.f32 %v12126_v53  ;;  %v3838_v47 = vsel %vm2162_vm10, %v3795_v17, 0.0  ;;  %v3413_v15 = vmul.f32 %v16305_v58, %v16304_v38  ;;  %v3632_v52 = vmul.f32 -0.5, %v11934_v63  ;;  %4520 = vmatpush1.bf16.msra.mxu1 %v9187_v36 }
 0x41a   : > { %v3839_v4 = vadd.f32 %v3838_v47, %v3794_v0  ;;  %9548 = vlog2.f32 %v3638_v39  ;;  %v12296_v53 = vmul.f32 %v11995_v35, %v11890_v24  ;;  %v12300_v28 = vmul.f32 %v11998_v11, %v11958_v19 }
 0x41b   : > { %9550 = vpow2.f32 %v3388_v59  ;;  %v3647_v50 = vadd.f32 1.0, %v11977_v37  ;;  %v9539_v56 = vpop.eup %9538  ;;  %v3444_v40 = vmax.f32 %v16298_v41, 0.0  ;;  %v3445_v6 = vmax.f32 %v16304_v38, 0.0 }
 0x41c   : > { %3840 = vadd.xlane.f32.xlu0 %v3839_v4  ;;  %v3415_v33 = vmul.f32 %v16307_v16, %v16306_v13  ;;  %v3641_v1 = vmul.f32 -0.5, %v11944_v29  ;;  %v3624_v35 = vadd.f32 1.0, %v3623_v31  ;;  %v3626_v3 = vand.u32 2147483647, %v11916_v27 }
 0x41d   : > { %v3635_v11 = vand.u32 2147483647, %v11934_v63  ;;  %9552 = vlog2.f32 %v3647_v50  ;;  %v3476_v42 = vsub.f32 %v3412_v5, %v3444_v40  ;;  %v3477_v9 = vsub.f32 %v3413_v15, %v3445_v6 }
 0x41e   : > { %v3633_v54 = vadd.f32 1.0, %v3632_v52  ;;  %v3656_v10 = vadd.f32 1.0, %v11980_v18  ;;  %v3622_v55 = vmul.f32 0.6931472, %v9539_v56  ;;  %v3446_v41 = vmax.f32 %v16300_v57, 0.0 }
 0x41f   : > { %v3447_v51 = vmax.f32 %v16306_v13, 0.0  ;;  %v3644_v59 = vand.u32 2147483647, %v11944_v29  ;;  %v12314_v17 = vpop.eup %9540  ;;  %v3642_v22 = vadd.f32 1.0, %v3641_v1  ;;  %v3650_v0 = vmul.f32 -0.5, %v11977_v37 }
 0x420   : > { %9554 = vlog2.f32 %v3656_v10  ;;  %v3665_v39 = vadd.f32 1.0, %v12094_v20  ;;  %v3625_v23 = vmul.f32 %v11916_v27, %v3624_v35  ;;  %vm12319_vm3 = vcmp.lt.f32.partialorder %v3626_v3, 0.0004427343  ;;  %v9190_v13 = vld [vmem:[%s16021_s3 + $0x2c8] ss:$8 sps:$4 sm:$0xff]  }
 0x421   : > { %v9543_v5 = vpop.eup %9542  ;;  %vm12323_vm2 = vcmp.lt.f32.partialorder %v3635_v11, 0.0004427343  ;;  %v3478_v31 = vsub.f32 %v3414_v26, %v3446_v41  ;;  %v3634_v58 = vmul.f32 %v11934_v63, %v3633_v54  ;;  %v3479_v15 = vsub.f32 %v3415_v33, %v3447_v51  ;;  %v9192_v3 = vld [vmem:[%s16021_s3 + $0x2cc] ss:$8 sps:$4 sm:$0xff]  }
 0x422   : > { %v12327_v4 = vpop.eup %9544  ;;  %v3631_v38 = vmul.f32 0.6931472, %v9543_v5  ;;  %9556 = vlog2.f32 %v3665_v39  ;;  %v3628_v27 = vsel %vm12319_vm3, %v3625_v23, %v3622_v55  ;;  %vm12334_vm6 = vcmp.lt.f32.partialorder %v3644_v59, 0.0004427343  ;;  %v16315_v54 = vld [vmem:[#allocation36_spill] sm:$0xff]  ;;  %4521 = vmatprep.subr.bf16.mxu1 %v9192_v3 }
 0x423   : > { %v12330_v52 = vpop.eup %9546  ;;  %v3653_v60 = vand.u32 2147483647, %v11977_v37  ;;  %v3674_v26 = vadd.f32 1.0, %v12118_v49  ;;  %v3643_v63 = vmul.f32 %v11944_v29, %v3642_v22  ;;  %v3651_v40 = vadd.f32 1.0, %v3650_v0  ;;  %v16314_v29 = vld [vmem:[#allocation33_spill] sm:$0xff]  ;;  %4522 = vmatpush1.bf16.msra.mxu1 %v9190_v13 }
 0x424   : > { %v9549_v50 = vpop.eup %9548  ;;  %v3637_v56 = vsel %vm12323_vm2, %v3634_v58, %v3631_v38  ;;  %v3659_v6 = vmul.f32 -0.5, %v11980_v18  ;;  %v3668_v35 = vmul.f32 -0.5, %v12094_v20  ;;  %v3796_v11 = vsub.f32 %v3476_v42, %v3628_v27 }
 0x425   : > { %v12347_v16 = vpop.eup %9550  ;;  %v3797_v33 = vsub.f32 %v3477_v9, %v3637_v56  ;;  %v3640_v1 = vmul.f32 0.6931472, %v9549_v50  ;;  %9558 = vlog2.f32 %v3674_v26  ;;  %v3417_v10 = vmul.f32 %v16315_v54, %v16314_v29 }
 0x426   : > { %v3448_v55 = vmax.f32 %v16302_v46, 0.0  ;;  %v3683_v41 = vadd.f32 1.0, %v12124_v30  ;;  %vm12358_vm7 = vcmp.lt.f32.partialorder %v3653_v60, 0.0004427343  ;;  %v3449_v22 = vmax.f32 %v16314_v29, 0.0 }
 0x427   : > { %v9553_v51 = vpop.eup %9552  ;;  %v3842_v59 = vsel %vm2162_vm10, %v3797_v33, 0.0  ;;  %v3662_v0 = vand.u32 2147483647, %v11980_v18  ;;  %v3652_v5 = vmul.f32 %v11977_v37, %v3651_v40  ;;  %v3660_v23 = vadd.f32 1.0, %v3659_v6 }
 0x428   : > { %v3843_v42 = vadd.f32 %v3842_v59, %v3796_v11  ;;  %v3649_v39 = vmul.f32 0.6931472, %v9553_v51  ;;  %v3646_v46 = vsel %vm12334_vm6, %v3643_v63, %v3640_v1  ;;  %v3480_v47 = vsub.f32 %v12280_v7, %v3448_v55 }
 0x429   : > { %v3669_v57 = vadd.f32 1.0, %v3668_v35  ;;  %9560 = vlog2.f32 %v3683_v41  ;;  %v3481_v27 = vsub.f32 %v3417_v10, %v3449_v22  ;;  %v3671_v60 = vand.u32 2147483647, %v12094_v20 }
 0x42a   : > { %v9555_v38 = vpop.eup %9554  ;;  %3844 = vadd.xlane.f32.xlu1 %v3843_v42  ;;  %v3655_v58 = vsel %vm12358_vm7, %v3652_v5, %v3649_v39  ;;  %v3692_v26 = vadd.f32 1.0, %v12149_v43  ;;  %vm12372_vm8 = vcmp.lt.f32.partialorder %v3662_v0, 0.0004427343  ;;  %v3677_v7 = vmul.f32 -0.5, %v12118_v49 }
 0x42b   : > { %v3799_v37 = vsub.f32 %v3479_v15, %v3655_v58  ;;  %v3658_v50 = vmul.f32 0.6931472, %v9555_v38  ;;  %v3798_v63 = vsub.f32 %v3478_v31, %v3646_v46  ;;  %v3661_v40 = vmul.f32 %v11980_v18, %v3660_v23 }
 0x42c   : > { %v9557_v36 = vpop.eup %9556  ;;  %v3686_v6 = vmul.f32 -0.5, %v12124_v30  ;;  %9562 = vlog2.f32 %v3692_v26  ;;  %v3670_v1 = vmul.f32 %v12094_v20, %v3669_v57  ;;  %v3701_v15 = vadd.f32 1.0, %v12184_v21  ;;  %v16323_v57 = vld [vmem:[#allocation46_spill] sm:$0xff] }
 0x42d   : > { %v3846_v13 = vsel %vm2162_vm10, %v3799_v37, 0.0  ;;  %v3667_v33 = vmul.f32 0.6931472, %v9557_v36  ;;  %v3664_v3 = vsel %vm12372_vm8, %v3661_v40, %v3658_v50  ;;  %vm3672_vm9 = vcmp.lt.f32.partialorder %v3671_v60, 0.0004427343 }
 0x42e   : > { %v3847_v35 = vadd.f32 %v3846_v13, %v3798_v63  ;;  %v3419_v31 = vmul.f32 %v11922_v44, %v11841_v14  ;;  %v3678_v29 = vadd.f32 1.0, %v3677_v7  ;;  %v3680_v54 = vand.u32 2147483647, %v12118_v49 }
 0x42f   : > { %v9559_v11 = vpop.eup %9558  ;;  %v3673_v18 = vsel %vm3672_vm9, %v3670_v1, %v3667_v33  ;;  %9564 = vlog2.f32 %v3701_v15  ;;  %v3451_v20 = vmax.f32 %v11841_v14, 0.0  ;;  %v3687_v55 = vadd.f32 1.0, %v3686_v6  ;;  %v9193_v6 = vld [vmem:[%s16021_s3 + $0x2d8] ss:$8 sps:$4 sm:$0xff]  }
 0x430   : > { %3848 = vadd.xlane.f32.xlu0 %v3847_v35  ;;  %v3801_v10 = vsub.f32 %v3481_v27, %v3673_v18  ;;  %v3689_v41 = vand.u32 2147483647, %v12124_v30  ;;  %v3800_v51 = vsub.f32 %v3480_v47, %v3664_v3  ;;  %v3676_v59 = vmul.f32 0.6931472, %v9559_v11  ;;  %v16322_v47 = vld [vmem:[#allocation42_spill] sm:$0xff] }
 0x431   : > { %v3695_v9 = vmul.f32 -0.5, %v12149_v43  ;;  %v3710_v22 = vadd.f32 1.0, %v12314_v17  ;;  %v3450_v0 = vmax.f32 %v11890_v24, 0.0  ;;  %v3483_v42 = vsub.f32 %v3419_v31, %v3451_v20 }
 0x432   : > { %v3850_v44 = vsel %vm2162_vm10, %v3801_v10, 0.0  ;;  %v3704_v39 = vmul.f32 -0.5, %v12184_v21  ;;  %v3679_v14 = vmul.f32 %v12118_v49, %v3678_v29  ;;  %vm12395_vm11 = vcmp.lt.f32.partialorder %v3680_v54, 0.0004427343 }
 0x433   : > { %v9561_v5 = vpop.eup %9560  ;;  %v3851_v23 = vadd.f32 %v3850_v44, %v3800_v51  ;;  %v3421_v38 = vmul.f32 %v16323_v57, %v16322_v47  ;;  %v3688_v27 = vmul.f32 %v12124_v30, %v3687_v55  ;;  %vm3690_vm5 = vcmp.lt.f32.partialorder %v3689_v41, 0.0004427343  ;;  %v9196_v41 = vld [vmem:[%s16021_s3 + $0x2e8] ss:$8 sps:$4 sm:$0xff]  }
 0x434   : > { %v3685_v58 = vmul.f32 0.6931472, %v9561_v5  ;;  %9566 = vlog2.f32 %v3710_v22  ;;  %v3682_v24 = vsel %vm12395_vm11, %v3679_v14, %v3676_v59  ;;  %v3696_v60 = vadd.f32 1.0, %v3695_v9 }
 0x435   : > { %3852 = vadd.xlane.f32.xlu1 %v3851_v23  ;;  %v3698_v26 = vand.u32 2147483647, %v12149_v43  ;;  %v3719_v49 = vadd.f32 1.0, %v12327_v4  ;;  %v3482_v50 = vsub.f32 %v12296_v53, %v3450_v0  ;;  %v3453_v7 = vmax.f32 %v16322_v47, 0.0  ;;  %v9195_v53 = vld [vmem:[%s16021_s3 + $0x2dc] ss:$8 sps:$4 sm:$0xff]  }
 0x436   : > { %v9563_v37 = vpop.eup %9562  ;;  %v3691_v56 = vsel %vm3690_vm5, %v3688_v27, %v3685_v58  ;;  %v3705_v36 = vadd.f32 1.0, %v3704_v39  ;;  %v3707_v40 = vand.u32 2147483647, %v12184_v21  ;;  %v3452_v33 = vmax.f32 %v11958_v19, 0.0  ;;  %v9198_v19 = vld [vmem:[%s16021_s3 + $0x2ec] ss:$8 sps:$4 sm:$0xff]   ;;  %4523 = vmatprep.subr.bf16.mxu1 %v9195_v53 }
 0x437   : > { %v3803_v63 = vsub.f32 %v3483_v42, %v3691_v56  ;;  %v3694_v30 = vmul.f32 0.6931472, %v9563_v37  ;;  %9568 = vlog2.f32 %v3719_v49  ;;  %v3802_v13 = vsub.f32 %v3482_v50, %v3682_v24  ;;  %4524 = vmatpush1.bf16.msra.mxu1 %v9193_v6  ;;  %v16326_v42 = vld [vmem:[#allocation9_spill] sm:$0xff] }
 0x438   : > { %v3485_v1 = vsub.f32 %v3421_v38, %v3453_v7  ;;  %v3728_v15 = vadd.f32 1.0, %v12330_v52  ;;  %v3697_v31 = vmul.f32 %v12149_v43, %v3696_v60  ;;  %vm12419_vm12 = vcmp.lt.f32.partialorder %v3698_v26, 0.0004427343  ;;  %4525 = vmatprep.subr.bf16.mxu1 %v9198_v19 }
 0x439   : > { %v9565_v35 = vpop.eup %9564  ;;  %v3854_v3 = vsel %vm2162_vm10, %v3803_v63, 0.0  ;;  %v3713_v18 = vmul.f32 -0.5, %v12314_v17  ;;  %v3706_v10 = vmul.f32 %v12184_v21, %v3705_v36  ;;  %v3722_v20 = vmul.f32 -0.5, %v12327_v4 }
 0x43a   : > { %v3855_v29 = vadd.f32 %v3854_v3, %v3802_v13  ;;  %v3703_v54 = vmul.f32 0.6931472, %v9565_v35  ;;  %v3700_v43 = vsel %vm12419_vm12, %v3697_v31, %v3694_v30  ;;  %vm3708_vm13 = vcmp.lt.f32.partialorder %v3707_v40, 0.0004427343  ;;  %v16329_v40 = vld [vmem:[#allocation12_spill] sm:$0xff] }
 0x43b   : > { %9570 = vlog2.f32 %v3728_v15  ;;  %v3737_v55 = vadd.f32 1.0, %v12347_v16  ;;  %v3484_v51 = vsub.f32 %v12300_v28, %v3452_v33  ;;  %v3714_v9 = vadd.f32 1.0, %v3713_v18  ;;  %4526 = vmatpush1.bf16.msra.mxu1 %v9196_v41  ;;  %v16330_v33 = vld [vmem:[#allocation7_spill] sm:$0xff] }
 0x43c   : > { %3856 = vadd.xlane.f32.xlu0 %v3855_v29  ;;  %v3709_v59 = vsel %vm3708_vm13, %v3706_v10, %v3703_v54  ;;  %v3716_v22 = vand.u32 2147483647, %v12314_v17  ;;  %v3423_v39 = vmul.f32 %v12044_v25, %v16326_v42  ;;  %v3723_v5 = vadd.f32 1.0, %v3722_v20 }
 0x43d   : > { %v3805_v21 = vsub.f32 %v3485_v1, %v3709_v59  ;;  %9572 = vlog2.f32 %v3737_v55  ;;  %v3804_v0 = vsub.f32 %v3484_v51, %v3700_v43  ;;  %v3725_v46 = vand.u32 2147483647, %v12327_v4  ;;  %v16331_v1 = vld [vmem:[#allocation6_spill] sm:$0xff] }
 0x43e   : > { %v9567_v44 = vpop.eup %9566  ;;  %v3731_v28 = vmul.f32 -0.5, %v12330_v52  ;;  %v3422_v47 = vmul.f32 %v12099_v34, %v12004_v61  ;;  %v3740_v38 = vmul.f32 -0.5, %v12347_v16  ;;  %v3454_v27 = vmax.f32 %v12004_v61, 0.0  ;;  %v9199_v34 = vld [vmem:[%s16021_s3 + $0x2f8] ss:$8 sps:$4 sm:$0xff]  }
 0x43f   : > { %v3858_v23 = vsel %vm2162_vm10, %v3805_v21, 0.0  ;;  %v3712_v14 = vmul.f32 0.6931472, %v9567_v44  ;;  %v3455_v25 = vmax.f32 %v16326_v42, 0.0  ;;  %v3715_v24 = vmul.f32 %v12314_v17, %v3714_v9  ;;  %v9201_v61 = vld [vmem:[%s16021_s3 + $0x2fc] ss:$8 sps:$4 sm:$0xff]  }
 0x440   : > { %v3859_v57 = vadd.f32 %v3858_v23, %v3804_v0  ;;  %vm12448_vm14 = vcmp.lt.f32.partialorder %v3716_v22, 0.0004427343  ;;  %v3724_v49 = vmul.f32 %v12327_v4, %v3723_v5  ;;  %vm3726_vm15 = vcmp.lt.f32.partialorder %v3725_v46, 0.0004427343  ;;  %4527 = vmatprep.subr.bf16.mxu1 %v9201_v61  ;;  %v9209_v42 = vld [vmem:[%s16022_s4 + $0x4] ss:$28 sps:$4 sm:$0xff]  }
 0x441   : > { %v9569_v58 = vpop.eup %9568  ;;  %v3487_v37 = vsub.f32 %v3423_v39, %v3455_v25  ;;  %v3718_v17 = vsel %vm12448_vm14, %v3715_v24, %v3712_v14  ;;  %v3732_v50 = vadd.f32 1.0, %v3731_v28  ;;  %v3486_v56 = vsub.f32 %v3422_v47, %v3454_v27  ;;  %4528 = vmatpush1.bf16.msra.mxu1 %v9199_v34  ;;  %v9216_v39 = vld [vmem:[%s16022_s4 + $0x8] ss:$28 sps:$4 sm:$0xff]   ;;  %v9222_v46 = vld [vmem:[%s16022_s4 + $0x40] ss:$28 sps:$4 sm:$0xff]  }
 0x442   : > { %3860 = vadd.xlane.f32.xlu1 %v3859_v57  ;;  %v3721_v26 = vmul.f32 0.6931472, %v9569_v58  ;;  %v3734_v36 = vand.u32 2147483647, %v12330_v52  ;;  %v3741_v63 = vadd.f32 1.0, %v3740_v38  ;;  %v3425_v6 = vmul.f32 %v16329_v40, %v11992_v2  ;;  %v16332_v47 = vld [vmem:[#allocation3_spill] sm:$0xff] }
 0x443   : > { %v3743_v13 = vand.u32 2147483647, %v12347_v16  ;;  %v3424_v15 = vmul.f32 %v16331_v1, %v16330_v33  ;;  %v3806_v53 = vsub.f32 %v3486_v56, %v3718_v17  ;;  %v3456_v11 = vmax.f32 %v16330_v33, 0.0  ;;  %v9218_v5 = vld [vmem:[%s16022_s4 + $0xc] ss:$28 sps:$4 sm:$0xff]   ;;  %v16333_v38 = vld [vmem:[#allocation4_spill] sm:$0xff] }
 0x444   : > { %v3727_v7 = vsel %vm3726_vm15, %v3724_v49, %v3721_v26  ;;  %v3457_v18 = vmax.f32 %v11992_v2, 0.0  ;;  %v3733_v19 = vmul.f32 %v12330_v52, %v3732_v50  ;;  %vm3735_vm4 = vcmp.lt.f32.partialorder %v3734_v36, 0.0004427343  ;;  %v9202_v2 = vld [vmem:[%s16021_s3 + $0x308] ss:$8 sps:$4 sm:$0xff]   ;;  %5477 = vmatprep.subr.bf16.mxu0 %v9218_v5 }
 0x445   : > { %v9571_v4 = vpop.eup %9570  ;;  %v3807_v30 = vsub.f32 %v3487_v37, %v3727_v7  ;;  %v3742_v10 = vmul.f32 %v12347_v16, %v3741_v63  ;;  %vm3744_vm3 = vcmp.lt.f32.partialorder %v3743_v13, 0.0004427343  ;;  %v3488_v55 = vsub.f32 %v3424_v15, %v3456_v11  ;;  %v9204_v52 = vld [vmem:[%s16021_s3 + $0x30c] ss:$8 sps:$4 sm:$0xff]   ;;  %v8511_v16 = vld [vmem:[%s16021_s3 + $0x318] sm:$0xff]  ;;  %5478 = vmatpush1.bf16.msra.mxu0 %v9216_v39 }
 0x446   : > { %v3730_v35 = vmul.f32 0.6931472, %v9571_v4  ;;  %v3489_v20 = vsub.f32 %v3425_v6, %v3457_v18  ;;  %v8538_v22 = vcombine.high %v8511_v16, %v8511_v16  ;;  %v8537_v44 = vcombine.low %v8511_v16, %v8511_v16  ;;  %4529 = vmatprep.subr.bf16.mxu1 %v9204_v52  ;;  %v9224_v23 = vld [vmem:[%s16022_s4 + $0x44] ss:$28 sps:$4 sm:$0xff]   ;;  %v9230_v28 = vld [vmem:[%s16022_s4 + $0x7c] ss:$28 sps:$4 sm:$0xff]  }
 0x447   : > { %v9573_v3 = vpop.eup %9572  ;;  %v3862_v31 = vsel %vm2162_vm10, %v3807_v30, 0.0  ;;  %4530 = vmatpush1.bf16.msra.mxu1 %v9202_v2  ;;  %v8435_v14 = vld [vmem:[%s16023_s5 + $0x3] ss:$8 sm:$0x3]  ;;  %5479 = vmatprep.subr.bf16.mxu0 %v9224_v23  ;;  %v9228_v27 = vld [vmem:[%s16022_s4 + $0x78] ss:$28 sps:$4 sm:$0xff]  }
 0x448   : > { %v3863_v29 = vadd.f32 %v3862_v31, %v3806_v53  ;;  %v3739_v54 = vmul.f32 0.6931472, %v9573_v3  ;;  %v3736_v43 = vsel %vm3735_vm4, %v3733_v19, %v3730_v35  ;;  %8539 = vmatprep.subr.msk.bf16.mxu1 %vm2187_vm1, %v8538_v22  ;;  %v4502_v0 = vsel %vm2187_vm1, %v8537_v44, 0  ;;  %v9233_v24 = vld [vmem:[%s16022_s4 + $0xb4] ss:$28 sps:$4 sm:$0xff]  }
 0x449   : > { %v3808_v59 = vsub.f32 %v3488_v55, %v3736_v43  ;;  %v12506_v57 = vrot.slane %v8435_v14, %v16332_v47  ;;  %v12509_v58 = vrot.slane %v8435_v14, %v16333_v38  ;;  %5480 = vmatpush1.bf16.msra.mxu0 %v9222_v46  ;;  %v9231_v50 = vld [vmem:[%s16022_s4 + $0xb0] ss:$28 sps:$4 sm:$0xff]   ;;  %v9237_v6 = vld [vmem:[%s16022_s4 + $0xe8] ss:$28 sps:$4 sm:$0xff]   ;;  %v9207_v11 = vld [vmem:[%s16022_s4] ss:$28 sps:$4 sm:$0xff]  }
 0x44a   : > { %3864 = vadd.xlane.f32.xlu0 %v3863_v29  ;;  %v3745_v41 = vsel %vm3744_vm3, %v3742_v10, %v3739_v54  ;;  %5481 = vmatprep.subr.bf16.mxu0 %v9230_v28  ;;  %v9239_v36 = vld [vmem:[%s16022_s4 + $0xec] ss:$28 sps:$4 sm:$0xff]   ;;  %v9245_v53 = vld [vmem:[%s16022_s4 + $0x124] ss:$28 sps:$4 sm:$0xff]   ;;  %v9212_v29 = vld [vmem:[%s16022_s4 + $0x3c] ss:$28 sps:$4 sm:$0xff]  }
 0x44b   : > { %v3809_v51 = vsub.f32 %v3489_v20, %v3745_v41  ;;  %4532 = vmatpush1.bf16.msra.mxu1 %v4502_v0  ;;  %v9243_v43 = vld [vmem:[%s16022_s4 + $0x120] ss:$28 sps:$4 sm:$0xff]   ;;  %v9215_v2 = vld [vmem:[%s16022_s4 + $0x74] ss:$28 sps:$4 sm:$0xff]  }
 0x44c   : > { %5364 = vmatprep.subr.bf16.mxu1 %v9209_v42  ;;  %v9249_v22 = vld [vmem:[%s16022_s4 + $0x158] ss:$28 sps:$4 sm:$0xff]   ;;  %v9213_v28 = vld [vmem:[%s16022_s4 + $0x70] ss:$28 sps:$4 sm:$0xff]  }
 0x44d   : > { %v3866_v21 = vsel %vm2162_vm10, %v3809_v51, 0.0  ;;  %5482 = vmatpush1.bf16.msra.mxu0 %v9228_v27  ;;  %v9251_v51 = vld [vmem:[%s16022_s4 + $0x15c] ss:$28 sps:$4 sm:$0xff]   ;;  %v9257_v5 = vld [vmem:[%s16022_s4 + $0x194] ss:$28 sps:$4 sm:$0xff]  }
 0x44e   : > { %v3867_v9 = vadd.f32 %v3866_v21, %v3808_v59  ;;  %5483 = vmatprep.subr.bf16.mxu0 %v9233_v24  ;;  %v9210_v21 = vld [vmem:[%s16022_s4 + $0x38] ss:$28 sps:$4 sm:$0xff]   ;;  %v9221_v24 = vld [vmem:[%s16022_s4 + $0xac] ss:$28 sps:$4 sm:$0xff]  }
 0x450   : > { %3868 = vadd.xlane.f32.xlu1 %v3867_v9 }
 0x451   : > { %5484 = vmatpush1.bf16.msra.mxu0 %v9231_v50 }
 0x452   : > { %5485 = vmatprep.subr.bf16.mxu0 %v9239_v36  ;;  %v9227_v36 = vld [vmem:[%s16022_s4 + $0xe4] ss:$28 sps:$4 sm:$0xff]  }
 0x455   : > { %5486 = vmatpush1.bf16.msra.mxu0 %v9237_v6 }
 0x456   : > { %5487 = vmatprep.subr.bf16.mxu0 %v9245_v53 }
 0x459   : > { %5488 = vmatpush1.bf16.msra.mxu0 %v9243_v43 }
 0x45a   : > { %5489 = vmatprep.subr.bf16.mxu0 %v9251_v51 }
 0x45d   : > { %5490 = vmatpush1.bf16.msra.mxu0 %v9249_v22 }
 0x45e   : > { %5491 = vmatprep.subr.bf16.mxu0 %v9257_v5  ;;  %v9252_v5 = vld [vmem:[%s16022_s4 + $0x1c0] ss:$28 sps:$4 sm:$0xff]  }
 0x47d   : > { %v4122_v25 = vpop.f32.mrb[68].mxu1 }
 0x47e   : > { %v4123_v60 = vadd.f32 %v4122_v25, %v12506_v57  ;;  %v4124_v26 = vpop.f32.mrb[69].mxu1 }
 0x47f   : > { %v4125_v49 = vadd.f32 %v4124_v26, %v12509_v58  ;;  %v4126_v34 = vpop.f32.mrb[70].mxu1 }
 0x480   : > { %v4233_v61 = vmul.f32 0.01, %v4123_v60  ;;  %v4127_v37 = vadd.f32 %v4126_v34, %v12506_v57  ;;  %v4128_v17 = vpop.f32.mrb[71].mxu1  ;;  %vm4201_vm2 = vcmp.gt.f32.partialorder %v4123_v60, 0.0  ;;  %v9255_v34 = vld [vmem:[%s16022_s4 + $0x190] ss:$28 sps:$4 sm:$0xff]  }
 0x481   : > { %v4234_v56 = vmul.f32 0.01, %v4125_v49  ;;  %v4129_v7 = vadd.f32 %v4128_v17, %v12509_v58  ;;  %vm4202_vm6 = vcmp.gt.f32.partialorder %v4125_v49, 0.0  ;;  %v9260_v17 = vld [vmem:[%s16022_s4 + $0x1cc] ss:$28 sps:$4 sm:$0xff]   ;;  %5492 = vmatpush1.bf16.msra.mxu0 %v9255_v34 }
 0x482   : > { %vm4203_vm7 = vcmp.gt.f32.partialorder %v4127_v37, 0.0  ;;  %v4235_v63 = vmul.f32 0.01, %v4127_v37  ;;  %v4265_v30 = vsel %vm4201_vm2, %v4123_v60, %v4233_v61  ;;  %5493 = vmatprep.subr.bf16.mxu0 %v9260_v17 }
 0x483   : > { %vm4204_vm8 = vcmp.gt.f32.partialorder %v4129_v7, 0.0  ;;  %v4236_v4 = vmul.f32 0.01, %v4129_v7  ;;  %v4266_v13 = vsel %vm4202_vm6, %v4125_v49, %v4234_v56  ;;  %v9219_v56 = vld [vmem:[%s16022_s4 + $0xa8] ss:$28 sps:$4 sm:$0xff]  }
 0x484   : > { %v4267_v40 = vsel %vm4203_vm7, %v4127_v37, %v4235_v63 }
 0x485   : > { %v4297_v33 = vpack.c.bf16 %v4267_v40, %v4265_v30  ;;  %v4268_v1 = vsel %vm4204_vm8, %v4129_v7, %v4236_v4  ;;  %v4132_v15 = vpop.f32.mrb[72].mxu1  ;;  %v9258_v30 = vld [vmem:[%s16022_s4 + $0x1c8] ss:$28 sps:$4 sm:$0xff]  }
 0x486   : > { %v4298_v35 = vpack.c.bf16 %v4268_v1, %v4266_v13  ;;  %v4133_v3 = vadd.f32 %v4132_v15, %v12506_v57  ;;  %v4134_v31 = vpop.f32.mrb[73].mxu1  ;;  %v9266_v1 = vld [vmem:[%s16022_s4 + $0x204] ss:$28 sps:$4 sm:$0xff]   ;;  %5494 = vmatpush1.bf16.msra.mxu0 %v9258_v30 }
 0x487   : > { %v4135_v18 = vadd.f32 %v4134_v31, %v12509_v58  ;;  %v4136_v19 = vpop.f32.mrb[74].mxu1  ;;  %5495 = vmatprep.subr.bf16.mxu0 %v9266_v1 }
 0x488   : > { %v4237_v54 = vmul.f32 0.01, %v4133_v3  ;;  %v4137_v10 = vadd.f32 %v4136_v19, %v12506_v57  ;;  %v4138_v20 = vpop.f32.mrb[75].mxu1  ;;  %8540 = vmatprep.mubr.msk.bf16.mxu1 %vm2162_vm10, %v4298_v35  ;;  %vm4205_vm9 = vcmp.gt.f32.partialorder %v4133_v3, 0.0 }
 0x489   : > { %v4238_v55 = vmul.f32 0.01, %v4135_v18  ;;  %v4139_v41 = vadd.f32 %v4138_v20, %v12509_v58  ;;  %4540 = vmatmul.mubr.bf16.vlgmr.msra.gmra.mrb[100].mxu1 %v4297_v33  ;;  %vm4206_vm11 = vcmp.gt.f32.partialorder %v4135_v18, 0.0 }
 0x48a   : > { %vm4207_vm5 = vcmp.gt.f32.partialorder %v4137_v10, 0.0  ;;  %v4239_v59 = vmul.f32 0.01, %v4137_v10  ;;  %5365 = vmatpush1.bf16.msra.mxu1 %v9207_v11  ;;  %v4269_v52 = vsel %vm4205_vm9, %v4133_v3, %v4237_v54  ;;  %v9225_v3 = vld [vmem:[%s16022_s4 + $0xe0] ss:$28 sps:$4 sm:$0xff]  }
 0x48b   : > { %vm4208_vm12 = vcmp.gt.f32.partialorder %v4139_v41, 0.0  ;;  %v4240_v9 = vmul.f32 0.01, %v4139_v41  ;;  %5366 = vmatprep.subr.bf16.mxu1 %v9212_v29  ;;  %v4270_v44 = vsel %vm4206_vm11, %v4135_v18, %v4238_v55  ;;  %v9236_v18 = vld [vmem:[%s16022_s4 + $0x11c] ss:$28 sps:$4 sm:$0xff]  }
 0x48c   : > { %v4271_v16 = vsel %vm4207_vm5, %v4137_v10, %v4239_v59  ;;  %v9264_v10 = vld [vmem:[%s16022_s4 + $0x200] ss:$28 sps:$4 sm:$0xff]   ;;  %v9242_v59 = vld [vmem:[%s16022_s4 + $0x154] ss:$28 sps:$4 sm:$0xff]  }
 0x48d   : > { %v4272_v0 = vsel %vm4208_vm12, %v4139_v41, %v4240_v9  ;;  %v4142_v42 = vpop.f32.mrb[76].mxu1  ;;  %v4299_v39 = vpack.c.bf16 %v4271_v16, %v4269_v52  ;;  %v9234_v41 = vld [vmem:[%s16022_s4 + $0x118] ss:$28 sps:$4 sm:$0xff]   ;;  %5496 = vmatpush1.bf16.msra.mxu0 %v9264_v10 }
 0x48e   : > { %v4300_v23 = vpack.c.bf16 %v4272_v0, %v4270_v44  ;;  %v4143_v14 = vadd.f32 %v4142_v42, %v12506_v57  ;;  %v4144_v46 = vpop.f32.mrb[77].mxu1  ;;  %5367 = vmatpush1.bf16.msra.mxu1 %v9210_v21  ;;  %v9240_v44 = vld [vmem:[%s16022_s4 + $0x150] ss:$28 sps:$4 sm:$0xff]   ;;  %v9246_v42 = vld [vmem:[%s16022_s4 + $0x188] ss:$28 sps:$4 sm:$0xff]  }
 0x48f   : > { %v4145_v27 = vadd.f32 %v4144_v46, %v12509_v58  ;;  %v4146_v25 = vpop.f32.mrb[78].mxu1  ;;  %5368 = vmatprep.subr.bf16.mxu1 %v9215_v2  ;;  %v9248_v0 = vld [vmem:[%s16022_s4 + $0x18c] ss:$28 sps:$4 sm:$0xff]  }
 0x490   : > { %v4241_v60 = vmul.f32 0.01, %v4143_v14  ;;  %v4147_v26 = vadd.f32 %v4146_v25, %v12506_v57  ;;  %v4148_v49 = vpop.f32.mrb[79].mxu1  ;;  %8541 = vmatprep.mubr.msk.bf16.mxu1 %vm2162_vm10, %v4300_v23  ;;  %vm4209_vm13 = vcmp.gt.f32.partialorder %v4143_v14, 0.0 }
 0x491   : > { %v4242_v61 = vmul.f32 0.01, %v4145_v27  ;;  %v4149_v37 = vadd.f32 %v4148_v49, %v12509_v58  ;;  %4550 = vmatmul.mubr.bf16.gmra.mrb[104].mxu1 %v4299_v39  ;;  %vm4210_vm14 = vcmp.gt.f32.partialorder %v4145_v27, 0.0  ;;  %v9254_v39 = vld [vmem:[%s16022_s4 + $0x1c4] ss:$28 sps:$4 sm:$0xff]  }
 0x492   : > { %vm4211_vm15 = vcmp.gt.f32.partialorder %v4147_v26, 0.0  ;;  %v4243_v50 = vmul.f32 0.01, %v4147_v26  ;;  %5369 = vmatpush1.bf16.msra.mxu1 %v9213_v28  ;;  %v4273_v63 = vsel %vm4209_vm13, %v4143_v14, %v4241_v60  ;;  %v9263_v14 = vld [vmem:[%s16022_s4 + $0x1fc] ss:$28 sps:$4 sm:$0xff]  }
 0x493   : > { %vm4212_vm4 = vcmp.gt.f32.partialorder %v4149_v37, 0.0  ;;  %v4244_v7 = vmul.f32 0.01, %v4149_v37  ;;  %5370 = vmatprep.subr.bf16.mxu1 %v9221_v24  ;;  %v4274_v40 = vsel %vm4210_vm14, %v4145_v27, %v4242_v61  ;;  %v9261_v49 = vld [vmem:[%s16022_s4 + $0x1f8] ss:$28 sps:$4 sm:$0xff]  }
 0x494   : > { %v4275_v4 = vsel %vm4211_vm15, %v4147_v26, %v4243_v50 }
 0x495   : > { %v4276_v6 = vsel %vm4212_vm4, %v4149_v37, %v4244_v7  ;;  %v4152_v13 = vpop.f32.mrb[80].mxu1  ;;  %v4301_v33 = vpack.c.bf16 %v4275_v4, %v4273_v63  ;;  %v9269_v37 = vld [vmem:[%s16022_s4 + $0x234] ss:$28 sps:$4 sm:$0xff]  }
 0x496   : > { %v4302_v15 = vpack.c.bf16 %v4276_v6, %v4274_v40  ;;  %v4153_v53 = vadd.f32 %v4152_v13, %v12506_v57  ;;  %v4154_v35 = vpop.f32.mrb[81].mxu1  ;;  %5371 = vmatpush1.bf16.msra.mxu1 %v9219_v56 }
 0x497   : > { %v4155_v31 = vadd.f32 %v4154_v35, %v12509_v58  ;;  %v4156_v11 = vpop.f32.mrb[82].mxu1  ;;  %5372 = vmatprep.subr.bf16.mxu1 %v9227_v36  ;;  %v9267_v36 = vld [vmem:[%s16022_s4 + $0x230] ss:$28 sps:$4 sm:$0xff]  }
 0x498   : > { %v4245_v19 = vmul.f32 0.01, %v4153_v53  ;;  %v4157_v29 = vadd.f32 %v4156_v11, %v12506_v57  ;;  %v4158_v54 = vpop.f32.mrb[83].mxu1  ;;  %8542 = vmatprep.mubr.msk.bf16.mxu1 %vm2162_vm10, %v4302_v15  ;;  %vm4213_vm3 = vcmp.gt.f32.partialorder %v4153_v53, 0.0 }
 0x499   : > { %v4246_v20 = vmul.f32 0.01, %v4155_v31  ;;  %v4159_v43 = vadd.f32 %v4158_v54, %v12509_v58  ;;  %4560 = vmatmul.mubr.bf16.gmra.mrb[108].mxu1 %v4301_v33  ;;  %vm4214_vm2 = vcmp.gt.f32.partialorder %v4155_v31, 0.0 }
 0x49a   : > { %vm4215_vm6 = vcmp.gt.f32.partialorder %v4157_v29, 0.0  ;;  %v4247_v55 = vmul.f32 0.01, %v4157_v29  ;;  %5373 = vmatpush1.bf16.msra.mxu1 %v9225_v3  ;;  %v4277_v21 = vsel %vm4213_vm3, %v4153_v53, %v4245_v19 }
 0x49b   : > { %vm4216_vm7 = vcmp.gt.f32.partialorder %v4159_v43, 0.0  ;;  %v4248_v51 = vmul.f32 0.01, %v4159_v43  ;;  %5374 = vmatprep.subr.bf16.mxu1 %v9236_v18  ;;  %v4278_v2 = vsel %vm4214_vm2, %v4155_v31, %v4246_v20 }
 0x49c   : > { %v4279_v9 = vsel %vm4215_vm6, %v4157_v29, %v4247_v55 }
 0x49d   : > { %v4280_v52 = vsel %vm4216_vm7, %v4159_v43, %v4248_v51  ;;  %v4303_v16 = vpack.c.bf16 %v4279_v9, %v4277_v21 }
 0x49e   : > { %v4304_v22 = vpack.c.bf16 %v4280_v52, %v4278_v2  ;;  %5375 = vmatpush1.bf16.msra.mxu1 %v9234_v41 }
 0x49f   : > { %5376 = vmatprep.subr.bf16.mxu1 %v9242_v59 }
 0x4a0   : > { %8543 = vmatprep.mubr.msk.bf16.mxu1 %vm2162_vm10, %v4304_v22 }
 0x4a1   : > { %4570 = vmatmul.mubr.bf16.gmra.mrb[112].mxu1 %v4303_v16 }
 0x4a2   : > { %5377 = vmatpush1.bf16.msra.mxu1 %v9240_v44 }
 0x4a3   : > { %5378 = vmatprep.subr.bf16.mxu1 %v9248_v0 }
 0x4a6   : > { %5379 = vmatpush1.bf16.msra.mxu1 %v9246_v42  ;;  %v4162_v23 = vpop.f32.mrb[84].mxu1 }
 0x4a7   : > { %5380 = vmatprep.subr.bf16.mxu1 %v9254_v39  ;;  %v4163_v46 = vadd.f32 %v4162_v23, %v12506_v57  ;;  %v4164_v28 = vpop.f32.mrb[85].mxu1 }
 0x4a8   : > { %v4165_v27 = vadd.f32 %v4164_v28, %v12509_v58  ;;  %v4166_v25 = vpop.f32.mrb[86].mxu1 }
 0x4a9   : > { %v4249_v24 = vmul.f32 0.01, %v4163_v46  ;;  %v4167_v60 = vadd.f32 %v4166_v25, %v12506_v57  ;;  %v4168_v26 = vpop.f32.mrb[87].mxu1  ;;  %vm4217_vm8 = vcmp.gt.f32.partialorder %v4163_v46, 0.0  ;;  %v9272_v25 = vld [vmem:[%s16022_s4 + $0x23c] ss:$28 sps:$4 sm:$0xff]  }
 0x4aa   : > { %5381 = vmatpush1.bf16.msra.mxu1 %v9252_v5  ;;  %v4250_v34 = vmul.f32 0.01, %v4165_v27  ;;  %v4169_v61 = vadd.f32 %v4168_v26, %v12509_v58  ;;  %vm4218_vm9 = vcmp.gt.f32.partialorder %v4165_v27, 0.0  ;;  %5497 = vmatprep.subr.bf16.mxu0 %v9272_v25  ;;  %v9276_v26 = vld [vmem:[%s16022_s4 + $0x270] ss:$28 sps:$4 sm:$0xff]  }
 0x4ab   : > { %5382 = vmatprep.subr.bf16.mxu1 %v9263_v14  ;;  %vm4219_vm11 = vcmp.gt.f32.partialorder %v4167_v60, 0.0  ;;  %v4251_v17 = vmul.f32 0.01, %v4167_v60  ;;  %v4281_v56 = vsel %vm4217_vm8, %v4163_v46, %v4249_v24  ;;  %v9273_v24 = vld [vmem:[%s16022_s4 + $0x268] ss:$28 sps:$4 sm:$0xff]  }
 0x4ac   : > { %vm4220_vm5 = vcmp.gt.f32.partialorder %v4169_v61, 0.0  ;;  %v4252_v50 = vmul.f32 0.01, %v4169_v61  ;;  %v4282_v63 = vsel %vm4218_vm9, %v4165_v27, %v4250_v34  ;;  %v9270_v27 = vld [vmem:[%s16022_s4 + $0x238] ss:$28 sps:$4 sm:$0xff]  }
 0x4ad   : > { %v4283_v7 = vsel %vm4219_vm11, %v4167_v60, %v4251_v17  ;;  %5498 = vmatpush1.bf16.msra.mxu0 %v9270_v27  ;;  %v9275_v60 = vld [vmem:[%s16022_s4 + $0x26c] ss:$28 sps:$4 sm:$0xff]  }
 0x4ae   : > { %5383 = vmatpush1.bf16.msra.mxu1 %v9261_v49  ;;  %v4284_v4 = vsel %vm4220_vm5, %v4169_v61, %v4252_v50  ;;  %v4305_v30 = vpack.c.bf16 %v4283_v7, %v4281_v56  ;;  %v9278_v49 = vld [vmem:[%s16022_s4 + $0x274] ss:$28 sps:$4 sm:$0xff]   ;;  %v4828_v56 = vld [vmem:[%s16022_s4 + $0x2a0] sm:$0xff]  ;;  %v4829_v7 = vld [vmem:[%s16022_s4 + $0x2a8] sm:$0xff] }
 0x4af   : > { %5384 = vmatprep.subr.bf16.mxu1 %v9269_v37  ;;  %v4306_v40 = vpack.c.bf16 %v4284_v4, %v4282_v63  ;;  %5499 = vmatprep.subr.bf16.mxu0 %v9278_v49 }
 0x4b1   : > { %8544 = vmatprep.mubr.msk.bf16.mxu1 %vm2162_vm10, %v4306_v40  ;;  %5500 = vmatpush1.bf16.msra.mxu0 %v9276_v26 }
 0x4b2   : > { %5385 = vmatpush1.bf16.msra.mxu1 %v9267_v36 }
 0x4b3   : > { %4580 = vmatmul.mubr.bf16.gmra.mrb[116].mxu1 %v4305_v30  ;;  %5386 = vmatprep.subr.bf16.mxu1 %v9275_v60  ;;  %v8633_v30 = vcombine.high %v4828_v56, %v4828_v56  ;;  %v9286_v60 = vld [vmem:[%s16022_s4 + $0x18] ss:$28 sps:$4 sm:$0xff]  }
 0x4b6   : > { %5387 = vmatpush1.bf16.msra.mxu1 %v9273_v24  ;;  %v9283_v24 = vld [vmem:[%s16022_s4 + $0x10] ss:$28 sps:$4 sm:$0xff]  }
 0x4b7   : > { %8639 = vmatprep.subr.msk.bf16.mxu1 %vm2187_vm1, %v8633_v30  ;;  %v9293_v30 = vld [vmem:[%s16022_s4 + $0x84] ss:$28 sps:$4 sm:$0xff]  }
 0x4ba   : > { %v4172_v6 = vpop.f32.mrb[88].mxu1 }
 0x4bb   : > { %v4173_v13 = vadd.f32 %v4172_v6, %v12506_v57  ;;  %v4174_v33 = vpop.f32.mrb[89].mxu1 }
 0x4bc   : > { %v4175_v1 = vadd.f32 %v4174_v33, %v12509_v58  ;;  %v4176_v15 = vpop.f32.mrb[90].mxu1 }
 0x4bd   : > { %v4253_v53 = vmul.f32 0.01, %v4173_v13  ;;  %v4177_v35 = vadd.f32 %v4176_v15, %v12506_v57  ;;  %v4178_v3 = vpop.f32.mrb[91].mxu1  ;;  %vm4221_vm12 = vcmp.gt.f32.partialorder %v4173_v13, 0.0 }
 0x4be   : > { %v4254_v31 = vmul.f32 0.01, %v4175_v1  ;;  %v4179_v11 = vadd.f32 %v4178_v3, %v12509_v58  ;;  %vm4222_vm13 = vcmp.gt.f32.partialorder %v4175_v1, 0.0 }
 0x4bf   : > { %vm4223_vm14 = vcmp.gt.f32.partialorder %v4177_v35, 0.0  ;;  %v4255_v18 = vmul.f32 0.01, %v4177_v35  ;;  %v4285_v29 = vsel %vm4221_vm12, %v4173_v13, %v4253_v53  ;;  %v8635_v13 = vcombine.high %v4829_v7, %v4829_v7 }
 0x4c0   : > { %vm4224_vm15 = vcmp.gt.f32.partialorder %v4179_v11, 0.0  ;;  %v4256_v19 = vmul.f32 0.01, %v4179_v11  ;;  %v4286_v10 = vsel %vm4222_vm13, %v4175_v1, %v4254_v31  ;;  %v8632_v1 = vcombine.low %v4828_v56, %v4828_v56 }
 0x4c1   : > { %v4287_v54 = vsel %vm4223_vm14, %v4177_v35, %v4255_v18  ;;  %8648 = vmatprep.subr.msk.bf16.mxu0 %vm2187_vm1, %v8635_v13  ;;  %v8634_v53 = vcombine.low %v4829_v7, %v4829_v7  ;;  %v9287_v7 = vld [vmem:[%s16022_s4 + $0x48] ss:$28 sps:$4 sm:$0xff]  }
 0x4c2   : > { %v4288_v20 = vsel %vm4224_vm15, %v4179_v11, %v4256_v19  ;;  %v4307_v43 = vpack.c.bf16 %v4287_v54, %v4285_v29  ;;  %v5344_v3 = vsel %vm2187_vm1, %v8632_v1, 0  ;;  %v16334_v54 = vmov 0  }
 0x4c3   : > { %v4308_v55 = vpack.c.bf16 %v4288_v20, %v4286_v10  ;;  %5389 = vmatpush1.bf16.msra.mxu1 %v5344_v3  ;;  %v5350_v19 = vsel %vm2187_vm1, %v8634_v53, 0  ;;  %v8512_v10 = vld [vmem:[%s16023_s5 + $0x4] ss:$8 sm:$0x3]  ;;  %v9291_v3 = vld [vmem:[%s16022_s4 + $0x80] ss:$28 sps:$4 sm:$0xff]  }
 0x4c4   : > { %5502 = vmatpush1.bf16.msra.mxu0 %v5350_v19  ;;  %v12695_v20 = vrot.slane %v8512_v10, %v16332_v47 }
 0x4c5   : > { %8545 = vmatprep.mubr.msk.bf16.mxu1 %vm2162_vm10, %v4308_v55  ;;  %5703 = vmatprep.subr.bf16.mxu0 %v16334_v54 }
 0x4c6   : > { %4590 = vmatmul.mubr.bf16.gmra.mrb[120].mxu1 %v4307_v43  ;;  %v12698_v43 = vrot.slane %v8512_v10, %v16333_v38 }
 0x4cf   : > { %v4182_v41 = vpop.f32.mrb[92].mxu1 }
 0x4d0   : > { %v4183_v51 = vadd.f32 %v4182_v41, %v12506_v57  ;;  %v4184_v59 = vpop.f32.mrb[93].mxu1 }
 0x4d1   : > { %v4185_v21 = vadd.f32 %v4184_v59, %v12509_v58  ;;  %v4186_v9 = vpop.f32.mrb[94].mxu1 }
 0x4d2   : > { %v4257_v2 = vmul.f32 0.01, %v4183_v51  ;;  %v4187_v52 = vadd.f32 %v4186_v9, %v12506_v57  ;;  %v4188_v16 = vpop.f32.mrb[95].mxu1  ;;  %vm4225_vm4 = vcmp.gt.f32.partialorder %v4183_v51, 0.0 }
 0x4d3   : > { %v4258_v22 = vmul.f32 0.01, %v4185_v21  ;;  %v4189_v44 = vadd.f32 %v4188_v16, %v12509_v58  ;;  %vm4226_vm3 = vcmp.gt.f32.partialorder %v4185_v21, 0.0 }
 0x4d4   : > { %vm4227_vm2 = vcmp.gt.f32.partialorder %v4187_v52, 0.0  ;;  %v4259_v0 = vmul.f32 0.01, %v4187_v52  ;;  %v4289_v39 = vsel %vm4225_vm4, %v4183_v51, %v4257_v2 }
 0x4d5   : > { %vm4228_vm6 = vcmp.gt.f32.partialorder %v4189_v44, 0.0  ;;  %v4260_v42 = vmul.f32 0.01, %v4189_v44  ;;  %v4290_v23 = vsel %vm4226_vm3, %v4185_v21, %v4258_v22 }
 0x4d6   : > { %v4291_v5 = vsel %vm4227_vm2, %v4187_v52, %v4259_v0 }
 0x4d7   : > { %v4292_v14 = vsel %vm4228_vm6, %v4189_v44, %v4260_v42  ;;  %v4309_v46 = vpack.c.bf16 %v4291_v5, %v4289_v39 }
 0x4d8   : > { %v4310_v28 = vpack.c.bf16 %v4292_v14, %v4290_v23 }
 0x4da   : > { %8546 = vmatprep.mubr.msk.bf16.mxu1 %vm2162_vm10, %v4310_v28 }
 0x4db   : > { %4600 = vmatmul.mubr.bf16.gmra.mrb[124].mxu1 %v4309_v46 }
 0x4e6   : > { %v4192_v34 = vpop.f32.mrb[96].mxu1 }
 0x4e7   : > { %v4193_v61 = vadd.f32 %v4192_v34, %v12506_v57  ;;  %v4194_v37 = vpop.f32.mrb[97].mxu1  ;;  %v9289_v34 = vld [vmem:[%s16022_s4 + $0x4c] ss:$28 sps:$4 sm:$0xff]  }
 0x4e8   : > { %v4195_v17 = vadd.f32 %v4194_v37, %v12509_v58  ;;  %v4196_v50 = vpop.f32.mrb[98].mxu1 }
 0x4e9   : > { %v4261_v36 = vmul.f32 0.01, %v4193_v61  ;;  %v4197_v63 = vadd.f32 %v4196_v50, %v12506_v57  ;;  %v4198_v4 = vpop.f32.mrb[99].mxu1  ;;  %vm4229_vm7 = vcmp.gt.f32.partialorder %v4193_v61, 0.0 }
 0x4ea   : > { %v4262_v40 = vmul.f32 0.01, %v4195_v17  ;;  %v4199_v6 = vadd.f32 %v4198_v4, %v12509_v58  ;;  %vm4230_vm8 = vcmp.gt.f32.partialorder %v4195_v17, 0.0  ;;  %v9285_v58 = vld [vmem:[%s16022_s4 + $0x14] ss:$28 sps:$4 sm:$0xff]  }
 0x4eb   : > { %vm4231_vm9 = vcmp.gt.f32.partialorder %v4197_v63, 0.0  ;;  %v4263_v33 = vmul.f32 0.01, %v4197_v63  ;;  %v4293_v35 = vsel %vm4229_vm7, %v4193_v61, %v4261_v36  ;;  %5590 = vmatprep.subr.bf16.mxu1 %v9285_v58  ;;  %v9294_v58 = vld [vmem:[%s16022_s4 + $0x88] ss:$28 sps:$4 sm:$0xff]  }
 0x4ec   : > { %vm4232_vm11 = vcmp.gt.f32.partialorder %v4199_v6, 0.0  ;;  %v4264_v15 = vmul.f32 0.01, %v4199_v6  ;;  %v4294_v31 = vsel %vm4230_vm8, %v4195_v17, %v4262_v40 }
 0x4ed   : > { %v4295_v57 = vsel %vm4231_vm9, %v4197_v63, %v4263_v33  ;;  %v9290_v63 = vld [vmem:[%s16022_s4 + $0x50] ss:$28 sps:$4 sm:$0xff]  }
 0x4ee   : > { %v4296_v11 = vsel %vm4232_vm11, %v4199_v6, %v4264_v15  ;;  %v4311_v18 = vpack.c.bf16 %v4295_v57, %v4293_v35 }
 0x4ef   : > { %v4312_v29 = vpack.c.bf16 %v4296_v11, %v4294_v31 }
 0x4f1   : > { %8547 = vmatprep.mubr.msk.bf16.mxu1 %vm2162_vm10, %v4312_v29 }
 0x4f2   : > { %4610 = vmatmul.mubr.bf16.gmra.mrb[128].mxu1 %v4311_v18  ;;  %v9297_v18 = vld [vmem:[%s16022_s4 + $0xbc] ss:$28 sps:$4 sm:$0xff]  }
 0x55c   : > { %v4541_v55 = vpop.f32.mrb[100].mxu1 }
 0x55d   : > { %v4542_v41 = vadd.f32 %v4541_v55, %v12695_v20  ;;  %v4543_v51 = vpop.f32.mrb[101].mxu1 }
 0x55e   : > { %v4544_v59 = vadd.f32 %v4543_v51, %v12698_v43  ;;  %v4545_v21 = vpop.f32.mrb[102].mxu1  ;;  %v9295_v51 = vld [vmem:[%s16022_s4 + $0xb8] ss:$28 sps:$4 sm:$0xff]  }
 0x55f   : > { %v4652_v9 = vmul.f32 0.01, %v4542_v41  ;;  %v4546_v2 = vadd.f32 %v4545_v21, %v12695_v20  ;;  %v4547_v52 = vpop.f32.mrb[103].mxu1  ;;  %vm4620_vm5 = vcmp.gt.f32.partialorder %v4542_v41, 0.0  ;;  %v9298_v21 = vld [vmem:[%s16022_s4 + $0xc0] ss:$28 sps:$4 sm:$0xff]  }
 0x560   : > { %v4653_v16 = vmul.f32 0.01, %v4544_v59  ;;  %v4548_v22 = vadd.f32 %v4547_v52, %v12698_v43  ;;  %vm4621_vm12 = vcmp.gt.f32.partialorder %v4544_v59, 0.0 }
 0x561   : > { %vm4622_vm13 = vcmp.gt.f32.partialorder %v4546_v2, 0.0  ;;  %v4654_v44 = vmul.f32 0.01, %v4546_v2  ;;  %v4684_v42 = vsel %vm4620_vm5, %v4542_v41, %v4652_v9 }
 0x562   : > { %vm4623_vm14 = vcmp.gt.f32.partialorder %v4548_v22, 0.0  ;;  %v4655_v0 = vmul.f32 0.01, %v4548_v22  ;;  %v4685_v5 = vsel %vm4621_vm12, %v4544_v59, %v4653_v16 }
 0x563   : > { %v4686_v39 = vsel %vm4622_vm13, %v4546_v2, %v4654_v44  ;;  %v9301_v2 = vld [vmem:[%s16022_s4 + $0xf4] ss:$28 sps:$4 sm:$0xff]  }
 0x564   : > { %v12704_v23 = vpack.c.bf16 %v4686_v39, %v4684_v42  ;;  %v4687_v14 = vsel %vm4623_vm14, %v4548_v22, %v4655_v0  ;;  %v4551_v46 = vpop.f32.mrb[104].mxu1 }
 0x565   : > { %v12706_v28 = vpack.c.bf16 %v4687_v14, %v4685_v5  ;;  %v4552_v27 = vadd.f32 %v4551_v46, %v12695_v20  ;;  %v4553_v25 = vpop.f32.mrb[105].mxu1  ;;  %v9299_v46 = vld [vmem:[%s16022_s4 + $0xf0] ss:$28 sps:$4 sm:$0xff]  }
 0x566   : > { %v4554_v26 = vadd.f32 %v4553_v25, %v12698_v43  ;;  %v4555_v49 = vpop.f32.mrb[106].mxu1 }
 0x567   : > { %v4656_v61 = vmul.f32 0.01, %v4552_v27  ;;  %v4556_v37 = vadd.f32 %v4555_v49, %v12695_v20  ;;  %v4557_v17 = vpop.f32.mrb[107].mxu1  ;;  %8640 = vmatprep.mubr.msk.bf16.mxu1 %vm2162_vm10, %v12706_v28  ;;  %8649 = vmatprep.mubr.msk.bf16.mxu0 %vm2162_vm10, %v12706_v28  ;;  %vm4624_vm15 = vcmp.gt.f32.partialorder %v4552_v27, 0.0 }
 0x568   : > { %v4657_v50 = vmul.f32 0.01, %v4554_v26  ;;  %v4558_v56 = vadd.f32 %v4557_v17, %v12698_v43  ;;  %5397 = vmatmul.mubr.bf16.vlgmr.msra.gmra.mrb[132].mxu1 %v12704_v23  ;;  %5510 = vmatmul.mubr.bf16.vlgmr.msra.gmra.mrb[32].mxu0 %v12704_v23  ;;  %vm4625_vm4 = vcmp.gt.f32.partialorder %v4554_v26, 0.0  ;;  %v9303_v17 = vld [vmem:[%s16022_s4 + $0x128] ss:$28 sps:$4 sm:$0xff]  }
 0x569   : > { %vm4626_vm3 = vcmp.gt.f32.partialorder %v4556_v37, 0.0  ;;  %v4658_v36 = vmul.f32 0.01, %v4556_v37  ;;  %5591 = vmatpush1.bf16.msra.mxu1 %v9283_v24  ;;  %5704 = vmatpush1.bf16.msra.mxu0 %v9286_v60  ;;  %v4688_v40 = vsel %vm4624_vm15, %v4552_v27, %v4656_v61  ;;  %v9302_v27 = vld [vmem:[%s16022_s4 + $0xf8] ss:$28 sps:$4 sm:$0xff]  }
 0x56a   : > { %vm4627_vm2 = vcmp.gt.f32.partialorder %v4558_v56, 0.0  ;;  %v4659_v4 = vmul.f32 0.01, %v4558_v56  ;;  %5592 = vmatprep.subr.bf16.mxu1 %v9289_v34  ;;  %5705 = vmatprep.subr.bf16.mxu0 %v16334_v54  ;;  %v4689_v13 = vsel %vm4625_vm4, %v4554_v26, %v4657_v50  ;;  %v9305_v60 = vld [vmem:[%s16022_s4 + $0x12c] ss:$28 sps:$4 sm:$0xff]  }
 0x56b   : > { %v4690_v6 = vsel %vm4626_vm3, %v4556_v37, %v4658_v36  ;;  %v9309_v36 = vld [vmem:[%s16022_s4 + $0x164] ss:$28 sps:$4 sm:$0xff]  }
 0x56c   : > { %v12738_v33 = vpack.c.bf16 %v4690_v6, %v4688_v40  ;;  %v4691_v1 = vsel %vm4627_vm2, %v4558_v56, %v4659_v4  ;;  %v4561_v15 = vpop.f32.mrb[108].mxu1  ;;  %v9306_v56 = vld [vmem:[%s16022_s4 + $0x130] ss:$28 sps:$4 sm:$0xff]  }
 0x56d   : > { %v12740_v53 = vpack.c.bf16 %v4691_v1, %v4689_v13  ;;  %v4562_v35 = vadd.f32 %v4561_v15, %v12695_v20  ;;  %v4563_v57 = vpop.f32.mrb[109].mxu1  ;;  %5593 = vmatpush1.bf16.msra.mxu1 %v9287_v7  ;;  %5706 = vmatpush1.bf16.msra.mxu0 %v9290_v63  ;;  %v9307_v1 = vld [vmem:[%s16022_s4 + $0x160] ss:$28 sps:$4 sm:$0xff]   ;;  %v9310_v15 = vld [vmem:[%s16022_s4 + $0x168] ss:$28 sps:$4 sm:$0xff]  }
 0x56e   : > { %v4564_v31 = vadd.f32 %v4563_v57, %v12698_v43  ;;  %v4565_v11 = vpop.f32.mrb[110].mxu1  ;;  %5594 = vmatprep.subr.bf16.mxu1 %v9293_v30  ;;  %5707 = vmatprep.subr.bf16.mxu0 %v16334_v54  ;;  %v9311_v57 = vld [vmem:[%s16022_s4 + $0x198] ss:$28 sps:$4 sm:$0xff]  }
 0x56f   : > { %v4660_v19 = vmul.f32 0.01, %v4562_v35  ;;  %v4566_v29 = vadd.f32 %v4565_v11, %v12695_v20  ;;  %v4567_v10 = vpop.f32.mrb[111].mxu1  ;;  %8641 = vmatprep.mubr.msk.bf16.mxu1 %vm2162_vm10, %v12740_v53  ;;  %8650 = vmatprep.mubr.msk.bf16.mxu0 %vm2162_vm10, %v12740_v53  ;;  %vm4628_vm6 = vcmp.gt.f32.partialorder %v4562_v35, 0.0  ;;  %v9318_v11 = vld [vmem:[%s16022_s4 + $0x1d8] ss:$28 sps:$4 sm:$0xff]  }
 0x570   : > { %v4661_v55 = vmul.f32 0.01, %v4564_v31  ;;  %v4568_v41 = vadd.f32 %v4567_v10, %v12698_v43  ;;  %5407 = vmatmul.mubr.bf16.gmra.mrb[136].mxu1 %v12738_v33  ;;  %5520 = vmatmul.mubr.bf16.gmra.mrb[36].mxu0 %v12738_v33  ;;  %vm4629_vm7 = vcmp.gt.f32.partialorder %v4564_v31, 0.0 }
 0x571   : > { %vm4630_vm8 = vcmp.gt.f32.partialorder %v4566_v29, 0.0  ;;  %v4662_v59 = vmul.f32 0.01, %v4566_v29  ;;  %5595 = vmatpush1.bf16.msra.mxu1 %v9291_v3  ;;  %5708 = vmatpush1.bf16.msra.mxu0 %v9294_v58  ;;  %v4692_v52 = vsel %vm4628_vm6, %v4562_v35, %v4660_v19  ;;  %v9313_v35 = vld [vmem:[%s16022_s4 + $0x19c] ss:$28 sps:$4 sm:$0xff]  }
 0x572   : > { %vm4631_vm9 = vcmp.gt.f32.partialorder %v4568_v41, 0.0  ;;  %v4663_v9 = vmul.f32 0.01, %v4568_v41  ;;  %5596 = vmatprep.subr.bf16.mxu1 %v9297_v18  ;;  %5709 = vmatprep.subr.bf16.mxu0 %v16334_v54  ;;  %v4693_v22 = vsel %vm4629_vm7, %v4564_v31, %v4661_v55  ;;  %v9314_v3 = vld [vmem:[%s16022_s4 + $0x1a0] ss:$28 sps:$4 sm:$0xff]  }
 0x573   : > { %v4694_v16 = vsel %vm4630_vm8, %v4566_v29, %v4662_v59  ;;  %v9317_v58 = vld [vmem:[%s16022_s4 + $0x1d4] ss:$28 sps:$4 sm:$0xff]   ;;  %v9321_v19 = vld [vmem:[%s16022_s4 + $0x20c] ss:$28 sps:$4 sm:$0xff]  }
 0x574   : > { %v12773_v44 = vpack.c.bf16 %v4694_v16, %v4692_v52  ;;  %v4695_v0 = vsel %vm4631_vm9, %v4568_v41, %v4663_v9  ;;  %v4571_v42 = vpop.f32.mrb[112].mxu1  ;;  %v9315_v31 = vld [vmem:[%s16022_s4 + $0x1d0] ss:$28 sps:$4 sm:$0xff]  }
 0x575   : > { %v12775_v39 = vpack.c.bf16 %v4695_v0, %v4693_v22  ;;  %v4572_v5 = vadd.f32 %v4571_v42, %v12695_v20  ;;  %v4573_v14 = vpop.f32.mrb[113].mxu1  ;;  %5597 = vmatpush1.bf16.msra.mxu1 %v9295_v51  ;;  %5710 = vmatpush1.bf16.msra.mxu0 %v9298_v21  ;;  %v9319_v51 = vld [vmem:[%s16022_s4 + $0x208] ss:$28 sps:$4 sm:$0xff]  }
 0x576   : > { %v4574_v25 = vadd.f32 %v4573_v14, %v12698_v43  ;;  %v4575_v24 = vpop.f32.mrb[114].mxu1  ;;  %5598 = vmatprep.subr.bf16.mxu1 %v9301_v2  ;;  %5711 = vmatprep.subr.bf16.mxu0 %v16334_v54  ;;  %v9322_v2 = vld [vmem:[%s16022_s4 + $0x210] ss:$28 sps:$4 sm:$0xff]   ;;  %v9325_v22 = vld [vmem:[%s16022_s4 + $0x244] ss:$28 sps:$4 sm:$0xff]  }
 0x577   : > { %v4664_v26 = vmul.f32 0.01, %v4572_v5  ;;  %v4576_v49 = vadd.f32 %v4575_v24, %v12695_v20  ;;  %v4577_v34 = vpop.f32.mrb[115].mxu1  ;;  %8642 = vmatprep.mubr.msk.bf16.mxu1 %vm2162_vm10, %v12775_v39  ;;  %8651 = vmatprep.mubr.msk.bf16.mxu0 %vm2162_vm10, %v12775_v39  ;;  %vm4632_vm11 = vcmp.gt.f32.partialorder %v4572_v5, 0.0 }
 0x578   : > { %v4665_v61 = vmul.f32 0.01, %v4574_v25  ;;  %v4578_v37 = vadd.f32 %v4577_v34, %v12698_v43  ;;  %5417 = vmatmul.mubr.bf16.gmra.mrb[140].mxu1 %v12773_v44  ;;  %5530 = vmatmul.mubr.bf16.gmra.mrb[40].mxu0 %v12773_v44  ;;  %vm4633_vm5 = vcmp.gt.f32.partialorder %v4574_v25, 0.0  ;;  %v4830_v34 = vld [vmem:[%s16022_s4 + $0x2b0] sm:$0xff] }
 0x579   : > { %vm4634_vm12 = vcmp.gt.f32.partialorder %v4576_v49, 0.0  ;;  %v4666_v50 = vmul.f32 0.01, %v4576_v49  ;;  %5599 = vmatpush1.bf16.msra.mxu1 %v9299_v46  ;;  %5712 = vmatpush1.bf16.msra.mxu0 %v9302_v27  ;;  %v4696_v63 = vsel %vm4632_vm11, %v4572_v5, %v4664_v26  ;;  %v9326_v26 = vld [vmem:[%s16022_s4 + $0x248] ss:$28 sps:$4 sm:$0xff]  }
 0x57a   : > { %vm4635_vm13 = vcmp.gt.f32.partialorder %v4578_v37, 0.0  ;;  %v4667_v7 = vmul.f32 0.01, %v4578_v37  ;;  %5600 = vmatprep.subr.bf16.mxu1 %v9305_v60  ;;  %5713 = vmatprep.subr.bf16.mxu0 %v16334_v54  ;;  %v4697_v30 = vsel %vm4633_vm5, %v4574_v25, %v4665_v61  ;;  %v9323_v60 = vld [vmem:[%s16022_s4 + $0x240] ss:$28 sps:$4 sm:$0xff]  }
 0x57b   : > { %v4698_v4 = vsel %vm4634_vm12, %v4576_v49, %v4666_v50  ;;  %v9329_v49 = vld [vmem:[%s16022_s4 + $0x27c] ss:$28 sps:$4 sm:$0xff]   ;;  %v8636_v50 = vcombine.low %v4830_v34, %v4830_v34 }
 0x57c   : > { %v12808_v40 = vpack.c.bf16 %v4698_v4, %v4696_v63  ;;  %v4699_v6 = vsel %vm4635_vm13, %v4578_v37, %v4667_v7  ;;  %v9327_v61 = vld [vmem:[%s16022_s4 + $0x278] ss:$28 sps:$4 sm:$0xff]   ;;  %v9330_v37 = vld [vmem:[%s16022_s4 + $0x280] ss:$28 sps:$4 sm:$0xff]  }
 0x57d   : > { %v12810_v13 = vpack.c.bf16 %v4699_v6, %v4697_v30  ;;  %5601 = vmatpush1.bf16.msra.mxu1 %v9303_v17  ;;  %5714 = vmatpush1.bf16.msra.mxu0 %v9306_v56  ;;  %v8637_v17 = vcombine.high %v4830_v34, %v4830_v34  ;;  %v9333_v56 = vld [vmem:[%s16022_s4 + $0x2b8] ss:$0 sps:$4 sm:$0xff]   ;;  %v5356_v7 = vsel %vm2187_vm1, %v8636_v50, 0 }
 0x57e   : > { %5602 = vmatprep.subr.bf16.mxu1 %v9309_v36  ;;  %5715 = vmatprep.subr.bf16.mxu0 %v16334_v54  ;;  %v5362_v36 = vsel %vm2187_vm1, %v9333_v56, 0 }
 0x57f   : > { %8643 = vmatprep.mubr.msk.bf16.mxu1 %vm2162_vm10, %v12810_v13  ;;  %8652 = vmatprep.mubr.msk.bf16.mxu0 %vm2162_vm10, %v12810_v13 }
 0x580   : > { %5427 = vmatmul.mubr.bf16.gmra.mrb[144].mxu1 %v12808_v40  ;;  %5540 = vmatmul.mubr.bf16.gmra.mrb[44].mxu0 %v12808_v40 }
 0x581   : > { %5603 = vmatpush1.bf16.msra.mxu1 %v9307_v1  ;;  %5716 = vmatpush1.bf16.msra.mxu0 %v9310_v15 }
 0x582   : > { %5604 = vmatprep.subr.bf16.mxu1 %v9313_v35  ;;  %5717 = vmatprep.subr.bf16.mxu0 %v16334_v54 }
 0x585   : > { %5605 = vmatpush1.bf16.msra.mxu1 %v9311_v57  ;;  %5718 = vmatpush1.bf16.msra.mxu0 %v9314_v3 }
 0x586   : > { %v4581_v18 = vpop.f32.mrb[116].mxu1  ;;  %5606 = vmatprep.subr.bf16.mxu1 %v9317_v58  ;;  %5719 = vmatprep.subr.bf16.mxu0 %v16334_v54 }
 0x587   : > { %v4582_v29 = vadd.f32 %v4581_v18, %v12695_v20  ;;  %v4583_v10 = vpop.f32.mrb[117].mxu1 }
 0x588   : > { %v4584_v55 = vadd.f32 %v4583_v10, %v12698_v43  ;;  %v4585_v41 = vpop.f32.mrb[118].mxu1 }
 0x589   : > { %v4668_v59 = vmul.f32 0.01, %v4582_v29  ;;  %v4586_v21 = vadd.f32 %v4585_v41, %v12695_v20  ;;  %v4587_v9 = vpop.f32.mrb[119].mxu1  ;;  %5607 = vmatpush1.bf16.msra.mxu1 %v9315_v31  ;;  %5720 = vmatpush1.bf16.msra.mxu0 %v9318_v11  ;;  %vm4636_vm14 = vcmp.gt.f32.partialorder %v4582_v29, 0.0 }
 0x58a   : > { %v4669_v52 = vmul.f32 0.01, %v4584_v55  ;;  %v4588_v16 = vadd.f32 %v4587_v9, %v12698_v43  ;;  %5608 = vmatprep.subr.bf16.mxu1 %v9321_v19  ;;  %5721 = vmatprep.subr.bf16.mxu0 %v16334_v54  ;;  %vm4637_vm15 = vcmp.gt.f32.partialorder %v4584_v55, 0.0 }
 0x58b   : > { %vm4638_vm4 = vcmp.gt.f32.partialorder %v4586_v21, 0.0  ;;  %v4670_v0 = vmul.f32 0.01, %v4586_v21  ;;  %v4700_v5 = vsel %vm4636_vm14, %v4582_v29, %v4668_v59 }
 0x58c   : > { %vm4639_vm3 = vcmp.gt.f32.partialorder %v4588_v16, 0.0  ;;  %v4671_v42 = vmul.f32 0.01, %v4588_v16  ;;  %v4701_v46 = vsel %vm4637_vm15, %v4584_v55, %v4669_v52 }
 0x58d   : > { %v4702_v14 = vsel %vm4638_vm4, %v4586_v21, %v4670_v0  ;;  %5609 = vmatpush1.bf16.msra.mxu1 %v9319_v51  ;;  %5722 = vmatpush1.bf16.msra.mxu0 %v9322_v2 }
 0x58e   : > { %v12862_v27 = vpack.c.bf16 %v4702_v14, %v4700_v5  ;;  %v4703_v25 = vsel %vm4639_vm3, %v4588_v16, %v4671_v42  ;;  %5610 = vmatprep.subr.bf16.mxu1 %v9325_v22  ;;  %5723 = vmatprep.subr.bf16.mxu0 %v16334_v54 }
 0x58f   : > { %v12865_v24 = vpack.c.bf16 %v4703_v25, %v4701_v46 }
 0x591   : > { %8644 = vmatprep.mubr.msk.bf16.mxu1 %vm2162_vm10, %v12865_v24  ;;  %8653 = vmatprep.mubr.msk.bf16.mxu0 %vm2162_vm10, %v12865_v24 }
 0x592   : > { %5437 = vmatmul.mubr.bf16.gmra.mrb[148].mxu1 %v12862_v27  ;;  %5550 = vmatmul.mubr.bf16.gmra.mrb[48].mxu0 %v12862_v27 }
 0x593   : > { %5611 = vmatpush1.bf16.msra.mxu1 %v9323_v60  ;;  %5724 = vmatpush1.bf16.msra.mxu0 %v9326_v26 }
 0x594   : > { %5612 = vmatprep.subr.bf16.mxu1 %v9329_v49  ;;  %5725 = vmatprep.subr.bf16.mxu0 %v16334_v54 }
 0x597   : > { %5613 = vmatpush1.bf16.msra.mxu1 %v9327_v61  ;;  %5726 = vmatpush1.bf16.msra.mxu0 %v9330_v37 }
 0x598   : > { %8657 = vmatprep.subr.msk.bf16.mxu1 %vm2187_vm1, %v8637_v17  ;;  %5727 = vmatprep.subr.bf16.mxu0 %v16334_v54 }
 0x599   : > { %v4591_v63 = vpop.f32.mrb[120].mxu1 }
 0x59a   : > { %v4592_v4 = vadd.f32 %v4591_v63, %v12695_v20  ;;  %v4593_v30 = vpop.f32.mrb[121].mxu1 }
 0x59b   : > { %5615 = vmatpush1.bf16.msra.mxu1 %v5356_v7  ;;  %5728 = vmatpush1.bf16.msra.mxu0 %v5362_v36  ;;  %v4594_v6 = vadd.f32 %v4593_v30, %v12698_v43  ;;  %v4595_v1 = vpop.f32.mrb[122].mxu1 }
 0x59c   : > { %v4672_v15 = vmul.f32 0.01, %v4592_v4  ;;  %v4596_v35 = vadd.f32 %v4595_v1, %v12695_v20  ;;  %v4597_v57 = vpop.f32.mrb[123].mxu1  ;;  %vm4640_vm2 = vcmp.gt.f32.partialorder %v4592_v4, 0.0 }
 0x59d   : > { %v4673_v3 = vmul.f32 0.01, %v4594_v6  ;;  %v4598_v54 = vadd.f32 %v4597_v57, %v12698_v43  ;;  %vm4641_vm6 = vcmp.gt.f32.partialorder %v4594_v6, 0.0 }
 0x59e   : > { %vm4642_vm7 = vcmp.gt.f32.partialorder %v4596_v35, 0.0  ;;  %v4674_v58 = vmul.f32 0.01, %v4596_v35  ;;  %v4704_v11 = vsel %vm4640_vm2, %v4592_v4, %v4672_v15 }
 0x59f   : > { %vm4643_vm1 = vcmp.gt.f32.partialorder %v4598_v54, 0.0  ;;  %v4675_v31 = vmul.f32 0.01, %v4598_v54  ;;  %v4705_v19 = vsel %vm4641_vm6, %v4594_v6, %v4673_v3 }
 0x5a0   : > { %v4706_v18 = vsel %vm4642_vm7, %v4596_v35, %v4674_v58  ;;  %v3300_v58 = vand.u32 2147483647, %v12196_v62 }
 0x5a1   : > { %v12903_v29 = vpack.c.bf16 %v4706_v18, %v4704_v11  ;;  %v4707_v10 = vsel %vm4643_vm1, %v4598_v54, %v4675_v31 }
 0x5a2   : > { %v12905_v55 = vpack.c.bf16 %v4707_v10, %v4705_v19  ;;  %v3332_v18 = vsub.f32 0.0, %v3300_v58  ;;  %v13040_v58 = vld [vmem:[%s10206_s12 + $0x8] sm:$0xff] }
 0x5a4   : > { %8645 = vmatprep.mubr.msk.bf16.mxu1 %vm2162_vm10, %v12905_v55  ;;  %8654 = vmatprep.mubr.msk.bf16.mxu0 %vm2162_vm10, %v12905_v55 }
 0x5a5   : > { %5447 = vmatmul.mubr.bf16.gmra.mrb[152].mxu1 %v12903_v29  ;;  %5560 = vmatmul.mubr.bf16.gmra.mrb[52].mxu0 %v12903_v29 }
 0x5ae   : > { %v4601_v41 = vpop.f32.mrb[124].mxu1 }
 0x5af   : > { %v4602_v51 = vadd.f32 %v4601_v41, %v12695_v20  ;;  %v4603_v59 = vpop.f32.mrb[125].mxu1 }
 0x5b0   : > { %v4604_v21 = vadd.f32 %v4603_v59, %v12698_v43  ;;  %v4605_v9 = vpop.f32.mrb[126].mxu1 }
 0x5b1   : > { %v4676_v2 = vmul.f32 0.01, %v4602_v51  ;;  %v4606_v52 = vadd.f32 %v4605_v9, %v12695_v20  ;;  %v4607_v16 = vpop.f32.mrb[127].mxu1  ;;  %vm4644_vm8 = vcmp.gt.f32.partialorder %v4602_v51, 0.0 }
 0x5b2   : > { %v4677_v22 = vmul.f32 0.01, %v4604_v21  ;;  %v4608_v0 = vadd.f32 %v4607_v16, %v12698_v43  ;;  %vm4645_vm9 = vcmp.gt.f32.partialorder %v4604_v21, 0.0 }
 0x5b3   : > { %vm4646_vm11 = vcmp.gt.f32.partialorder %v4606_v52, 0.0  ;;  %v4678_v42 = vmul.f32 0.01, %v4606_v52  ;;  %v4708_v14 = vsel %vm4644_vm8, %v4602_v51, %v4676_v2 }
 0x5b4   : > { %vm4647_vm5 = vcmp.gt.f32.partialorder %v4608_v0, 0.0  ;;  %v4679_v5 = vmul.f32 0.01, %v4608_v0  ;;  %v4709_v25 = vsel %vm4645_vm9, %v4604_v21, %v4677_v22 }
 0x5b5   : > { %v4710_v46 = vsel %vm4646_vm11, %v4606_v52, %v4678_v42 }
 0x5b6   : > { %v4728_v60 = vpack.c.bf16 %v4710_v46, %v4708_v14  ;;  %v4711_v26 = vsel %vm4647_vm5, %v4608_v0, %v4679_v5 }
 0x5b7   : > { %v4729_v49 = vpack.c.bf16 %v4711_v26, %v4709_v25  ;;  %v16339_v25 = vld [vmem:[#allocation2_spill] sm:$0xff] }
 0x5b9   : > { %8646 = vmatprep.mubr.msk.bf16.mxu1 %vm2162_vm10, %v4729_v49  ;;  %8655 = vmatprep.mubr.msk.bf16.mxu0 %vm2162_vm10, %v4729_v49 }
 0x5ba   : > { %5457 = vmatmul.mubr.bf16.gmra.mrb[156].mxu1 %v4728_v60  ;;  %5570 = vmatmul.mubr.bf16.gmra.mrb[56].mxu0 %v4728_v60 }
 0x5c5   : > { %v4611_v34 = vpop.f32.mrb[128].mxu1 }
 0x5c6   : > { %v4612_v61 = vadd.f32 %v4611_v34, %v12695_v20  ;;  %v4613_v37 = vpop.f32.mrb[129].mxu1  ;;  %v4832_v34 = vld [vmem:[%s16024_s6] sm:$0x7f] }
 0x5c7   : > { %v4614_v17 = vadd.f32 %v4613_v37, %v12698_v43  ;;  %v4615_v50 = vpop.f32.mrb[130].mxu1 }
 0x5c8   : > { %v4680_v56 = vmul.f32 0.01, %v4612_v61  ;;  %v4616_v7 = vadd.f32 %v4615_v50, %v12695_v20  ;;  %v4617_v36 = vpop.f32.mrb[131].mxu1  ;;  %vm4648_vm12 = vcmp.gt.f32.partialorder %v4612_v61, 0.0  ;;  %v16335_v20 = vld [vmem:[#allocation14_spill] sm:$0xff] }
 0x5c9   : > { %v4681_v63 = vmul.f32 0.01, %v4614_v17  ;;  %v4618_v4 = vadd.f32 %v4617_v36, %v12698_v43  ;;  %vm4649_vm13 = vcmp.gt.f32.partialorder %v4614_v17, 0.0  ;;  %v3299_v43 = vand.u32 2147483647, %v16335_v20 }
 0x5ca   : > { %vm4650_vm14 = vcmp.gt.f32.partialorder %v4616_v7, 0.0  ;;  %v4682_v30 = vmul.f32 0.01, %v4616_v7  ;;  %v4712_v1 = vsel %vm4648_vm12, %v4612_v61, %v4680_v56  ;;  %v3427_v52 = vmul.f32 %v12155_v48, %v16335_v20 }
 0x5cb   : > { %vm4651_vm15 = vcmp.gt.f32.partialorder %v4618_v4, 0.0  ;;  %v4683_v6 = vmul.f32 0.01, %v4618_v4  ;;  %v4713_v35 = vsel %vm4649_vm13, %v4614_v17, %v4681_v63  ;;  %v3459_v42 = vmax.f32 %v16335_v20, 0.0 }
 0x5cc   : > { %v4714_v15 = vsel %vm4650_vm14, %v4616_v7, %v4682_v30  ;;  %v3426_v48 = vmul.f32 %v12247_v45, %v12188_v12  ;;  %v4848_v17 = vsub.s32 3, %v16339_v25  ;;  %v3458_v36 = vmax.f32 %v12188_v12, 0.0  ;;  %v13080_v45 = vld [vmem:[%s10206_s12 + $0x5c] sm:$0xff] }
 0x5cd   : > { %v4730_v57 = vpack.c.bf16 %v4714_v15, %v4712_v1  ;;  %v4715_v3 = vsel %vm4651_vm15, %v4618_v4, %v4683_v6  ;;  %v3491_v61 = vsub.f32 %v3427_v52, %v3459_v42  ;;  %v13001_v30 = vrot.slane %v4832_v34, %v16332_v47 }
 0x5ce   : > { %v4731_v54 = vpack.c.bf16 %v4715_v3, %v4713_v35  ;;  %v13008_v35 = vrot.slane %v4832_v34, %v16333_v38 }
 0x5d0   : > { %8647 = vmatprep.mubr.msk.bf16.mxu1 %vm2162_vm10, %v4731_v54  ;;  %8656 = vmatprep.mubr.msk.bf16.mxu0 %vm2162_vm10, %v4731_v54 }
 0x5d1   : > { %5467 = vmatmul.mubr.bf16.gmra.mrb[160].mxu1 %v4730_v57  ;;  %5580 = vmatmul.mubr.bf16.gmra.mrb[60].mxu0 %v4730_v57 }
 0x5d2   : > { %8658 = vmatprep.mubr.msk.bf16.mxu1 %vm2162_vm10, %v12706_v28  ;;  %8666 = vmatprep.mubr.msk.bf16.mxu0 %vm2162_vm10, %v12706_v28  ;;  %v3331_v28 = vsub.f32 0.0, %v3299_v43 }
 0x5d9   : > { %5623 = vmatmul.mubr.bf16.vlgmr.msra.gmra.mrb[164].mxu1 %v12704_v23  ;;  %5736 = vmatmul.mubr.bf16.vlgmr.msra.gmra.mrb[64].mxu0 %v12704_v23  ;;  %v3298_v23 = vand.u32 2147483647, %v12188_v12  ;;  %v3490_v12 = vsub.f32 %v3426_v48, %v3458_v36 }
 0x5da   : > { %8659 = vmatprep.mubr.msk.bf16.mxu1 %vm2162_vm10, %v12740_v53  ;;  %8667 = vmatprep.mubr.msk.bf16.mxu0 %vm2162_vm10, %v12740_v53  ;;  %v3392_v53 = vmul.f32 1.442695, %v3331_v28  ;;  %v13131_v28 = vld [vmem:[%s10206_s12 + $0x94] sm:$0xff] }
 0x5db   : > { %16352 = vst [vmem:[#allocation23_spill] sm:$0xff] %v13131_v28 }
 0x5dc   : > { %9574 = vpow2.f32 %v3392_v53 }
 0x5e1   : > { %5633 = vmatmul.mubr.bf16.gmra.mrb[168].mxu1 %v12738_v33  ;;  %5744 = vmatmul.mubr.bf16.gmra.mrb[68].mxu0 %v12738_v33  ;;  %v3330_v33 = vsub.f32 0.0, %v3298_v23  ;;  %v13115_v23 = vld [vmem:[%s10206_s12 + $0x78] sm:$0xff] }
 0x5e2   : > { %8660 = vmatprep.mubr.msk.bf16.mxu1 %vm2162_vm10, %v12775_v39  ;;  %8668 = vmatprep.mubr.msk.bf16.mxu0 %vm2162_vm10, %v12775_v39  ;;  %v16336_v39 = vld [vmem:[#allocation38_spill] sm:$0xff] }
 0x5e3   : > { %v3429_v56 = vmul.f32 %v12144_v32, %v16336_v39  ;;  %v3461_v63 = vmax.f32 %v16336_v39, 0.0 }
 0x5e5   : > { %v13012_v3 = vsub.f32 %v3429_v56, %v3461_v63 }
 0x5e7   : > { %16344 = vst [vmem:[#allocation11_spill] sm:$0xff] %v13012_v3 }
 0x5e9   : > { %5643 = vmatmul.mubr.bf16.gmra.mrb[172].mxu1 %v12773_v44  ;;  %5752 = vmatmul.mubr.bf16.gmra.mrb[72].mxu0 %v12773_v44  ;;  %v3390_v44 = vmul.f32 1.442695, %v3330_v33 }
 0x5ea   : > { %8661 = vmatprep.mubr.msk.bf16.mxu1 %vm2162_vm10, %v12810_v13  ;;  %8669 = vmatprep.mubr.msk.bf16.mxu0 %vm2162_vm10, %v12810_v13 }
 0x5eb   : > { %9576 = vpow2.f32 %v3390_v44 }
 0x5f1   : > { %5653 = vmatmul.mubr.bf16.gmra.mrb[176].mxu1 %v12808_v40  ;;  %5760 = vmatmul.mubr.bf16.gmra.mrb[76].mxu0 %v12808_v40  ;;  %v3301_v40 = vand.u32 2147483647, %v16336_v39 }
 0x5f2   : > { %8662 = vmatprep.mubr.msk.bf16.mxu1 %vm2162_vm10, %v12865_v24  ;;  %8670 = vmatprep.mubr.msk.bf16.mxu0 %vm2162_vm10, %v12865_v24  ;;  %v9575_v24 = vpop.eup %9574 }
 0x5f3   : > { %v3333_v13 = vsub.f32 0.0, %v3301_v40  ;;  %v3755_v11 = vadd.f32 1.0, %v9575_v24  ;;  %v3761_v9 = vand.u32 2147483647, %v9575_v24 }
 0x5f5   : > { %v9577_v31 = vpop.eup %9576  ;;  %vm12979_vm4 = vcmp.lt.f32.partialorder %v3761_v9, 0.0004427343 }
 0x5f6   : > { %v3746_v19 = vadd.f32 1.0, %v9577_v31  ;;  %v3749_v59 = vmul.f32 -0.5, %v9577_v31  ;;  %v3752_v5 = vand.u32 2147483647, %v9577_v31 }
 0x5f8   : > { %v3750_v22 = vadd.f32 1.0, %v3749_v59  ;;  %vm12995_vm3 = vcmp.lt.f32.partialorder %v3752_v5, 0.0004427343 }
 0x5f9   : > { %5663 = vmatmul.mubr.bf16.gmra.mrb[180].mxu1 %v12862_v27  ;;  %5768 = vmatmul.mubr.bf16.gmra.mrb[80].mxu0 %v12862_v27  ;;  %v3396_v27 = vmul.f32 1.442695, %v3333_v13 }
 0x5fa   : > { %8663 = vmatprep.mubr.msk.bf16.mxu1 %vm2162_vm10, %v12905_v55  ;;  %8671 = vmatprep.mubr.msk.bf16.mxu0 %vm2162_vm10, %v12905_v55  ;;  %v3758_v55 = vmul.f32 -0.5, %v9575_v24  ;;  %v3751_v50 = vmul.f32 %v9577_v31, %v3750_v22  ;;  %v13138_v22 = vld [vmem:[%s10206_s12 + $0xa8] sm:$0xff] }
 0x5fb   : > { %9578 = vpow2.f32 %v3396_v27  ;;  %v13036_v27 = vld [vmem:[%s10206_s12] sm:$0xff]  ;;  %16353 = vst [vmem:[#allocation28_spill] sm:$0xff] %v13138_v22 }
 0x5fc   : > { %9580 = vlog2.f32 %v3755_v11  ;;  %v3759_v21 = vadd.f32 1.0, %v3758_v55  ;;  %v16359_v62 = vunpack.c.h.bf16 %v13036_v27 }
 0x5fd   : > { %9582 = vlog2.f32 %v3746_v19 }
 0x5fe   : > { %v3760_v14 = vmul.f32 %v9575_v24, %v3759_v21  ;;  %v418_v24 = vunpack.c.l.bf16 %v13036_v27 }
 0x601   : > { %5673 = vmatmul.mubr.bf16.gmra.mrb[184].mxu1 %v12903_v29  ;;  %5776 = vmatmul.mubr.bf16.gmra.mrb[84].mxu0 %v12903_v29  ;;  %v3394_v29 = vmul.f32 1.442695, %v3332_v18 }
 0x602   : > { %8664 = vmatprep.mubr.msk.bf16.mxu1 %vm2162_vm10, %v4729_v49  ;;  %8672 = vmatprep.mubr.msk.bf16.mxu0 %vm2162_vm10, %v4729_v49  ;;  %v13069_v49 = vld [vmem:[%s10206_s12 + $0x40] sm:$0xff] }
 0x603   : > { %9584 = vpow2.f32 %v3394_v29 }
 0x605   : > { %v12969_v10 = vpop.eup %9578 }
 0x606   : > { %16337 = vst [vmem:[#allocation21_spill] sm:$0xff] %v12969_v10  ;;  %v3773_v41 = vadd.f32 1.0, %v12969_v10  ;;  %v9581_v51 = vpop.eup %9580  ;;  %v3776_v46 = vmul.f32 -0.5, %v12969_v10 }
 0x607   : > { %v9583_v2 = vpop.eup %9582  ;;  %v3757_v16 = vmul.f32 0.6931472, %v9581_v51  ;;  %v13152_v51 = vld [vmem:[%s10206_s12 + $0xc4] sm:$0xff] }
 0x608   : > { %9586 = vlog2.f32 %v3773_v41  ;;  %v3748_v26 = vmul.f32 0.6931472, %v9583_v2  ;;  %v3777_v4 = vadd.f32 1.0, %v3776_v46  ;;  %v13055_v2 = vld [vmem:[%s10206_s12 + $0x1c] sm:$0xff]  ;;  %16355 = vst [vmem:[#allocation29_spill] sm:$0xff] %v13152_v51 }
 0x609   : > { %5683 = vmatmul.mubr.bf16.gmra.mrb[188].mxu1 %v4728_v60  ;;  %5784 = vmatmul.mubr.bf16.gmra.mrb[88].mxu0 %v4728_v60  ;;  %v4844_v60 = vsub.s32 2, %v16339_v25  ;;  %v3763_v37 = vsel %vm12979_vm4, %v3760_v14, %v3757_v16  ;;  %v13059_v16 = vld [vmem:[%s10206_s12 + $0x24] sm:$0xff] }
 0x60a   : > { %8665 = vmatprep.mubr.msk.bf16.mxu1 %vm2162_vm10, %v4731_v54  ;;  %8673 = vmatprep.mubr.msk.bf16.mxu0 %vm2162_vm10, %v4731_v54  ;;  %v3754_v1 = vsel %vm12995_vm3, %v3751_v50, %v3748_v26  ;;  %v3811_v32 = vsub.f32 %v3491_v61, %v3763_v37  ;;  %v13021_v38 = vmul.f32 %v12969_v10, %v3777_v4  ;;  %v13127_v37 = vld [vmem:[%s10206_s12 + $0x8c] sm:$0xff] }
 0x60b   : > { %v13003_v6 = vrot.slane %v4832_v34, %v4844_v60  ;;  %v13017_v43 = vsub.f32 %v3490_v12, %v3754_v1  ;;  %v13065_v60 = vld [vmem:[%s10206_s12 + $0x38] sm:$0xff]  ;;  %16351 = vst [vmem:[#allocation41_spill] sm:$0xff] %v13127_v37 }
 0x60c   : > { %16347 = vst [vmem:[#allocation19_spill] sm:$0xff] %v13021_v38  ;;  %v13031_v40 = vsel %vm2162_vm10, %v3811_v32, 0.0 }
 0x60d   : > { %v12974_v0 = vpop.eup %9584  ;;  %16346 = vst [vmem:[#allocation15_spill] sm:$0xff] %v13017_v43  ;;  %16348 = vst [vmem:[#allocation10_spill] sm:$0xff] %v13031_v40 }
 0x60e   : > { %16338 = vst [vmem:[#allocation8_spill] sm:$0xff] %v12974_v0  ;;  %v3764_v7 = vadd.f32 1.0, %v12974_v0  ;;  %v13015_v47 = vmul.f32 -0.5, %v12974_v0 }
 0x610   : > { %9588 = vlog2.f32 %v3764_v7  ;;  %16345 = vst [vmem:[#allocation16_spill] sm:$0xff] %v13015_v47  ;;  %v13076_v7 = vld [vmem:[%s10206_s12 + $0x54] sm:$0xff] }
 0x611   : > { %5693 = vmatmul.mubr.bf16.gmra.mrb[192].mxu1 %v4730_v57  ;;  %5792 = vmatmul.mubr.bf16.gmra.mrb[92].mxu0 %v4730_v57  ;;  %v13010_v57 = vrot.slane %v4832_v34, %v4848_v17 }
 0x612   : > { %v9587_v15 = vpop.eup %9586 }
 0x613   : > { %v13033_v13 = vmul.f32 0.6931472, %v9587_v15 }
 0x615   : > { %16349 = vst [vmem:[#allocation17_spill] sm:$0xff] %v13033_v13 }
 0x63b   : > { %v5398_v54 = vpop.f32.mrb[132].mxu1  ;;  %v5511_v20 = vpop.f32.mrb[32].mxu0 }
 0x63c   : > { %v13025_v33 = vadd.f32 %v5398_v54, %v13001_v30  ;;  %v13028_v53 = vadd.f32 %v5511_v20, %v13003_v6  ;;  %v5400_v44 = vpop.f32.mrb[133].mxu1  ;;  %v5513_v39 = vpop.f32.mrb[33].mxu0 }
 0x63d   : > { %v13045_v18 = vadd.f32 %v5400_v44, %v13008_v35  ;;  %v5402_v19 = vpop.f32.mrb[134].mxu1  ;;  %v5515_v29 = vpop.f32.mrb[34].mxu0  ;;  %v13051_v59 = vadd.f32 %v5513_v39, %v13010_v57 }
 0x63e   : > { %v5800_v55 = vand.u32 2147483647, %v13025_v33  ;;  %v5802_v41 = vand.u32 2147483647, %v13028_v53  ;;  %v5404_v21 = vpop.f32.mrb[135].mxu1  ;;  %v5517_v5 = vpop.f32.mrb[35].mxu0  ;;  %v13084_v1 = vadd.f32 %v5402_v19, %v13001_v30  ;;  %v13087_v32 = vadd.f32 %v5515_v29, %v13003_v6 }
 0x63f   : > { %v5801_v9 = vand.u32 2147483647, %v13045_v18  ;;  %v5803_v56 = vand.u32 2147483647, %v13051_v59  ;;  %v13092_v20 = vpop.eup %9588  ;;  %v13095_v44 = vadd.f32 %v5404_v21, %v13008_v35  ;;  %v13103_v29 = vld [vmem:[%s10206_s12 + $0x70] sm:$0xff]  ;;  %v6360_v0 = vmax.f32 %v13025_v33, 0.0 }
 0x640   : > { %v5912_v14 = vsub.f32 0.0, %v5800_v55  ;;  %v5914_v34 = vsub.f32 0.0, %v5802_v41  ;;  %16350 = vst [vmem:[#allocation20_spill] sm:$0xff] %v13092_v20  ;;  %v5809_v41 = vand.u32 2147483647, %v13087_v32  ;;  %v6362_v8 = vmax.f32 %v13028_v53, 0.0 }
 0x641   : > { %v5913_v61 = vsub.f32 0.0, %v5801_v9  ;;  %v5915_v19 = vsub.f32 0.0, %v5803_v56  ;;  %v5808_v36 = vand.u32 2147483647, %v13095_v44  ;;  %v6249_v31 = vmul.f32 %v13045_v18, %v16359_v62 }
 0x642   : > { %v6024_v50 = vmul.f32 1.442695, %v5912_v14  ;;  %v6028_v9 = vmul.f32 1.442695, %v5914_v34  ;;  %v5807_v14 = vand.u32 2147483647, %v13084_v1 }
 0x643   : > { %v6026_v4 = vmul.f32 1.442695, %v5913_v61  ;;  %v5408_v15 = vpop.f32.mrb[136].mxu1  ;;  %v13089_v12 = vpop.f32.mrb[36].mxu0  ;;  %v13108_v61 = vadd.f32 %v5517_v5, %v13010_v57  ;;  %v5921_v56 = vsub.f32 0.0, %v5809_v41  ;;  %v5920_v5 = vsub.f32 0.0, %v5808_v36 }
 0x644   : > { %9590 = vpow2.f32 %v6024_v50  ;;  %v13097_v39 = vpop.f32.mrb[137].mxu1  ;;  %v13099_v55 = vpop.f32.mrb[37].mxu0  ;;  %v5919_v63 = vsub.f32 0.0, %v5807_v14  ;;  %v6030_v41 = vmul.f32 1.442695, %v5915_v19  ;;  %v13156_v19 = vadd.f32 %v5408_v15, %v13001_v30 }
 0x645   : > { %v13110_v50 = vpop.f32.mrb[138].mxu1  ;;  %v13112_v21 = vpop.f32.mrb[38].mxu0  ;;  %9592 = vpow2.f32 %v6026_v4  ;;  %v5810_v42 = vand.u32 2147483647, %v13108_v61  ;;  %v13142_v4 = vld [vmem:[%s10206_s12 + $0xb0] sm:$0xff]  ;;  %v6361_v40 = vmax.f32 %v13045_v18, 0.0 }
 0x646   : > { %v13119_v34 = vpop.f32.mrb[139].mxu1  ;;  %v13121_v54 = vpop.f32.mrb[39].mxu0  ;;  %v6038_v14 = vmul.f32 1.442695, %v5919_v63  ;;  %9594 = vpow2.f32 %v6028_v9  ;;  %16354 = vst [vmem:[#allocation22_spill] sm:$0xff] %v13142_v4  ;;  %v6248_v63 = vmul.f32 %v13025_v33, %v418_v24  ;;  %v16360_v33 = vunpack.c.h.bf16 %v13040_v58 }
 0x647   : > { %v6040_v46 = vmul.f32 1.442695, %v5920_v5  ;;  %v6042_v17 = vmul.f32 1.442695, %v5921_v56  ;;  %v5922_v9 = vsub.f32 0.0, %v5810_v42  ;;  %v16357_v5 = vunpack.c.l.bf16 %v13040_v58 }
 0x648   : > { %9596 = vpow2.f32 %v6038_v14  ;;  %v13163_v14 = vld [vmem:[%s10206_s12 + $0xcc] sm:$0xff]  ;;  %v6251_v43 = vmul.f32 %v13051_v59, %v16360_v33  ;;  %v5814_v13 = vand.u32 2147483647, %v13156_v19  ;;  %v6367_v27 = vmax.f32 %v13084_v1, 0.0 }
 0x649   : > { %16356 = vst [vmem:[#allocation18_spill] sm:$0xff] %v13163_v14  ;;  %9598 = vpow2.f32 %v6040_v46  ;;  %v6250_v26 = vmul.f32 %v13028_v53, %v16357_v5  ;;  %v6363_v53 = vmax.f32 %v13051_v59, 0.0  ;;  %v6044_v18 = vmul.f32 1.442695, %v5922_v9 }
 0x64a   : > { %9600 = vpow2.f32 %v6030_v41  ;;  %v16361_v41 = vunpack.c.l.bf16 %v13055_v2  ;;  %v16362_v58 = vunpack.c.l.bf16 %v13059_v16  ;;  %v6369_v47 = vmax.f32 %v13087_v32, 0.0 }
 0x64b   : > { %v13146_v52 = vpop.f32.mrb[140].mxu1  ;;  %v13148_v36 = vpop.f32.mrb[40].mxu0  ;;  %9602 = vpow2.f32 %v6042_v17  ;;  %v16363_v59 = vunpack.c.h.bf16 %v13055_v2  ;;  %v6368_v17 = vmax.f32 %v13095_v44, 0.0  ;;  %v6370_v9 = vmax.f32 %v13108_v61, 0.0 }
 0x64c   : > { %v13158_v11 = vpop.f32.mrb[141].mxu1  ;;  %v13160_v48 = vpop.f32.mrb[41].mxu0  ;;  %v6255_v38 = vmul.f32 %v13084_v1, %v16361_v41  ;;  %v6257_v33 = vmul.f32 %v13087_v32, %v16362_v58  ;;  %v13211_v41 = vsub.f32 %v6248_v63, %v6360_v0  ;;  %v5926_v0 = vsub.f32 0.0, %v5814_v13 }
 0x64d   : > { %v13170_v56 = vpop.f32.mrb[142].mxu1  ;;  %v13172_v15 = vpop.f32.mrb[42].mxu0  ;;  %v6256_v20 = vmul.f32 %v13095_v44, %v16363_v59  ;;  %v13224_v59 = vsub.f32 %v6250_v26, %v6362_v8  ;;  %v13226_v44 = vsub.f32 %v6249_v31, %v6361_v40  ;;  %v13250_v26 = vadd.f32 %v13089_v12, %v13003_v6 }
 0x64e   : > { %v13175_v3 = vpop.eup %9590  ;;  %v13182_v24 = vpop.f32.mrb[143].mxu1  ;;  %v13237_v25 = vsub.f32 %v6255_v38, %v6367_v27  ;;  %v13244_v13 = vsub.f32 %v6257_v33, %v6369_v47  ;;  %v13264_v47 = vadd.f32 %v13097_v39, %v13008_v35 }
 0x64f   : > { %v13184_v42 = vpop.f32.mrb[43].mxu0  ;;  %v6584_v46 = vadd.f32 1.0, %v13175_v3  ;;  %v13194_v5 = vpop.eup %9592  ;;  %v6587_v2 = vmul.f32 -0.5, %v13175_v3  ;;  %v13246_v31 = vsub.f32 %v6256_v20, %v6368_v17  ;;  %v6052_v17 = vmul.f32 1.442695, %v5926_v0 }
 0x650   : > { %16358 = vst [vmem:[#allocation26_spill] sm:$0xff] %v13184_v42  ;;  %v6593_v62 = vadd.f32 1.0, %v13194_v5  ;;  %v13221_v32 = vpop.eup %9594  ;;  %v6599_v22 = vand.u32 2147483647, %v13194_v5 }
 0x651   : > { %9604 = vlog2.f32 %v6584_v46  ;;  %v16364_v46 = vunpack.c.h.bf16 %v13059_v16  ;;  %v6602_v27 = vadd.f32 1.0, %v13221_v32  ;;  %v6588_v12 = vadd.f32 1.0, %v6587_v2 }
 0x652   : > { %9606 = vlog2.f32 %v6593_v62  ;;  %v13232_v62 = vpop.eup %9596  ;;  %v5816_v2 = vand.u32 2147483647, %v13250_v26  ;;  %vm6600_vm6 = vcmp.lt.f32.partialorder %v6599_v22, 0.0004427343 }
 0x653   : > { %v6258_v1 = vmul.f32 %v13108_v61, %v16364_v46  ;;  %v13217_v10 = vpop.f32.mrb[144].mxu1  ;;  %v13219_v58 = vpop.f32.mrb[44].mxu0  ;;  %v6596_v61 = vmul.f32 -0.5, %v13194_v5  ;;  %v13235_v46 = vsub.f32 %v6251_v43, %v6363_v53  ;;  %9608 = vpow2.f32 %v6044_v18 }
 0x654   : > { %16365 = vst [vmem:[#allocation24_spill] sm:$0xff] %v13217_v10  ;;  %16366 = vst [vmem:[#allocation39_spill] sm:$0xff] %v13219_v58  ;;  %v13228_v63 = vpop.f32.mrb[145].mxu1  ;;  %v13230_v16 = vpop.f32.mrb[45].mxu0  ;;  %v6647_v40 = vadd.f32 1.0, %v13232_v62  ;;  %v6650_v39 = vmul.f32 -0.5, %v13232_v62 }
 0x655   : > { %16367 = vst [vmem:[#allocation40_spill] sm:$0xff] %v13228_v63  ;;  %16368 = vst [vmem:[#allocation45_spill] sm:$0xff] %v13230_v16  ;;  %v13239_v14 = vpop.f32.mrb[146].mxu1  ;;  %v13241_v8 = vpop.f32.mrb[46].mxu0  ;;  %v6590_v53 = vand.u32 2147483647, %v13175_v3  ;;  %v13260_v18 = vsub.f32 %v6258_v1, %v6370_v9  ;;  %v6589_v1 = vmul.f32 %v13175_v3, %v6588_v12 }
 0x656   : > { %16369 = vst [vmem:[#allocation25_spill] sm:$0xff] %v13239_v14  ;;  %16370 = vst [vmem:[#allocation32_spill] sm:$0xff] %v13241_v8  ;;  %v13252_v51 = vpop.f32.mrb[147].mxu1  ;;  %v13254_v43 = vpop.f32.mrb[47].mxu0  ;;  %9610 = vlog2.f32 %v6647_v40  ;;  %v16373_v8 = vunpack.c.l.bf16 %v13065_v60  ;;  %v6651_v10 = vadd.f32 1.0, %v6650_v39  ;;  %v5928_v37 = vsub.f32 0.0, %v5816_v2 }
 0x657   : > { %16371 = vst [vmem:[#allocation34_spill] sm:$0xff] %v13252_v51  ;;  %16372 = vst [vmem:[#allocation43_spill] sm:$0xff] %v13254_v43  ;;  %v13256_v38 = vpop.eup %9598  ;;  %v6605_v43 = vmul.f32 -0.5, %v13221_v32  ;;  %v6597_v51 = vadd.f32 1.0, %v6596_v61  ;;  %v6608_v61 = vand.u32 2147483647, %v13221_v32 }
 0x658   : > { %v13266_v20 = vpop.eup %9600  ;;  %v6656_v33 = vadd.f32 1.0, %v13256_v38  ;;  %v13273_v4 = vmul.f32 %v13156_v19, %v16373_v8  ;;  %vm6591_vm2 = vcmp.lt.f32.partialorder %v6590_v53, 0.0004427343  ;;  %v6659_v40 = vmul.f32 -0.5, %v13256_v38 }
 0x659   : > { %v13276_v9 = vpop.eup %9602  ;;  %v6611_v8 = vadd.f32 1.0, %v13266_v20  ;;  %v6606_v63 = vadd.f32 1.0, %v6605_v43  ;;  %v6614_v3 = vmul.f32 -0.5, %v13266_v20  ;;  %v6653_v43 = vand.u32 2147483647, %v13232_v62 }
 0x65a   : > { %9612 = vlog2.f32 %v6656_v33  ;;  %v6598_v33 = vmul.f32 %v13194_v5, %v6597_v51  ;;  %v6665_v58 = vadd.f32 1.0, %v13276_v9  ;;  %v6662_v51 = vand.u32 2147483647, %v13256_v38 }
 0x65b   : > { %v9605_v0 = vpop.eup %9604  ;;  %9614 = vlog2.f32 %v6602_v27  ;;  %v6056_v5 = vmul.f32 1.442695, %v5928_v37  ;;  %vm6654_vm7 = vcmp.lt.f32.partialorder %v6653_v43, 0.0004427343  ;;  %vm13337_vm8 = vcmp.lt.f32.partialorder %v6608_v61, 0.0004427343 }
 0x65c   : > { %v6586_v14 = vmul.f32 0.6931472, %v9605_v0  ;;  %9616 = vpow2.f32 %v6052_v17  ;;  %v9607_v16 = vpop.eup %9606  ;;  %v5815_v17 = vand.u32 2147483647, %v13264_v47  ;;  %vm13305_vm1 = vcmp.lt.f32.partialorder %v6662_v51, 0.0004427343 }
 0x65d   : > { %v6595_v28 = vmul.f32 0.6931472, %v9607_v16  ;;  %v13288_v42 = vpop.eup %9608  ;;  %9618 = vlog2.f32 %v6611_v8  ;;  %v6660_v16 = vadd.f32 1.0, %v6659_v40 }
 0x65e   : > { %v6592_v27 = vsel %vm6591_vm2, %v6589_v1, %v6586_v14  ;;  %v6668_v14 = vmul.f32 -0.5, %v13276_v9  ;;  %9620 = vlog2.f32 %v6665_v58  ;;  %v6674_v22 = vadd.f32 1.0, %v13288_v42 }
 0x65f   : > { %v7592_v0 = vsub.f32 %v13211_v41, %v6592_v27  ;;  %v6601_v53 = vsel %vm6600_vm6, %v6598_v33, %v6595_v28  ;;  %v6652_v41 = vmul.f32 %v13232_v62, %v6651_v10  ;;  %v13301_v28 = vadd.f32 %v13099_v55, %v13010_v57 }
 0x660   : > { %v7593_v12 = vsub.f32 %v13226_v44, %v6601_v53  ;;  %v9611_v1 = vpop.eup %9610  ;;  %9622 = vpow2.f32 %v6056_v5  ;;  %v5927_v44 = vsub.f32 0.0, %v5815_v17  ;;  %v16377_v10 = vunpack.c.l.bf16 %v13069_v49 }
 0x661   : > { %v6649_v37 = vmul.f32 0.6931472, %v9611_v1  ;;  %v5817_v62 = vand.u32 2147483647, %v13301_v28  ;;  %v6661_v27 = vmul.f32 %v13256_v38, %v6660_v16  ;;  %9624 = vlog2.f32 %v6674_v22 }
 0x662   : > { %v13303_v39 = vadd.f32 %v7593_v12, %v7592_v0  ;;  %v13312_v58 = vmul.f32 %v13250_v26, %v16377_v10  ;;  %v6054_v0 = vmul.f32 1.442695, %v5927_v44  ;;  %v13323_v12 = vadd.f32 %v13110_v50, %v13001_v30 }
 0x663   : > { %v6655_v8 = vsel %vm6654_vm7, %v6652_v41, %v6649_v37  ;;  %v5929_v5 = vsub.f32 0.0, %v5817_v62  ;;  %v6615_v41 = vadd.f32 1.0, %v6614_v3  ;;  %v6617_v38 = vand.u32 2147483647, %v13266_v20 }
 0x664   : > { %16374 = vst [vmem:[#allocation37_spill] sm:$0xff] %v13303_v39  ;;  %v9613_v2 = vpop.eup %9612  ;;  %v7599_v51 = vsub.f32 %v13237_v25, %v6655_v8  ;;  %v6677_v37 = vmul.f32 -0.5, %v13288_v42  ;;  %v6671_v50 = vand.u32 2147483647, %v13276_v9  ;;  %9626 = vpow2.f32 %v6054_v0 }
 0x665   : > { %v9615_v55 = vpop.eup %9614  ;;  %v6658_v33 = vmul.f32 0.6931472, %v9613_v2  ;;  %v13316_v53 = vpop.f32.mrb[148].mxu1  ;;  %v6607_v62 = vmul.f32 %v13221_v32, %v6606_v63  ;;  %v6669_v8 = vadd.f32 1.0, %v6668_v14  ;;  %v6058_v0 = vmul.f32 1.442695, %v5929_v5 }
 0x666   : > { %v13318_v43 = vpop.eup %9616  ;;  %v13325_v17 = vpop.f32.mrb[48].mxu0  ;;  %vm13360_vm9 = vcmp.lt.f32.partialorder %v6617_v38, 0.0004427343  ;;  %vm13365_vm11 = vcmp.lt.f32.partialorder %v6671_v50, 0.0004427343 }
 0x667   : > { %v13327_v1 = vpop.f32.mrb[149].mxu1  ;;  %v6664_v16 = vsel %vm13305_vm1, %v6661_v27, %v6658_v33  ;;  %v13333_v44 = vpop.f32.mrb[49].mxu0  ;;  %v16382_v33 = vmax.f32 %v13156_v19, 0.0  ;;  %v6710_v27 = vadd.f32 1.0, %v13318_v43  ;;  %v6678_v19 = vadd.f32 1.0, %v6677_v37 }
 0x668   : > { %v13335_v25 = vpop.f32.mrb[150].mxu1  ;;  %v7600_v2 = vsub.f32 %v13246_v31, %v6664_v16  ;;  %v13343_v3 = vpop.f32.mrb[50].mxu0  ;;  %v5821_v16 = vand.u32 2147483647, %v13323_v12  ;;  %v6670_v38 = vmul.f32 %v13276_v9, %v6669_v8  ;;  %v13382_v37 = vadd.f32 %v13121_v54, %v13010_v57 }
 0x669   : > { %16378 = vst [vmem:[#allocation44_spill] sm:$0xff] %v13335_v25  ;;  %v13345_v10 = vpop.f32.mrb[151].mxu1  ;;  %v9619_v40 = vpop.eup %9618  ;;  %v13351_v61 = vsub.f32 %v13273_v4, %v16382_v33  ;;  %v6604_v25 = vmul.f32 0.6931472, %v9615_v55  ;;  %v6680_v4 = vand.u32 2147483647, %v13288_v42  ;;  %9628 = vlog2.f32 %v6710_v27 }
 0x66a   : > { %16381 = vst [vmem:[#allocation27_spill] sm:$0xff] %v13345_v10  ;;  %v13354_v39 = vpop.f32.mrb[51].mxu0  ;;  %v13356_v31 = vadd.f32 %v7600_v2, %v7599_v51  ;;  %v6616_v10 = vmul.f32 %v13266_v20, %v6615_v41  ;;  %v9621_v63 = vpop.eup %9620  ;;  %v5933_v55 = vsub.f32 0.0, %v5821_v16  ;;  %v13371_v51 = vadd.f32 %v13112_v21, %v13003_v6 }
 0x66b   : > { %v13375_v20 = vadd.f32 %v13119_v34, %v13008_v35  ;;  %v13377_v5 = vpop.eup %9622  ;;  %v6613_v41 = vmul.f32 0.6931472, %v9619_v40  ;;  %v6610_v50 = vsel %vm13337_vm8, %v6607_v62, %v6604_v25  ;;  %9630 = vpow2.f32 %v6058_v0 }
 0x66c   : > { %16383 = vst [vmem:[#allocation30_spill] sm:$0xff] %v13356_v31  ;;  %v6066_v21 = vmul.f32 1.442695, %v5933_v55  ;;  %v5823_v2 = vand.u32 2147483647, %v13371_v51  ;;  %v6679_v34 = vmul.f32 %v13288_v42, %v6678_v19  ;;  %v16390_v9 = vunpack.c.h.bf16 %v13065_v60  ;;  %v9625_v54 = vpop.eup %9624 }
 0x66d   : > { %v6667_v33 = vmul.f32 0.6931472, %v9621_v63  ;;  %vm13388_vm5 = vcmp.lt.f32.partialorder %v6680_v4, 0.0004427343  ;;  %v6728_v8 = vadd.f32 1.0, %v13377_v5  ;;  %v6619_v62 = vsel %vm13360_vm9, %v6616_v10, %v6613_v41 }
 0x66e   : > { %v6263_v40 = vmul.f32 %v13264_v47, %v16390_v9  ;;  %9632 = vpow2.f32 %v6066_v21  ;;  %v5935_v25 = vsub.f32 0.0, %v5823_v2  ;;  %v5822_v22 = vand.u32 2147483647, %v13375_v20  ;;  %v13404_v19 = vpop.eup %9626 }
 0x66f   : > { %v6375_v42 = vmax.f32 %v13264_v47, 0.0  ;;  %v16391_v27 = vunpack.c.h.bf16 %v13069_v49  ;;  %v5824_v60 = vand.u32 2147483647, %v13382_v37  ;;  %v6713_v4 = vmul.f32 -0.5, %v13318_v43 }
 0x670   : > { %v6377_v63 = vmax.f32 %v13301_v28, 0.0  ;;  %v6070_v55 = vmul.f32 1.442695, %v5935_v25  ;;  %v5934_v21 = vsub.f32 0.0, %v5822_v22  ;;  %v6673_v32 = vsel %vm13365_vm11, %v6670_v38, %v6667_v33 }
 0x671   : > { %v6265_v0 = vmul.f32 %v13301_v28, %v16391_v27  ;;  %v6676_v10 = vmul.f32 0.6931472, %v9625_v54  ;;  %v6716_v47 = vand.u32 2147483647, %v13318_v43  ;;  %v6719_v49 = vadd.f32 1.0, %v13404_v19 }
 0x672   : > { %v13413_v41 = vsub.f32 %v13224_v59, %v6610_v50  ;;  %9634 = vlog2.f32 %v6728_v8  ;;  %v6068_v2 = vmul.f32 1.442695, %v5934_v21  ;;  %v5936_v9 = vsub.f32 0.0, %v5824_v60 }
 0x673   : > { %v13416_v27 = vsub.f32 %v13235_v46, %v6619_v62  ;;  %v16394_v28 = vmax.f32 %v13250_v26, 0.0  ;;  %v6731_v14 = vmul.f32 -0.5, %v13377_v5  ;;  %9636 = vlog2.f32 %v6719_v49  ;;  %v9629_v50 = vpop.eup %9628 }
 0x674   : > { %16392 = vst [vmem:[#allocation31_spill] sm:$0xff] %v13413_v41  ;;  %v13425_v38 = vsub.f32 %v13244_v13, %v6673_v32  ;;  %v6714_v33 = vadd.f32 1.0, %v6713_v4  ;;  %v13427_v59 = vsub.f32 %v6263_v40, %v6375_v42  ;;  %9638 = vpow2.f32 %v6070_v55 }
 0x675   : > { %16393 = vst [vmem:[#allocation35_spill] sm:$0xff] %v13416_v27  ;;  %v13421_v25 = vsub.f32 %v13312_v58, %v16394_v28  ;;  %v6682_v46 = vsel %vm13388_vm5, %v6679_v34, %v6676_v10  ;;  %vm13431_vm12 = vcmp.lt.f32.partialorder %v6716_v47, 0.0004427343  ;;  %v13435_v26 = vsub.f32 %v6265_v0, %v6377_v63  ;;  %v13437_v58 = vpop.eup %9630 }
 0x676   : > { %16395 = vst [vmem:[#allocation33_spill] sm:$0xff] %v13425_v38  ;;  %9640 = vpow2.f32 %v6068_v2  ;;  %v6722_v13 = vmul.f32 -0.5, %v13404_v19  ;;  %v16398_v8 = vunpack.c.l.bf16 %v13076_v7  ;;  %v6072_v22 = vmul.f32 1.442695, %v5936_v9 }
 0x677   : > { %v13445_v16 = vadd.f32 %v13146_v52, %v13001_v30  ;;  %v6732_v34 = vadd.f32 1.0, %v6731_v14  ;;  %v6734_v62 = vand.u32 2147483647, %v13377_v5  ;;  %v6381_v42 = vmax.f32 %v13323_v12, 0.0 }
 0x678   : > { %v6269_v40 = vmul.f32 %v13323_v12, %v16398_v8  ;;  %v13451_v0 = vadd.f32 %v13148_v36, %v13003_v6  ;;  %v13453_v60 = vpop.eup %9632  ;;  %v13456_v4 = vsub.f32 %v13260_v18, %v6682_v46  ;;  %v6712_v63 = vmul.f32 0.6931472, %v9629_v50  ;;  %v13460_v21 = vpop.f32.mrb[152].mxu1 }
 0x679   : > { %v6715_v55 = vmul.f32 %v13318_v43, %v6714_v33  ;;  %v5828_v52 = vand.u32 2147483647, %v13445_v16  ;;  %v13462_v32 = vpop.f32.mrb[52].mxu0  ;;  %v6737_v12 = vadd.f32 1.0, %v13437_v58  ;;  %v6773_v10 = vadd.f32 1.0, %v13453_v60  ;;  %v13470_v49 = vpop.f32.mrb[153].mxu1 }
 0x67a   : > { %16399 = vst [vmem:[#allocation36_spill] sm:$0xff] %v13456_v4  ;;  %v16400_v36 = vunpack.c.l.bf16 %v13080_v45  ;;  %v6383_v18 = vmax.f32 %v13371_v51, 0.0  ;;  %v6723_v2 = vadd.f32 1.0, %v6722_v13  ;;  %9642 = vpow2.f32 %v6072_v22  ;;  %v13473_v28 = vpop.f32.mrb[53].mxu0  ;;  %v13475_v14 = vpop.f32.mrb[154].mxu1 }
 0x67b   : > { %v5940_v43 = vsub.f32 0.0, %v5828_v52  ;;  %v5830_v9 = vand.u32 2147483647, %v13451_v0  ;;  %v6725_v33 = vand.u32 2147483647, %v13404_v19  ;;  %v13478_v50 = vsub.f32 %v6269_v40, %v6381_v42  ;;  %v13496_v42 = vpop.f32.mrb[54].mxu0 }
 0x67c   : > { %v6271_v47 = vmul.f32 %v13371_v51, %v16400_v36  ;;  %9644 = vlog2.f32 %v6773_v10  ;;  %v16401_v46 = vunpack.c.h.bf16 %v13076_v7  ;;  %v9635_v8 = vpop.eup %9634  ;;  %v6718_v13 = vsel %vm13431_vm12, %v6715_v55, %v6712_v63 }
 0x67d   : > { %v13486_v22 = vmul.f32 %v13377_v5, %v6732_v34  ;;  %vm13488_vm13 = vcmp.lt.f32.partialorder %v6734_v62, 0.0004427343  ;;  %v6080_v36 = vmul.f32 1.442695, %v5940_v43  ;;  %v13494_v40 = vadd.f32 %v13158_v11, %v13008_v35  ;;  %v9637_v7 = vpop.eup %9636 }
 0x67e   : > { %v6270_v51 = vmul.f32 %v13375_v20, %v16401_v46  ;;  %9646 = vlog2.f32 %v6737_v12  ;;  %v13498_v10 = vsub.f32 %v6271_v47, %v6383_v18  ;;  %v6382_v54 = vmax.f32 %v13375_v20, 0.0  ;;  %v13504_v62 = vpop.eup %9638 }
 0x67f   : > { %v16404_v5 = vunpack.c.h.bf16 %v13080_v45  ;;  %v6721_v63 = vmul.f32 0.6931472, %v9637_v7  ;;  %v6724_v55 = vmul.f32 %v13404_v19, %v6723_v2  ;;  %9648 = vpow2.f32 %v6080_v36 }
 0x680   : > { %v5942_v11 = vsub.f32 0.0, %v5830_v9  ;;  %v13507_v43 = vpop.eup %9640  ;;  %v7606_v46 = vsub.f32 %v13351_v61, %v6718_v13  ;;  %vm6726_vm14 = vcmp.lt.f32.partialorder %v6725_v33, 0.0004427343  ;;  %v6740_v12 = vmul.f32 -0.5, %v13437_v58 }
 0x681   : > { %v6272_v34 = vmul.f32 %v13382_v37, %v16404_v5  ;;  %v6384_v20 = vmax.f32 %v13382_v37, 0.0  ;;  %v6727_v47 = vsel %vm6726_vm14, %v6724_v55, %v6721_v63  ;;  %v6776_v45 = vmul.f32 -0.5, %v13453_v60 }
 0x682   : > { %v6782_v18 = vadd.f32 1.0, %v13507_v43  ;;  %v5829_v7 = vand.u32 2147483647, %v13494_v40  ;;  %v6730_v5 = vmul.f32 0.6931472, %v9635_v8  ;;  %v7607_v19 = vsub.f32 %v13427_v59, %v6727_v47  ;;  %v13529_v59 = vpop.f32.mrb[155].mxu1 }
 0x683   : > { %v6791_v2 = vadd.f32 1.0, %v13504_v62  ;;  %v13517_v9 = vsub.f32 %v6270_v51, %v6382_v54  ;;  %v6743_v61 = vand.u32 2147483647, %v13437_v58  ;;  %v6084_v33 = vmul.f32 1.442695, %v5942_v11 }
 0x684   : > { %9650 = vlog2.f32 %v6782_v18  ;;  %v13522_v37 = vadd.f32 %v13160_v48, %v13010_v57  ;;  %v13524_v13 = vadd.f32 %v7607_v19, %v7606_v46  ;;  %v6741_v36 = vadd.f32 1.0, %v6740_v12  ;;  %v13531_v55 = vpop.eup %9642 }
 0x685   : > { %v6779_v63 = vand.u32 2147483647, %v13453_v60  ;;  %v13527_v8 = vsub.f32 %v6272_v34, %v6384_v20  ;;  %v6777_v51 = vadd.f32 1.0, %v6776_v45  ;;  %v16406_v54 = vunpack.c.l.bf16 %v13103_v29 }
 0x686   : > { %16405 = vst [vmem:[#allocation42_spill] sm:$0xff] %v13524_v13  ;;  %v6388_v47 = vmax.f32 %v13445_v16, 0.0  ;;  %v5941_v48 = vsub.f32 0.0, %v5829_v7  ;;  %v9645_v18 = vpop.eup %9644  ;;  %v6736_v46 = vsel %vm13488_vm13, %v13486_v22, %v6730_v5  ;;  %9652 = vlog2.f32 %v6791_v2 }
 0x687   : > { %v6276_v11 = vmul.f32 %v13445_v16, %v16406_v54  ;;  %v6794_v34 = vmul.f32 -0.5, %v13504_v62  ;;  %v6785_v12 = vmul.f32 -0.5, %v13507_v43  ;;  %vm13542_vm15 = vcmp.lt.f32.partialorder %v6743_v61, 0.0004427343  ;;  %v13559_v61 = vpop.f32.mrb[55].mxu0 }
 0x688   : > { %9654 = vpow2.f32 %v6084_v33  ;;  %v16409_v45 = vunpack.c.l.bf16 %v13115_v23  ;;  %v6082_v7 = vmul.f32 1.442695, %v5941_v48  ;;  %v5831_v19 = vand.u32 2147483647, %v13522_v37  ;;  %v9647_v54 = vpop.eup %9646  ;;  %16412 = vst [vmem:[#allocation46_spill] sm:$0xff] %v13559_v61 }
 0x689   : > { %v6775_v52 = vmul.f32 0.6931472, %v9645_v18  ;;  %vm13550_vm4 = vcmp.lt.f32.partialorder %v6779_v63, 0.0004427343  ;;  %v6800_v5 = vadd.f32 1.0, %v13531_v55  ;;  %v13557_v2 = vadd.f32 %v13170_v56, %v13001_v30  ;;  %v13561_v33 = vpop.eup %9648 }
 0x68a   : > { %v6278_v16 = vmul.f32 %v13451_v0, %v16409_v45  ;;  %v6778_v48 = vmul.f32 %v13453_v60, %v6777_v51  ;;  %v6390_v45 = vmax.f32 %v13451_v0, 0.0  ;;  %9656 = vpow2.f32 %v6082_v7 }
 0x68b   : > { %v5943_v18 = vsub.f32 0.0, %v5831_v19  ;;  %v6795_v63 = vadd.f32 1.0, %v6794_v34  ;;  %v6797_v13 = vand.u32 2147483647, %v13504_v62  ;;  %v6786_v4 = vadd.f32 1.0, %v6785_v12 }
 0x68c   : > { %v6836_v31 = vadd.f32 1.0, %v13561_v33  ;;  %v6742_v38 = vmul.f32 %v13437_v58, %v6741_v36  ;;  %v6788_v56 = vand.u32 2147483647, %v13507_v43  ;;  %v5835_v41 = vand.u32 2147483647, %v13557_v2 }
 0x68d   : > { %v6086_v27 = vmul.f32 1.442695, %v5943_v18  ;;  %v6739_v61 = vmul.f32 0.6931472, %v9647_v54  ;;  %v6781_v60 = vsel %vm13550_vm4, %v6778_v48, %v6775_v52  ;;  %9658 = vlog2.f32 %v6800_v5  ;;  %v13585_v54 = vpop.f32.mrb[156].mxu1 }
 0x68e   : > { %v13574_v0 = vadd.f32 %v13172_v15, %v13003_v6  ;;  %v9651_v51 = vpop.eup %9650  ;;  %v13577_v34 = vsub.f32 %v13421_v25, %v6736_v46  ;;  %v6803_v58 = vmul.f32 -0.5, %v13531_v55  ;;  %v13580_v36 = vsub.f32 %v6276_v11, %v6388_v47  ;;  %v13597_v46 = vpop.f32.mrb[56].mxu0 }
 0x68f   : > { %9660 = vlog2.f32 %v6836_v31  ;;  %v6784_v12 = vmul.f32 0.6931472, %v9651_v51  ;;  %v6787_v7 = vmul.f32 %v13507_v43, %v6786_v4  ;;  %v13583_v19 = vsub.f32 %v6278_v16, %v6390_v45  ;;  %v13610_v45 = vpop.f32.mrb[157].mxu1 }
 0x690   : > { %16413 = vst [vmem:[#allocation9_spill] sm:$0xff] %v13577_v34  ;;  %9662 = vpow2.f32 %v6086_v27  ;;  %v7613_v15 = vsub.f32 %v13478_v50, %v6781_v60  ;;  %v6796_v52 = vmul.f32 %v13504_v62, %v6795_v63  ;;  %vm13589_vm3 = vcmp.lt.f32.partialorder %v6797_v13, 0.0004427343  ;;  %v9653_v47 = vpop.eup %9652 }
 0x691   : > { %vm6789_vm2 = vcmp.lt.f32.partialorder %v6788_v56, 0.0004427343  ;;  %v5947_v11 = vsub.f32 0.0, %v5835_v41  ;;  %v6745_v31 = vsel %vm13542_vm15, %v6742_v38, %v6739_v61  ;;  %v6806_v43 = vand.u32 2147483647, %v13531_v55 }
 0x692   : > { %v6790_v4 = vsel %vm6789_vm2, %v6787_v7, %v6784_v12  ;;  %v5837_v27 = vand.u32 2147483647, %v13574_v0  ;;  %v13599_v50 = vpop.eup %9654  ;;  %v6804_v13 = vadd.f32 1.0, %v6803_v58  ;;  %v16416_v16 = vunpack.c.h.bf16 %v13103_v29 }
 0x693   : > { %v7614_v62 = vsub.f32 %v13517_v9, %v6790_v4  ;;  %v6094_v22 = vmul.f32 1.442695, %v5947_v11  ;;  %v6389_v20 = vmax.f32 %v13494_v40, 0.0  ;;  %v16417_v38 = vunpack.c.h.bf16 %v13115_v23  ;;  %v16422_v11 = vld [vmem:[#allocation26_spill] sm:$0xff] }
 0x694   : > { %v6277_v41 = vmul.f32 %v13494_v40, %v16416_v16  ;;  %v6391_v61 = vmax.f32 %v13522_v37, 0.0  ;;  %v5949_v48 = vsub.f32 0.0, %v5837_v27  ;;  %v13612_v18 = vpop.eup %9656  ;;  %v6839_v29 = vmul.f32 -0.5, %v13561_v33 }
 0x695   : > { %v6279_v5 = vmul.f32 %v13522_v37, %v16417_v38  ;;  %v13614_v9 = vadd.f32 %v7614_v62, %v7613_v15  ;;  %9664 = vpow2.f32 %v6094_v22  ;;  %v13619_v63 = vadd.f32 %v13182_v24, %v13008_v35  ;;  %v16435_v38 = vld [vmem:[#allocation40_spill] sm:$0xff] }
 0x696   : > { %v6793_v40 = vmul.f32 0.6931472, %v9653_v47  ;;  %v6842_v23 = vand.u32 2147483647, %v13561_v33  ;;  %v6854_v56 = vadd.f32 1.0, %v13599_v50  ;;  %v6845_v37 = vadd.f32 1.0, %v13612_v18 }
 0x697   : > { %16418 = vst [vmem:[#allocation12_spill] sm:$0xff] %v13614_v9  ;;  %v13625_v60 = vsub.f32 %v13435_v26, %v6745_v31  ;;  %v6857_v51 = vmul.f32 -0.5, %v13599_v50  ;;  %v6098_v58 = vmul.f32 1.442695, %v5949_v48  ;;  %v5836_v12 = vand.u32 2147483647, %v13619_v63  ;;  %v9659_v7 = vpop.eup %9658 }
 0x698   : > { %v6805_v15 = vmul.f32 %v13531_v55, %v6804_v13  ;;  %vm13630_vm6 = vcmp.lt.f32.partialorder %v6806_v43, 0.0004427343  ;;  %9666 = vlog2.f32 %v6845_v37  ;;  %v13636_v47 = vadd.f32 %v16422_v11, %v13010_v57  ;;  %v16445_v9 = vld [vmem:[#allocation28_spill] sm:$0xff] }
 0x699   : > { %16419 = vst [vmem:[#allocation7_spill] sm:$0xff] %v13625_v60  ;;  %v9661_v4 = vpop.eup %9660  ;;  %v6840_v26 = vadd.f32 1.0, %v6839_v29  ;;  %v6501_v31 = vsub.f32 %v6277_v41, %v6389_v20  ;;  %v13638_v27 = vsub.f32 %v6279_v5, %v6391_v61  ;;  %v5948_v62 = vsub.f32 0.0, %v5836_v12  ;;  %v13650_v41 = vpop.f32.mrb[57].mxu0  ;;  %v16425_v5 = vld [vmem:[#allocation41_spill] sm:$0xff]  ;;  %v16428_v12 = vld [vmem:[#allocation24_spill] sm:$0xff] }
 0x69a   : > { %v13640_v16 = vpop.eup %9662  ;;  %v6799_v55 = vsel %vm13589_vm3, %v6796_v52, %v6793_v40  ;;  %9668 = vlog2.f32 %v6854_v56  ;;  %v6848_v43 = vmul.f32 -0.5, %v13612_v18  ;;  %v5838_v13 = vand.u32 2147483647, %v13636_v47 }
 0x69b   : > { %v6802_v22 = vmul.f32 0.6931472, %v9659_v7  ;;  %vm13646_vm7 = vcmp.lt.f32.partialorder %v6842_v23, 0.0004427343  ;;  %v6858_v48 = vadd.f32 1.0, %v6857_v51  ;;  %9670 = vpow2.f32 %v6098_v58 }
 0x69c   : > { %v6863_v20 = vadd.f32 1.0, %v13640_v16  ;;  %v16426_v61 = vunpack.c.l.bf16 %v16425_v5  ;;  %v6096_v25 = vmul.f32 1.442695, %v5948_v62  ;;  %v5950_v29 = vsub.f32 0.0, %v5838_v13 }
 0x69d   : > { %v13657_v40 = vsub.f32 %v13498_v10, %v6799_v55  ;;  %v6838_v56 = vmul.f32 0.6931472, %v9661_v4  ;;  %v6860_v23 = vand.u32 2147483647, %v13599_v50  ;;  %v6395_v37 = vmax.f32 %v13557_v2, 0.0  ;;  %v16429_v4 = vld [vmem:[#allocation23_spill] sm:$0xff] }
 0x69e   : > { %v6283_v52 = vmul.f32 %v13557_v2, %v16426_v61  ;;  %v6841_v51 = vmul.f32 %v13561_v33, %v6840_v26  ;;  %v6849_v58 = vadd.f32 1.0, %v6848_v43  ;;  %9672 = vpow2.f32 %v6096_v25  ;;  %v16431_v33 = vld [vmem:[#allocation39_spill] sm:$0xff]  ;;  %v13682_v25 = vpop.f32.mrb[158].mxu1 }
 0x69f   : > { %16427 = vst [vmem:[#allocation6_spill] sm:$0xff] %v13657_v40  ;;  %v13664_v7 = vadd.f32 %v16428_v12, %v13001_v30  ;;  %v13666_v11 = vpop.eup %9664  ;;  %v6808_v62 = vsel %vm13630_vm6, %v6805_v15, %v6802_v22  ;;  %v13671_v10 = vmul.f32 %v13599_v50, %v6858_v48  ;;  %v16430_v55 = vunpack.c.l.bf16 %v16429_v4 }
 0x6a0   : > { %v13678_v26 = vadd.f32 %v16431_v33, %v13003_v6  ;;  %v6851_v43 = vand.u32 2147483647, %v13612_v18  ;;  %9674 = vlog2.f32 %v6863_v20  ;;  %v6899_v13 = vadd.f32 1.0, %v13666_v11 }
 0x6a1   : > { %v6285_v2 = vmul.f32 %v13574_v0, %v16430_v55  ;;  %v6100_v61 = vmul.f32 1.442695, %v5950_v29  ;;  %v6844_v50 = vsel %vm13646_vm7, %v6841_v51, %v6838_v56  ;;  %v13686_v15 = vsub.f32 %v6283_v52, %v6395_v37 }
 0x6a2   : > { %v5842_v24 = vand.u32 2147483647, %v13664_v7  ;;  %v5844_v22 = vand.u32 2147483647, %v13678_v26  ;;  %v9667_v48 = vpop.eup %9666  ;;  %v13691_v12 = vsub.f32 %v13527_v8, %v6808_v62  ;;  %vm13693_vm1 = vcmp.lt.f32.partialorder %v6860_v23, 0.0004427343 }
 0x6a3   : > { %v6850_v29 = vmul.f32 %v13612_v18, %v6849_v58  ;;  %v6397_v55 = vmax.f32 %v13574_v0, 0.0  ;;  %v13701_v52 = vadd.f32 %v16435_v38, %v13008_v35  ;;  %v6847_v56 = vmul.f32 0.6931472, %v9667_v48  ;;  %v13705_v62 = vpop.f32.mrb[58].mxu0 }
 0x6a4   : > { %16432 = vst [vmem:[#allocation3_spill] sm:$0xff] %v13691_v12  ;;  %9676 = vlog2.f32 %v6899_v13  ;;  %v5954_v37 = vsub.f32 0.0, %v5842_v24  ;;  %v5956_v51 = vsub.f32 0.0, %v5844_v22  ;;  %v9669_v33 = vpop.eup %9668  ;;  %v7620_v8 = vsub.f32 %v13580_v36, %v6844_v50  ;;  %16436 = vst [vmem:[#allocation4_spill] sm:$0xff] %v13705_v62 }
 0x6a5   : > { %vm6852_vm8 = vcmp.lt.f32.partialorder %v6851_v43, 0.0004427343  ;;  %v6866_v23 = vmul.f32 -0.5, %v13640_v16  ;;  %9678 = vpow2.f32 %v6100_v61  ;;  %v13707_v18 = vpop.eup %9670  ;;  %v16437_v58 = vunpack.c.h.bf16 %v16425_v5 }
 0x6a6   : > { %v6853_v0 = vsel %vm6852_vm8, %v6850_v29, %v6847_v56  ;;  %v6108_v48 = vmul.f32 1.442695, %v5954_v37  ;;  %v6112_v13 = vmul.f32 1.442695, %v5956_v51  ;;  %v6869_v22 = vand.u32 2147483647, %v13640_v16 }
 0x6a7   : > { %v6284_v38 = vmul.f32 %v13619_v63, %v16437_v58  ;;  %v7621_v24 = vsub.f32 %v6501_v31, %v6853_v0  ;;  %v6396_v36 = vmax.f32 %v13619_v63, 0.0  ;;  %v16438_v43 = vunpack.c.h.bf16 %v16429_v4 }
 0x6a8   : > { %v6856_v50 = vmul.f32 0.6931472, %v9669_v33  ;;  %v6398_v12 = vmax.f32 %v13636_v47, 0.0  ;;  %9680 = vpow2.f32 %v6108_v48  ;;  %v5843_v29 = vand.u32 2147483647, %v13701_v52  ;;  %v13719_v5 = vpop.eup %9672 }
 0x6a9   : > { %v6286_v61 = vmul.f32 %v13636_v47, %v16438_v43  ;;  %v13721_v56 = vadd.f32 %v7621_v24, %v7620_v8  ;;  %v6867_v37 = vadd.f32 1.0, %v6866_v23  ;;  %v6917_v31 = vadd.f32 1.0, %v13707_v18  ;;  %v16442_v23 = vld [vmem:[#allocation45_spill] sm:$0xff] }
 0x6aa   : > { %9682 = vpow2.f32 %v6112_v13  ;;  %v6902_v63 = vmul.f32 -0.5, %v13666_v11  ;;  %v13725_v51 = vsub.f32 %v6285_v2, %v6397_v55  ;;  %v6908_v4 = vadd.f32 1.0, %v13719_v5  ;;  %v9675_v0 = vpop.eup %9674  ;;  %v13739_v13 = vpop.f32.mrb[159].mxu1 }
 0x6ab   : > { %16439 = vst [vmem:[#allocation14_spill] sm:$0xff] %v13721_v56  ;;  %v5955_v33 = vsub.f32 0.0, %v5843_v29  ;;  %vm13728_vm9 = vcmp.lt.f32.partialorder %v6869_v22, 0.0004427343  ;;  %v6905_v58 = vand.u32 2147483647, %v13666_v11  ;;  %v13733_v8 = vsub.f32 %v6284_v38, %v6396_v36 }
 0x6ac   : > { %v13737_v48 = vadd.f32 %v16442_v23, %v13010_v57  ;;  %16443 = vst [vmem:[#allocation38_spill] sm:$0xff] %v13739_v13  ;;  %v6862_v2 = vsel %vm13693_vm1, %v13671_v10, %v6856_v50  ;;  %v6920_v55 = vmul.f32 -0.5, %v13707_v18  ;;  %9684 = vlog2.f32 %v6908_v4  ;;  %v16444_v36 = vld [vmem:[#allocation25_spill] sm:$0xff]  ;;  %v13767_v4 = vpop.f32.mrb[59].mxu0 }
 0x6ad   : > { %v13745_v24 = vsub.f32 %v6286_v61, %v6398_v12  ;;  %v6868_v22 = vmul.f32 %v13640_v16, %v6867_v37  ;;  %9686 = vlog2.f32 %v6917_v31  ;;  %v6110_v38 = vmul.f32 1.442695, %v5955_v33  ;;  %v16449_v37 = vld [vmem:[#allocation22_spill] sm:$0xff]  ;;  %16451 = vst [vmem:[#allocation26_spill] sm:$0xff] %v13767_v4 }
 0x6ae   : > { %v13750_v43 = vadd.f32 %v16444_v36, %v13001_v30  ;;  %v9677_v29 = vpop.eup %9676  ;;  %v6865_v23 = vmul.f32 0.6931472, %v9675_v0  ;;  %v6903_v56 = vadd.f32 1.0, %v6902_v63  ;;  %v16446_v40 = vunpack.c.l.bf16 %v16445_v9 }
 0x6af   : > { %v5845_v20 = vand.u32 2147483647, %v13737_v48  ;;  %v13756_v50 = vpop.eup %9678  ;;  %vm13758_vm11 = vcmp.lt.f32.partialorder %v6905_v58, 0.0004427343  ;;  %v6911_v16 = vmul.f32 -0.5, %v13719_v5  ;;  %v6402_v61 = vmax.f32 %v13664_v7, 0.0 }
 0x6b0   : > { %v6290_v10 = vmul.f32 %v13664_v7, %v16446_v40  ;;  %v16450_v31 = vunpack.c.l.bf16 %v16449_v37  ;;  %v6921_v33 = vadd.f32 1.0, %v6920_v55  ;;  %v6404_v40 = vmax.f32 %v13678_v26, 0.0 }
 0x6b1   : > { %9688 = vpow2.f32 %v6110_v38  ;;  %v5957_v0 = vsub.f32 0.0, %v5845_v20  ;;  %v13771_v58 = vsub.f32 %v13583_v19, %v6862_v2  ;;  %v6901_v36 = vmul.f32 0.6931472, %v9677_v29 }
 0x6b2   : > { %v6292_v63 = vmul.f32 %v13678_v26, %v16450_v31  ;;  %v6923_v60 = vand.u32 2147483647, %v13707_v18  ;;  %v5849_v34 = vand.u32 2147483647, %v13750_v43  ;;  %v13775_v7 = vpop.eup %9680  ;;  %v6871_v31 = vsel %vm13728_vm9, %v6868_v22, %v6865_v23 }
 0x6b3   : > { %16452 = vst [vmem:[#allocation41_spill] sm:$0xff] %v13771_v58  ;;  %v6904_v4 = vmul.f32 %v13666_v11, %v6903_v56  ;;  %v6914_v55 = vand.u32 2147483647, %v13719_v5  ;;  %v6926_v26 = vadd.f32 1.0, %v13756_v50  ;;  %v6912_v19 = vadd.f32 1.0, %v6911_v16 }
 0x6b4   : > { %v13782_v38 = vpop.eup %9682  ;;  %v6962_v2 = vadd.f32 1.0, %v13775_v7  ;;  %v6114_v29 = vmul.f32 1.442695, %v5957_v0  ;;  %v5961_v20 = vsub.f32 0.0, %v5849_v34  ;;  %v13786_v58 = vmul.f32 %v13707_v18, %v6921_v33  ;;  %v16457_v33 = vld [vmem:[#allocation32_spill] sm:$0xff] }
 0x6b5   : > { %v13788_v13 = vsub.f32 %v6290_v10, %v6402_v61  ;;  %v13790_v47 = vsub.f32 %v6292_v63, %v6404_v40  ;;  %v16453_v11 = vunpack.c.h.bf16 %v16445_v9  ;;  %v6907_v22 = vsel %vm13758_vm11, %v6904_v4, %v6901_v36 }
 0x6b6   : > { %vm13797_vm5 = vcmp.lt.f32.partialorder %v6923_v60, 0.0004427343  ;;  %v6929_v34 = vmul.f32 -0.5, %v13756_v50  ;;  %9690 = vlog2.f32 %v6962_v2  ;;  %v6403_v18 = vmax.f32 %v13701_v52, 0.0  ;;  %v9685_v10 = vpop.eup %9684 }
 0x6b7   : > { %v6291_v56 = vmul.f32 %v13701_v52, %v16453_v11  ;;  %v13804_v16 = vsub.f32 %v13638_v27, %v6871_v31  ;;  %9692 = vlog2.f32 %v6926_v26  ;;  %v6980_v9 = vadd.f32 1.0, %v13782_v38  ;;  %v9687_v63 = vpop.eup %9686  ;;  %v16458_v27 = vld [vmem:[#allocation34_spill] sm:$0xff] }
 0x6b8   : > { %v6122_v61 = vmul.f32 1.442695, %v5961_v20  ;;  %v6910_v12 = vmul.f32 0.6931472, %v9685_v10  ;;  %v6913_v60 = vmul.f32 %v13719_v5, %v6912_v19  ;;  %vm6915_vm12 = vcmp.lt.f32.partialorder %v6914_v55, 0.0004427343 }
 0x6b9   : > { %16456 = vst [vmem:[#allocation24_spill] sm:$0xff] %v13804_v16  ;;  %9694 = vpow2.f32 %v6114_v29  ;;  %v7627_v4 = vsub.f32 %v13686_v15, %v6907_v22  ;;  %v13811_v52 = vadd.f32 %v16457_v33, %v13003_v6  ;;  %v13815_v40 = vadd.f32 %v16458_v27, %v13008_v35  ;;  %v13820_v5 = vpop.f32.mrb[160].mxu1 }
 0x6ba   : > { %9696 = vpow2.f32 %v6122_v61  ;;  %v6916_v0 = vsel %vm6915_vm12, %v6913_v60, %v6910_v12  ;;  %v6930_v36 = vadd.f32 1.0, %v6929_v34  ;;  %v6932_v31 = vand.u32 2147483647, %v13756_v50  ;;  %16459 = vst [vmem:[#allocation23_spill] sm:$0xff] %v13820_v5  ;;  %v13839_v61 = vpop.f32.mrb[60].mxu0 }
 0x6bb   : > { %v13818_v26 = vsub.f32 %v6291_v56, %v6403_v18  ;;  %v13822_v55 = vpop.eup %9688  ;;  %v6919_v15 = vmul.f32 0.6931472, %v9687_v63  ;;  %v7628_v19 = vsub.f32 %v13733_v8, %v6916_v0  ;;  %9698 = vlog2.f32 %v6980_v9  ;;  %v16461_v56 = vld [vmem:[#allocation43_spill] sm:$0xff]  ;;  %16463 = vst [vmem:[#allocation40_spill] sm:$0xff] %v13839_v61 }
 0x6bc   : > { %v5851_v2 = vand.u32 2147483647, %v13811_v52  ;;  %v6965_v29 = vmul.f32 -0.5, %v13775_v7  ;;  %v6971_v20 = vadd.f32 1.0, %v13822_v55  ;;  %v16460_v11 = vunpack.c.h.bf16 %v16449_v37 }
 0x6bd   : > { %v13833_v34 = vadd.f32 %v16461_v56, %v13010_v57  ;;  %v13835_v18 = vadd.f32 %v7628_v19, %v7627_v4  ;;  %v6983_v10 = vmul.f32 -0.5, %v13782_v38  ;;  %v5850_v9 = vand.u32 2147483647, %v13815_v40  ;;  %v13864_v56 = vpop.f32.mrb[161].mxu1 }
 0x6be   : > { %v6293_v22 = vmul.f32 %v13737_v48, %v16460_v11  ;;  %v5963_v8 = vsub.f32 0.0, %v5851_v2  ;;  %v13842_v63 = vmul.f32 %v13756_v50, %v6930_v36  ;;  %v6968_v37 = vand.u32 2147483647, %v13775_v7  ;;  %16468 = vst [vmem:[#allocation45_spill] sm:$0xff] %v13864_v56  ;;  %v13881_v56 = vpop.f32.mrb[61].mxu0 }
 0x6bf   : > { %16462 = vst [vmem:[#allocation39_spill] sm:$0xff] %v13835_v18  ;;  %9700 = vlog2.f32 %v6971_v20  ;;  %v6405_v12 = vmax.f32 %v13737_v48, 0.0  ;;  %v6925_v60 = vsel %vm13797_vm5, %v13786_v58, %v6919_v15  ;;  %vm13849_vm13 = vcmp.lt.f32.partialorder %v6932_v31, 0.0004427343  ;;  %v16466_v31 = vld [vmem:[#allocation29_spill] sm:$0xff]  ;;  %16472 = vst [vmem:[#allocation28_spill] sm:$0xff] %v13881_v56 }
 0x6c0   : > { %v6126_v33 = vmul.f32 1.442695, %v5963_v8  ;;  %v5962_v27 = vsub.f32 0.0, %v5850_v9  ;;  %v13855_v0 = vadd.f32 %v13316_v53, %v13001_v30  ;;  %v9691_v50 = vpop.eup %9690  ;;  %v6966_v36 = vadd.f32 1.0, %v6965_v29 }
 0x6c1   : > { %v6986_v19 = vand.u32 2147483647, %v13782_v38  ;;  %v6974_v48 = vmul.f32 -0.5, %v13822_v55  ;;  %v5852_v2 = vand.u32 2147483647, %v13833_v34  ;;  %v9693_v23 = vpop.eup %9692  ;;  %v6984_v58 = vadd.f32 1.0, %v6983_v10 }
 0x6c2   : > { %v16467_v15 = vunpack.c.l.bf16 %v16466_v31  ;;  %v6409_v11 = vmax.f32 %v13750_v43, 0.0  ;;  %9702 = vpow2.f32 %v6126_v33  ;;  %v6964_v29 = vmul.f32 0.6931472, %v9691_v50 }
 0x6c3   : > { %v13866_v53 = vpop.eup %9694  ;;  %vm13868_vm14 = vcmp.lt.f32.partialorder %v6968_v37, 0.0004427343  ;;  %v13872_v9 = vsub.f32 %v6293_v22, %v6405_v12  ;;  %v5964_v10 = vsub.f32 0.0, %v5852_v2  ;;  %v6124_v33 = vmul.f32 1.442695, %v5962_v27  ;;  %v13893_v27 = vld [vmem:[%s10206_s12 + $0xe0] sm:$0xff] }
 0x6c4   : > { %v6297_v20 = vmul.f32 %v13750_v43, %v16467_v15  ;;  %v13874_v18 = vpop.eup %9696  ;;  %v13877_v15 = vsub.f32 %v13725_v51, %v6925_v60  ;;  %v6989_v43 = vadd.f32 1.0, %v13866_v53  ;;  %v5856_v16 = vand.u32 2147483647, %v13855_v0 }
 0x6c5   : > { %v6928_v37 = vmul.f32 0.6931472, %v9693_v23  ;;  %v6967_v50 = vmul.f32 %v13775_v7, %v6966_v36  ;;  %vm13884_vm15 = vcmp.lt.f32.partialorder %v6986_v19, 0.0004427343  ;;  %v6975_v12 = vadd.f32 1.0, %v6974_v48  ;;  %v9699_v2 = vpop.eup %9698  ;;  %v16475_v7 = vld [vmem:[#allocation18_spill] sm:$0xff] }
 0x6c6   : > { %16471 = vst [vmem:[#allocation25_spill] sm:$0xff] %v13877_v15  ;;  %v6985_v61 = vmul.f32 %v13782_v38, %v6984_v58  ;;  %v13889_v51 = vsub.f32 %v6297_v20, %v6409_v11  ;;  %v7025_v60 = vadd.f32 1.0, %v13874_v18  ;;  %v474_v15 = vunpack.c.l.bf16 %v13893_v27 }
 0x6c7   : > { %v6977_v23 = vand.u32 2147483647, %v13822_v55  ;;  %9704 = vlog2.f32 %v6989_v43  ;;  %v16476_v36 = vunpack.c.l.bf16 %v16475_v7  ;;  %v6128_v56 = vmul.f32 1.442695, %v5964_v10 }
 0x6c8   : > { %v6970_v48 = vsel %vm13868_vm14, %v6967_v50, %v6964_v29  ;;  %v6411_v38 = vmax.f32 %v13811_v52, 0.0  ;;  %9706 = vpow2.f32 %v6124_v33  ;;  %v5968_v58 = vsub.f32 0.0, %v5856_v16 }
 0x6c9   : > { %v6299_v19 = vmul.f32 %v13811_v52, %v16476_v36  ;;  %v9701_v20 = vpop.eup %9700  ;;  %v6934_v11 = vsel %vm13849_vm13, %v13842_v63, %v6928_v37  ;;  %v6982_v5 = vmul.f32 0.6931472, %v9699_v2  ;;  %v6976_v43 = vmul.f32 %v13822_v55, %v6975_v12  ;;  %v13917_v63 = vpop.f32.mrb[162].mxu1 }
 0x6ca   : > { %9708 = vpow2.f32 %v6128_v56  ;;  %v6973_v62 = vmul.f32 0.6931472, %v9701_v20  ;;  %v6992_v36 = vmul.f32 -0.5, %v13866_v53  ;;  %v6136_v10 = vmul.f32 1.442695, %v5968_v58 }
 0x6cb   : > { %9710 = vlog2.f32 %v7025_v60  ;;  %v7634_v29 = vsub.f32 %v13788_v13, %v6970_v48  ;;  %vm6978_vm4 = vcmp.lt.f32.partialorder %v6977_v23, 0.0004427343  ;;  %v13911_v16 = vadd.f32 %v13325_v17, %v13003_v6 }
 0x6cc   : > { %v13915_v52 = vadd.f32 %v13327_v1, %v13008_v35  ;;  %v13919_v55 = vpop.eup %9702  ;;  %v13922_v4 = vsub.f32 %v13745_v24, %v6934_v11  ;;  %v6979_v56 = vsel %vm6978_vm4, %v6976_v43, %v6973_v62  ;;  %v16478_v8 = vunpack.c.h.bf16 %v16466_v31 }
 0x6cd   : > { %9712 = vpow2.f32 %v6136_v10  ;;  %v6988_v17 = vsel %vm13884_vm15, %v6985_v61, %v6982_v5  ;;  %v7635_v33 = vsub.f32 %v13818_v26, %v6979_v56  ;;  %v6995_v1 = vand.u32 2147483647, %v13866_v53  ;;  %v13941_v5 = vpop.f32.mrb[62].mxu0 }
 0x6ce   : > { %16477 = vst [vmem:[#allocation22_spill] sm:$0xff] %v13922_v4  ;;  %v6298_v13 = vmul.f32 %v13815_v40, %v16478_v8  ;;  %v6410_v37 = vmax.f32 %v13815_v40, 0.0  ;;  %v6993_v50 = vadd.f32 1.0, %v6992_v36  ;;  %v7028_v12 = vmul.f32 -0.5, %v13874_v18 }
 0x6cf   : > { %v5858_v62 = vand.u32 2147483647, %v13911_v16  ;;  %v5857_v24 = vand.u32 2147483647, %v13915_v52  ;;  %v13935_v31 = vadd.f32 %v7635_v33, %v7634_v29  ;;  %v7031_v2 = vand.u32 2147483647, %v13874_v18 }
 0x6d0   : > { %v13938_v22 = vsub.f32 %v6299_v19, %v6411_v38  ;;  %v7043_v26 = vadd.f32 1.0, %v13919_v55  ;;  %v16480_v40 = vunpack.c.h.bf16 %v16475_v7  ;;  %v6412_v60 = vmax.f32 %v13833_v34, 0.0  ;;  %v10055_v7 = vld [vmem:[%s10206_s12 + $0xe8] sm:$0xff]  ;;  %v16488_v19 = vld [vmem:[#allocation44_spill] sm:$0xff] }
 0x6d1   : > { %16479 = vst [vmem:[#allocation32_spill] sm:$0xff] %v13935_v31  ;;  %v5970_v23 = vsub.f32 0.0, %v5858_v62  ;;  %v13949_v48 = vadd.f32 %v13333_v44, %v13010_v57  ;;  %v9705_v58 = vpop.eup %9704  ;;  %v13952_v20 = vsub.f32 %v13790_v47, %v6988_v17  ;;  %vm13954_vm3 = vcmp.lt.f32.partialorder %v6995_v1, 0.0004427343 }
 0x6d2   : > { %v6300_v61 = vmul.f32 %v13833_v34, %v16480_v40  ;;  %v13958_v38 = vsub.f32 %v6298_v13, %v6410_v37  ;;  %v476_v11 = vunpack.c.l.bf16 %v10055_v7  ;;  %v13961_v43 = vpop.eup %9706  ;;  %v6994_v34 = vmul.f32 %v13866_v53, %v6993_v50  ;;  %v13973_v13 = vpop.f32.mrb[163].mxu1 }
 0x6d3   : > { %16481 = vst [vmem:[#allocation34_spill] sm:$0xff] %v13952_v20  ;;  %v7029_v36 = vadd.f32 1.0, %v7028_v12  ;;  %v7046_v44 = vmul.f32 -0.5, %v13919_v55  ;;  %v5969_v10 = vsub.f32 0.0, %v5857_v24  ;;  %vm13967_vm2 = vcmp.lt.f32.partialorder %v7031_v2, 0.0004427343 }
 0x6d4   : > { %v13965_v29 = vpop.eup %9708  ;;  %9714 = vlog2.f32 %v7043_v26  ;;  %v7034_v56 = vadd.f32 1.0, %v13961_v43  ;;  %v6304_v8 = vmul.f32 %v13855_v0, %v474_v15  ;;  %v6416_v53 = vmax.f32 %v13855_v0, 0.0 }
 0x6d5   : > { %v9711_v17 = vpop.eup %9710  ;;  %v6140_v33 = vmul.f32 1.442695, %v5970_v23  ;;  %v475_v1 = vunpack.c.h.bf16 %v13893_v27  ;;  %v5859_v37 = vand.u32 2147483647, %v13949_v48  ;;  %v7052_v50 = vadd.f32 1.0, %v13965_v29 }
 0x6d6   : > { %9716 = vlog2.f32 %v7034_v56  ;;  %v6306_v12 = vmul.f32 %v13911_v16, %v476_v11  ;;  %v6418_v62 = vmax.f32 %v13911_v16, 0.0  ;;  %v6991_v15 = vmul.f32 0.6931472, %v9705_v58 }
 0x6d7   : > { %v13981_v24 = vpop.eup %9712  ;;  %v7047_v2 = vadd.f32 1.0, %v7046_v44  ;;  %v13983_v26 = vsub.f32 %v6300_v61, %v6412_v60  ;;  %v6138_v40 = vmul.f32 1.442695, %v5969_v10  ;;  %v7027_v0 = vmul.f32 0.6931472, %v9711_v17  ;;  %v13999_v44 = vpop.f32.mrb[63].mxu0 }
 0x6d8   : > { %v7030_v23 = vmul.f32 %v13874_v18, %v7029_v36  ;;  %v7049_v27 = vand.u32 2147483647, %v13919_v55  ;;  %v7088_v56 = vadd.f32 1.0, %v13981_v24  ;;  %v7037_v31 = vmul.f32 -0.5, %v13961_v43 }
 0x6d9   : > { %9718 = vpow2.f32 %v6140_v33  ;;  %v477_v11 = vunpack.c.h.bf16 %v10055_v7  ;;  %v5971_v20 = vsub.f32 0.0, %v5859_v37  ;;  %v13989_v16 = vsub.f32 %v6304_v8, %v6416_v53 }
 0x6da   : > { %9720 = vlog2.f32 %v7052_v50  ;;  %v13991_v58 = vsub.f32 %v6306_v12, %v6418_v62  ;;  %v6305_v61 = vmul.f32 %v13915_v52, %v475_v1  ;;  %v6997_v60 = vsel %vm13954_vm3, %v6994_v34, %v6991_v15  ;;  %v16490_v12 = vld [vmem:[#allocation27_spill] sm:$0xff] }
 0x6db   : > { %v13997_v18 = vmul.f32 %v13919_v55, %v7047_v2  ;;  %9722 = vpow2.f32 %v6138_v40  ;;  %v6142_v36 = vmul.f32 1.442695, %v5971_v20  ;;  %v7033_v7 = vsel %vm13967_vm2, %v7030_v23, %v7027_v0 }
 0x6dc   : > { %vm14003_vm6 = vcmp.lt.f32.partialorder %v7049_v27, 0.0004427343  ;;  %v7055_v8 = vmul.f32 -0.5, %v13965_v29  ;;  %9724 = vlog2.f32 %v7088_v56  ;;  %v14010_v34 = vadd.f32 %v16488_v19, %v13001_v30 }
 0x6dd   : > { %v7038_v55 = vadd.f32 1.0, %v7037_v31  ;;  %v6417_v17 = vmax.f32 %v13915_v52, 0.0  ;;  %9726 = vpow2.f32 %v6142_v36  ;;  %v14015_v20 = vadd.f32 %v13343_v3, %v13003_v6 }
 0x6de   : > { %v9715_v47 = vpop.eup %9714  ;;  %v14018_v53 = vsub.f32 %v13872_v9, %v6997_v60  ;;  %v7040_v33 = vand.u32 2147483647, %v13961_v43  ;;  %v6307_v1 = vmul.f32 %v13949_v48, %v477_v11  ;;  %v5863_v37 = vand.u32 2147483647, %v14010_v34 }
 0x6df   : > { %v7641_v50 = vsub.f32 %v13889_v51, %v7033_v7  ;;  %v7091_v31 = vmul.f32 -0.5, %v13981_v24  ;;  %v5865_v52 = vand.u32 2147483647, %v14015_v20  ;;  %v14028_v3 = vadd.f32 %v16490_v12, %v13008_v35 }
 0x6e0   : > { %16489 = vst [vmem:[#allocation43_spill] sm:$0xff] %v14018_v53  ;;  %v9717_v62 = vpop.eup %9716  ;;  %v7056_v15 = vadd.f32 1.0, %v7055_v8  ;;  %v7058_v9 = vand.u32 2147483647, %v13965_v29  ;;  %v7094_v2 = vand.u32 2147483647, %v13981_v24  ;;  %v7039_v27 = vmul.f32 %v13961_v43, %v7038_v55 }
 0x6e1   : > { %v5975_v40 = vsub.f32 0.0, %v5863_v37  ;;  %v7045_v0 = vmul.f32 0.6931472, %v9715_v47  ;;  %v7036_v23 = vmul.f32 0.6931472, %v9717_v62  ;;  %v14034_v56 = vsub.f32 %v6305_v61, %v6417_v17  ;;  %v14043_v37 = vpop.f32.mrb[164].mxu1 }
 0x6e2   : > { %v5864_v51 = vand.u32 2147483647, %v14028_v3  ;;  %vm7041_vm7 = vcmp.lt.f32.partialorder %v7040_v33, 0.0004427343  ;;  %v14038_v60 = vadd.f32 %v13354_v39, %v13010_v57  ;;  %v7092_v8 = vadd.f32 1.0, %v7091_v31  ;;  %v10056_v39 = vld [vmem:[%s10206_s12 + $0xfc] sm:$0xff] }
 0x6e3   : > { %v6150_v11 = vmul.f32 1.442695, %v5975_v40  ;;  %v14040_v36 = vpop.eup %9718  ;;  %v7042_v7 = vsel %vm7041_vm7, %v7039_v27, %v7036_v23  ;;  %v6419_v19 = vmax.f32 %v13949_v48, 0.0  ;;  %v5977_v47 = vsub.f32 0.0, %v5865_v52 }
 0x6e4   : > { %v9721_v43 = vpop.eup %9720  ;;  %v7642_v55 = vsub.f32 %v13958_v38, %v7042_v7  ;;  %v7057_v61 = vmul.f32 %v13965_v29, %v7056_v15  ;;  %vm14047_vm1 = vcmp.lt.f32.partialorder %v7058_v9, 0.0004427343  ;;  %v481_v33 = vunpack.c.l.bf16 %v10056_v39 }
 0x6e5   : > { %v14052_v12 = vpop.eup %9722  ;;  %v7051_v48 = vsel %vm14003_vm6, %v13997_v18, %v7045_v0  ;;  %vm14057_vm8 = vcmp.lt.f32.partialorder %v7094_v2, 0.0004427343  ;;  %9728 = vpow2.f32 %v6150_v11  ;;  %v5976_v38 = vsub.f32 0.0, %v5864_v51  ;;  %v14072_v2 = vld [vmem:[%s10206_s12 + $0x104] sm:$0xff] }
 0x6e6   : > { %v9725_v29 = vpop.eup %9724  ;;  %v14061_v52 = vadd.f32 %v7642_v55, %v7641_v50  ;;  %v7106_v62 = vadd.f32 1.0, %v14040_v36  ;;  %v7097_v15 = vadd.f32 1.0, %v14052_v12  ;;  %v5866_v9 = vand.u32 2147483647, %v14038_v60 }
 0x6e7   : > { %v14066_v40 = vpop.eup %9726  ;;  %v7093_v10 = vmul.f32 %v13981_v24, %v7092_v8  ;;  %v14069_v18 = vsub.f32 %v6307_v1, %v6419_v19  ;;  %v483_v0 = vunpack.c.l.bf16 %v14072_v2  ;;  %v6154_v23 = vmul.f32 1.442695, %v5977_v47 }
 0x6e8   : > { %16495 = vst [vmem:[#allocation29_spill] sm:$0xff] %v14061_v52  ;;  %9730 = vlog2.f32 %v7097_v15  ;;  %v6311_v50 = vmul.f32 %v14010_v34, %v481_v33  ;;  %v6423_v27 = vmax.f32 %v14010_v34, 0.0  ;;  %v482_v51 = vunpack.c.h.bf16 %v10056_v39  ;;  %v14082_v52 = vpop.f32.mrb[64].mxu0  ;;  %v14097_v15 = vpop.f32.mrb[165].mxu1 }
 0x6e9   : > { %v14078_v11 = vsub.f32 %v13938_v22, %v7051_v48  ;;  %v7054_v7 = vmul.f32 0.6931472, %v9721_v43  ;;  %v7109_v55 = vmul.f32 -0.5, %v14040_v36  ;;  %v7115_v24 = vadd.f32 1.0, %v14066_v40  ;;  %v5739_v22 = vpop.f32.mrb[65].mxu0  ;;  %v14105_v17 = vpop.f32.mrb[166].mxu1 }
 0x6ea   : > { %v7090_v1 = vmul.f32 0.6931472, %v9725_v29  ;;  %9732 = vlog2.f32 %v7106_v62  ;;  %v6152_v8 = vmul.f32 1.442695, %v5976_v38  ;;  %v5978_v19 = vsub.f32 0.0, %v5866_v9  ;;  %v14130_v22 = vpop.f32.mrb[66].mxu0 }
 0x6eb   : > { %16496 = vst [vmem:[#allocation18_spill] sm:$0xff] %v14078_v11  ;;  %v7100_v47 = vmul.f32 -0.5, %v14052_v12  ;;  %9734 = vpow2.f32 %v6154_v23  ;;  %v6313_v34 = vmul.f32 %v14015_v20, %v483_v0  ;;  %v6425_v39 = vmax.f32 %v14015_v20, 0.0 }
 0x6ec   : > { %v14087_v33 = vsub.f32 %v6311_v50, %v6423_v27  ;;  %9736 = vpow2.f32 %v6152_v8  ;;  %v484_v43 = vunpack.c.h.bf16 %v14072_v2  ;;  %v6156_v48 = vmul.f32 1.442695, %v5978_v19  ;;  %v14127_v19 = vld [vmem:[%s10206_s12 + $0x118] sm:$0xff] }
 0x6ed   : > { %v7060_v38 = vsel %vm14047_vm1, %v7057_v61, %v7054_v7  ;;  %9738 = vlog2.f32 %v7115_v24  ;;  %v6312_v29 = vmul.f32 %v14028_v3, %v482_v51  ;;  %v14095_v62 = vadd.f32 %v13460_v21, %v13001_v30 }
 0x6ee   : > { %v7096_v20 = vsel %vm14057_vm8, %v7093_v10, %v7090_v1  ;;  %v7110_v9 = vadd.f32 1.0, %v7109_v55  ;;  %9740 = vpow2.f32 %v6156_v48  ;;  %v14103_v2 = vadd.f32 %v13462_v32, %v13003_v6  ;;  %v5742_v48 = vpop.f32.mrb[67].mxu0 }
 0x6ef   : > { %v14107_v61 = vpop.eup %9728  ;;  %v7112_v0 = vand.u32 2147483647, %v14040_v36  ;;  %v7101_v21 = vadd.f32 1.0, %v7100_v47  ;;  %v6424_v23 = vmax.f32 %v14028_v3, 0.0  ;;  %v5870_v50 = vand.u32 2147483647, %v14095_v62 }
 0x6f0   : > { %v7103_v31 = vand.u32 2147483647, %v14052_v12  ;;  %v7118_v10 = vmul.f32 -0.5, %v14066_v40  ;;  %v7151_v27 = vadd.f32 1.0, %v14107_v61  ;;  %v5872_v32 = vand.u32 2147483647, %v14103_v2 }
 0x6f1   : > { %v14117_v51 = vsub.f32 %v13983_v26, %v7060_v38  ;;  %v7648_v7 = vsub.f32 %v13989_v16, %v7096_v20  ;;  %v14120_v55 = vsub.f32 %v6313_v34, %v6425_v39  ;;  %v5982_v24 = vsub.f32 0.0, %v5870_v50 }
 0x6f2   : > { %v9731_v1 = vpop.eup %9730  ;;  %v14123_v3 = vmul.f32 %v14040_v36, %v7110_v9  ;;  %v7121_v8 = vand.u32 2147483647, %v14066_v40  ;;  %9742 = vlog2.f32 %v7151_v27  ;;  %v488_v47 = vunpack.c.l.bf16 %v14127_v19 }
 0x6f3   : > { %16497 = vst [vmem:[#allocation44_spill] sm:$0xff] %v14117_v51  ;;  %vm14132_vm9 = vcmp.lt.f32.partialorder %v7112_v0, 0.0004427343  ;;  %v7099_v16 = vmul.f32 0.6931472, %v9731_v1  ;;  %v7102_v34 = vmul.f32 %v14052_v12, %v7101_v21  ;;  %v14139_v36 = vadd.f32 %v13470_v49, %v13008_v35 }
 0x6f4   : > { %v6164_v39 = vmul.f32 1.442695, %v5982_v24  ;;  %v9733_v38 = vpop.eup %9732  ;;  %vm7104_vm11 = vcmp.lt.f32.partialorder %v7103_v31, 0.0004427343  ;;  %v7119_v20 = vadd.f32 1.0, %v7118_v10  ;;  %v14141_v9 = vsub.f32 %v6312_v29, %v6424_v23  ;;  %v14153_v10 = vld [vmem:[%s10206_s12 + $0x120] sm:$0xff] }
 0x6f5   : > { %v5984_v50 = vsub.f32 0.0, %v5872_v32  ;;  %v14143_v0 = vpop.eup %9734  ;;  %v7105_v27 = vsel %vm7104_vm11, %v7102_v34, %v7099_v16  ;;  %v6314_v1 = vmul.f32 %v14038_v60, %v484_v43  ;;  %v6426_v12 = vmax.f32 %v14038_v60, 0.0  ;;  %v14156_v23 = vpop.f32.mrb[167].mxu1 }
 0x6f6   : > { %9744 = vpow2.f32 %v6164_v39  ;;  %v14147_v21 = vpop.eup %9736  ;;  %v7649_v49 = vsub.f32 %v14034_v56, %v7105_v27  ;;  %v6318_v24 = vmul.f32 %v14095_v62, %v488_v47  ;;  %v6430_v31 = vmax.f32 %v14095_v62, 0.0  ;;  %16500 = vst [vmem:[#allocation27_spill] sm:$0xff] %v14156_v23 }
 0x6f7   : > { %v490_v29 = vunpack.c.l.bf16 %v14153_v10  ;;  %v9739_v32 = vpop.eup %9738  ;;  %vm14158_vm5 = vcmp.lt.f32.partialorder %v7121_v8, 0.0004427343  ;;  %v7154_v60 = vmul.f32 -0.5, %v14107_v61  ;;  %v7160_v16 = vadd.f32 1.0, %v14147_v21 }
 0x6f8   : > { %v5871_v56 = vand.u32 2147483647, %v14139_v36  ;;  %v14165_v47 = vpop.eup %9740  ;;  %v7108_v62 = vmul.f32 0.6931472, %v9733_v38  ;;  %v14167_v34 = vadd.f32 %v7649_v49, %v7648_v7  ;;  %v7157_v39 = vand.u32 2147483647, %v14107_v61 }
 0x6f9   : > { %v6168_v48 = vmul.f32 1.442695, %v5984_v50  ;;  %v7120_v27 = vmul.f32 %v14066_v40, %v7119_v20  ;;  %v7169_v8 = vadd.f32 1.0, %v14143_v0  ;;  %9746 = vlog2.f32 %v7160_v16 }
 0x6fa   : > { %16503 = vst [vmem:[#allocation47_spill] sm:$0xff] %v14167_v34  ;;  %v14172_v51 = vsub.f32 %v6314_v1, %v6426_v12  ;;  %v7178_v11 = vadd.f32 1.0, %v14165_v47  ;;  %v14175_v53 = vsub.f32 %v6318_v24, %v6430_v31  ;;  %v6320_v4 = vmul.f32 %v14103_v2, %v490_v29  ;;  %v14188_v12 = vpop.f32.mrb[168].mxu1 }
 0x6fb   : > { %v489_v38 = vunpack.c.h.bf16 %v14127_v19  ;;  %v7117_v7 = vmul.f32 0.6931472, %v9739_v32  ;;  %v7155_v49 = vadd.f32 1.0, %v7154_v60  ;;  %v7163_v34 = vmul.f32 -0.5, %v14147_v21  ;;  %v14190_v19 = vpop.f32.mrb[68].mxu0 }
 0x6fc   : > { %v5983_v50 = vsub.f32 0.0, %v5871_v56  ;;  %v9743_v23 = vpop.eup %9742  ;;  %v7114_v40 = vsel %vm14132_vm9, %v14123_v3, %v7108_v62  ;;  %vm14183_vm12 = vcmp.lt.f32.partialorder %v7157_v39, 0.0004427343  ;;  %9748 = vpow2.f32 %v6168_v48  ;;  %v14197_v3 = vpop.f32.mrb[169].mxu1 }
 0x6fd   : > { %v6432_v1 = vmax.f32 %v14103_v2, 0.0  ;;  %9750 = vlog2.f32 %v7169_v8  ;;  %v7172_v24 = vmul.f32 -0.5, %v14143_v0  ;;  %v14195_v29 = vadd.f32 %v13473_v28, %v13010_v57  ;;  %v5747_v26 = vpop.f32.mrb[69].mxu0 }
 0x6fe   : > { %v6166_v31 = vmul.f32 1.442695, %v5983_v50  ;;  %v7153_v32 = vmul.f32 0.6931472, %v9743_v23  ;;  %v7166_v60 = vand.u32 2147483647, %v14147_v21  ;;  %9752 = vlog2.f32 %v7178_v11 }
 0x6ff   : > { %v14202_v2 = vadd.f32 %v13475_v14, %v13001_v30  ;;  %v7123_v56 = vsel %vm14158_vm5, %v7120_v27, %v7117_v7  ;;  %v7164_v62 = vadd.f32 1.0, %v7163_v34  ;;  %v5873_v28 = vand.u32 2147483647, %v14195_v29  ;;  %v14219_v34 = vpop.f32.mrb[170].mxu1 }
 0x700   : > { %v14204_v16 = vpop.eup %9744  ;;  %9754 = vpow2.f32 %v6166_v31  ;;  %v14210_v39 = vsub.f32 %v13991_v58, %v7114_v40  ;;  %v7156_v23 = vmul.f32 %v14107_v61, %v7155_v49  ;;  %v7181_v11 = vmul.f32 -0.5, %v14165_v47  ;;  %v14230_v49 = vpop.f32.mrb[70].mxu0 }
 0x701   : > { %v7214_v48 = vadd.f32 1.0, %v14204_v16  ;;  %v7175_v14 = vand.u32 2147483647, %v14143_v0  ;;  %v14216_v8 = vsub.f32 %v6320_v4, %v6432_v1  ;;  %v5985_v50 = vsub.f32 0.0, %v5873_v28  ;;  %v14234_v28 = vpop.f32.mrb[171].mxu1 }
 0x702   : > { %16506 = vst [vmem:[#allocation48_spill] sm:$0xff] %v14210_v39  ;;  %v5877_v43 = vand.u32 2147483647, %v14202_v2  ;;  %v14222_v27 = vsub.f32 %v14069_v18, %v7123_v56  ;;  %v7159_v58 = vsel %vm14183_vm12, %v7156_v23, %v7153_v32  ;;  %v7173_v61 = vadd.f32 1.0, %v7172_v24  ;;  %v5750_v24 = vpop.f32.mrb[71].mxu0 }
 0x703   : > { %vm14226_vm13 = vcmp.lt.f32.partialorder %v7166_v60, 0.0004427343  ;;  %v9747_v4 = vpop.eup %9746  ;;  %v7165_v40 = vmul.f32 %v14147_v21, %v7164_v62  ;;  %v7184_v1 = vand.u32 2147483647, %v14165_v47  ;;  %v6170_v31 = vmul.f32 1.442695, %v5985_v50 }
 0x704   : > { %16507 = vst [vmem:[#allocation49_spill] sm:$0xff] %v14222_v27  ;;  %v5989_v26 = vsub.f32 0.0, %v5877_v43  ;;  %v7162_v18 = vmul.f32 0.6931472, %v9747_v4  ;;  %v7182_v56 = vadd.f32 1.0, %v7181_v11  ;;  %9756 = vlog2.f32 %v7214_v48 }
 0x705   : > { %v491_v20 = vunpack.c.h.bf16 %v14153_v10  ;;  %v7655_v32 = vsub.f32 %v14087_v33, %v7159_v58  ;;  %vm14238_vm14 = vcmp.lt.f32.partialorder %v7175_v14, 0.0004427343  ;;  %9758 = vpow2.f32 %v6170_v31  ;;  %v14258_v58 = vld [vmem:[%s10206_s12 + $0x134] sm:$0xff] }
 0x706   : > { %v6178_v21 = vmul.f32 1.442695, %v5989_v26  ;;  %v14244_v62 = vadd.f32 %v13496_v42, %v13003_v6  ;;  %v14246_v23 = vpop.eup %9748  ;;  %v14249_v11 = vmul.f32 %v14143_v0, %v7173_v61  ;;  %v7168_v10 = vsel %vm14226_vm13, %v7165_v40, %v7162_v18  ;;  %v14275_v18 = vpop.f32.mrb[172].mxu1 }
 0x707   : > { %v6319_v33 = vmul.f32 %v14139_v36, %v489_v38  ;;  %v6431_v48 = vmax.f32 %v14139_v36, 0.0  ;;  %v9751_v14 = vpop.eup %9750  ;;  %v7656_v50 = vsub.f32 %v14141_v9, %v7168_v10  ;;  %v7217_v43 = vmul.f32 -0.5, %v14204_v16  ;;  %16515 = vst [vmem:[#allocation51_spill] sm:$0xff] %v14275_v18  ;;  %v14288_v27 = vpop.f32.mrb[173].mxu1 }
 0x708   : > { %v495_v42 = vunpack.c.l.bf16 %v14258_v58  ;;  %9760 = vpow2.f32 %v6178_v21  ;;  %v9753_v0 = vpop.eup %9752  ;;  %v7183_v61 = vmul.f32 %v14165_v47, %v7182_v56  ;;  %vm14262_vm15 = vcmp.lt.f32.partialorder %v7184_v1, 0.0004427343  ;;  %v14277_v47 = vpop.f32.mrb[72].mxu0  ;;  %v14282_v21 = vld [vmem:[%s10206_s12 + $0x13c] sm:$0xff]  ;;  %16517 = vst [vmem:[#allocation53_spill] sm:$0xff] %v14288_v27 }
 0x709   : > { %v7220_v36 = vand.u32 2147483647, %v14204_v16  ;;  %v5879_v38 = vand.u32 2147483647, %v14244_v62  ;;  %v14270_v4 = vadd.f32 %v7656_v50, %v7655_v32  ;;  %v7232_v40 = vadd.f32 1.0, %v14246_v23  ;;  %16516 = vst [vmem:[#allocation52_spill] sm:$0xff] %v14277_v47 }
 0x70a   : > { %v14268_v9 = vpop.eup %9754  ;;  %v6321_v31 = vmul.f32 %v14195_v29, %v491_v20  ;;  %v6433_v26 = vmax.f32 %v14195_v29, 0.0  ;;  %v7171_v1 = vmul.f32 0.6931472, %v9751_v14  ;;  %v7235_v56 = vmul.f32 -0.5, %v14246_v23  ;;  %v5755_v10 = vpop.f32.mrb[73].mxu0 }
 0x70b   : > { %16514 = vst [vmem:[#allocation50_spill] sm:$0xff] %v14270_v4  ;;  %v7223_v24 = vadd.f32 1.0, %v14268_v9  ;;  %v497_v32 = vunpack.c.l.bf16 %v14282_v21  ;;  %v7218_v50 = vadd.f32 1.0, %v7217_v43  ;;  %v14285_v4 = vsub.f32 %v6319_v33, %v6431_v48  ;;  %v16520_v43 = vld [vmem:[#allocation46_spill] sm:$0xff] }
 0x70c   : > { %v6325_v20 = vmul.f32 %v14202_v2, %v495_v42  ;;  %v5991_v29 = vsub.f32 0.0, %v5879_v38  ;;  %v7180_v39 = vmul.f32 0.6931472, %v9753_v0  ;;  %vm14290_vm4 = vcmp.lt.f32.partialorder %v7220_v36, 0.0004427343 }
 0x70d   : > { %9762 = vlog2.f32 %v7223_v24  ;;  %v6437_v47 = vmax.f32 %v14202_v2, 0.0  ;;  %v14297_v18 = vadd.f32 %v13529_v59, %v13008_v35  ;;  %v14299_v33 = vsub.f32 %v6321_v31, %v6433_v26  ;;  %v14310_v59 = vpop.f32.mrb[174].mxu1 }
 0x70e   : > { %9764 = vlog2.f32 %v7232_v40  ;;  %v6182_v48 = vmul.f32 1.442695, %v5991_v29  ;;  %v14303_v42 = vadd.f32 %v16520_v43, %v13010_v57  ;;  %v9757_v0 = vpop.eup %9756  ;;  %v7177_v36 = vsel %vm14238_vm14, %v14249_v11, %v7171_v1  ;;  %16521 = vst [vmem:[#allocation46_spill] sm:$0xff] %v14310_v59  ;;  %v14312_v40 = vpop.f32.mrb[74].mxu0 }
 0x70f   : > { %v7236_v38 = vadd.f32 1.0, %v7235_v56  ;;  %v6327_v2 = vmul.f32 %v14244_v62, %v497_v32  ;;  %v5878_v24 = vand.u32 2147483647, %v14297_v18  ;;  %16522 = vst [vmem:[#allocation54_spill] sm:$0xff] %v14312_v40  ;;  %v14314_v31 = vpop.eup %9758  ;;  %v7226_v26 = vmul.f32 -0.5, %v14268_v9  ;;  %v5758_v60 = vpop.f32.mrb[75].mxu0 }
 0x710   : > { %9766 = vpow2.f32 %v6182_v48  ;;  %v6439_v10 = vmax.f32 %v14244_v62, 0.0  ;;  %v5880_v29 = vand.u32 2147483647, %v14303_v42  ;;  %v7186_v11 = vsel %vm14262_vm15, %v7183_v61, %v7180_v39  ;;  %v14324_v43 = vpop.f32.mrb[175].mxu1 }
 0x711   : > { %v7219_v1 = vmul.f32 %v14204_v16, %v7218_v50  ;;  %v7238_v56 = vand.u32 2147483647, %v14246_v23  ;;  %v7241_v32 = vadd.f32 1.0, %v14314_v31  ;;  %16523 = vst [vmem:[#allocation55_spill] sm:$0xff] %v14324_v43  ;;  %v7216_v59 = vmul.f32 0.6931472, %v9757_v0 }
 0x712   : > { %v14326_v40 = vpop.eup %9760  ;;  %v496_v48 = vunpack.c.h.bf16 %v14258_v58  ;;  %v5990_v62 = vsub.f32 0.0, %v5878_v24  ;;  %v5992_v27 = vsub.f32 0.0, %v5880_v29  ;;  %v14330_v60 = vsub.f32 %v14120_v55, %v7177_v36  ;;  %v14362_v14 = vpop.f32.mrb[176].mxu1 }
 0x713   : > { %v7229_v39 = vand.u32 2147483647, %v14268_v9  ;;  %v14333_v61 = vsub.f32 %v6325_v20, %v6437_v47  ;;  %v7277_v16 = vadd.f32 1.0, %v14326_v40  ;;  %v14337_v7 = vsub.f32 %v14172_v51, %v7186_v11  ;;  %v14364_v24 = vpop.f32.mrb[76].mxu0  ;;  %v14371_v29 = vpop.f32.mrb[177].mxu1 }
 0x714   : > { %16524 = vst [vmem:[#allocation56_spill] sm:$0xff] %v14330_v60  ;;  %v14340_v50 = vmul.f32 %v14246_v23, %v7236_v38  ;;  %v7227_v0 = vadd.f32 1.0, %v7226_v26  ;;  %v14342_v43 = vsub.f32 %v6327_v2, %v6439_v10  ;;  %9768 = vlog2.f32 %v7241_v32  ;;  %v5763_v11 = vpop.f32.mrb[77].mxu0 }
 0x715   : > { %16525 = vst [vmem:[#allocation57_spill] sm:$0xff] %v14337_v7  ;;  %v6180_v58 = vmul.f32 1.442695, %v5990_v62  ;;  %v498_v55 = vunpack.c.h.bf16 %v14282_v21  ;;  %v6184_v36 = vmul.f32 1.442695, %v5992_v27  ;;  %v7222_v47 = vsel %vm14290_vm4, %v7219_v1, %v7216_v59 }
 0x716   : > { %vm14347_vm3 = vcmp.lt.f32.partialorder %v7238_v56, 0.0004427343  ;;  %9770 = vlog2.f32 %v7277_v16  ;;  %v6326_v51 = vmul.f32 %v14297_v18, %v496_v48  ;;  %v6438_v23 = vmax.f32 %v14297_v18, 0.0 }
 0x717   : > { %v9763_v38 = vpop.eup %9762  ;;  %vm14353_vm2 = vcmp.lt.f32.partialorder %v7229_v39, 0.0004427343  ;;  %v7244_v21 = vmul.f32 -0.5, %v14314_v31  ;;  %9772 = vpow2.f32 %v6180_v58  ;;  %v14360_v27 = vadd.f32 %v13585_v54, %v13001_v30 }
 0x718   : > { %v9765_v59 = vpop.eup %9764  ;;  %v7225_v26 = vmul.f32 0.6931472, %v9763_v38  ;;  %v7228_v18 = vmul.f32 %v14268_v9, %v7227_v0  ;;  %9774 = vpow2.f32 %v6184_v36  ;;  %v14369_v10 = vadd.f32 %v13597_v46, %v13003_v6 }
 0x719   : > { %v7662_v54 = vsub.f32 %v14175_v53, %v7222_v47  ;;  %v7247_v1 = vand.u32 2147483647, %v14314_v31  ;;  %v6328_v56 = vmul.f32 %v14303_v42, %v498_v55  ;;  %v5884_v32 = vand.u32 2147483647, %v14360_v27  ;;  %v14387_v55 = vpop.f32.mrb[178].mxu1  ;;  %v10062_v47 = vld [vmem:[%s10206_s12 + $0x150] sm:$0xff] }
 0x71a   : > { %v14377_v48 = vpop.eup %9766  ;;  %v7231_v9 = vsel %vm14353_vm2, %v7228_v18, %v7225_v26  ;;  %v14381_v62 = vsub.f32 %v6326_v51, %v6438_v23  ;;  %v6440_v46 = vmax.f32 %v14303_v42, 0.0  ;;  %v5886_v39 = vand.u32 2147483647, %v14369_v10  ;;  %v14391_v23 = vpop.f32.mrb[78].mxu0 }
 0x71b   : > { %v7234_v16 = vmul.f32 0.6931472, %v9765_v59  ;;  %v7663_v53 = vsub.f32 %v14285_v4, %v7231_v9  ;;  %v7245_v0 = vadd.f32 1.0, %v7244_v21  ;;  %v7295_v58 = vadd.f32 1.0, %v14377_v48  ;;  %16530 = vst [vmem:[#allocation58_spill] sm:$0xff] %v14391_v23  ;;  %v14401_v21 = vld [vmem:[%s10206_s12 + $0x158] sm:$0xff] }
 0x71c   : > { %v7280_v36 = vmul.f32 -0.5, %v14326_v40  ;;  %v502_v38 = vunpack.c.l.bf16 %v10062_v47  ;;  %v5996_v2 = vsub.f32 0.0, %v5884_v32  ;;  %v5998_v51 = vsub.f32 0.0, %v5886_v39  ;;  %v5766_v18 = vpop.f32.mrb[79].mxu0  ;;  %v14415_v7 = vpop.f32.mrb[179].mxu1 }
 0x71d   : > { %v14393_v42 = vadd.f32 %v7663_v53, %v7662_v54  ;;  %vm14395_vm6 = vcmp.lt.f32.partialorder %v7247_v1, 0.0004427343  ;;  %v7283_v4 = vand.u32 2147483647, %v14326_v40  ;;  %v504_v59 = vunpack.c.l.bf16 %v14401_v21  ;;  %16534 = vst [vmem:[#allocation60_spill] sm:$0xff] %v14415_v7 }
 0x71e   : > { %v7298_v11 = vmul.f32 -0.5, %v14377_v48  ;;  %v6192_v9 = vmul.f32 1.442695, %v5996_v2  ;;  %v6196_v32 = vmul.f32 1.442695, %v5998_v51  ;;  %v14407_v39 = vadd.f32 %v13610_v45, %v13008_v35  ;;  %v9769_v54 = vpop.eup %9768 }
 0x71f   : > { %16531 = vst [vmem:[#allocation59_spill] sm:$0xff] %v14393_v42  ;;  %v7240_v1 = vsel %vm14347_vm3, %v14340_v50, %v7234_v16  ;;  %v7246_v53 = vmul.f32 %v14314_v31, %v7245_v0  ;;  %9776 = vlog2.f32 %v7295_v58  ;;  %v14413_v42 = vsub.f32 %v6328_v56, %v6440_v46 }
 0x720   : > { %v9771_v18 = vpop.eup %9770  ;;  %v7281_v60 = vadd.f32 1.0, %v7280_v36  ;;  %9778 = vpow2.f32 %v6192_v9  ;;  %v6332_v2 = vmul.f32 %v14360_v27, %v502_v38  ;;  %v5885_v45 = vand.u32 2147483647, %v14407_v39 }
 0x721   : > { %v14419_v51 = vpop.eup %9772  ;;  %v6444_v23 = vmax.f32 %v14360_v27, 0.0  ;;  %9780 = vpow2.f32 %v6196_v32  ;;  %v6334_v50 = vmul.f32 %v14369_v10, %v504_v59  ;;  %v6446_v31 = vmax.f32 %v14369_v10, 0.0 }
 0x722   : > { %v14424_v20 = vpop.eup %9774  ;;  %v7243_v56 = vmul.f32 0.6931472, %v9769_v54  ;;  %v7299_v46 = vadd.f32 1.0, %v7298_v11  ;;  %v7286_v16 = vadd.f32 1.0, %v14419_v51  ;;  %v14429_v0 = vadd.f32 %v13650_v41, %v13010_v57  ;;  %v14446_v54 = vpop.f32.mrb[180].mxu1 }
 0x723   : > { %v14432_v58 = vsub.f32 %v14216_v8, %v7240_v1  ;;  %v7279_v36 = vmul.f32 0.6931472, %v9771_v18  ;;  %vm14434_vm7 = vcmp.lt.f32.partialorder %v7283_v4, 0.0004427343  ;;  %v503_v38 = vunpack.c.h.bf16 %v10062_v47  ;;  %16538 = vst [vmem:[#allocation62_spill] sm:$0xff] %v14446_v54  ;;  %v14448_v4 = vpop.f32.mrb[80].mxu0 }
 0x724   : > { %v7282_v10 = vmul.f32 %v14326_v40, %v7281_v60  ;;  %v7301_v59 = vand.u32 2147483647, %v14377_v48  ;;  %9782 = vlog2.f32 %v7286_v16  ;;  %v5997_v11 = vsub.f32 0.0, %v5885_v45  ;;  %16539 = vst [vmem:[#allocation63_spill] sm:$0xff] %v14448_v4  ;;  %v14456_v18 = vpop.f32.mrb[181].mxu1  ;;  %v5771_v45 = vpop.f32.mrb[81].mxu0 }
 0x725   : > { %16535 = vst [vmem:[#allocation61_spill] sm:$0xff] %v14432_v58  ;;  %v7289_v9 = vmul.f32 -0.5, %v14419_v51  ;;  %v7304_v41 = vadd.f32 1.0, %v14424_v20  ;;  %v14442_v32 = vsub.f32 %v6332_v2, %v6444_v23  ;;  %v14444_v8 = vsub.f32 %v6334_v50, %v6446_v31  ;;  %16540 = vst [vmem:[#allocation64_spill] sm:$0xff] %v14456_v18  ;;  %v16541_v31 = vld [vmem:[#allocation4_spill] sm:$0xff]  ;;  %v14473_v16 = vpop.f32.mrb[82].mxu0 }
 0x726   : > { %v7249_v47 = vsel %vm14395_vm6, %v7246_v53, %v7243_v56  ;;  %v14453_v40 = vmul.f32 %v14377_v48, %v7299_v46  ;;  %v6194_v60 = vmul.f32 1.442695, %v5997_v11  ;;  %v5887_v1 = vand.u32 2147483647, %v14429_v0  ;;  %v14471_v46 = vpop.f32.mrb[182].mxu1  ;;  %16543 = vst [vmem:[#allocation65_spill] sm:$0xff] %v14473_v16 }
 0x727   : > { %v7285_v23 = vsel %vm14434_vm7, %v7282_v10, %v7279_v36  ;;  %v7292_v2 = vand.u32 2147483647, %v14419_v51  ;;  %v6333_v50 = vmul.f32 %v14407_v39, %v503_v38  ;;  %v14464_v26 = vadd.f32 %v13682_v25, %v13001_v30  ;;  %16542 = vst [vmem:[#allocation4_spill] sm:$0xff] %v14471_v46  ;;  %v5774_v11 = vpop.f32.mrb[83].mxu0  ;;  %v14488_v58 = vld [vmem:[%s10206_s12 + $0x16c] sm:$0xff]  ;;  %v14510_v54 = vld [vmem:[%s10206_s12 + $0x174] sm:$0xff] }
 0x728   : > { %v7307_v48 = vmul.f32 -0.5, %v14424_v20  ;;  %9784 = vpow2.f32 %v6194_v60  ;;  %v5999_v53 = vsub.f32 0.0, %v5887_v1  ;;  %v14469_v56 = vadd.f32 %v16541_v31, %v13003_v6 }
 0x729   : > { %v9777_v36 = vpop.eup %9776  ;;  %vm14475_vm1 = vcmp.lt.f32.partialorder %v7301_v59, 0.0004427343  ;;  %v7290_v25 = vadd.f32 1.0, %v7289_v9  ;;  %9786 = vlog2.f32 %v7304_v41  ;;  %v6445_v38 = vmax.f32 %v14407_v39, 0.0 }
 0x72a   : > { %v5891_v10 = vand.u32 2147483647, %v14464_v26  ;;  %v14481_v60 = vpop.eup %9778  ;;  %v14484_v1 = vsub.f32 %v14299_v33, %v7249_v47  ;;  %v505_v45 = vunpack.c.h.bf16 %v14401_v21  ;;  %v6198_v31 = vmul.f32 1.442695, %v5999_v53  ;;  %v14502_v53 = vpop.f32.mrb[183].mxu1 }
 0x72b   : > { %v509_v59 = vunpack.c.l.bf16 %v14488_v58  ;;  %v14491_v16 = vpop.eup %9780  ;;  %v7669_v9 = vsub.f32 %v14333_v61, %v7285_v23  ;;  %v7310_v39 = vand.u32 2147483647, %v14424_v20  ;;  %v7340_v41 = vadd.f32 1.0, %v14481_v60  ;;  %16549 = vst [vmem:[#allocation67_spill] sm:$0xff] %v14502_v53 }
 0x72c   : > { %16546 = vst [vmem:[#allocation66_spill] sm:$0xff] %v14484_v1  ;;  %v5893_v11 = vand.u32 2147483647, %v14469_v56  ;;  %vm14497_vm8 = vcmp.lt.f32.partialorder %v7292_v2, 0.0004427343  ;;  %v7308_v21 = vadd.f32 1.0, %v7307_v48  ;;  %9788 = vpow2.f32 %v6198_v31 }
 0x72d   : > { %v7358_v47 = vadd.f32 1.0, %v14491_v16  ;;  %v7291_v1 = vmul.f32 %v14419_v51, %v7290_v25  ;;  %9790 = vlog2.f32 %v7340_v41  ;;  %v14505_v61 = vsub.f32 %v6333_v50, %v6445_v38  ;;  %v14531_v41 = vpop.f32.mrb[84].mxu0 }
 0x72e   : > { %v6003_v23 = vsub.f32 0.0, %v5891_v10  ;;  %v9783_v46 = vpop.eup %9782  ;;  %v7297_v18 = vmul.f32 0.6931472, %v9777_v36  ;;  %v6335_v4 = vmul.f32 %v14429_v0, %v505_v45  ;;  %v6447_v2 = vmax.f32 %v14429_v0, 0.0  ;;  %v16552_v10 = vld [vmem:[#allocation38_spill] sm:$0xff] }
 0x72f   : > { %v511_v48 = vunpack.c.l.bf16 %v14510_v54  ;;  %v7288_v7 = vmul.f32 0.6931472, %v9783_v46  ;;  %9792 = vlog2.f32 %v7358_v47  ;;  %v6005_v53 = vsub.f32 0.0, %v5893_v11  ;;  %16553 = vst [vmem:[#allocation38_spill] sm:$0xff] %v14531_v41  ;;  %v5779_v47 = vpop.f32.mrb[85].mxu0 }
 0x730   : > { %v6206_v31 = vmul.f32 1.442695, %v6003_v23  ;;  %v14514_v51 = vmul.f32 %v14424_v20, %v7308_v21  ;;  %v7343_v50 = vmul.f32 -0.5, %v14481_v60  ;;  %v7346_v25 = vand.u32 2147483647, %v14481_v60  ;;  %v14529_v20 = vpop.f32.mrb[184].mxu1 }
 0x731   : > { %v7361_v36 = vmul.f32 -0.5, %v14491_v16  ;;  %v7294_v0 = vsel %vm14497_vm8, %v7291_v1, %v7288_v7  ;;  %vm14521_vm9 = vcmp.lt.f32.partialorder %v7310_v39, 0.0004427343  ;;  %v6210_v46 = vmul.f32 1.442695, %v6005_v53  ;;  %v14541_v21 = vpop.f32.mrb[185].mxu1 }
 0x732   : > { %9794 = vpow2.f32 %v6206_v31  ;;  %v14527_v45 = vadd.f32 %v16552_v10, %v13008_v35  ;;  %v14533_v11 = vpop.eup %9784  ;;  %v7303_v7 = vsel %vm14475_vm1, %v14453_v40, %v7297_v18  ;;  %v7670_v1 = vsub.f32 %v14381_v62, %v7294_v0  ;;  %v14551_v18 = vpop.f32.mrb[186].mxu1 }
 0x733   : > { %v6339_v39 = vmul.f32 %v14464_v26, %v509_v59  ;;  %v6451_v33 = vmax.f32 %v14464_v26, 0.0  ;;  %v9787_v53 = vpop.eup %9786  ;;  %v7364_v23 = vand.u32 2147483647, %v14491_v16  ;;  %v7349_v31 = vadd.f32 1.0, %v14533_v11  ;;  %16555 = vst [vmem:[#allocation69_spill] sm:$0xff] %v14551_v18  ;;  %v14553_v26 = vpop.f32.mrb[86].mxu0 }
 0x734   : > { %v14545_v10 = vsub.f32 %v6335_v4, %v6447_v2  ;;  %v6341_v41 = vmul.f32 %v14469_v56, %v511_v48  ;;  %v14548_v27 = vadd.f32 %v7670_v1, %v7669_v9  ;;  %v7344_v40 = vadd.f32 1.0, %v7343_v50  ;;  %16556 = vst [vmem:[#allocation70_spill] sm:$0xff] %v14553_v26  ;;  %v5782_v2 = vpop.f32.mrb[87].mxu0  ;;  %v16560_v1 = vld [vmem:[#allocation26_spill] sm:$0xff]  ;;  %v14583_v18 = vpop.f32.mrb[187].mxu1 }
 0x735   : > { %9796 = vpow2.f32 %v6210_v46  ;;  %v5892_v62 = vand.u32 2147483647, %v14527_v45  ;;  %v14556_v59 = vsub.f32 %v14342_v43, %v7303_v7  ;;  %vm14558_vm11 = vcmp.lt.f32.partialorder %v7346_v25, 0.0004427343  ;;  %16564 = vst [vmem:[#allocation26_spill] sm:$0xff] %v14583_v18 }
 0x736   : > { %16554 = vst [vmem:[#allocation68_spill] sm:$0xff] %v14548_v27  ;;  %v7362_v4 = vadd.f32 1.0, %v7361_v36  ;;  %9798 = vlog2.f32 %v7349_v31  ;;  %v9789_v9 = vpop.eup %9788  ;;  %v7306_v48 = vmul.f32 0.6931472, %v9787_v53  ;;  %v14562_v50 = vsub.f32 %v6339_v39, %v6451_v33 }
 0x737   : > { %16557 = vst [vmem:[#allocation71_spill] sm:$0xff] %v14556_v59  ;;  %v6004_v46 = vsub.f32 0.0, %v5892_v62  ;;  %v14566_v47 = vadd.f32 %v16560_v1, %v13010_v57  ;;  %v9791_v27 = vpop.eup %9790  ;;  %vm14568_vm5 = vcmp.lt.f32.partialorder %v7364_v23, 0.0004427343  ;;  %v7352_v25 = vmul.f32 -0.5, %v14533_v11  ;;  %v16563_v59 = vld [vmem:[#allocation23_spill] sm:$0xff] }
 0x738   : > { %v7367_v7 = vadd.f32 1.0, %v9789_v9  ;;  %v6453_v36 = vmax.f32 %v14469_v56, 0.0  ;;  %v510_v31 = vunpack.c.h.bf16 %v14488_v58  ;;  %v7345_v39 = vmul.f32 %v14481_v60, %v7344_v40 }
 0x739   : > { %v7355_v33 = vand.u32 2147483647, %v14533_v11  ;;  %v6208_v53 = vmul.f32 1.442695, %v6004_v46  ;;  %v5894_v62 = vand.u32 2147483647, %v14566_v47  ;;  %v9793_v2 = vpop.eup %9792  ;;  %v7363_v23 = vmul.f32 %v14491_v16, %v7362_v4 }
 0x73a   : > { %9800 = vlog2.f32 %v7367_v7  ;;  %v7370_v1 = vmul.f32 -0.5, %v9789_v9  ;;  %v14581_v26 = vadd.f32 %v16563_v59, %v13001_v30  ;;  %v7312_v58 = vsel %vm14521_vm9, %v14514_v51, %v7306_v48 }
 0x73b   : > { %v7342_v56 = vmul.f32 0.6931472, %v9791_v27  ;;  %9802 = vpow2.f32 %v6208_v53  ;;  %v6006_v60 = vsub.f32 0.0, %v5894_v62  ;;  %v7353_v46 = vadd.f32 1.0, %v7352_v25 }
 0x73c   : > { %v14588_v40 = vpop.eup %9794  ;;  %v14590_v16 = vsub.f32 %v6341_v41, %v6453_v36  ;;  %v6340_v4 = vmul.f32 %v14527_v45, %v510_v31  ;;  %v6452_v59 = vmax.f32 %v14527_v45, 0.0  ;;  %v7360_v7 = vmul.f32 0.6931472, %v9793_v2 }
 0x73d   : > { %vm14594_vm12 = vcmp.lt.f32.partialorder %v7355_v33, 0.0004427343  ;;  %v7403_v51 = vadd.f32 1.0, %v14588_v40  ;;  %v512_v38 = vunpack.c.h.bf16 %v14510_v54  ;;  %v14601_v27 = vsub.f32 %v14413_v42, %v7312_v58  ;;  %v14609_v33 = vld [vmem:[%s10206_s12 + $0x188] sm:$0xff] }
 0x73e   : > { %v7371_v48 = vadd.f32 1.0, %v7370_v1  ;;  %v6212_v25 = vmul.f32 1.442695, %v6006_v60  ;;  %v5898_v41 = vand.u32 2147483647, %v14581_v26  ;;  %v7348_v45 = vsel %vm14558_vm11, %v7345_v39, %v7342_v56 }
 0x73f   : > { %16567 = vst [vmem:[#allocation23_spill] sm:$0xff] %v14601_v27  ;;  %v14604_v36 = vpop.eup %9796  ;;  %v7373_v31 = vand.u32 2147483647, %v9789_v9  ;;  %9804 = vlog2.f32 %v7403_v51  ;;  %v516_v53 = vunpack.c.l.bf16 %v14609_v33  ;;  %v7354_v54 = vmul.f32 %v14533_v11, %v7353_v46 }
 0x740   : > { %v9799_v62 = vpop.eup %9798  ;;  %v7421_v42 = vadd.f32 1.0, %v14604_v36  ;;  %v14614_v2 = vsub.f32 %v6340_v4, %v6452_v59  ;;  %9806 = vpow2.f32 %v6212_v25  ;;  %v7366_v1 = vsel %vm14568_vm5, %v7363_v23, %v7360_v7  ;;  %v16570_v23 = vld [vmem:[#allocation40_spill] sm:$0xff]  ;;  %v16572_v59 = vld [vmem:[#allocation45_spill] sm:$0xff] }
 0x741   : > { %v7351_v58 = vmul.f32 0.6931472, %v9799_v62  ;;  %v7406_v0 = vmul.f32 -0.5, %v14588_v40  ;;  %v6010_v39 = vsub.f32 0.0, %v5898_v41  ;;  %v7676_v56 = vsub.f32 %v14442_v32, %v7348_v45 }
 0x742   : > { %v7372_v60 = vmul.f32 %v9789_v9, %v7371_v48  ;;  %v6342_v51 = vmul.f32 %v14566_v47, %v512_v38  ;;  %v6454_v27 = vmax.f32 %v14566_v47, 0.0  ;;  %vm14624_vm13 = vcmp.lt.f32.partialorder %v7373_v31, 0.0004427343 }
 0x743   : > { %v7357_v11 = vsel %vm14594_vm12, %v7354_v54, %v7351_v58  ;;  %9808 = vlog2.f32 %v7421_v42  ;;  %v6220_v43 = vmul.f32 1.442695, %v6010_v39  ;;  %v14630_v4 = vadd.f32 %v16570_v23, %v13003_v6  ;;  %v10067_v54 = vld [vmem:[%s10206_s12 + $0x190] sm:$0xff] }
 0x744   : > { %v9801_v32 = vpop.eup %9800  ;;  %v14633_v9 = vsub.f32 %v14444_v8, %v7366_v1  ;;  %v7677_v47 = vsub.f32 %v14505_v61, %v7357_v11  ;;  %v7409_v18 = vand.u32 2147483647, %v14588_v40  ;;  %v14639_v7 = vadd.f32 %v16572_v59, %v13008_v35 }
 0x745   : > { %v9803_v38 = vpop.eup %9802  ;;  %v7407_v48 = vadd.f32 1.0, %v7406_v0  ;;  %9810 = vpow2.f32 %v6220_v43  ;;  %v6346_v25 = vmul.f32 %v14581_v26, %v516_v53  ;;  %v5900_v41 = vand.u32 2147483647, %v14630_v4 }
 0x746   : > { %16571 = vst [vmem:[#allocation40_spill] sm:$0xff] %v14633_v9  ;;  %v14643_v45 = vadd.f32 %v7677_v47, %v7676_v56  ;;  %v7424_v8 = vmul.f32 -0.5, %v14604_v36  ;;  %v7412_v31 = vadd.f32 1.0, %v9803_v38  ;;  %v6458_v61 = vmax.f32 %v14581_v26, 0.0 }
 0x747   : > { %v7427_v62 = vand.u32 2147483647, %v14604_v36  ;;  %v518_v42 = vunpack.c.l.bf16 %v10067_v54  ;;  %v6012_v1 = vsub.f32 0.0, %v5900_v41  ;;  %v5899_v58 = vand.u32 2147483647, %v14639_v7 }
 0x748   : > { %16573 = vst [vmem:[#allocation45_spill] sm:$0xff] %v14643_v45  ;;  %v7369_v0 = vmul.f32 0.6931472, %v9801_v32  ;;  %vm14650_vm14 = vcmp.lt.f32.partialorder %v7409_v18, 0.0004427343  ;;  %9812 = vlog2.f32 %v7412_v31  ;;  %v14654_v53 = vsub.f32 %v6342_v51, %v6454_v27  ;;  %v16576_v32 = vld [vmem:[#allocation28_spill] sm:$0xff] }
 0x749   : > { %v9805_v56 = vpop.eup %9804  ;;  %v7415_v11 = vmul.f32 -0.5, %v9803_v38  ;;  %v6224_v43 = vmul.f32 1.442695, %v6012_v1  ;;  %v517_v26 = vunpack.c.h.bf16 %v14609_v33  ;;  %v6011_v23 = vsub.f32 0.0, %v5899_v58 }
 0x74a   : > { %v9807_v47 = vpop.eup %9806  ;;  %v7408_v59 = vmul.f32 %v14588_v40, %v7407_v48  ;;  %v7425_v41 = vadd.f32 1.0, %v7424_v8  ;;  %v14658_v45 = vsub.f32 %v6346_v25, %v6458_v61  ;;  %v14662_v18 = vadd.f32 %v16576_v32, %v13010_v57 }
 0x74b   : > { %vm14664_vm15 = vcmp.lt.f32.partialorder %v7427_v62, 0.0004427343  ;;  %v7418_v27 = vand.u32 2147483647, %v9803_v38  ;;  %v7430_v51 = vadd.f32 1.0, %v9807_v47  ;;  %9814 = vpow2.f32 %v6224_v43 }
 0x74c   : > { %v6348_v33 = vmul.f32 %v14630_v4, %v518_v42  ;;  %v7375_v1 = vsel %vm14624_vm13, %v7372_v60, %v7369_v0  ;;  %v7405_v40 = vmul.f32 0.6931472, %v9805_v56  ;;  %v6222_v48 = vmul.f32 1.442695, %v6011_v23 }
 0x74d   : > { %v5901_v25 = vand.u32 2147483647, %v14662_v18  ;;  %v9809_v8 = vpop.eup %9808  ;;  %v7416_v61 = vadd.f32 1.0, %v7415_v11  ;;  %9816 = vlog2.f32 %v7430_v51  ;;  %v6460_v62 = vmax.f32 %v14630_v4, 0.0 }
 0x74e   : > { %v6347_v58 = vmul.f32 %v14639_v7, %v517_v26  ;;  %v7433_v32 = vmul.f32 -0.5, %v9807_v47  ;;  %9818 = vpow2.f32 %v6222_v48  ;;  %v6459_v43 = vmax.f32 %v14639_v7, 0.0 }
 0x74f   : > { %v6013_v9 = vsub.f32 0.0, %v5901_v25  ;;  %v14675_v42 = vpop.eup %9810  ;;  %v14678_v60 = vsub.f32 %v14545_v10, %v7375_v1  ;;  %v7426_v46 = vmul.f32 %v14604_v36, %v7425_v41  ;;  %vm14681_vm4 = vcmp.lt.f32.partialorder %v7418_v27, 0.0004427343 }
 0x750   : > { %v519_v56 = vunpack.c.h.bf16 %v10067_v54  ;;  %v7411_v4 = vsel %vm14650_vm14, %v7408_v59, %v7405_v40  ;;  %v7423_v11 = vmul.f32 0.6931472, %v9809_v8  ;;  %v7436_v26 = vand.u32 2147483647, %v9807_v47 }
 0x751   : > { %16579 = vst [vmem:[#allocation28_spill] sm:$0xff] %v14678_v60  ;;  %v7466_v7 = vadd.f32 1.0, %v14675_v42  ;;  %v7417_v23 = vmul.f32 %v9803_v38, %v7416_v61  ;;  %v14688_v51 = vsub.f32 %v6348_v33, %v6460_v62  ;;  %v6226_v48 = vmul.f32 1.442695, %v6013_v9  ;;  %v14716_v61 = vld [vmem:[%s10206_s12 + $0x1a4] sm:$0xff] }
 0x752   : > { %v14692_v10 = vadd.f32 %v13917_v63, %v13001_v30  ;;  %v9813_v36 = vpop.eup %9812  ;;  %v7434_v41 = vadd.f32 1.0, %v7433_v32  ;;  %v14694_v27 = vsub.f32 %v6347_v58, %v6459_v43  ;;  %v14698_v54 = vadd.f32 %v13941_v5, %v13003_v6  ;;  %v14719_v58 = vpop.f32.mrb[188].mxu1  ;;  %v10072_v60 = vld [vmem:[%s10206_s12 + $0x18] sm:$0xf] }
 0x753   : > { %9820 = vlog2.f32 %v7466_v7  ;;  %v7683_v39 = vsub.f32 %v14562_v50, %v7411_v4  ;;  %v7414_v38 = vmul.f32 0.6931472, %v9813_v36  ;;  %v7429_v30 = vsel %vm14664_vm15, %v7426_v46, %v7423_v11  ;;  %v14721_v32 = vpop.f32.mrb[88].mxu0 }
 0x754   : > { %9822 = vpow2.f32 %v6226_v48  ;;  %v5905_v9 = vand.u32 2147483647, %v14692_v10  ;;  %vm14704_vm3 = vcmp.lt.f32.partialorder %v7436_v26, 0.0004427343  ;;  %v6349_v59 = vmul.f32 %v14662_v18, %v519_v56  ;;  %v14724_v56 = vld [vmem:[%s10206_s12 + $0x1ac] sm:$0xff]  ;;  %v5787_v11 = vpop.f32.mrb[89].mxu0 }
 0x755   : > { %v5907_v33 = vand.u32 2147483647, %v14698_v54  ;;  %v9815_v6 = vpop.eup %9814  ;;  %v7420_v5 = vsel %vm14681_vm4, %v7417_v23, %v7414_v38  ;;  %v7469_v50 = vmul.f32 -0.5, %v14675_v42  ;;  %v6461_v1 = vmax.f32 %v14662_v18, 0.0 }
 0x756   : > { %v6017_v40 = vsub.f32 0.0, %v5905_v9  ;;  %v7684_v31 = vsub.f32 %v14614_v2, %v7420_v5  ;;  %v7435_v25 = vmul.f32 %v9807_v47, %v7434_v41  ;;  %v7484_v8 = vadd.f32 1.0, %v9815_v6 }
 0x757   : > { %v523_v62 = vunpack.c.l.bf16 %v14716_v61  ;;  %v9817_v43 = vpop.eup %9816  ;;  %v7487_v46 = vmul.f32 -0.5, %v9815_v6  ;;  %v525_v18 = vunpack.c.l.bf16 %v14724_v56  ;;  %v6019_v4 = vsub.f32 0.0, %v5907_v33 }
 0x758   : > { %v6234_v0 = vmul.f32 1.442695, %v6017_v40  ;;  %v9819_v2 = vpop.eup %9818  ;;  %v14728_v47 = vsub.f32 %v14590_v16, %v7429_v30  ;;  %v14730_v26 = vadd.f32 %v7684_v31, %v7683_v39  ;;  %v7472_v7 = vand.u32 2147483647, %v14675_v42  ;;  %v14786_v31 = vld [vmem:[%s10206_s12 + $0x10] sm:$0xff] }
 0x759   : > { %9824 = vlog2.f32 %v7484_v8  ;;  %v7432_v23 = vmul.f32 0.6931472, %v9817_v43  ;;  %v7470_v48 = vadd.f32 1.0, %v7469_v50  ;;  %v7475_v36 = vadd.f32 1.0, %v9819_v2 }
 0x75a   : > { %16584 = vst [vmem:[#allocation72_spill] sm:$0xff] %v14728_v47  ;;  %16585 = vst [vmem:[#allocation73_spill] sm:$0xff] %v14730_v26  ;;  %v14733_v41 = vsub.f32 %v6349_v59, %v6461_v1  ;;  %9826 = vpow2.f32 %v6234_v0  ;;  %v6353_v38 = vmul.f32 %v14692_v10, %v523_v62  ;;  %v6465_v9 = vmax.f32 %v14692_v10, 0.0 }
 0x75b   : > { %v6238_v33 = vmul.f32 1.442695, %v6019_v4  ;;  %v7488_v5 = vadd.f32 1.0, %v7487_v46  ;;  %9828 = vlog2.f32 %v7475_v36  ;;  %v6355_v16 = vmul.f32 %v14698_v54, %v525_v18 }
 0x75c   : > { %v6467_v39 = vmax.f32 %v14698_v54, 0.0  ;;  %v7478_v40 = vmul.f32 -0.5, %v9819_v2  ;;  %v5475_v50 = vadd.f32 %v13973_v13, %v13008_v35  ;;  %v14743_v59 = vadd.f32 %v13999_v44, %v13010_v57  ;;  %v16588_v35 = vld [vmem:[#allocation2_spill] sm:$0xff] }
 0x75d   : > { %v9821_v30 = vpop.eup %9820  ;;  %9830 = vpow2.f32 %v6238_v33  ;;  %v7438_v10 = vsel %vm14704_vm3, %v7435_v25, %v7432_v23  ;;  %vm14749_vm2 = vcmp.lt.f32.partialorder %v7472_v7, 0.0004427343  ;;  %v7490_v54 = vand.u32 2147483647, %v9815_v6 }
 0x75e   : > { %v14745_v1 = vpop.eup %9822  ;;  %v7481_v8 = vand.u32 2147483647, %v9819_v2  ;;  %v7468_v62 = vmul.f32 0.6931472, %v9821_v30  ;;  %v5906_v46 = vand.u32 2147483647, %v5475_v50  ;;  %v7471_v57 = vmul.f32 %v14675_v42, %v7470_v48 }
 0x75f   : > { %v7493_v43 = vadd.f32 1.0, %v14745_v1  ;;  %v4852_v13 = vsub.s32 4, %v16588_v35  ;;  %v14756_v44 = vsub.f32 %v6353_v38, %v6465_v9  ;;  %v524_v0 = vunpack.c.h.bf16 %v14716_v61  ;;  %v10070_v38 = vld [vmem:[%s16024_s6] sm:$0x7f] }
 0x760   : > { %v5908_v63 = vand.u32 2147483647, %v14743_v59  ;;  %v14760_v25 = vmul.f32 %v9815_v6, %v7488_v5  ;;  %v7479_v18 = vadd.f32 1.0, %v7478_v40  ;;  %v14762_v4 = vsub.f32 %v6355_v16, %v6467_v39 }
 0x761   : > { %9832 = vlog2.f32 %v7493_v43  ;;  %v14765_v11 = vsub.f32 %v14654_v53, %v7438_v10  ;;  %vm14767_vm6 = vcmp.lt.f32.partialorder %v7490_v54, 0.0004427343  ;;  %v7496_v42 = vmul.f32 -0.5, %v14745_v1  ;;  %v14793_v43 = vpop.f32.mrb[90].mxu0 }
 0x762   : > { %v6018_v23 = vsub.f32 0.0, %v5906_v46  ;;  %v6020_v61 = vsub.f32 0.0, %v5908_v63  ;;  %v7474_v6 = vsel %vm14749_vm2, %v7471_v57, %v7468_v62  ;;  %vm14774_vm7 = vcmp.lt.f32.partialorder %v7481_v8, 0.0004427343  ;;  %v14791_v62 = vpop.f32.mrb[189].mxu1 }
 0x763   : > { %16589 = vst [vmem:[#allocation2_spill] sm:$0xff] %v14765_v11  ;;  %v9825_v48 = vpop.eup %9824  ;;  %v7499_v53 = vand.u32 2147483647, %v14745_v1  ;;  %v14782_v9 = vrot.slane %v10070_v38, %v4852_v13  ;;  %v6354_v5 = vmul.f32 %v5475_v50, %v524_v0  ;;  %v6466_v16 = vmax.f32 %v5475_v50, 0.0  ;;  %v14796_v0 = vpop.f32.mrb[190].mxu1 }
 0x764   : > { %v6236_v33 = vmul.f32 1.442695, %v6018_v23  ;;  %v526_v39 = vunpack.c.h.bf16 %v14724_v56  ;;  %v9827_v30 = vpop.eup %9826  ;;  %v7480_v40 = vmul.f32 %v9819_v2, %v7479_v18  ;;  %v6240_v10 = vmul.f32 1.442695, %v6020_v61  ;;  %v5790_v2 = vpop.f32.mrb[91].mxu0 }
 0x765   : > { %v422_v54 = vunpack.c.l.bf16 %v14786_v31  ;;  %v5625_v8 = vadd.f32 %v14043_v37, %v14782_v9  ;;  %v9829_v46 = vpop.eup %9828  ;;  %v7690_v13 = vsub.f32 %v14658_v45, %v7474_v6  ;;  %v7486_v50 = vmul.f32 0.6931472, %v9825_v48  ;;  %v14802_v11 = vpop.f32.mrb[191].mxu1 }
 0x766   : > { %v7497_v57 = vadd.f32 1.0, %v7496_v42  ;;  %v7529_v56 = vadd.f32 1.0, %v9827_v30  ;;  %v7477_v18 = vmul.f32 0.6931472, %v9829_v46  ;;  %vm14798_vm1 = vcmp.lt.f32.partialorder %v7499_v53, 0.0004427343 }
 0x767   : > { %v9831_v63 = vpop.eup %9830  ;;  %v7532_v37 = vmul.f32 -0.5, %v9827_v30  ;;  %9834 = vpow2.f32 %v6236_v33  ;;  %v5804_v61 = vand.u32 2147483647, %v5625_v8  ;;  %16596 = vst [vmem:[#allocation74_spill] sm:$0xff] %v14802_v11  ;;  %v14804_v45 = vsub.f32 %v6354_v5, %v6466_v16 }
 0x768   : > { %9836 = vlog2.f32 %v7529_v56  ;;  %v7547_v26 = vadd.f32 1.0, %v9831_v63  ;;  %v4860_v42 = vsub.s32 6, %v16588_v35  ;;  %v7483_v48 = vsel %vm14774_vm7, %v7480_v40, %v7477_v18 }
 0x769   : > { %v7550_v6 = vmul.f32 -0.5, %v9831_v63  ;;  %9838 = vpow2.f32 %v6240_v10  ;;  %v4856_v53 = vsub.s32 5, %v16588_v35  ;;  %v7691_v46 = vsub.f32 %v14694_v27, %v7483_v48 }
 0x76a   : > { %9840 = vlog2.f32 %v7547_v26  ;;  %v6356_v33 = vmul.f32 %v14743_v59, %v526_v39  ;;  %v6468_v56 = vmax.f32 %v14743_v59, 0.0  ;;  %v7492_v5 = vsel %vm14767_vm6, %v14760_v25, %v7486_v50 }
 0x76b   : > { %v9833_v2 = vpop.eup %9832  ;;  %v7533_v16 = vadd.f32 1.0, %v7532_v37  ;;  %v7535_v36 = vand.u32 2147483647, %v9827_v30  ;;  %v5916_v40 = vsub.f32 0.0, %v5804_v61  ;;  %v14816_v18 = vadd.f32 %v7691_v46, %v7690_v13 }
 0x76c   : > { %v7495_v10 = vmul.f32 0.6931472, %v9833_v2  ;;  %v7553_v35 = vand.u32 2147483647, %v9831_v63  ;;  %v14818_v47 = vrot.slane %v10070_v38, %v4860_v42  ;;  %v7551_v27 = vadd.f32 1.0, %v7550_v6 }
 0x76d   : > { %16597 = vst [vmem:[#allocation75_spill] sm:$0xff] %v14816_v18  ;;  %v6252_v26 = vmul.f32 %v5625_v8, %v422_v54  ;;  %v6364_v39 = vmax.f32 %v5625_v8, 0.0  ;;  %v14820_v48 = vrot.slane %v10070_v38, %v4856_v53  ;;  %v7498_v59 = vmul.f32 %v14745_v1, %v7497_v57  ;;  %v14854_v53 = vld [vmem:[%s10206_s12 + $0x2c] sm:$0xff] }
 0x76e   : > { %v424_v11 = vunpack.c.l.bf16 %v10072_v60  ;;  %v14826_v25 = vadd.f32 %v14082_v52, %v14818_v47  ;;  %v423_v7 = vunpack.c.h.bf16 %v14786_v31  ;;  %v14830_v13 = vsub.f32 %v14688_v51, %v7492_v5 }
 0x76f   : > { %v14832_v50 = vsub.f32 %v6356_v33, %v6468_v56  ;;  %v6032_v54 = vmul.f32 1.442695, %v5916_v40  ;;  %v5627_v38 = vadd.f32 %v14097_v15, %v14820_v48  ;;  %v7501_v1 = vsel %vm14798_vm1, %v7498_v59, %v7495_v10 }
 0x770   : > { %16598 = vst [vmem:[#allocation76_spill] sm:$0xff] %v14830_v13  ;;  %vm14838_vm8 = vcmp.lt.f32.partialorder %v7535_v36, 0.0004427343  ;;  %v5806_v52 = vand.u32 2147483647, %v14826_v25  ;;  %v14845_v51 = vadd.f32 %v14105_v17, %v14782_v9  ;;  %v7534_v8 = vmul.f32 %v9827_v30, %v7533_v16  ;;  %v16624_v13 = vld [vmem:[#allocation53_spill] sm:$0xff] }
 0x771   : > { %v9835_v31 = vpop.eup %9834  ;;  %v7552_v57 = vmul.f32 %v9831_v63, %v7551_v27  ;;  %vm14847_vm9 = vcmp.lt.f32.partialorder %v7553_v35, 0.0004427343  ;;  %v14851_v15 = vsub.f32 %v6252_v26, %v6364_v39  ;;  %v5805_v6 = vand.u32 2147483647, %v5627_v38 }
 0x772   : > { %v9837_v23 = vpop.eup %9836  ;;  %v7538_v61 = vadd.f32 1.0, %v9835_v31  ;;  %v7541_v42 = vmul.f32 -0.5, %v9835_v31  ;;  %v429_v46 = vunpack.c.l.bf16 %v14854_v53  ;;  %v14858_v17 = vsub.f32 %v14733_v41, %v7501_v1 }
 0x773   : > { %v9839_v33 = vpop.eup %9838  ;;  %v7531_v30 = vmul.f32 0.6931472, %v9837_v23  ;;  %9842 = vpow2.f32 %v6032_v54  ;;  %v14862_v63 = vadd.f32 %v14130_v22, %v14818_v47  ;;  %v5918_v5 = vsub.f32 0.0, %v5806_v52  ;;  %v10074_v54 = vld [vmem:[%s10206_s12 + $0x34] sm:$0xf] }
 0x774   : > { %16603 = vst [vmem:[#allocation77_spill] sm:$0xff] %v14858_v17  ;;  %v9841_v56 = vpop.eup %9840  ;;  %9844 = vlog2.f32 %v7538_v61  ;;  %v7556_v2 = vadd.f32 1.0, %v9839_v33  ;;  %v5811_v16 = vand.u32 2147483647, %v14845_v51  ;;  %v7559_v40 = vmul.f32 -0.5, %v9839_v33  ;;  %v14875_v61 = vpop.f32.mrb[192].mxu1 }
 0x775   : > { %v7549_v36 = vmul.f32 0.6931472, %v9841_v56  ;;  %v6253_v10 = vmul.f32 %v5627_v38, %v423_v7  ;;  %v6365_v35 = vmax.f32 %v5627_v38, 0.0  ;;  %v7542_v27 = vadd.f32 1.0, %v7541_v42  ;;  %v14877_v42 = vpop.f32.mrb[92].mxu0 }
 0x776   : > { %v7544_v41 = vand.u32 2147483647, %v9835_v31  ;;  %9846 = vlog2.f32 %v7556_v2  ;;  %v5917_v26 = vsub.f32 0.0, %v5805_v6  ;;  %v7537_v39 = vsel %vm14838_vm8, %v7534_v8, %v7531_v30  ;;  %v5795_v30 = vpop.f32.mrb[93].mxu0 }
 0x777   : > { %v14868_v22 = vmul.f32 %v14826_v25, %v424_v11  ;;  %v431_v1 = vunpack.c.l.bf16 %v10074_v54  ;;  %v7555_v52 = vsel %vm14847_vm9, %v7552_v57, %v7549_v36  ;;  %v6036_v23 = vmul.f32 1.442695, %v5918_v5  ;;  %v14925_v57 = vpop.f32.mrb[94].mxu0 }
 0x778   : > { %v5923_v7 = vsub.f32 0.0, %v5811_v16  ;;  %v6259_v38 = vmul.f32 %v14845_v51, %v429_v46  ;;  %v7560_v60 = vadd.f32 1.0, %v7559_v40  ;;  %v7562_v8 = vand.u32 2147483647, %v9839_v33  ;;  %v16607_v16 = vld [vmem:[#allocation27_spill] sm:$0xff]  ;;  %16611 = vst [vmem:[#allocation79_spill] sm:$0xff] %v14925_v57 }
 0x779   : > { %v14879_v11 = vsub.f32 %v6253_v10, %v6365_v35  ;;  %v5813_v6 = vand.u32 2147483647, %v14862_v63  ;;  %v7697_v56 = vsub.f32 %v14756_v44, %v7537_v39  ;;  %v7543_v37 = vmul.f32 %v9835_v31, %v7542_v27  ;;  %v10075_v44 = vld [vmem:[%s10206_s12 + $0x48] sm:$0xff] }
 0x77a   : > { %vm14883_vm11 = vcmp.lt.f32.partialorder %v7544_v41, 0.0004427343  ;;  %v6034_v46 = vmul.f32 1.442695, %v5917_v26  ;;  %v14888_v2 = vsub.f32 %v14762_v4, %v7555_v52  ;;  %v5631_v36 = vadd.f32 %v16607_v16, %v14820_v48 }
 0x77b   : > { %v5925_v5 = vsub.f32 0.0, %v5813_v6  ;;  %v5635_v40 = vadd.f32 %v14188_v12, %v14782_v9  ;;  %9848 = vpow2.f32 %v6036_v23  ;;  %v430_v10 = vunpack.c.h.bf16 %v14854_v53 }
 0x77c   : > { %16606 = vst [vmem:[#allocation78_spill] sm:$0xff] %v14888_v2  ;;  %v436_v31 = vunpack.c.l.bf16 %v10075_v44  ;;  %v14898_v35 = vadd.f32 %v14190_v19, %v14818_v47  ;;  %v7561_v4 = vmul.f32 %v9839_v33, %v7560_v60  ;;  %vm14902_vm5 = vcmp.lt.f32.partialorder %v7562_v8, 0.0004427343  ;;  %v10076_v2 = vld [vmem:[%s10206_s12 + $0x50] sm:$0xf] }
 0x77d   : > { %v14900_v27 = vpop.eup %9842  ;;  %v6046_v26 = vmul.f32 1.442695, %v5923_v7  ;;  %v6371_v39 = vmax.f32 %v14845_v51, 0.0  ;;  %v5812_v12 = vand.u32 2147483647, %v5631_v36  ;;  %9850 = vpow2.f32 %v6034_v46 }
 0x77e   : > { %v9845_v54 = vpop.eup %9844  ;;  %v5818_v53 = vand.u32 2147483647, %v5635_v40  ;;  %v5820_v52 = vand.u32 2147483647, %v14898_v35  ;;  %v14910_v19 = vadd.f32 %v14197_v3, %v14820_v48  ;;  %v6050_v33 = vmul.f32 1.442695, %v5925_v5 }
 0x77f   : > { %v7540_v23 = vmul.f32 0.6931472, %v9845_v54  ;;  %v14913_v60 = vmul.f32 %v14862_v63, %v431_v1  ;;  %v5924_v8 = vsub.f32 0.0, %v5812_v12  ;;  %v6260_v6 = vmul.f32 %v5631_v36, %v430_v10 }
 0x780   : > { %v9847_v7 = vpop.eup %9846  ;;  %v6372_v51 = vmax.f32 %v5631_v36, 0.0  ;;  %v6266_v30 = vmul.f32 %v5635_v40, %v436_v31  ;;  %v6378_v16 = vmax.f32 %v5635_v40, 0.0  ;;  %9852 = vpow2.f32 %v6046_v26  ;;  %v14923_v40 = vpop.f32.mrb[193].mxu1 }
 0x781   : > { %v7546_v46 = vsel %vm14883_vm11, %v7543_v37, %v7540_v23  ;;  %v5930_v59 = vsub.f32 0.0, %v5818_v53  ;;  %v438_v17 = vunpack.c.l.bf16 %v10076_v2  ;;  %v7558_v54 = vmul.f32 0.6931472, %v9847_v7  ;;  %16610 = vst [vmem:[#allocation27_spill] sm:$0xff] %v14923_v40  ;;  %v14933_v26 = vpop.f32.mrb[194].mxu1 }
 0x782   : > { %v7698_v3 = vsub.f32 %v14804_v45, %v7546_v46  ;;  %v5932_v5 = vsub.f32 0.0, %v5820_v52  ;;  %v5819_v1 = vand.u32 2147483647, %v14910_v19  ;;  %v14920_v18 = vsub.f32 %v6259_v38, %v6371_v39  ;;  %16614 = vst [vmem:[#allocation82_spill] sm:$0xff] %v14933_v26  ;;  %v5798_v38 = vpop.f32.mrb[95].mxu0  ;;  %v16630_v26 = vld [vmem:[#allocation55_spill] sm:$0xff] }
 0x783   : > { %v6048_v36 = vmul.f32 1.442695, %v5924_v8  ;;  %v437_v31 = vunpack.c.h.bf16 %v10075_v44  ;;  %9854 = vpow2.f32 %v6050_v33  ;;  %v14929_v2 = vsub.f32 %v6260_v6, %v6372_v51 }
 0x784   : > { %v14927_v37 = vadd.f32 %v7698_v3, %v7697_v56  ;;  %v14931_v45 = vsub.f32 %v6266_v30, %v6378_v16  ;;  %v6060_v39 = vmul.f32 1.442695, %v5930_v59  ;;  %v14936_v12 = vmul.f32 %v14898_v35, %v438_v17  ;;  %v14941_v56 = vpop.f32.mrb[195].mxu1  ;;  %v10077_v17 = vld [vmem:[%s10206_s12 + $0x64] sm:$0xff] }
 0x785   : > { %v5639_v53 = vadd.f32 %v14219_v34, %v14782_v9  ;;  %16615 = vst [vmem:[#allocation83_spill] sm:$0xff] %v14941_v56  ;;  %v14943_v52 = vpop.eup %9848  ;;  %v7564_v23 = vsel %vm14902_vm5, %v7561_v4, %v7558_v54  ;;  %v6064_v33 = vmul.f32 1.442695, %v5932_v5  ;;  %v5931_v8 = vsub.f32 0.0, %v5819_v1  ;;  %v10078_v5 = vld [vmem:[%s10206_s12 + $0x6c] sm:$0xf] }
 0x786   : > { %16612 = vst [vmem:[#allocation80_spill] sm:$0xff] %v14927_v37  ;;  %16613 = vst [vmem:[#allocation81_spill] sm:$0xff] %v14931_v45  ;;  %v14949_v59 = vadd.f32 %v14230_v49, %v14818_v47  ;;  %9856 = vpow2.f32 %v6048_v36  ;;  %v443_v7 = vunpack.c.l.bf16 %v10077_v17  ;;  %v5641_v34 = vadd.f32 %v14234_v28, %v14820_v48  ;;  %v16618_v36 = vld [vmem:[#allocation51_spill] sm:$0xff] }
 0x787   : > { %v5825_v6 = vand.u32 2147483647, %v5639_v53  ;;  %v14954_v51 = vpop.eup %9850  ;;  %v6267_v30 = vmul.f32 %v14910_v19, %v437_v31  ;;  %v6379_v4 = vmax.f32 %v14910_v19, 0.0  ;;  %v444_v16 = vunpack.c.h.bf16 %v10077_v17 }
 0x788   : > { %16616 = vst [vmem:[#allocation84_spill] sm:$0xff] %v14949_v59  ;;  %v5827_v41 = vand.u32 2147483647, %v14949_v59  ;;  %v14960_v49 = vsub.f32 %v14832_v50, %v7564_v23  ;;  %9858 = vpow2.f32 %v6060_v39  ;;  %v5826_v3 = vand.u32 2147483647, %v5641_v34  ;;  %v16619_v50 = vld [vmem:[#allocation52_spill] sm:$0xff] }
 0x789   : > { %v5937_v46 = vsub.f32 0.0, %v5825_v6  ;;  %v6062_v54 = vmul.f32 1.442695, %v5931_v8  ;;  %v445_v1 = vunpack.c.l.bf16 %v10078_v5  ;;  %v14965_v38 = vadd.f32 %v16618_v36, %v14782_v9  ;;  %v10079_v36 = vld [vmem:[%s10206_s12 + $0x80] sm:$0xff] }
 0x78a   : > { %16617 = vst [vmem:[#allocation85_spill] sm:$0xff] %v14960_v49  ;;  %v5939_v28 = vsub.f32 0.0, %v5827_v41  ;;  %v14967_v31 = vpop.eup %9852  ;;  %v6273_v19 = vmul.f32 %v5639_v53, %v443_v7  ;;  %v6385_v44 = vmax.f32 %v5639_v53, 0.0  ;;  %v5938_v17 = vsub.f32 0.0, %v5826_v3 }
 0x78b   : > { %v14971_v23 = vadd.f32 %v16619_v50, %v14818_v47  ;;  %9860 = vpow2.f32 %v6064_v33  ;;  %v14973_v39 = vsub.f32 %v6267_v30, %v6379_v4  ;;  %v6274_v8 = vmul.f32 %v5641_v34, %v444_v16  ;;  %v10082_v4 = vld [vmem:[%s10206_s12 + $0xa4] sm:$0xf] }
 0x78c   : > { %v5832_v6 = vand.u32 2147483647, %v14965_v38  ;;  %v6074_v41 = vmul.f32 1.442695, %v5937_v46  ;;  %v6386_v5 = vmax.f32 %v5641_v34, 0.0  ;;  %v450_v10 = vunpack.c.l.bf16 %v10079_v36 }
 0x78d   : > { %16620 = vst [vmem:[#allocation51_spill] sm:$0xff] %v14971_v23  ;;  %16621 = vst [vmem:[#allocation52_spill] sm:$0xff] %v14973_v39  ;;  %v5834_v49 = vand.u32 2147483647, %v14971_v23  ;;  %v14978_v7 = vpop.eup %9854  ;;  %9862 = vpow2.f32 %v6062_v54  ;;  %v6078_v53 = vmul.f32 1.442695, %v5939_v28  ;;  %v14981_v3 = vmul.f32 %v14949_v59, %v445_v1 }
 0x78e   : > { %v5944_v33 = vsub.f32 0.0, %v5832_v6  ;;  %v14983_v30 = vsub.f32 %v6273_v19, %v6385_v44  ;;  %v6076_v16 = vmul.f32 1.442695, %v5938_v17  ;;  %v10080_v46 = vld [vmem:[%s10206_s12 + $0x88] sm:$0xf]  ;;  %v451_v37 = vunpack.c.h.bf16 %v10079_v36  ;;  %v16625_v54 = vld [vmem:[#allocation46_spill] sm:$0xff] }
 0x78f   : > { %16622 = vst [vmem:[#allocation86_spill] sm:$0xff] %v14981_v3  ;;  %v452_v34 = vunpack.c.l.bf16 %v10080_v46  ;;  %v5946_v50 = vsub.f32 0.0, %v5834_v49  ;;  %v5647_v56 = vadd.f32 %v16624_v13, %v14820_v48  ;;  %v5649_v28 = vadd.f32 %v16625_v54, %v14782_v9  ;;  %v16627_v19 = vld [vmem:[#allocation54_spill] sm:$0xff] }
 0x790   : > { %16623 = vst [vmem:[#allocation87_spill] sm:$0xff] %v14983_v30  ;;  %v14991_v57 = vpop.eup %9856  ;;  %9864 = vpow2.f32 %v6074_v41  ;;  %v14993_v44 = vsub.f32 %v6274_v8, %v6386_v5  ;;  %v6280_v1 = vmul.f32 %v14965_v38, %v450_v10  ;;  %v14998_v17 = vadd.f32 %v16627_v19, %v14818_v47  ;;  %v10081_v36 = vld [vmem:[%s10206_s12 + $0x9c] sm:$0xff] }
 0x791   : > { %9866 = vpow2.f32 %v6078_v53  ;;  %v6088_v49 = vmul.f32 1.442695, %v5944_v33  ;;  %v5833_v6 = vand.u32 2147483647, %v5647_v56  ;;  %v457_v13 = vunpack.c.l.bf16 %v10081_v36 }
 0x792   : > { %16626 = vst [vmem:[#allocation53_spill] sm:$0xff] %v14993_v44  ;;  %16628 = vst [vmem:[#allocation46_spill] sm:$0xff] %v14998_v17  ;;  %v15001_v46 = vpop.eup %9858  ;;  %9868 = vpow2.f32 %v6076_v16  ;;  %v6392_v54 = vmax.f32 %v14965_v38, 0.0  ;;  %v15005_v41 = vmul.f32 %v14971_v23, %v452_v34  ;;  %v5839_v8 = vand.u32 2147483647, %v5649_v28 }
 0x793   : > { %v6092_v5 = vmul.f32 1.442695, %v5946_v50  ;;  %v6281_v10 = vmul.f32 %v5647_v56, %v451_v37  ;;  %v459_v19 = vunpack.c.l.bf16 %v10082_v4  ;;  %v5841_v53 = vand.u32 2147483647, %v14998_v17  ;;  %v10083_v4 = vld [vmem:[%s10206_s12 + $0xb8] sm:$0xff] }
 0x794   : > { %16629 = vst [vmem:[#allocation54_spill] sm:$0xff] %v15005_v41  ;;  %v5945_v33 = vsub.f32 0.0, %v5833_v6  ;;  %v6393_v44 = vmax.f32 %v5647_v56, 0.0  ;;  %v5951_v30 = vsub.f32 0.0, %v5839_v8  ;;  %v5651_v40 = vadd.f32 %v16630_v26, %v14820_v48 }
 0x795   : > { %v15011_v16 = vpop.eup %9860  ;;  %9870 = vpow2.f32 %v6088_v49  ;;  %v6287_v38 = vmul.f32 %v5649_v28, %v457_v13  ;;  %v458_v34 = vunpack.c.h.bf16 %v10081_v36  ;;  %v5655_v50 = vadd.f32 %v14362_v14, %v14782_v9 }
 0x796   : > { %v6399_v37 = vmax.f32 %v5649_v28, 0.0  ;;  %v5953_v41 = vsub.f32 0.0, %v5841_v53  ;;  %v5840_v39 = vand.u32 2147483647, %v5651_v40  ;;  %v464_v45 = vunpack.c.l.bf16 %v10083_v4 }
 0x797   : > { %v15016_v3 = vpop.eup %9862  ;;  %v15018_v56 = vsub.f32 %v6280_v1, %v6392_v54  ;;  %9872 = vpow2.f32 %v6092_v5  ;;  %v5846_v6 = vand.u32 2147483647, %v5655_v50  ;;  %v6090_v8 = vmul.f32 1.442695, %v5945_v33 }
 0x798   : > { %v15021_v49 = vsub.f32 %v6281_v10, %v6393_v44  ;;  %v6102_v36 = vmul.f32 1.442695, %v5951_v30  ;;  %v15024_v14 = vmul.f32 %v14998_v17, %v459_v19  ;;  %v5952_v28 = vsub.f32 0.0, %v5840_v39  ;;  %v10084_v19 = vld [vmem:[%s10206_s12 + $0xc0] sm:$0xf]  ;;  %v16645_v17 = vld [vmem:[#allocation63_spill] sm:$0xff] }
 0x799   : > { %16631 = vst [vmem:[#allocation55_spill] sm:$0xff] %v15018_v56  ;;  %v6288_v13 = vmul.f32 %v5651_v40, %v458_v34  ;;  %v6400_v53 = vmax.f32 %v5651_v40, 0.0  ;;  %v15028_v59 = vadd.f32 %v14364_v24, %v14818_v47  ;;  %v15032_v54 = vsub.f32 %v6287_v38, %v6399_v37  ;;  %v10086_v56 = vld [vmem:[%s10206_s12 + $0xdc] sm:$0xf] }
 0x79a   : > { %16632 = vst [vmem:[#allocation88_spill] sm:$0xff] %v15021_v49  ;;  %16633 = vst [vmem:[#allocation89_spill] sm:$0xff] %v15024_v14  ;;  %v15030_v1 = vpop.eup %9864  ;;  %v6106_v5 = vmul.f32 1.442695, %v5953_v41  ;;  %v6294_v33 = vmul.f32 %v5655_v50, %v464_v45  ;;  %v5657_v44 = vadd.f32 %v14371_v29, %v14820_v48  ;;  %v5958_v10 = vsub.f32 0.0, %v5846_v6  ;;  %v10085_v6 = vld [vmem:[%s10206_s12 + $0xd4] sm:$0xff] }
 0x79b   : > { %16634 = vst [vmem:[#allocation90_spill] sm:$0xff] %v15028_v59  ;;  %16635 = vst [vmem:[#allocation91_spill] sm:$0xff] %v15032_v54  ;;  %v15036_v30 = vpop.eup %9866  ;;  %v6406_v39 = vmax.f32 %v5655_v50, 0.0  ;;  %v466_v40 = vunpack.c.l.bf16 %v10084_v19  ;;  %v5848_v34 = vand.u32 2147483647, %v15028_v59  ;;  %9874 = vpow2.f32 %v6090_v8  ;;  %v16637_v54 = vld [vmem:[#allocation58_spill] sm:$0xff] }
 0x79c   : > { %v15040_v24 = vpop.eup %9868  ;;  %v465_v37 = vunpack.c.h.bf16 %v10083_v4  ;;  %v5847_v41 = vand.u32 2147483647, %v5657_v44  ;;  %9876 = vpow2.f32 %v6102_v36  ;;  %v6104_v45 = vmul.f32 1.442695, %v5952_v28 }
 0x79d   : > { %v15043_v26 = vsub.f32 %v6288_v13, %v6400_v53  ;;  %v5659_v29 = vadd.f32 %v14387_v55, %v14782_v9  ;;  %9878 = vpow2.f32 %v6106_v5  ;;  %v5960_v50 = vsub.f32 0.0, %v5848_v34 }
 0x79e   : > { %v471_v19 = vunpack.c.l.bf16 %v10085_v6  ;;  %v15050_v49 = vadd.f32 %v16637_v54, %v14818_v47  ;;  %v6116_v4 = vmul.f32 1.442695, %v5958_v10  ;;  %v15054_v38 = vsub.f32 %v6294_v33, %v6406_v39 }
 0x79f   : > { %16636 = vst [vmem:[#allocation92_spill] sm:$0xff] %v15043_v26  ;;  %v15052_v8 = vpop.eup %9870  ;;  %v15057_v36 = vmul.f32 %v15028_v59, %v466_v40  ;;  %v5853_v28 = vand.u32 2147483647, %v5659_v29  ;;  %v5959_v13 = vsub.f32 0.0, %v5847_v41  ;;  %v6295_v55 = vmul.f32 %v5657_v44, %v465_v37  ;;  %v16643_v40 = vld [vmem:[#allocation60_spill] sm:$0xff] }
 0x7a0   : > { %16638 = vst [vmem:[#allocation58_spill] sm:$0xff] %v15050_v49  ;;  %16639 = vst [vmem:[#allocation93_spill] sm:$0xff] %v15052_v8  ;;  %v6407_v53 = vmax.f32 %v5657_v44, 0.0  ;;  %v5855_v5 = vand.u32 2147483647, %v15050_v49  ;;  %9880 = vpow2.f32 %v6104_v45  ;;  %v473_v14 = vunpack.c.l.bf16 %v10086_v56  ;;  %v16644_v44 = vld [vmem:[#allocation62_spill] sm:$0xff] }
 0x7a1   : > { %16640 = vst [vmem:[#allocation94_spill] sm:$0xff] %v15054_v38  ;;  %16641 = vst [vmem:[#allocation95_spill] sm:$0xff] %v15057_v36  ;;  %v15060_v34 = vpop.eup %9872  ;;  %v5965_v26 = vsub.f32 0.0, %v5853_v28  ;;  %v6120_v10 = vmul.f32 1.442695, %v5960_v50  ;;  %v6301_v33 = vmul.f32 %v5659_v29, %v471_v19  ;;  %v6413_v39 = vmax.f32 %v5659_v29, 0.0 }
 0x7a2   : > { %16642 = vst [vmem:[#allocation96_spill] sm:$0xff] %v15060_v34  ;;  %v5661_v36 = vadd.f32 %v16643_v40, %v14820_v48  ;;  %v5967_v41 = vsub.f32 0.0, %v5855_v5  ;;  %v472_v37 = vunpack.c.h.bf16 %v10085_v6  ;;  %v5665_v38 = vadd.f32 %v16644_v44, %v14782_v9 }
 0x7a3   : > { %v15070_v45 = vadd.f32 %v16645_v17, %v14818_v47  ;;  %9882 = vpow2.f32 %v6116_v4  ;;  %v6118_v28 = vmul.f32 1.442695, %v5959_v13  ;;  %v15072_v54 = vsub.f32 %v6295_v55, %v6407_v53  ;;  %v10087_v17 = vld [vmem:[%s10206_s12 + $0xf0] sm:$0xff] }
 0x7a4   : > { %v5854_v56 = vand.u32 2147483647, %v5661_v36  ;;  %v6130_v50 = vmul.f32 1.442695, %v5965_v26  ;;  %v15075_v29 = vmul.f32 %v15050_v49, %v473_v14  ;;  %v5860_v5 = vand.u32 2147483647, %v5665_v38 }
 0x7a5   : > { %16646 = vst [vmem:[#allocation60_spill] sm:$0xff] %v15070_v45  ;;  %16647 = vst [vmem:[#allocation62_spill] sm:$0xff] %v15072_v54  ;;  %v15078_v6 = vpop.eup %9874  ;;  %9884 = vpow2.f32 %v6120_v10  ;;  %v15080_v40 = vsub.f32 %v6301_v33, %v6413_v39  ;;  %v478_v44 = vunpack.c.l.bf16 %v10087_v17  ;;  %v5862_v4 = vand.u32 2147483647, %v15070_v45  ;;  %v16653_v10 = vld [vmem:[#allocation64_spill] sm:$0xff] }
 0x7a6   : > { %16648 = vst [vmem:[#allocation63_spill] sm:$0xff] %v15075_v29  ;;  %16649 = vst [vmem:[#allocation97_spill] sm:$0xff] %v15078_v6  ;;  %v15084_v13 = vpop.eup %9876  ;;  %v6134_v55 = vmul.f32 1.442695, %v5967_v41  ;;  %v5966_v26 = vsub.f32 0.0, %v5854_v56  ;;  %v6302_v14 = vmul.f32 %v5661_v36, %v472_v37  ;;  %v6414_v53 = vmax.f32 %v5661_v36, 0.0 }
 0x7a7   : > { %16650 = vst [vmem:[#allocation98_spill] sm:$0xff] %v15080_v40  ;;  %16651 = vst [vmem:[#allocation99_spill] sm:$0xff] %v15084_v13  ;;  %v15086_v29 = vpop.eup %9878  ;;  %9886 = vpow2.f32 %v6118_v28  ;;  %v5972_v19 = vsub.f32 0.0, %v5860_v5  ;;  %v5974_v49 = vsub.f32 0.0, %v5862_v4  ;;  %v5667_v33 = vadd.f32 %v16653_v10, %v14820_v48  ;;  %v10088_v39 = vld [vmem:[%s10206_s12 + $0xf8] sm:$0xf] }
 0x7a8   : > { %16652 = vst [vmem:[#allocation100_spill] sm:$0xff] %v15086_v29  ;;  %9888 = vpow2.f32 %v6130_v50  ;;  %v480_v40 = vunpack.c.l.bf16 %v10088_v39  ;;  %v479_v59 = vunpack.c.h.bf16 %v10087_v17  ;;  %v16654_v54 = vld [vmem:[#allocation4_spill] sm:$0xff]  ;;  %v6308_v41 = vmul.f32 %v5665_v38, %v478_v44  ;;  %v16657_v17 = vld [vmem:[#allocation65_spill] sm:$0xff]  ;;  %v16659_v6 = vld [vmem:[#allocation67_spill] sm:$0xff] }
 0x7a9   : > { %v5669_v13 = vadd.f32 %v16654_v54, %v14782_v9  ;;  %v6420_v56 = vmax.f32 %v5665_v38, 0.0  ;;  %v5861_v23 = vand.u32 2147483647, %v5667_v33  ;;  %v10089_v37 = vld [vmem:[%s10206_s12 + $0x10c] sm:$0xff]  ;;  %9890 = vpow2.f32 %v6134_v55 }
 0x7aa   : > { %v485_v36 = vunpack.c.l.bf16 %v10089_v37  ;;  %v15094_v34 = vpop.eup %9880  ;;  %v6132_v28 = vmul.f32 1.442695, %v5966_v26  ;;  %v15096_v5 = vsub.f32 %v6302_v14, %v6414_v53  ;;  %v6144_v50 = vmul.f32 1.442695, %v5972_v19  ;;  %v10090_v14 = vld [vmem:[%s10206_s12 + $0x114] sm:$0xf] }
 0x7ab   : > { %16655 = vst [vmem:[#allocation64_spill] sm:$0xff] %v15094_v34  ;;  %v5867_v4 = vand.u32 2147483647, %v5669_v13  ;;  %v6148_v10 = vmul.f32 1.442695, %v5974_v49  ;;  %v5973_v39 = vsub.f32 0.0, %v5861_v23  ;;  %v15100_v29 = vadd.f32 %v16657_v17, %v14818_v47 }
 0x7ac   : > { %16656 = vst [vmem:[#allocation4_spill] sm:$0xff] %v15096_v5  ;;  %v6309_v54 = vmul.f32 %v5667_v33, %v479_v59  ;;  %v6421_v38 = vmax.f32 %v5667_v33, 0.0  ;;  %v5671_v8 = vadd.f32 %v16659_v6, %v14820_v48  ;;  %v6315_v55 = vmul.f32 %v5669_v13, %v485_v36 }
 0x7ad   : > { %16658 = vst [vmem:[#allocation65_spill] sm:$0xff] %v15100_v29  ;;  %v5979_v44 = vsub.f32 0.0, %v5867_v4  ;;  %v15104_v34 = vpop.eup %9882  ;;  %v6427_v26 = vmax.f32 %v5669_v13, 0.0  ;;  %v487_v53 = vunpack.c.l.bf16 %v10090_v14  ;;  %v5869_v19 = vand.u32 2147483647, %v15100_v29 }
 0x7ae   : > { %9892 = vpow2.f32 %v6132_v28  ;;  %v15108_v23 = vsub.f32 %v6308_v41, %v6420_v56  ;;  %v486_v49 = vunpack.c.h.bf16 %v10089_v37  ;;  %v5868_v17 = vand.u32 2147483647, %v5671_v8 }
 0x7af   : > { %v15110_v5 = vpop.eup %9884  ;;  %9894 = vpow2.f32 %v6144_v50  ;;  %v15113_v59 = vmul.f32 %v15070_v45, %v480_v40  ;;  %v6146_v33 = vmul.f32 1.442695, %v5973_v39  ;;  %v15116_v13 = vsub.f32 %v6309_v54, %v6421_v38  ;;  %v16666_v40 = vld [vmem:[#allocation38_spill] sm:$0xff] }
 0x7b0   : > { %16660 = vst [vmem:[#allocation67_spill] sm:$0xff] %v15108_v23  ;;  %16661 = vst [vmem:[#allocation101_spill] sm:$0xff] %v15110_v5  ;;  %9896 = vpow2.f32 %v6148_v10  ;;  %v6158_v36 = vmul.f32 1.442695, %v5979_v44  ;;  %v5675_v41 = vadd.f32 %v14529_v20, %v14782_v9  ;;  %v15122_v37 = vsub.f32 %v6315_v55, %v6427_v26  ;;  %v10091_v55 = vld [vmem:[%s10206_s12 + $0x128] sm:$0xff] }
 0x7b1   : > { %16662 = vst [vmem:[#allocation102_spill] sm:$0xff] %v15113_v59  ;;  %16663 = vst [vmem:[#allocation103_spill] sm:$0xff] %v15116_v13  ;;  %v15120_v56 = vpop.eup %9886  ;;  %v5981_v28 = vsub.f32 0.0, %v5869_v19  ;;  %v15125_v4 = vmul.f32 %v15100_v29, %v487_v53  ;;  %v15129_v50 = vadd.f32 %v16666_v40, %v14818_v47  ;;  %v5980_v39 = vsub.f32 0.0, %v5868_v17 }
 0x7b2   : > { %16664 = vst [vmem:[#allocation104_spill] sm:$0xff] %v15122_v37  ;;  %v15131_v10 = vpop.eup %9888  ;;  %v6316_v54 = vmul.f32 %v5671_v8, %v486_v49  ;;  %v6428_v38 = vmax.f32 %v5671_v8, 0.0  ;;  %v5874_v44 = vand.u32 2147483647, %v5675_v41  ;;  %9898 = vpow2.f32 %v6146_v33  ;;  %v10092_v8 = vld [vmem:[%s10206_s12 + $0x144] sm:$0xff]  ;;  %v16670_v33 = vld [vmem:[#allocation69_spill] sm:$0xff] }
 0x7b3   : > { %16665 = vst [vmem:[#allocation105_spill] sm:$0xff] %v15125_v4  ;;  %16667 = vst [vmem:[#allocation38_spill] sm:$0xff] %v15129_v50  ;;  %v492_v26 = vunpack.c.l.bf16 %v10091_v55  ;;  %v5876_v14 = vand.u32 2147483647, %v15129_v50  ;;  %v15136_v53 = vpop.eup %9890  ;;  %9900 = vpow2.f32 %v6158_v36  ;;  %v493_v40 = vunpack.c.h.bf16 %v10091_v55  ;;  %v10093_v4 = vld [vmem:[%s10206_s12 + $0x130] sm:$0xf] }
 0x7b4   : > { %16668 = vst [vmem:[#allocation106_spill] sm:$0xff] %v15131_v10  ;;  %16669 = vst [vmem:[#allocation107_spill] sm:$0xff] %v15136_v53  ;;  %v5986_v19 = vsub.f32 0.0, %v5874_v44  ;;  %v5677_v17 = vadd.f32 %v14541_v21, %v14820_v48  ;;  %v6162_v6 = vmul.f32 1.442695, %v5981_v28  ;;  %v499_v37 = vunpack.c.l.bf16 %v10092_v8  ;;  %v16672_v10 = vld [vmem:[#allocation70_spill] sm:$0xff] }
 0x7b5   : > { %v5988_v49 = vsub.f32 0.0, %v5876_v14  ;;  %v5679_v20 = vadd.f32 %v16670_v33, %v14782_v9  ;;  %v6160_v13 = vmul.f32 1.442695, %v5980_v39  ;;  %v15143_v23 = vsub.f32 %v6316_v54, %v6428_v38  ;;  %v16675_v33 = vld [vmem:[#allocation26_spill] sm:$0xff] }
 0x7b6   : > { %v494_v29 = vunpack.c.l.bf16 %v10093_v4  ;;  %v5875_v59 = vand.u32 2147483647, %v5677_v17  ;;  %v6172_v45 = vmul.f32 1.442695, %v5986_v19  ;;  %v6322_v36 = vmul.f32 %v5675_v41, %v492_v26 }
 0x7b7   : > { %16671 = vst [vmem:[#allocation69_spill] sm:$0xff] %v15143_v23  ;;  %v6434_v44 = vmax.f32 %v5675_v41, 0.0  ;;  %v5881_v55 = vand.u32 2147483647, %v5679_v20  ;;  %v6323_v28 = vmul.f32 %v5677_v17, %v493_v40  ;;  %v6435_v14 = vmax.f32 %v5677_v17, 0.0 }
 0x7b8   : > { %v15146_v53 = vpop.eup %9892  ;;  %v5987_v21 = vsub.f32 0.0, %v5875_v59  ;;  %v15150_v5 = vadd.f32 %v16672_v10, %v14818_v47  ;;  %9902 = vpow2.f32 %v6162_v6  ;;  %v6176_v54 = vmul.f32 1.442695, %v5988_v49  ;;  %v10094_v59 = vld [vmem:[%s10206_s12 + $0x14c] sm:$0xf] }
 0x7b9   : > { %v15152_v39 = vpop.eup %9894  ;;  %v6329_v4 = vmul.f32 %v5679_v20, %v499_v37  ;;  %v6441_v38 = vmax.f32 %v5679_v20, 0.0  ;;  %v15157_v41 = vmul.f32 %v15129_v50, %v494_v29  ;;  %v501_v40 = vunpack.c.l.bf16 %v10094_v59 }
 0x7ba   : > { %16673 = vst [vmem:[#allocation70_spill] sm:$0xff] %v15150_v5  ;;  %v15154_v19 = vpop.eup %9896  ;;  %v5883_v17 = vand.u32 2147483647, %v15150_v5  ;;  %9904 = vpow2.f32 %v6160_v13  ;;  %v5993_v10 = vsub.f32 0.0, %v5881_v55  ;;  %v5681_v23 = vadd.f32 %v16675_v33, %v14820_v48 }
 0x7bb   : > { %16674 = vst [vmem:[#allocation108_spill] sm:$0xff] %v15157_v41  ;;  %v6620_v6 = vadd.f32 1.0, %v14900_v27  ;;  %9906 = vpow2.f32 %v6172_v45  ;;  %v15165_v37 = vsub.f32 %v6322_v36, %v6434_v44  ;;  %v6174_v20 = vmul.f32 1.442695, %v5987_v21 }
 0x7bc   : > { %v15167_v49 = vsub.f32 %v6323_v28, %v6435_v14  ;;  %v15169_v29 = vpop.eup %9898  ;;  %9908 = vpow2.f32 %v6176_v54  ;;  %v15171_v26 = vsub.f32 %v6329_v4, %v6441_v38  ;;  %v500_v59 = vunpack.c.h.bf16 %v10092_v8 }
 0x7bd   : > { %16676 = vst [vmem:[#allocation26_spill] sm:$0xff] %v15165_v37  ;;  %v5882_v41 = vand.u32 2147483647, %v5681_v23  ;;  %v15173_v13 = vpop.eup %9900  ;;  %v5995_v55 = vsub.f32 0.0, %v5883_v17  ;;  %v15176_v33 = vmul.f32 %v15150_v5, %v501_v40  ;;  %9910 = vlog2.f32 %v6620_v6  ;;  %v16681_v6 = vld [vmem:[#allocation31_spill] sm:$0xff] }
 0x7be   : > { %16677 = vst [vmem:[#allocation109_spill] sm:$0xff] %v15167_v49  ;;  %16678 = vst [vmem:[#allocation110_spill] sm:$0xff] %v15171_v26  ;;  %v6186_v36 = vmul.f32 1.442695, %v5993_v10  ;;  %v6623_v21 = vmul.f32 -0.5, %v14900_v27  ;;  %v6629_v28 = vadd.f32 1.0, %v14954_v51  ;;  %9912 = vpow2.f32 %v6174_v20 }
 0x7bf   : > { %16679 = vst [vmem:[#allocation111_spill] sm:$0xff] %v15176_v33  ;;  %v5994_v44 = vsub.f32 0.0, %v5882_v41  ;;  %v16680_v14 = vmax.f32 %v14826_v25, 0.0  ;;  %v6632_v54 = vmul.f32 -0.5, %v14954_v51  ;;  %v6638_v4 = vadd.f32 1.0, %v14943_v52  ;;  %v16682_v20 = vld [vmem:[#allocation37_spill] sm:$0xff] }
 0x7c0   : > { %v6330_v38 = vmul.f32 %v5681_v23, %v500_v59  ;;  %v6442_v40 = vmax.f32 %v5681_v23, 0.0  ;;  %v6626_v17 = vand.u32 2147483647, %v14900_v27  ;;  %9914 = vlog2.f32 %v6629_v28  ;;  %v16683_v33 = vld [vmem:[#allocation35_spill] sm:$0xff] }
 0x7c1   : > { %v15184_v8 = vsub.f32 %v14868_v22, %v16680_v14  ;;  %v6190_v41 = vmul.f32 1.442695, %v5995_v55  ;;  %9916 = vlog2.f32 %v6638_v4  ;;  %v6641_v10 = vmul.f32 -0.5, %v14943_v52 }
 0x7c2   : > { %v7705_v25 = vadd.f32 %v16682_v20, %v16681_v6  ;;  %v15192_v45 = vpop.eup %9902  ;;  %9918 = vpow2.f32 %v6186_v36  ;;  %v6188_v22 = vmul.f32 1.442695, %v5994_v44  ;;  %v6624_v14 = vadd.f32 1.0, %v6623_v21  ;;  %v15208_v36 = vld [vmem:[%s10206_s12 + $0x160] sm:$0xff] }
 0x7c3   : > { %v6635_v26 = vand.u32 2147483647, %v14954_v51  ;;  %v6633_v59 = vadd.f32 1.0, %v6632_v54  ;;  %v6644_v23 = vand.u32 2147483647, %v14943_v52  ;;  %v5685_v55 = vadd.f32 %v14719_v58, %v14782_v9 }
 0x7c4   : > { %v7706_v28 = vadd.f32 %v7705_v25, %v16683_v33  ;;  %v15199_v4 = vpop.eup %9904  ;;  %v15201_v5 = vsub.f32 %v6330_v38, %v6442_v40  ;;  %vm15203_vm12 = vcmp.lt.f32.partialorder %v6626_v17, 0.0004427343  ;;  %v506_v44 = vunpack.c.l.bf16 %v15208_v36  ;;  %v10096_v25 = vld [vmem:[%s10206_s12 + $0x168] sm:$0xf] }
 0x7c5   : > { %v6683_v21 = vadd.f32 1.0, %v14967_v31  ;;  %v15212_v54 = vpop.eup %9906  ;;  %9920 = vpow2.f32 %v6190_v41  ;;  %v6642_v33 = vadd.f32 1.0, %v6641_v10  ;;  %v5888_v20 = vand.u32 2147483647, %v5685_v55 }
 0x7c6   : > { %16684 = vst [vmem:[#allocation31_spill] sm:$0xff] %v15201_v5  ;;  %v15216_v58 = vadd.f32 %v14721_v32, %v14818_v47  ;;  %v15218_v38 = vpop.eup %9908  ;;  %v6625_v40 = vmul.f32 %v14900_v27, %v6624_v14  ;;  %vm15221_vm13 = vcmp.lt.f32.partialorder %v6635_v26, 0.0004427343  ;;  %v508_v5 = vunpack.c.l.bf16 %v10096_v25 }
 0x7c7   : > { %16687 = vst [vmem:[#allocation37_spill] sm:$0xff] %v15218_v38  ;;  %9922 = vlog2.f32 %v6683_v21  ;;  %v9911_v49 = vpop.eup %9910  ;;  %v6634_v41 = vmul.f32 %v14954_v51, %v6633_v59  ;;  %vm15227_vm14 = vcmp.lt.f32.partialorder %v6644_v23, 0.0004427343  ;;  %v6686_v32 = vmul.f32 -0.5, %v14967_v31 }
 0x7c8   : > { %9924 = vpow2.f32 %v6188_v22  ;;  %v6622_v37 = vmul.f32 0.6931472, %v9911_v49  ;;  %v6336_v50 = vmul.f32 %v5685_v55, %v506_v44  ;;  %v6448_v27 = vmax.f32 %v5685_v55, 0.0  ;;  %v15233_v14 = vpop.eup %9912 }
 0x7c9   : > { %v6692_v26 = vadd.f32 1.0, %v14991_v57  ;;  %16692 = vst [vmem:[#allocation35_spill] sm:$0xff] %v15233_v14  ;;  %v6643_v25 = vmul.f32 %v14943_v52, %v6642_v33  ;;  %v6000_v21 = vsub.f32 0.0, %v5888_v20  ;;  %v5890_v22 = vand.u32 2147483647, %v15216_v58 }
 0x7ca   : > { %v16693_v51 = vmax.f32 %v14862_v63, 0.0  ;;  %v9915_v23 = vpop.eup %9914  ;;  %v6628_v49 = vsel %vm15203_vm12, %v6625_v40, %v6622_v37  ;;  %v15245_v55 = vmul.f32 %v15216_v58, %v508_v5  ;;  %v6687_v20 = vadd.f32 1.0, %v6686_v32 }
 0x7cb   : > { %9926 = vlog2.f32 %v6692_v26  ;;  %v9917_v38 = vpop.eup %9916  ;;  %v6631_v52 = vmul.f32 0.6931472, %v9915_v23  ;;  %v7596_v33 = vsub.f32 %v14851_v15, %v6628_v49  ;;  %v6689_v63 = vand.u32 2147483647, %v14967_v31  ;;  %v16695_v49 = vld [vmem:[#allocation33_spill] sm:$0xff] }
 0x7cc   : > { %v15240_v59 = vsub.f32 %v14913_v60, %v16693_v51  ;;  %v15250_v14 = vpop.eup %9918  ;;  %v6640_v60 = vmul.f32 0.6931472, %v9917_v38  ;;  %v15252_v51 = vsub.f32 %v6336_v50, %v6448_v27  ;;  %v6695_v37 = vmul.f32 -0.5, %v14991_v57  ;;  %v16696_v38 = vld [vmem:[#allocation30_spill] sm:$0xff] }
 0x7cd   : > { %v6701_v5 = vadd.f32 1.0, %v14978_v7  ;;  %v6637_v6 = vsel %vm15221_vm13, %v6634_v41, %v6631_v52  ;;  %v7707_v40 = vadd.f32 %v7706_v28, %v7596_v33  ;;  %v6200_v26 = vmul.f32 1.442695, %v6000_v21 }
 0x7ce   : > { %16694 = vst [vmem:[#allocation112_spill] sm:$0xff] %v15252_v51  ;;  %v6002_v23 = vsub.f32 0.0, %v5890_v22  ;;  %v6646_v15 = vsel %vm15227_vm14, %v6643_v25, %v6640_v60  ;;  %v7597_v32 = vsub.f32 %v14879_v11, %v6637_v6  ;;  %v7714_v50 = vadd.f32 %v16696_v38, %v16695_v49  ;;  %v16699_v25 = vld [vmem:[#allocation36_spill] sm:$0xff] }
 0x7cf   : > { %9928 = vlog2.f32 %v6701_v5  ;;  %v15263_v27 = vpop.eup %9920  ;;  %v7598_v44 = vsub.f32 %v15184_v8, %v6646_v15  ;;  %v6688_v51 = vmul.f32 %v14967_v31, %v6687_v20  ;;  %vm15267_vm15 = vcmp.lt.f32.partialorder %v6689_v63, 0.0004427343 }
 0x7d0   : > { %v6698_v28 = vand.u32 2147483647, %v14991_v57  ;;  %v7708_v10 = vadd.f32 %v7707_v40, %v7597_v32  ;;  %v6696_v11 = vadd.f32 1.0, %v6695_v37  ;;  %v7715_v21 = vadd.f32 %v7714_v50, %v16699_v25 }
 0x7d1   : > { %v9923_v41 = vpop.eup %9922  ;;  %v5687_v22 = vadd.f32 %v14791_v62, %v14820_v48  ;;  %v7709_v8 = vsel %vm1410_vm0, %v7598_v44, 0.0  ;;  %v6704_v33 = vmul.f32 -0.5, %v14978_v7  ;;  %v5689_v20 = vadd.f32 %v14796_v0, %v14782_v9  ;;  %v10097_v62 = vld [vmem:[%s10206_s12 + $0x17c] sm:$0xff] }
 0x7d2   : > { %v15275_v52 = vpop.eup %9924  ;;  %v6685_v31 = vmul.f32 0.6931472, %v9923_v41  ;;  %v7710_v63 = vadd.f32 %v7709_v8, %v7708_v10  ;;  %v6204_v60 = vmul.f32 1.442695, %v6002_v23  ;;  %v507_v5 = vunpack.c.h.bf16 %v15208_v36 }
 0x7d3   : > { %v5889_v37 = vand.u32 2147483647, %v5687_v22  ;;  %9930 = vpow2.f32 %v6200_v26  ;;  %v513_v40 = vunpack.c.l.bf16 %v10097_v62  ;;  %v5895_v15 = vand.u32 2147483647, %v5689_v20 }
 0x7d4   : > { %v6691_v6 = vsel %vm15267_vm15, %v6688_v51, %v6685_v31  ;;  %7711 = vadd.xlane.f32.xlu0 %v7710_v63  ;;  %v6697_v44 = vmul.f32 %v14991_v57, %v6696_v11  ;;  %vm15286_vm4 = vcmp.lt.f32.partialorder %v6698_v28, 0.0004427343  ;;  %v6707_v0 = vand.u32 2147483647, %v14978_v7  ;;  %v16702_v57 = vld [vmem:[#allocation74_spill] sm:$0xff] }
 0x7d5   : > { %v9927_v32 = vpop.eup %9926  ;;  %v7603_v36 = vsub.f32 %v14920_v18, %v6691_v6  ;;  %v6705_v23 = vadd.f32 1.0, %v6704_v33  ;;  %v6001_v38 = vsub.f32 0.0, %v5889_v37  ;;  %v15294_v51 = vadd.f32 %v14793_v43, %v14818_v47  ;;  %v10098_v63 = vld [vmem:[%s10206_s12 + $0x184] sm:$0xf] }
 0x7d6   : > { %v6694_v26 = vmul.f32 0.6931472, %v9927_v32  ;;  %v6337_v17 = vmul.f32 %v5687_v22, %v507_v5  ;;  %v6007_v41 = vsub.f32 0.0, %v5895_v15  ;;  %v5691_v28 = vadd.f32 %v16702_v57, %v14820_v48 }
 0x7d7   : > { %v7716_v50 = vadd.f32 %v7715_v21, %v7603_v36  ;;  %v6449_v11 = vmax.f32 %v5687_v22, 0.0  ;;  %v6343_v25 = vmul.f32 %v5689_v20, %v513_v40  ;;  %v5897_v18 = vand.u32 2147483647, %v15294_v51 }
 0x7d8   : > { %v6700_v10 = vsel %vm15286_vm4, %v6697_v44, %v6694_v26  ;;  %v6455_v33 = vmax.f32 %v5689_v20, 0.0  ;;  %v515_v43 = vunpack.c.l.bf16 %v10098_v63  ;;  %v5896_v37 = vand.u32 2147483647, %v5691_v28  ;;  %v16704_v63 = vld [vmem:[#allocation9_spill] sm:$0xff] }
 0x7d9   : > { %v9929_v8 = vpop.eup %9928  ;;  %v7604_v31 = vsub.f32 %v14929_v2, %v6700_v10  ;;  %9932 = vpow2.f32 %v6204_v60  ;;  %v6706_v5 = vmul.f32 %v14978_v7, %v6705_v23  ;;  %v6202_v6 = vmul.f32 1.442695, %v6001_v38 }
 0x7da   : > { %v6703_v21 = vmul.f32 0.6931472, %v9929_v8  ;;  %vm6708_vm3 = vcmp.lt.f32.partialorder %v6707_v0, 0.0004427343  ;;  %v6214_v32 = vmul.f32 1.442695, %v6007_v41  ;;  %v514_v44 = vunpack.c.h.bf16 %v10097_v62 }
 0x7db   : > { %v7717_v15 = vadd.f32 %v7716_v50, %v7604_v31  ;;  %v15304_v40 = vsub.f32 %v6337_v17, %v6449_v11  ;;  %v6009_v49 = vsub.f32 0.0, %v5897_v18  ;;  %v6746_v36 = vadd.f32 1.0, %v15001_v46 }
 0x7dc   : > { %v6709_v22 = vsel %vm6708_vm3, %v6706_v5, %v6703_v21  ;;  %v15308_v20 = vsub.f32 %v6343_v25, %v6455_v33  ;;  %v15311_v60 = vmul.f32 %v15294_v51, %v515_v43  ;;  %v6008_v26 = vsub.f32 0.0, %v5896_v37  ;;  %v16705_v43 = vld [vmem:[#allocation42_spill] sm:$0xff] }
 0x7dd   : > { %v7605_v2 = vsub.f32 %v15240_v59, %v6709_v22  ;;  %v15313_v7 = vpop.eup %9930  ;;  %9934 = vpow2.f32 %v6202_v6  ;;  %v6749_v62 = vmul.f32 -0.5, %v15001_v46  ;;  %v6755_v23 = vadd.f32 1.0, %v15016_v3 }
 0x7de   : > { %9936 = vpow2.f32 %v6214_v32  ;;  %v6344_v50 = vmul.f32 %v5691_v28, %v514_v44  ;;  %v6758_v59 = vmul.f32 -0.5, %v15016_v3  ;;  %v6218_v41 = vmul.f32 1.442695, %v6009_v49 }
 0x7df   : > { %v7718_v38 = vsel %vm1410_vm0, %v7605_v2, 0.0  ;;  %v6456_v57 = vmax.f32 %v5691_v28, 0.0  ;;  %9938 = vlog2.f32 %v6746_v36  ;;  %v6216_v10 = vmul.f32 1.442695, %v6008_v26  ;;  %v15352_v2 = vld [vmem:[%s10206_s12 + $0x198] sm:$0xff] }
 0x7e0   : > { %v7719_v17 = vadd.f32 %v7718_v38, %v7717_v15  ;;  %v6752_v11 = vand.u32 2147483647, %v15001_v46  ;;  %9940 = vlog2.f32 %v6755_v23  ;;  %v6764_v25 = vadd.f32 1.0, %v15011_v16  ;;  %v10100_v38 = vld [vmem:[%s10206_s12 + $0x1a0] sm:$0xf]  ;;  %v16725_v23 = vld [vmem:[#allocation3_spill] sm:$0xff] }
 0x7e1   : > { %v16703_v18 = vmax.f32 %v14898_v35, 0.0  ;;  %v6750_v31 = vadd.f32 1.0, %v6749_v62  ;;  %v6767_v33 = vmul.f32 -0.5, %v15011_v16  ;;  %v7723_v37 = vadd.f32 %v16705_v43, %v16704_v63 }
 0x7e2   : > { %7720 = vadd.xlane.f32.xlu0 %v7719_v17  ;;  %v6759_v28 = vadd.f32 1.0, %v6758_v59  ;;  %v6761_v21 = vand.u32 2147483647, %v15016_v3  ;;  %9942 = vlog2.f32 %v6764_v25  ;;  %v15333_v5 = vadd.f32 %v14875_v61, %v14782_v9 }
 0x7e3   : > { %v15325_v8 = vsub.f32 %v14936_v12, %v16703_v18  ;;  %v15335_v6 = vpop.eup %9932  ;;  %9944 = vpow2.f32 %v6218_v41  ;;  %v15337_v35 = vsub.f32 %v6344_v50, %v6456_v57  ;;  %v16707_v12 = vld [vmem:[#allocation7_spill] sm:$0xff]  ;;  %v15342_v32 = vadd.f32 %v14877_v42, %v14818_v47  ;;  %v16717_v18 = vld [vmem:[#allocation86_spill] sm:$0xff] }
 0x7e4   : > { %v7724_v15 = vadd.f32 %v7723_v37, %v16707_v12  ;;  %9946 = vpow2.f32 %v6216_v10  ;;  %vm15344_vm2 = vcmp.lt.f32.partialorder %v6752_v11, 0.0004427343  ;;  %v6770_v61 = vand.u32 2147483647, %v15011_v16  ;;  %v16715_v11 = vld [vmem:[#allocation84_spill] sm:$0xff] }
 0x7e5   : > { %16706 = vst [vmem:[#allocation33_spill] sm:$0xff] %v15337_v35  ;;  %16708 = vst [vmem:[#allocation30_spill] sm:$0xff] %v15342_v32  ;;  %v5902_v22 = vand.u32 2147483647, %v15333_v5  ;;  %v6751_v49 = vmul.f32 %v15001_v46, %v6750_v31  ;;  %v6768_v36 = vadd.f32 1.0, %v6767_v33  ;;  %v520_v26 = vunpack.c.l.bf16 %v15352_v2 }
 0x7e6   : > { %v6809_v62 = vadd.f32 1.0, %v15030_v1  ;;  %v6760_v42 = vmul.f32 %v15016_v3, %v6759_v28  ;;  %vm15357_vm6 = vcmp.lt.f32.partialorder %v6761_v21, 0.0004427343  ;;  %v522_v50 = vunpack.c.l.bf16 %v10100_v38 }
 0x7e7   : > { %v5904_v59 = vand.u32 2147483647, %v15342_v32  ;;  %v15363_v17 = vpop.eup %9934  ;;  %v6014_v46 = vsub.f32 0.0, %v5902_v22  ;;  %v6812_v41 = vmul.f32 -0.5, %v15030_v1  ;;  %v6818_v57 = vadd.f32 1.0, %v15040_v24 }
 0x7e8   : > { %9948 = vlog2.f32 %v6809_v62  ;;  %v15367_v10 = vpop.eup %9936  ;;  %vm15369_vm7 = vcmp.lt.f32.partialorder %v6770_v61, 0.0004427343  ;;  %v16716_v25 = vmax.f32 %v16715_v11, 0.0  ;;  %v6815_v33 = vand.u32 2147483647, %v15030_v1 }
 0x7e9   : > { %v6827_v63 = vadd.f32 1.0, %v15036_v30  ;;  %v9939_v43 = vpop.eup %9938  ;;  %v6769_v37 = vmul.f32 %v15011_v16, %v6768_v36  ;;  %v15382_v28 = vmul.f32 %v15333_v5, %v520_v26  ;;  %9950 = vlog2.f32 %v6818_v57 }
 0x7ea   : > { %v15376_v31 = vsub.f32 %v16717_v18, %v16716_v25  ;;  %v9941_v12 = vpop.eup %9940  ;;  %v6748_v61 = vmul.f32 0.6931472, %v9939_v43  ;;  %v6016_v22 = vsub.f32 0.0, %v5904_v59  ;;  %v15386_v62 = vmul.f32 %v15342_v32, %v522_v50  ;;  %v16721_v43 = vld [vmem:[#allocation81_spill] sm:$0xff]  ;;  %v16723_v18 = vld [vmem:[#allocation12_spill] sm:$0xff] }
 0x7eb   : > { %v6821_v38 = vmul.f32 -0.5, %v15040_v24  ;;  %v6757_v11 = vmul.f32 0.6931472, %v9941_v12  ;;  %v6228_v25 = vmul.f32 1.442695, %v6014_v46  ;;  %v6813_v0 = vadd.f32 1.0, %v6812_v41 }
 0x7ec   : > { %16718 = vst [vmem:[#allocation36_spill] sm:$0xff] %v15386_v62  ;;  %v9943_v16 = vpop.eup %9942  ;;  %v6754_v36 = vsel %vm15344_vm2, %v6751_v49, %v6748_v61  ;;  %vm15392_vm1 = vcmp.lt.f32.partialorder %v6815_v33, 0.0004427343  ;;  %9952 = vlog2.f32 %v6827_v63  ;;  %v6830_v59 = vmul.f32 -0.5, %v15036_v30  ;;  %v16722_v41 = vld [vmem:[#allocation6_spill] sm:$0xff]  ;;  %v16724_v49 = vld [vmem:[#allocation52_spill] sm:$0xff] }
 0x7ed   : > { %v15397_v50 = vpop.eup %9944  ;;  %v6763_v57 = vsel %vm15357_vm6, %v6760_v42, %v6757_v11  ;;  %v6766_v46 = vmul.f32 0.6931472, %v9943_v16  ;;  %v7610_v12 = vsub.f32 %v16721_v43, %v6754_v36  ;;  %v7732_v21 = vadd.f32 %v16723_v18, %v16722_v41  ;;  %v16726_v11 = vld [vmem:[#allocation27_spill] sm:$0xff] }
 0x7ee   : > { %v15404_v44 = vpop.eup %9946  ;;  %v7611_v33 = vsub.f32 %v16724_v49, %v6763_v57  ;;  %v6232_v61 = vmul.f32 1.442695, %v6016_v22  ;;  %v6822_v62 = vadd.f32 1.0, %v6821_v38  ;;  %v6824_v63 = vand.u32 2147483647, %v15040_v24  ;;  %v16727_v22 = vld [vmem:[#allocation82_spill] sm:$0xff] }
 0x7ef   : > { %v6772_v32 = vsel %vm15369_vm7, %v6769_v37, %v6766_v46  ;;  %v7725_v35 = vadd.f32 %v7724_v15, %v7610_v12  ;;  %v7733_v42 = vadd.f32 %v7732_v21, %v16725_v23  ;;  %v5697_v16 = vadd.f32 %v16726_v11, %v14820_v48  ;;  %v16728_v49 = vld [vmem:[#allocation79_spill] sm:$0xff] }
 0x7f0   : > { %v7612_v36 = vsub.f32 %v15325_v8, %v6772_v32  ;;  %9954 = vpow2.f32 %v6228_v25  ;;  %v6814_v18 = vmul.f32 %v15030_v1, %v6813_v0  ;;  %v5699_v38 = vadd.f32 %v16727_v22, %v14782_v9  ;;  %v10101_v0 = vld [vmem:[%s10206_s12 + $0x1b4] sm:$0xff]  ;;  %v16730_v23 = vld [vmem:[#allocation87_spill] sm:$0xff] }
 0x7f1   : > { %v7726_v43 = vadd.f32 %v7725_v35, %v7611_v33  ;;  %v6831_v41 = vadd.f32 1.0, %v6830_v59  ;;  %v6833_v3 = vand.u32 2147483647, %v15036_v30  ;;  %v5903_v15 = vand.u32 2147483647, %v5697_v16 }
 0x7f2   : > { %v9949_v57 = vpop.eup %9948  ;;  %v7727_v37 = vsel %vm1410_vm0, %v7612_v36, 0.0  ;;  %v521_v46 = vunpack.c.h.bf16 %v15352_v2  ;;  %v5909_v12 = vand.u32 2147483647, %v5699_v38  ;;  %9956 = vpow2.f32 %v6232_v61 }
 0x7f3   : > { %v6811_v21 = vmul.f32 0.6931472, %v9949_v57  ;;  %v9951_v8 = vpop.eup %9950  ;;  %v7728_v32 = vadd.f32 %v7727_v37, %v7726_v43  ;;  %v6823_v1 = vmul.f32 %v15040_v24, %v6822_v62  ;;  %v527_v25 = vunpack.c.l.bf16 %v10101_v0  ;;  %v16734_v37 = vld [vmem:[#allocation83_spill] sm:$0xff] }
 0x7f4   : > { %v6820_v35 = vmul.f32 0.6931472, %v9951_v8  ;;  %v6015_v59 = vsub.f32 0.0, %v5903_v15  ;;  %v15426_v33 = vadd.f32 %v16728_v49, %v14818_v47  ;;  %vm6825_vm8 = vcmp.lt.f32.partialorder %v6824_v63, 0.0004427343  ;;  %v16733_v47 = vld [vmem:[#allocation53_spill] sm:$0xff] }
 0x7f5   : > { %v6817_v9 = vsel %vm15392_vm1, %v6814_v18, %v6811_v21  ;;  %7729 = vadd.xlane.f32.xlu1 %v7728_v32  ;;  %v6832_v2 = vmul.f32 %v15036_v30, %v6831_v41  ;;  %v6021_v61 = vsub.f32 0.0, %v5909_v12  ;;  %vm15430_vm9 = vcmp.lt.f32.partialorder %v6833_v3, 0.0004427343  ;;  %v16736_v8 = vld [vmem:[#allocation93_spill] sm:$0xff] }
 0x7f6   : > { %16729 = vst [vmem:[#allocation74_spill] sm:$0xff] %v15426_v33  ;;  %v7617_v11 = vsub.f32 %v16730_v23, %v6817_v9  ;;  %v9953_v36 = vpop.eup %9952  ;;  %v6826_v24 = vsel %vm6825_vm8, %v6823_v1, %v6820_v35  ;;  %v6351_v26 = vmul.f32 %v5697_v16, %v521_v46  ;;  %v5911_v18 = vand.u32 2147483647, %v15426_v33 }
 0x7f7   : > { %v6829_v22 = vmul.f32 0.6931472, %v9953_v36  ;;  %v7618_v57 = vsub.f32 %v16733_v47, %v6826_v24  ;;  %v6463_v63 = vmax.f32 %v5697_v16, 0.0  ;;  %v6230_v15 = vmul.f32 1.442695, %v6015_v59 }
 0x7f8   : > { %v7734_v43 = vadd.f32 %v7733_v42, %v7617_v11  ;;  %v6357_v30 = vmul.f32 %v5699_v38, %v527_v25  ;;  %v6469_v41 = vmax.f32 %v5699_v38, 0.0  ;;  %v15438_v21 = vadd.f32 %v16734_v37, %v14820_v48  ;;  %v10102_v42 = vld [vmem:[%s10206_s12 + $0x1bc] sm:$0xf] }
 0x7f9   : > { %v6835_v3 = vsel %vm15430_vm9, %v6832_v2, %v6829_v22  ;;  %v6242_v46 = vmul.f32 1.442695, %v6021_v61  ;;  %v6872_v32 = vadd.f32 1.0, %v16736_v8  ;;  %v529_v16 = vunpack.c.l.bf16 %v10102_v42  ;;  %v16738_v11 = vld [vmem:[#allocation97_spill] sm:$0xff]  ;;  %v16741_v22 = vld [vmem:[#allocation96_spill] sm:$0xff] }
 0x7fa   : > { %16735 = vst [vmem:[#allocation9_spill] sm:$0xff] %v15438_v21  ;;  %v7735_v12 = vadd.f32 %v7734_v43, %v7618_v57  ;;  %v15443_v1 = vpop.eup %9954  ;;  %v7619_v9 = vsub.f32 %v15376_v31, %v6835_v3  ;;  %v6023_v35 = vsub.f32 0.0, %v5911_v18  ;;  %v5910_v38 = vand.u32 2147483647, %v15438_v21  ;;  %v16746_v3 = vld [vmem:[#allocation41_spill] sm:$0xff] }
 0x7fb   : > { %v16737_v25 = vmax.f32 %v15333_v5, 0.0  ;;  %v15453_v59 = vsub.f32 %v6351_v26, %v6463_v63  ;;  %v528_v49 = vunpack.c.h.bf16 %v10101_v0  ;;  %9958 = vlog2.f32 %v6872_v32  ;;  %v16743_v63 = vld [vmem:[#allocation51_spill] sm:$0xff]  ;;  %v16761_v0 = vld [vmem:[#allocation25_spill] sm:$0xff] }
 0x7fc   : > { %v7736_v2 = vsel %vm1410_vm0, %v7619_v9, 0.0  ;;  %9960 = vpow2.f32 %v6230_v15  ;;  %v6022_v23 = vsub.f32 0.0, %v5910_v38  ;;  %v6881_v31 = vadd.f32 1.0, %v16738_v11  ;;  %v15457_v61 = vpop.eup %9956  ;;  %v16762_v32 = vld [vmem:[#allocation39_spill] sm:$0xff] }
 0x7fd   : > { %v15451_v48 = vsub.f32 %v15382_v28, %v16737_v25  ;;  %v7737_v36 = vadd.f32 %v7736_v2, %v7735_v12  ;;  %9962 = vpow2.f32 %v6242_v46  ;;  %v15459_v24 = vsub.f32 %v6357_v30, %v6469_v41  ;;  %v16745_v30 = vld [vmem:[#allocation54_spill] sm:$0xff]  ;;  %v16749_v25 = vld [vmem:[#allocation99_spill] sm:$0xff] }
 0x7fe   : > { %v6875_v5 = vmul.f32 -0.5, %v16736_v8  ;;  %v6246_v28 = vmul.f32 1.442695, %v6023_v35  ;;  %v15463_v62 = vmul.f32 %v15426_v33, %v529_v16  ;;  %9964 = vlog2.f32 %v6881_v31  ;;  %v16747_v12 = vld [vmem:[#allocation14_spill] sm:$0xff]  ;;  %v16748_v35 = vld [vmem:[#allocation24_spill] sm:$0xff] }
 0x7ff   : > { %16739 = vst [vmem:[#allocation42_spill] sm:$0xff] %v15459_v24  ;;  %7738 = vadd.xlane.f32.xlu1 %v7737_v36  ;;  %v6244_v26 = vmul.f32 1.442695, %v6022_v23  ;;  %v6884_v18 = vmul.f32 -0.5, %v16738_v11  ;;  %v6890_v47 = vadd.f32 1.0, %v16741_v22  ;;  %v6893_v57 = vmul.f32 -0.5, %v16741_v22 }
 0x800   : > { %16740 = vst [vmem:[#allocation7_spill] sm:$0xff] %v15463_v62  ;;  %v15470_v43 = vmul.f32 %v15438_v21, %v528_v49  ;;  %v16744_v15 = vmax.f32 %v16743_v63, 0.0  ;;  %v6878_v37 = vand.u32 2147483647, %v16736_v8  ;;  %v7741_v46 = vadd.f32 %v16747_v12, %v16746_v3  ;;  %v16750_v31 = vld [vmem:[#allocation64_spill] sm:$0xff]  ;;  %v16770_v3 = vld [vmem:[#allocation101_spill] sm:$0xff] }
 0x801   : > { %v6876_v9 = vadd.f32 1.0, %v6875_v5  ;;  %v6887_v42 = vand.u32 2147483647, %v16738_v11  ;;  %9966 = vlog2.f32 %v6890_v47  ;;  %v6896_v16 = vand.u32 2147483647, %v16741_v22  ;;  %v16753_v47 = vld [vmem:[#allocation100_spill] sm:$0xff] }
 0x802   : > { %16742 = vst [vmem:[#allocation84_spill] sm:$0xff] %v15470_v43  ;;  %v15475_v41 = vsub.f32 %v16745_v30, %v16744_v15  ;;  %9968 = vpow2.f32 %v6246_v28  ;;  %v7742_v38 = vadd.f32 %v7741_v46, %v16748_v35  ;;  %v6935_v49 = vadd.f32 1.0, %v16749_v25 }
 0x803   : > { %9970 = vpow2.f32 %v6244_v26  ;;  %v6885_v2 = vadd.f32 1.0, %v6884_v18  ;;  %v6894_v23 = vadd.f32 1.0, %v6893_v57  ;;  %v6944_v36 = vadd.f32 1.0, %v16750_v31 }
 0x804   : > { %vm15486_vm11 = vcmp.lt.f32.partialorder %v6878_v37, 0.0004427343  ;;  %9972 = vlog2.f32 %v6935_v49  ;;  %v6938_v5 = vmul.f32 -0.5, %v16749_v25  ;;  %v6953_v28 = vadd.f32 1.0, %v16753_v47  ;;  %v16760_v49 = vld [vmem:[#allocation89_spill] sm:$0xff] }
 0x805   : > { %v9959_v15 = vpop.eup %9958  ;;  %v6877_v30 = vmul.f32 %v16736_v8, %v6876_v9  ;;  %vm15493_vm5 = vcmp.lt.f32.partialorder %v6887_v42, 0.0004427343  ;;  %9974 = vlog2.f32 %v6944_v36  ;;  %v6947_v26 = vmul.f32 -0.5, %v16750_v31  ;;  %v16758_v42 = vld [vmem:[#allocation46_spill] sm:$0xff] }
 0x806   : > { %v15498_v18 = vpop.eup %9960  ;;  %v6874_v57 = vmul.f32 0.6931472, %v9959_v15  ;;  %vm15500_vm12 = vcmp.lt.f32.partialorder %v6896_v16, 0.0004427343  ;;  %9976 = vlog2.f32 %v6953_v28  ;;  %v6956_v12 = vmul.f32 -0.5, %v16753_v47 }
 0x807   : > { %v15505_v46 = vpop.eup %9962  ;;  %v6886_v8 = vmul.f32 %v16738_v11, %v6885_v2  ;;  %v6895_v9 = vmul.f32 %v16741_v22, %v6894_v23  ;;  %v16759_v35 = vmax.f32 %v16758_v42, 0.0  ;;  %v7750_v15 = vadd.f32 %v16762_v32, %v16761_v0  ;;  %v16763_v11 = vld [vmem:[#allocation55_spill] sm:$0xff] }
 0x808   : > { %v9965_v16 = vpop.eup %9964  ;;  %v6880_v62 = vsel %vm15486_vm11, %v6877_v30, %v6874_v57  ;;  %v6939_v28 = vadd.f32 1.0, %v6938_v5  ;;  %v6941_v33 = vand.u32 2147483647, %v16749_v25  ;;  %v6998_v43 = vadd.f32 1.0, %v15104_v34 }
 0x809   : > { %v6513_v36 = vsub.f32 %v16760_v49, %v16759_v35  ;;  %v6883_v21 = vmul.f32 0.6931472, %v9965_v16  ;;  %v7624_v2 = vsub.f32 %v16763_v11, %v6880_v62  ;;  %v6948_v22 = vadd.f32 1.0, %v6947_v26  ;;  %v16764_v35 = vld [vmem:[#allocation22_spill] sm:$0xff]  ;;  %v16765_v26 = vld [vmem:[#allocation88_spill] sm:$0xff] }
 0x80a   : > { %v6950_v23 = vand.u32 2147483647, %v16750_v31  ;;  %v6957_v42 = vadd.f32 1.0, %v6956_v12  ;;  %v7751_v49 = vadd.f32 %v7750_v15, %v16764_v35  ;;  %9978 = vlog2.f32 %v6998_v43 }
 0x80b   : > { %v7001_v0 = vmul.f32 -0.5, %v15104_v34  ;;  %v9967_v32 = vpop.eup %9966  ;;  %v6889_v63 = vsel %vm15493_vm5, %v6886_v8, %v6883_v21  ;;  %v7743_v5 = vadd.f32 %v7742_v38, %v7624_v2  ;;  %v6959_v30 = vand.u32 2147483647, %v16753_v47 }
 0x80c   : > { %v7007_v57 = vadd.f32 1.0, %v15120_v56  ;;  %v15526_v16 = vpop.eup %9968  ;;  %v6892_v62 = vmul.f32 0.6931472, %v9967_v32  ;;  %v7625_v11 = vsub.f32 %v16765_v26, %v6889_v63  ;;  %v6940_v12 = vmul.f32 %v16749_v25, %v6939_v28 }
 0x80d   : > { %vm15530_vm13 = vcmp.lt.f32.partialorder %v6941_v33, 0.0004427343  ;;  %v15534_v15 = vpop.eup %9970  ;;  %v6949_v21 = vmul.f32 %v16750_v31, %v6948_v22  ;;  %vm15537_vm14 = vcmp.lt.f32.partialorder %v6950_v23, 0.0004427343  ;;  %v7016_v8 = vadd.f32 1.0, %v16770_v3 }
 0x80e   : > { %9980 = vlog2.f32 %v7007_v57  ;;  %v9973_v2 = vpop.eup %9972  ;;  %v6898_v35 = vsel %vm15500_vm12, %v6895_v9, %v6892_v62  ;;  %v7744_v25 = vadd.f32 %v7743_v5, %v7625_v11  ;;  %v6958_v33 = vmul.f32 %v16753_v47, %v6957_v42  ;;  %v16773_v42 = vld [vmem:[#allocation34_spill] sm:$0xff]  ;;  %v16775_v11 = vld [vmem:[#allocation91_spill] sm:$0xff] }
 0x80f   : > { %v7002_v28 = vadd.f32 1.0, %v7001_v0  ;;  %v9975_v32 = vpop.eup %9974  ;;  %v7626_v63 = vsub.f32 %v15475_v41, %v6898_v35  ;;  %v6937_v26 = vmul.f32 0.6931472, %v9973_v2  ;;  %vm15546_vm15 = vcmp.lt.f32.partialorder %v6959_v30, 0.0004427343  ;;  %v16774_v0 = vld [vmem:[#allocation32_spill] sm:$0xff] }
 0x810   : > { %v7004_v22 = vand.u32 2147483647, %v15104_v34  ;;  %v9977_v23 = vpop.eup %9976  ;;  %v6946_v57 = vmul.f32 0.6931472, %v9975_v32  ;;  %v7010_v24 = vmul.f32 -0.5, %v15120_v56  ;;  %9982 = vlog2.f32 %v7016_v8  ;;  %v16776_v32 = vld [vmem:[#allocation92_spill] sm:$0xff] }
 0x811   : > { %v7019_v37 = vmul.f32 -0.5, %v16770_v3  ;;  %v7745_v47 = vsel %vm1410_vm0, %v7626_v63, 0.0  ;;  %v6943_v9 = vsel %vm15530_vm13, %v6940_v12, %v6937_v26  ;;  %v6955_v41 = vmul.f32 0.6931472, %v9977_v23  ;;  %v16779_v12 = vld [vmem:[#allocation43_spill] sm:$0xff] }
 0x812   : > { %v7759_v5 = vadd.f32 %v16774_v0, %v16773_v42  ;;  %v7746_v30 = vadd.f32 %v7745_v47, %v7744_v25  ;;  %v6952_v62 = vsel %vm15537_vm14, %v6949_v21, %v6946_v57  ;;  %v7631_v2 = vsub.f32 %v16775_v11, %v6943_v9  ;;  %v16780_v57 = vld [vmem:[#allocation106_spill] sm:$0xff] }
 0x813   : > { %v7003_v35 = vmul.f32 %v15104_v34, %v7002_v28  ;;  %v6961_v8 = vsel %vm15546_vm15, %v6958_v33, %v6955_v41  ;;  %v7632_v63 = vsub.f32 %v16776_v32, %v6952_v62  ;;  %vm15565_vm4 = vcmp.lt.f32.partialorder %v7004_v22, 0.0004427343 }
 0x814   : > { %v7760_v26 = vadd.f32 %v7759_v5, %v16779_v12  ;;  %v9979_v23 = vpop.eup %9978  ;;  %7747 = vadd.xlane.f32.xlu0 %v7746_v30  ;;  %v7633_v25 = vsub.f32 %v6513_v36, %v6961_v8  ;;  %v7752_v38 = vadd.f32 %v7751_v49, %v7631_v2  ;;  %v7011_v21 = vadd.f32 1.0, %v7010_v24  ;;  %v16781_v30 = vld [vmem:[#allocation94_spill] sm:$0xff]  ;;  %v16782_v8 = vld [vmem:[#allocation107_spill] sm:$0xff] }
 0x815   : > { %v7061_v47 = vadd.f32 1.0, %v16780_v57  ;;  %v7000_v9 = vmul.f32 0.6931472, %v9979_v23  ;;  %v7013_v34 = vand.u32 2147483647, %v15120_v56  ;;  %v7020_v28 = vadd.f32 1.0, %v7019_v37 }
 0x816   : > { %v7070_v33 = vadd.f32 1.0, %v15146_v53  ;;  %v7753_v31 = vadd.f32 %v7752_v38, %v7632_v63  ;;  %v7022_v22 = vand.u32 2147483647, %v16770_v3  ;;  %v7064_v41 = vmul.f32 -0.5, %v16780_v57  ;;  %v16783_v23 = vld [vmem:[#allocation18_spill] sm:$0xff] }
 0x817   : > { %9984 = vlog2.f32 %v7061_v47  ;;  %v7754_v0 = vsel %vm1410_vm0, %v7633_v25, 0.0  ;;  %v7006_v24 = vsel %vm15565_vm4, %v7003_v35, %v7000_v9  ;;  %v7073_v36 = vmul.f32 -0.5, %v15146_v53  ;;  %v16784_v25 = vld [vmem:[#allocation29_spill] sm:$0xff]  ;;  %v16785_v9 = vld [vmem:[#allocation62_spill] sm:$0xff] }
 0x818   : > { %v9981_v42 = vpop.eup %9980  ;;  %9986 = vlog2.f32 %v7070_v33  ;;  %v7755_v49 = vadd.f32 %v7754_v0, %v7753_v31  ;;  %v7012_v37 = vmul.f32 %v15120_v56, %v7011_v21  ;;  %v7638_v62 = vsub.f32 %v16781_v30, %v7006_v24  ;;  %v16789_v31 = vld [vmem:[#allocation58_spill] sm:$0xff]  ;;  %v16791_v0 = vld [vmem:[#allocation63_spill] sm:$0xff] }
 0x819   : > { %v7009_v5 = vmul.f32 0.6931472, %v9981_v42  ;;  %vm7014_vm3 = vcmp.lt.f32.partialorder %v7013_v34, 0.0004427343  ;;  %v7021_v11 = vmul.f32 %v16770_v3, %v7020_v28  ;;  %v7067_v2 = vand.u32 2147483647, %v16780_v57 }
 0x81a   : > { %v7079_v32 = vadd.f32 1.0, %v16782_v8  ;;  %v9983_v63 = vpop.eup %9982  ;;  %7756 = vadd.xlane.f32.xlu1 %v7755_v49  ;;  %v7761_v35 = vadd.f32 %v7760_v26, %v7638_v62  ;;  %v7065_v12 = vadd.f32 1.0, %v7064_v41  ;;  %v7768_v38 = vadd.f32 %v16784_v25, %v16783_v23  ;;  %v16786_v34 = vld [vmem:[#allocation90_spill] sm:$0xff]  ;;  %v16788_v3 = vld [vmem:[#allocation95_spill] sm:$0xff]  ;;  %v16792_v49 = vld [vmem:[#allocation44_spill] sm:$0xff] }
 0x81b   : > { %v7015_v43 = vsel %vm7014_vm3, %v7012_v37, %v7009_v5  ;;  %v7018_v47 = vmul.f32 0.6931472, %v9983_v63  ;;  %v7074_v21 = vadd.f32 1.0, %v7073_v36  ;;  %v16787_v33 = vmax.f32 %v16786_v34, 0.0 }
 0x81c   : > { %v7639_v56 = vsub.f32 %v16785_v9, %v7015_v43  ;;  %9988 = vlog2.f32 %v7079_v32  ;;  %vm7023_vm2 = vcmp.lt.f32.partialorder %v7022_v22, 0.0004427343  ;;  %v16790_v42 = vmax.f32 %v16789_v31, 0.0  ;;  %v16800_v31 = vld [vmem:[#allocation47_spill] sm:$0xff] }
 0x81d   : > { %v6520_v28 = vsub.f32 %v16788_v3, %v16787_v33  ;;  %v7769_v26 = vadd.f32 %v7768_v38, %v16792_v49  ;;  %v7024_v41 = vsel %vm7023_vm2, %v7021_v11, %v7018_v47  ;;  %v7076_v37 = vand.u32 2147483647, %v15146_v53  ;;  %v16801_v49 = vld [vmem:[#allocation98_spill] sm:$0xff] }
 0x81e   : > { %v6527_v24 = vsub.f32 %v16791_v0, %v16790_v42  ;;  %v7762_v5 = vadd.f32 %v7761_v35, %v7639_v56  ;;  %v7124_v30 = vadd.f32 1.0, %v15152_v39  ;;  %v7082_v36 = vmul.f32 -0.5, %v16782_v8 }
 0x81f   : > { %v7640_v62 = vsub.f32 %v6520_v28, %v7024_v41  ;;  %v7085_v32 = vand.u32 2147483647, %v16782_v8  ;;  %v7133_v63 = vadd.f32 1.0, %v15169_v29  ;;  %v7066_v22 = vmul.f32 %v16780_v57, %v7065_v12  ;;  %v16799_v28 = vld [vmem:[#allocation48_spill] sm:$0xff] }
 0x820   : > { %vm15600_vm6 = vcmp.lt.f32.partialorder %v7067_v2, 0.0004427343  ;;  %v7075_v11 = vmul.f32 %v15146_v53, %v7074_v21  ;;  %9990 = vlog2.f32 %v7124_v30  ;;  %v7127_v25 = vmul.f32 -0.5, %v15152_v39  ;;  %v16813_v21 = vld [vmem:[#allocation105_spill] sm:$0xff] }
 0x821   : > { %v9985_v35 = vpop.eup %9984  ;;  %v7763_v23 = vsel %vm1410_vm0, %v7640_v62, 0.0  ;;  %9992 = vlog2.f32 %v7133_v63  ;;  %v7142_v38 = vadd.f32 1.0, %v15154_v19  ;;  %vm15608_vm7 = vcmp.lt.f32.partialorder %v7076_v37, 0.0004427343  ;;  %v16802_v62 = vld [vmem:[#allocation4_spill] sm:$0xff]  ;;  %v16803_v63 = vld [vmem:[#allocation49_spill] sm:$0xff] }
 0x822   : > { %v9987_v47 = vpop.eup %9986  ;;  %v7764_v9 = vadd.f32 %v7763_v23, %v7762_v5  ;;  %v7063_v56 = vmul.f32 0.6931472, %v9985_v35  ;;  %v7136_v2 = vmul.f32 -0.5, %v15169_v29  ;;  %v7083_v53 = vadd.f32 1.0, %v7082_v36 }
 0x823   : > { %v7072_v12 = vmul.f32 0.6931472, %v9987_v47  ;;  %vm15613_vm1 = vcmp.lt.f32.partialorder %v7085_v32, 0.0004427343  ;;  %9994 = vlog2.f32 %v7142_v38  ;;  %v7130_v33 = vand.u32 2147483647, %v15152_v39 }
 0x824   : > { %7765 = vadd.xlane.f32.xlu0 %v7764_v9  ;;  %v7069_v34 = vsel %vm15600_vm6, %v7066_v22, %v7063_v56  ;;  %v7145_v3 = vmul.f32 -0.5, %v15154_v19  ;;  %v7777_v42 = vadd.f32 %v16800_v31, %v16799_v28  ;;  %v7128_v5 = vadd.f32 1.0, %v7127_v25  ;;  %v16804_v47 = vld [vmem:[#allocation60_spill] sm:$0xff] }
 0x825   : > { %v7078_v0 = vsel %vm15608_vm7, %v7075_v11, %v7072_v12  ;;  %v7645_v41 = vsub.f32 %v16801_v49, %v7069_v34  ;;  %v7139_v37 = vand.u32 2147483647, %v15169_v29  ;;  %v7137_v32 = vadd.f32 1.0, %v7136_v2  ;;  %v16806_v11 = vld [vmem:[#allocation102_spill] sm:$0xff] }
 0x826   : > { %v9989_v30 = vpop.eup %9988  ;;  %v7646_v36 = vsub.f32 %v16802_v62, %v7078_v0  ;;  %v7778_v22 = vadd.f32 %v7777_v42, %v16803_v63  ;;  %v7187_v43 = vadd.f32 1.0, %v15173_v13  ;;  %v7084_v23 = vmul.f32 %v16782_v8, %v7083_v53  ;;  %v16811_v0 = vld [vmem:[#allocation65_spill] sm:$0xff] }
 0x827   : > { %v7081_v35 = vmul.f32 0.6931472, %v9989_v30  ;;  %v7770_v38 = vadd.f32 %v7769_v26, %v7645_v41  ;;  %v16805_v9 = vmax.f32 %v16804_v47, 0.0  ;;  %vm15634_vm8 = vcmp.lt.f32.partialorder %v7130_v33, 0.0004427343 }
 0x828   : > { %v7146_v57 = vadd.f32 1.0, %v7145_v3  ;;  %9996 = vlog2.f32 %v7187_v43  ;;  %v7196_v2 = vadd.f32 1.0, %v15199_v4  ;;  %v7129_v28 = vmul.f32 %v15152_v39, %v7128_v5 }
 0x829   : > { %v6534_v56 = vsub.f32 %v16806_v11, %v16805_v9  ;;  %v7087_v12 = vsel %vm15613_vm1, %v7084_v23, %v7081_v35  ;;  %v7771_v34 = vadd.f32 %v7770_v38, %v7646_v36  ;;  %vm15642_vm9 = vcmp.lt.f32.partialorder %v7139_v37, 0.0004427343  ;;  %v16814_v23 = vld [vmem:[#allocation67_spill] sm:$0xff] }
 0x82a   : > { %v9991_v26 = vpop.eup %9990  ;;  %v7647_v53 = vsub.f32 %v6527_v24, %v7087_v12  ;;  %v7138_v33 = vmul.f32 %v15169_v29, %v7137_v32  ;;  %v7148_v31 = vand.u32 2147483647, %v15154_v19  ;;  %9998 = vlog2.f32 %v7196_v2  ;;  %v16817_v2 = vld [vmem:[#allocation50_spill] sm:$0xff] }
 0x82b   : > { %v9993_v3 = vpop.eup %9992  ;;  %v7126_v42 = vmul.f32 0.6931472, %v9991_v26  ;;  %v16812_v49 = vmax.f32 %v16811_v0, 0.0  ;;  %v7190_v39 = vmul.f32 -0.5, %v15173_v13  ;;  %v7205_v5 = vadd.f32 1.0, %v15192_v45 }
 0x82c   : > { %v7772_v37 = vsel %vm1410_vm0, %v7647_v53, 0.0  ;;  %v7135_v30 = vmul.f32 0.6931472, %v9993_v3  ;;  %v7147_v24 = vmul.f32 %v15154_v19, %v7146_v57  ;;  %v7199_v29 = vmul.f32 -0.5, %v15199_v4  ;;  %v16815_v19 = vld [vmem:[#allocation103_spill] sm:$0xff]  ;;  %v16816_v57 = vld [vmem:[#allocation56_spill] sm:$0xff] }
 0x82d   : > { %v15651_v41 = vsub.f32 %v16813_v21, %v16812_v49  ;;  %v9995_v62 = vpop.eup %9994  ;;  %v7773_v36 = vadd.f32 %v7772_v37, %v7771_v34  ;;  %v7132_v32 = vsel %vm15634_vm8, %v7129_v28, %v7126_v42  ;;  %v7193_v63 = vand.u32 2147483647, %v15173_v13  ;;  %v16820_v3 = vld [vmem:[#allocation57_spill] sm:$0xff]  ;;  %v16821_v21 = vld [vmem:[#allocation35_spill] sm:$0xff] }
 0x82e   : > { %10000 = vlog2.f32 %v7205_v5  ;;  %v7141_v43 = vsel %vm15642_vm9, %v7138_v33, %v7135_v30  ;;  %v7144_v35 = vmul.f32 0.6931472, %v9995_v62  ;;  %v7652_v38 = vsub.f32 %v16814_v23, %v7132_v32  ;;  %v16823_v23 = vld [vmem:[#allocation104_spill] sm:$0xff] }
 0x82f   : > { %v7208_v47 = vmul.f32 -0.5, %v15192_v45  ;;  %7774 = vadd.xlane.f32.xlu1 %v7773_v36  ;;  %vm7149_vm11 = vcmp.lt.f32.partialorder %v7148_v31, 0.0004427343  ;;  %v7653_v9 = vsub.f32 %v16815_v19, %v7141_v43  ;;  %v7191_v11 = vadd.f32 1.0, %v7190_v39  ;;  %v16822_v43 = vld [vmem:[#allocation37_spill] sm:$0xff] }
 0x830   : > { %v7786_v25 = vadd.f32 %v16817_v2, %v16816_v57  ;;  %v7150_v12 = vsel %vm7149_vm11, %v7147_v24, %v7144_v35  ;;  %v7779_v34 = vadd.f32 %v7778_v22, %v7652_v38  ;;  %v7200_v28 = vadd.f32 1.0, %v7199_v29  ;;  %v16825_v57 = vld [vmem:[#allocation59_spill] sm:$0xff] }
 0x831   : > { %v7250_v26 = vadd.f32 1.0, %v15212_v54  ;;  %v7654_v8 = vsub.f32 %v6534_v56, %v7150_v12  ;;  %vm15669_vm5 = vcmp.lt.f32.partialorder %v7193_v63, 0.0004427343  ;;  %v7202_v33 = vand.u32 2147483647, %v15199_v4  ;;  %v16826_v12 = vld [vmem:[#allocation69_spill] sm:$0xff] }
 0x832   : > { %v7787_v31 = vadd.f32 %v7786_v25, %v16820_v3  ;;  %v9997_v42 = vpop.eup %9996  ;;  %v7780_v0 = vadd.f32 %v7779_v34, %v7653_v9  ;;  %v7209_v49 = vadd.f32 1.0, %v7208_v47  ;;  %v7259_v39 = vadd.f32 1.0, %v16821_v21 }
 0x833   : > { %10002 = vlog2.f32 %v7250_v26  ;;  %v7781_v22 = vsel %vm1410_vm0, %v7654_v8, 0.0  ;;  %v7189_v5 = vmul.f32 0.6931472, %v9997_v42  ;;  %v7192_v37 = vmul.f32 %v15173_v13, %v7191_v11  ;;  %v16824_v11 = vld [vmem:[#allocation61_spill] sm:$0xff] }
 0x834   : > { %v7253_v56 = vmul.f32 -0.5, %v15212_v54  ;;  %v9999_v30 = vpop.eup %9998  ;;  %v7782_v24 = vadd.f32 %v7781_v22, %v7780_v0  ;;  %v7201_v29 = vmul.f32 %v15199_v4, %v7200_v28  ;;  %v7211_v62 = vand.u32 2147483647, %v15192_v45  ;;  %v16828_v22 = vld [vmem:[#allocation38_spill] sm:$0xff] }
 0x835   : > { %10004 = vlog2.f32 %v7259_v39  ;;  %v7195_v36 = vsel %vm15669_vm5, %v7192_v37, %v7189_v5  ;;  %v7198_v32 = vmul.f32 0.6931472, %v9999_v30  ;;  %v7262_v63 = vmul.f32 -0.5, %v16821_v21  ;;  %v16830_v37 = vld [vmem:[#allocation108_spill] sm:$0xff] }
 0x836   : > { %v7268_v35 = vadd.f32 1.0, %v16822_v43  ;;  %7783 = vadd.xlane.f32.xlu0 %v7782_v24  ;;  %vm7203_vm12 = vcmp.lt.f32.partialorder %v7202_v33, 0.0004427343  ;;  %v7210_v13 = vmul.f32 %v15192_v45, %v7209_v49  ;;  %v7659_v38 = vsub.f32 %v16823_v23, %v7195_v36  ;;  %v16827_v45 = vld [vmem:[#allocation66_spill] sm:$0xff] }
 0x837   : > { %v7256_v47 = vand.u32 2147483647, %v15212_v54  ;;  %v7204_v19 = vsel %vm7203_vm12, %v7201_v29, %v7198_v32  ;;  %v7254_v9 = vadd.f32 1.0, %v7253_v56  ;;  %v7795_v2 = vadd.f32 %v16825_v57, %v16824_v11  ;;  %v16837_v11 = vld [vmem:[#allocation26_spill] sm:$0xff]  ;;  %v16844_v29 = vld [vmem:[#allocation111_spill] sm:$0xff] }
 0x838   : > { %v10001_v4 = vpop.eup %10000  ;;  %10006 = vlog2.f32 %v7268_v35  ;;  %v7660_v34 = vsub.f32 %v16826_v12, %v7204_v19  ;;  %v7788_v28 = vadd.f32 %v7787_v31, %v7659_v38  ;;  %v7271_v26 = vmul.f32 -0.5, %v16822_v43 }
 0x839   : > { %v7207_v25 = vmul.f32 0.6931472, %v10001_v4  ;;  %vm7212_vm13 = vcmp.lt.f32.partialorder %v7211_v62, 0.0004427343  ;;  %v7263_v8 = vadd.f32 1.0, %v7262_v63  ;;  %v7796_v53 = vadd.f32 %v7795_v2, %v16827_v45  ;;  %v16838_v2 = vld [vmem:[#allocation71_spill] sm:$0xff] }
 0x83a   : > { %v7313_v33 = vadd.f32 1.0, %v15250_v14  ;;  %v7789_v42 = vadd.f32 %v7788_v28, %v7660_v34  ;;  %v7265_v0 = vand.u32 2147483647, %v16821_v21  ;;  %v7274_v49 = vand.u32 2147483647, %v16822_v43 }
 0x83b   : > { %v7213_v3 = vsel %vm7212_vm13, %v7210_v13, %v7207_v25  ;;  %v16829_v5 = vmax.f32 %v16828_v22, 0.0  ;;  %v7322_v56 = vadd.f32 1.0, %v15275_v52  ;;  %v7255_v24 = vmul.f32 %v15212_v54, %v7254_v9  ;;  %v16839_v25 = vld [vmem:[#allocation68_spill] sm:$0xff] }
 0x83c   : > { %v7661_v39 = vsub.f32 %v15651_v41, %v7213_v3  ;;  %10008 = vlog2.f32 %v7313_v33  ;;  %vm15702_vm14 = vcmp.lt.f32.partialorder %v7256_v47, 0.0004427343  ;;  %v7272_v62 = vadd.f32 1.0, %v7271_v26  ;;  %v16840_v3 = vld [vmem:[#allocation109_spill] sm:$0xff] }
 0x83d   : > { %v6548_v31 = vsub.f32 %v16830_v37, %v16829_v5  ;;  %v10003_v30 = vpop.eup %10002  ;;  %v7331_v36 = vadd.f32 1.0, %v15263_v27  ;;  %v7316_v63 = vmul.f32 -0.5, %v15250_v14  ;;  %10010 = vlog2.f32 %v7322_v56 }
 0x83e   : > { %v7790_v32 = vsel %vm1410_vm0, %v7661_v39, 0.0  ;;  %v7252_v41 = vmul.f32 0.6931472, %v10003_v30  ;;  %v7264_v23 = vmul.f32 %v16821_v21, %v7263_v8  ;;  %vm15710_vm15 = vcmp.lt.f32.partialorder %v7265_v0, 0.0004427343  ;;  %v16841_v39 = vld [vmem:[#allocation23_spill] sm:$0xff] }
 0x83f   : > { %v10005_v35 = vpop.eup %10004  ;;  %v7791_v13 = vadd.f32 %v7790_v32, %v7789_v42  ;;  %vm15714_vm4 = vcmp.lt.f32.partialorder %v7274_v49, 0.0004427343  ;;  %v7325_v19 = vmul.f32 -0.5, %v15275_v52  ;;  %10012 = vlog2.f32 %v7331_v36  ;;  %v16842_v30 = vld [vmem:[#allocation70_spill] sm:$0xff] }
 0x840   : > { %v7258_v47 = vsel %vm15702_vm14, %v7255_v24, %v7252_v41  ;;  %v7261_v4 = vmul.f32 0.6931472, %v10005_v35  ;;  %v7273_v9 = vmul.f32 %v16822_v43, %v7272_v62  ;;  %v7319_v57 = vand.u32 2147483647, %v15250_v14 }
 0x841   : > { %7792 = vadd.xlane.f32.xlu1 %v7791_v13  ;;  %v7666_v21 = vsub.f32 %v16837_v11, %v7258_v47  ;;  %v7804_v12 = vadd.f32 %v16839_v25, %v16838_v2  ;;  %v7317_v26 = vadd.f32 1.0, %v7316_v63  ;;  %v7334_v8 = vmul.f32 -0.5, %v15263_v27  ;;  %v16851_v25 = vld [vmem:[#allocation110_spill] sm:$0xff] }
 0x842   : > { %v10007_v34 = vpop.eup %10006  ;;  %v7267_v28 = vsel %vm15710_vm15, %v7264_v23, %v7261_v4  ;;  %v7376_v45 = vadd.f32 1.0, %v15313_v7  ;;  %v7328_v0 = vand.u32 2147483647, %v15275_v52  ;;  %v7326_v49 = vadd.f32 1.0, %v7325_v19 }
 0x843   : > { %v7270_v33 = vmul.f32 0.6931472, %v10007_v34  ;;  %v7667_v42 = vsub.f32 %v16840_v3, %v7267_v28  ;;  %v7797_v43 = vadd.f32 %v7796_v53, %v7666_v21  ;;  %v7805_v22 = vadd.f32 %v7804_v12, %v16841_v39  ;;  %v15762_v34 = vpop.xlane.xlu0 %3816  ;;  %v16854_v3 = vld [vmem:[#allocation31_spill] sm:$0xff] }
 0x844   : > { %10014 = vlog2.f32 %v7376_v45  ;;  %v7379_v5 = vmul.f32 -0.5, %v15313_v7  ;;  %v16843_v24 = vmax.f32 %v16842_v30, 0.0  ;;  %v7385_v36 = vadd.f32 1.0, %v15363_v17  ;;  %v16852_v45 = vld [vmem:[#allocation40_spill] sm:$0xff] }
 0x845   : > { %v7276_v37 = vsel %vm15714_vm4, %v7273_v9, %v7270_v33  ;;  %v7798_v56 = vadd.f32 %v7797_v43, %v7667_v42  ;;  %vm15740_vm3 = vcmp.lt.f32.partialorder %v7319_v57, 0.0004427343  ;;  %v7335_v63 = vadd.f32 1.0, %v7334_v8  ;;  %v16853_v33 = vld [vmem:[#allocation45_spill] sm:$0xff] }
 0x846   : > { %v6555_v62 = vsub.f32 %v16844_v29, %v16843_v24  ;;  %v10009_v32 = vpop.eup %10008  ;;  %v7668_v53 = vsub.f32 %v6548_v31, %v7276_v37  ;;  %v7337_v35 = vand.u32 2147483647, %v15263_v27  ;;  %v7318_v23 = vmul.f32 %v15250_v14, %v7317_v26  ;;  %v16855_v37 = vld [vmem:[#allocation28_spill] sm:$0xff] }
 0x847   : > { %v7315_v13 = vmul.f32 0.6931472, %v10009_v32  ;;  %10016 = vlog2.f32 %v7385_v36  ;;  %v7394_v38 = vadd.f32 1.0, %v15335_v6  ;;  %v10011_v54 = vpop.eup %10010  ;;  %v7327_v4 = vmul.f32 %v15275_v52, %v7326_v49 }
 0x848   : > { %v7799_v47 = vsel %vm1410_vm0, %v7668_v53, 0.0  ;;  %vm15749_vm2 = vcmp.lt.f32.partialorder %v7328_v0, 0.0004427343  ;;  %v7380_v19 = vadd.f32 1.0, %v7379_v5  ;;  %v7324_v21 = vmul.f32 0.6931472, %v10011_v54 }
 0x849   : > { %v7800_v9 = vadd.f32 %v7799_v47, %v7798_v56  ;;  %v7321_v11 = vsel %vm15740_vm3, %v7318_v23, %v7315_v13  ;;  %10018 = vlog2.f32 %v7394_v38  ;;  %v10013_v14 = vpop.eup %10012  ;;  %v7336_v57 = vmul.f32 %v15263_v27, %v7335_v63 }
 0x84a   : > { %vm15756_vm6 = vcmp.lt.f32.partialorder %v7337_v35, 0.0004427343  ;;  %v7673_v52 = vsub.f32 %v16851_v25, %v7321_v11  ;;  %v7388_v12 = vmul.f32 -0.5, %v15363_v17  ;;  %v7330_v28 = vsel %vm15749_vm2, %v7327_v4, %v7324_v21  ;;  %v16862_v25 = vld [vmem:[#allocation72_spill] sm:$0xff] }
 0x84b   : > { %7801 = vadd.xlane.f32.xlu0 %v7800_v9  ;;  %v7333_v26 = vmul.f32 0.6931472, %v10013_v14  ;;  %v7397_v8 = vmul.f32 -0.5, %v15335_v6  ;;  %v7813_v27 = vadd.f32 %v16853_v33, %v16852_v45  ;;  %v7674_v42 = vsub.f32 %v16854_v3, %v7330_v28  ;;  %v16872_v9 = vld [vmem:[#allocation76_spill] sm:$0xff] }
 0x84c   : > { %v7806_v43 = vadd.f32 %v7805_v22, %v7673_v52  ;;  %v7382_v0 = vand.u32 2147483647, %v15313_v7  ;;  %v7391_v49 = vand.u32 2147483647, %v15363_v17  ;;  %v7381_v5 = vmul.f32 %v15313_v7, %v7380_v19  ;;  %v15778_v22 = vpop.xlane.xlu0 %3824  ;;  %v16863_v52 = vld [vmem:[#allocation73_spill] sm:$0xff] }
 0x84d   : > { %v7339_v39 = vsel %vm15756_vm6, %v7336_v57, %v7333_v26  ;;  %v7814_v56 = vadd.f32 %v7813_v27, %v16855_v37  ;;  %v7439_v30 = vadd.f32 1.0, %v15367_v10  ;;  %v7389_v32 = vadd.f32 1.0, %v7388_v12 }
 0x84e   : > { %v10015_v24 = vpop.eup %10014  ;;  %v7675_v29 = vsub.f32 %v6555_v62, %v7339_v39  ;;  %v7807_v36 = vadd.f32 %v7806_v43, %v7674_v42  ;;  %v7400_v53 = vand.u32 2147483647, %v15335_v6  ;;  %v7398_v63 = vadd.f32 1.0, %v7397_v8  ;;  %v16865_v43 = vld [vmem:[#allocation2_spill] sm:$0xff] }
 0x84f   : > { %v7378_v41 = vmul.f32 0.6931472, %v10015_v24  ;;  %10020 = vlog2.f32 %v7439_v30  ;;  %v7448_v35 = vadd.f32 1.0, %v15404_v44  ;;  %v16856_v7 = vmax.f32 %v15216_v58, 0.0  ;;  %v16861_v58 = vld [vmem:[#allocation112_spill] sm:$0xff] }
 0x850   : > { %v7808_v13 = vsel %vm1410_vm0, %v7675_v29, 0.0  ;;  %vm7383_vm7 = vcmp.lt.f32.partialorder %v7382_v0, 0.0004427343  ;;  %vm15785_vm1 = vcmp.lt.f32.partialorder %v7391_v49, 0.0004427343  ;;  %v7442_v4 = vmul.f32 -0.5, %v15367_v10  ;;  %v15796_v21 = vpop.xlane.xlu0 %3832 }
 0x851   : > { %v6562_v23 = vsub.f32 %v15245_v55, %v16856_v7  ;;  %v10017_v38 = vpop.eup %10016  ;;  %v7809_v54 = vadd.f32 %v7808_v13, %v7807_v36  ;;  %v7384_v47 = vsel %vm7383_vm7, %v7381_v5, %v7378_v41  ;;  %10022 = vlog2.f32 %v7448_v35  ;;  %v16894_v30 = vld [vmem:[#allocation16_spill] sm:$0xff] }
 0x852   : > { %v7387_v31 = vmul.f32 0.6931472, %v10017_v38  ;;  %v7390_v19 = vmul.f32 %v15363_v17, %v7389_v32  ;;  %vm15791_vm8 = vcmp.lt.f32.partialorder %v7400_v53, 0.0004427343  ;;  %v7680_v55 = vsub.f32 %v16861_v58, %v7384_v47  ;;  %v16873_v58 = vld [vmem:[#allocation75_spill] sm:$0xff] }
 0x853   : > { %v10019_v11 = vpop.eup %10018  ;;  %7810 = vadd.xlane.f32.xlu1 %v7809_v54  ;;  %v7399_v14 = vmul.f32 %v15335_v6, %v7398_v63  ;;  %v7451_v57 = vmul.f32 -0.5, %v15404_v44  ;;  %v7457_v2 = vadd.f32 1.0, %v15397_v50  ;;  %v7822_v12 = vadd.f32 %v16863_v52, %v16862_v25 }
 0x854   : > { %v7393_v17 = vsel %vm15785_vm1, %v7390_v19, %v7387_v31  ;;  %v7396_v28 = vmul.f32 0.6931472, %v10019_v11  ;;  %v7815_v26 = vadd.f32 %v7814_v56, %v7680_v55  ;;  %v7445_v8 = vand.u32 2147483647, %v15367_v10  ;;  %v15815_v39 = vpop.xlane.xlu0 %3840 }
 0x855   : > { %v7681_v45 = vsub.f32 %v15304_v40, %v7393_v17  ;;  %v7443_v33 = vadd.f32 1.0, %v7442_v4  ;;  %10024 = vlog2.f32 %v7457_v2  ;;  %v7460_v6 = vmul.f32 -0.5, %v15397_v50 }
 0x856   : > { %v7402_v27 = vsel %vm15791_vm8, %v7399_v14, %v7396_v28  ;;  %v16864_v3 = vmax.f32 %v15294_v51, 0.0  ;;  %v7823_v0 = vadd.f32 %v7822_v12, %v16865_v43  ;;  %v7502_v49 = vadd.f32 1.0, %v15443_v1  ;;  %v16874_v12 = vld [vmem:[#allocation33_spill] sm:$0xff]  ;;  %v16878_v43 = vld [vmem:[#allocation36_spill] sm:$0xff] }
 0x857   : > { %v7682_v5 = vsub.f32 %v6562_v23, %v7402_v27  ;;  %v7816_v37 = vadd.f32 %v7815_v26, %v7681_v45  ;;  %v7452_v40 = vadd.f32 1.0, %v7451_v57  ;;  %v7454_v56 = vand.u32 2147483647, %v15404_v44  ;;  %v16875_v28 = vld [vmem:[#allocation77_spill] sm:$0xff]  ;;  %v16876_v27 = vld [vmem:[#allocation30_spill] sm:$0xff] }
 0x858   : > { %v6569_v42 = vsub.f32 %v15311_v60, %v16864_v3  ;;  %vm15818_vm9 = vcmp.lt.f32.partialorder %v7445_v8, 0.0004427343  ;;  %v7463_v24 = vand.u32 2147483647, %v15397_v50  ;;  %10026 = vlog2.f32 %v7502_v49  ;;  %v15828_v7 = vpop.xlane.xlu0 %3848 }
 0x859   : > { %v7511_v51 = vadd.f32 1.0, %v15498_v18  ;;  %v10021_v60 = vpop.eup %10020  ;;  %v7817_v29 = vsel %vm1410_vm0, %v7682_v5, 0.0  ;;  %v7444_v36 = vmul.f32 %v15367_v10, %v7443_v33  ;;  %v7461_v32 = vadd.f32 1.0, %v7460_v6 }
 0x85a   : > { %v7520_v53 = vadd.f32 1.0, %v15457_v61  ;;  %v7818_v41 = vadd.f32 %v7817_v29, %v7816_v37  ;;  %v7441_v63 = vmul.f32 0.6931472, %v10021_v60  ;;  %v7505_v35 = vmul.f32 -0.5, %v15443_v1 }
 0x85b   : > { %10028 = vlog2.f32 %v7511_v51  ;;  %v10023_v13 = vpop.eup %10022  ;;  %v7453_v23 = vmul.f32 %v15404_v44, %v7452_v40  ;;  %vm15831_vm11 = vcmp.lt.f32.partialorder %v7454_v56, 0.0004427343  ;;  %v7514_v38 = vmul.f32 -0.5, %v15498_v18 }
 0x85c   : > { %10030 = vlog2.f32 %v7520_v53  ;;  %7819 = vadd.xlane.f32.xlu0 %v7818_v41  ;;  %v7447_v10 = vsel %vm15818_vm9, %v7444_v36, %v7441_v63  ;;  %v7450_v54 = vmul.f32 0.6931472, %v10023_v13  ;;  %vm15838_vm5 = vcmp.lt.f32.partialorder %v7463_v24, 0.0004427343  ;;  %v15852_v52 = vpop.xlane.xlu0 %3856  ;;  %v16885_v63 = vld [vmem:[#allocation21_spill] sm:$0xff] }
 0x85d   : > { %v7523_v4 = vmul.f32 -0.5, %v15457_v61  ;;  %v7462_v44 = vmul.f32 %v15397_v50, %v7461_v32  ;;  %v7687_v31 = vsub.f32 %v15308_v20, %v7447_v10  ;;  %v7508_v19 = vand.u32 2147483647, %v15443_v1 }
 0x85e   : > { %v7831_v55 = vadd.f32 %v16873_v58, %v16872_v9  ;;  %v7456_v11 = vsel %vm15831_vm11, %v7453_v23, %v7450_v54  ;;  %v7506_v14 = vadd.f32 1.0, %v7505_v35  ;;  %v7517_v57 = vand.u32 2147483647, %v15498_v18  ;;  %v16890_v9 = vld [vmem:[#allocation80_spill] sm:$0xff] }
 0x85f   : > { %v7565_v2 = vadd.f32 1.0, %v15505_v46  ;;  %v10025_v25 = vpop.eup %10024  ;;  %v7688_v50 = vsub.f32 %v16874_v12, %v7456_v11  ;;  %v7824_v17 = vadd.f32 %v7823_v0, %v7687_v31  ;;  %v7515_v20 = vadd.f32 1.0, %v7514_v38  ;;  %v3821_v11 = vpop.xlane.xlu1 %3820 }
 0x860   : > { %v7832_v26 = vadd.f32 %v7831_v55, %v16875_v28  ;;  %v7459_v8 = vmul.f32 0.6931472, %v10025_v25  ;;  %v7524_v45 = vadd.f32 1.0, %v7523_v4  ;;  %v7526_v33 = vand.u32 2147483647, %v15457_v61  ;;  %v15873_v51 = vpop.xlane.xlu0 %3864 }
 0x861   : > { %10032 = vlog2.f32 %v7565_v2  ;;  %v7825_v6 = vadd.f32 %v7824_v17, %v7688_v50  ;;  %v16877_v3 = vmax.f32 %v16876_v27, 0.0  ;;  %vm15860_vm12 = vcmp.lt.f32.partialorder %v7508_v19, 0.0004427343  ;;  %v16889_v19 = vld [vmem:[#allocation78_spill] sm:$0xff] }
 0x862   : > { %v7574_v37 = vadd.f32 1.0, %v15534_v15  ;;  %v10027_v0 = vpop.eup %10026  ;;  %v7465_v40 = vsel %vm15838_vm5, %v7462_v44, %v7459_v8  ;;  %v7507_v56 = vmul.f32 %v15443_v1, %v7506_v14  ;;  %vm15868_vm13 = vcmp.lt.f32.partialorder %v7517_v57, 0.0004427343  ;;  %v16898_v1 = vld [vmem:[#allocation15_spill] sm:$0xff] }
 0x863   : > { %v6576_v49 = vsub.f32 %v16878_v43, %v16877_v3  ;;  %v7583_v24 = vadd.f32 1.0, %v15526_v16  ;;  %v7689_v60 = vsub.f32 %v6569_v42, %v7465_v40  ;;  %v7504_v29 = vmul.f32 0.6931472, %v10027_v0  ;;  %v3829_v3 = vpop.xlane.xlu1 %3828  ;;  %v16893_v40 = vld [vmem:[#allocation20_spill] sm:$0xff] }
 0x864   : > { %v7568_v36 = vmul.f32 -0.5, %v15505_v46  ;;  %10034 = vlog2.f32 %v7574_v37  ;;  %v7516_v53 = vmul.f32 %v15498_v18, %v7515_v20  ;;  %v7525_v41 = vmul.f32 %v15457_v61, %v7524_v45  ;;  %v7712_v55 = vpop.xlane.xlu0 %7711  ;;  %v16892_v20 = vld [vmem:[#allocation85_spill] sm:$0xff] }
 0x865   : > { %v10029_v32 = vpop.eup %10028  ;;  %vm15878_vm14 = vcmp.lt.f32.partialorder %v7526_v33, 0.0004427343  ;;  %10036 = vlog2.f32 %v7583_v24  ;;  %v16886_v35 = vand.u32 2147483647, %v16885_v63  ;;  %v7826_v23 = vsel %vm1410_vm0, %v7689_v60, 0.0  ;;  %v16895_v60 = vld [vmem:[#allocation17_spill] sm:$0xff] }
 0x866   : > { %v10031_v42 = vpop.eup %10030  ;;  %v7510_v62 = vsel %vm15860_vm12, %v7507_v56, %v7504_v29  ;;  %v7513_v18 = vmul.f32 0.6931472, %v10029_v32  ;;  %v7577_v61 = vmul.f32 -0.5, %v15534_v15  ;;  %v7827_v38 = vadd.f32 %v7826_v23, %v7825_v6  ;;  %v16896_v29 = vld [vmem:[#allocation19_spill] sm:$0xff]  ;;  %v16899_v63 = vld [vmem:[#allocation10_spill] sm:$0xff] }
 0x867   : > { %vm15884_vm15 = vcmp.lt.f32.partialorder %v16886_v35, 0.0004427343  ;;  %v7522_v10 = vmul.f32 0.6931472, %v10031_v42  ;;  %v7694_v54 = vsub.f32 %v15451_v48, %v7510_v62  ;;  %v7571_v47 = vand.u32 2147483647, %v15505_v46 }
 0x868   : > { %v7519_v4 = vsel %vm15868_vm13, %v7516_v53, %v7513_v18  ;;  %v7569_v44 = vadd.f32 1.0, %v7568_v36  ;;  %v7586_v31 = vmul.f32 -0.5, %v15526_v16  ;;  %v7840_v58 = vadd.f32 %v16890_v9, %v16889_v19  ;;  %7828 = vadd.xlane.f32.xlu1 %v7827_v38  ;;  %v16900_v42 = vld [vmem:[#allocation9_spill] sm:$0xff]  ;;  %v16902_v62 = vld [vmem:[#allocation84_spill] sm:$0xff]  ;;  %v3837_v38 = vpop.xlane.xlu1 %3836 }
 0x869   : > { %v7528_v14 = vsel %vm15878_vm14, %v7525_v41, %v7522_v10  ;;  %v7695_v48 = vsub.f32 %v15453_v59, %v7519_v4  ;;  %v7833_v57 = vadd.f32 %v7832_v26, %v7694_v54  ;;  %v16891_v2 = vlaneseq  ;;  %v16897_v41 = vld [vmem:[#allocation42_spill] sm:$0xff]  ;;  %v16906_v19 = vld [vmem:[#allocation5_spill] sm:$0xff] }
 0x86a   : > { %v7696_v12 = vsub.f32 %v6576_v49, %v7528_v14  ;;  %v7578_v50 = vadd.f32 1.0, %v7577_v61  ;;  %v7580_v17 = vand.u32 2147483647, %v15534_v15  ;;  %v7841_v28 = vadd.f32 %v7840_v58, %v16892_v20  ;;  %v16903_v10 = vld [vmem:[#allocation74_spill] sm:$0xff]  ;;  %v16907_v9 = vld [vmem:[#allocation13_spill] sm:$0xff] }
 0x86b   : > { %v15903_v25 = vand.u32 127, %v16891_v2  ;;  %v10033_v8 = vpop.eup %10032  ;;  %v7834_v45 = vadd.f32 %v7833_v57, %v7695_v48  ;;  %vm7885_vm3 = vcmask 15360   ;;  %v7848_v59 = vadd.f32 -138.62944, %v7712_v55  ;;  %v16908_v2 = vld [vmem:[#allocation8_spill] sm:$0xff] }
 0x86c   : > { %v7835_v26 = vsel %vm1410_vm0, %v7696_v12, 0.0  ;;  %v7567_v33 = vmul.f32 0.6931472, %v10033_v8  ;;  %v7570_v6 = vmul.f32 %v15505_v46, %v7569_v44  ;;  %v7587_v27 = vadd.f32 1.0, %v7586_v31  ;;  %v16909_v12 = vld [vmem:[#allocation11_spill] sm:$0xff] }
 0x86d   : > { %vm7866_vm4 = vcmp.eq.s32.totalorder %v15903_v25, 0  ;;  %v7836_v43 = vadd.f32 %v7835_v26, %v7834_v45  ;;  %vm7572_vm2 = vcmp.lt.f32.partialorder %v7571_v47, 0.0004427343  ;;  %v7589_v49 = vand.u32 2147483647, %v15526_v16  ;;  %v16905_v47 = vld [vmem:[#allocation7_spill] sm:$0xff]  ;;  %v3845_v45 = vpop.xlane.xlu1 %3844 }
 0x86e   : > { %v7869_v5 = vsel %vm7866_vm4, %v15762_v34, %v7848_v59  ;;  %v10035_v37 = vpop.eup %10034  ;;  %v7573_v0 = vsel %vm7572_vm2, %v7570_v6, %v7567_v33  ;;  %v3766_v56 = vmul.f32 0.6931472, %v16893_v40  ;;  %v3768_v24 = vadd.f32 1.0, %v16894_v30 }
 0x86f   : > { %v3781_v46 = vsel %vm15884_vm15, %v16896_v29, %v16895_v60  ;;  %7886 = vst.msk [vmem:[%s15912_s10] sm:$0xff] %vm7885_vm3, %v7869_v5  ;;  %v10037_v36 = vpop.eup %10036  ;;  %7837 = vadd.xlane.f32.xlu0 %v7836_v43  ;;  %v7576_v32 = vmul.f32 0.6931472, %v10035_v37  ;;  %v7579_v53 = vmul.f32 %v15534_v15, %v7578_v50  ;;  %v7701_v34 = vsub.f32 %v16897_v41, %v7573_v0  ;;  %v7721_v31 = vpop.xlane.xlu0 %7720 }
 0x870   : > { %v3871_v35 = vadd.f32 %v16899_v63, %v16898_v1  ;;  %v16901_v23 = vmax.f32 %v16900_v42, 0.0  ;;  %vm7581_vm6 = vcmp.lt.f32.partialorder %v7580_v17, 0.0004427343  ;;  %v7585_v61 = vmul.f32 0.6931472, %v10037_v36 }
 0x871   : > { %v7588_v13 = vmul.f32 %v15526_v16, %v7587_v27  ;;  %v16904_v54 = vmax.f32 %v16903_v10, 0.0  ;;  %v7582_v44 = vsel %vm7581_vm6, %v7579_v53, %v7576_v32  ;;  %vm7590_vm7 = vcmp.lt.f32.partialorder %v7589_v49, 0.0004427343  ;;  %v3853_v49 = vpop.xlane.xlu1 %3852 }
 0x872   : > { %v6582_v18 = vsub.f32 %v16902_v62, %v16901_v23  ;;  %v7842_v15 = vadd.f32 %v7841_v28, %v7701_v34  ;;  %v3428_v58 = vmul.f32 %v16907_v9, %v16906_v19  ;;  %v7849_v48 = vadd.f32 -138.62944, %v7721_v31 }
 0x873   : > { %v6583_v4 = vsub.f32 %v16905_v47, %v16904_v54  ;;  %v7591_v55 = vsel %vm7590_vm7, %v7588_v13, %v7585_v61  ;;  %3872 = vadd.xlane.f32.xlu0 %v3871_v35  ;;  %v3769_v16 = vmul.f32 %v16908_v2, %v3768_v24  ;;  %v3813_v50 = vsub.f32 %v16909_v12, %v3781_v46 }
 0x874   : > { %v7702_v14 = vsub.f32 %v6582_v18, %v7582_v44  ;;  %v3460_v20 = vmax.f32 %v16906_v19, 0.0  ;;  %v16910_v8 = vand.u32 2147483647, %v16908_v2  ;;  %v7870_v28 = vsel %vm7866_vm4, %v3821_v11, %v7849_v48 }
 0x875   : > { %v7703_v57 = vsub.f32 %v6583_v4, %v7591_v55  ;;  %7887 = vst.msk [vmem:[%s15912_s10 + $0x8] sm:$0xff] %vm7885_vm3, %v7870_v28  ;;  %v3874_v27 = vsel %vm2162_vm10, %v3813_v50, 0.0  ;;  %v3861_v37 = vpop.xlane.xlu1 %3860 }
 0x876   : > { %v7843_v17 = vadd.f32 %v7842_v15, %v7702_v14  ;;  %vm3771_vm1 = vcmp.lt.f32.partialorder %v16910_v8, 0.0004427343  ;;  %v3492_v6 = vsub.f32 %v3428_v58, %v3460_v20 }
 0x877   : > { %v7844_v59 = vsel %vm1410_vm0, %v7703_v57, 0.0  ;;  %v3772_v26 = vsel %vm3771_vm1, %v3769_v16, %v3766_v56 }
 0x878   : > { %v7845_v33 = vadd.f32 %v7844_v59, %v7843_v17  ;;  %v3812_v43 = vsub.f32 %v3492_v6, %v3772_v26 }
 0x879   : > { %v3869_v11 = vpop.xlane.xlu1 %3868 }
 0x87a   : > { %7846 = vadd.xlane.f32.xlu1 %v7845_v33  ;;  %v3875_v5 = vadd.f32 %v3874_v27, %v3812_v43 }
 0x87e   : > { %3876 = vadd.xlane.f32.xlu1 %v3875_v5 }
 0x882   : > { %v7730_v0 = vpop.xlane.xlu1 %7729 }
 0x883   : > { %v7850_v40 = vadd.f32 -138.62944, %v7730_v0 }
 0x885   : > { %v7871_v56 = vsel %vm7866_vm4, %v15778_v22, %v7850_v40 }
 0x886   : > { %7888 = vst.msk [vmem:[%s15912_s10 + $0x10] sm:$0xff] %vm7885_vm3, %v7871_v56 }
 0x88c   : > { %v7739_v30 = vpop.xlane.xlu1 %7738 }
 0x88d   : > { %v7851_v24 = vadd.f32 -138.62944, %v7739_v30 }
 0x88f   : > { %v7872_v60 = vsel %vm7866_vm4, %v3829_v3, %v7851_v24 }
 0x890   : > { %7889 = vst.msk [vmem:[%s15912_s10 + $0x18] sm:$0xff] %vm7885_vm3, %v7872_v60 }
 0x8a1   : > { %v7748_v29 = vpop.xlane.xlu0 %7747 }
 0x8a2   : > { %v7852_v46 = vadd.f32 -138.62944, %v7748_v29 }
 0x8a4   : > { %v7873_v36 = vsel %vm7866_vm4, %v15796_v21, %v7852_v46 }
 0x8a5   : > { %7890 = vst.msk [vmem:[%s15912_s10 + $0x20] sm:$0xff] %vm7885_vm3, %v7873_v36 }
 0x8a7   : > { %v7757_v22 = vpop.xlane.xlu1 %7756 }
 0x8a8   : > { %v7853_v32 = vadd.f32 -138.62944, %v7757_v22 }
 0x8aa   : > { %v7874_v53 = vsel %vm7866_vm4, %v3837_v38, %v7853_v32 }
 0x8ab   : > { %7891 = vst.msk [vmem:[%s15912_s10 + $0x28] sm:$0xff] %vm7885_vm3, %v7874_v53 }
 0x8b1   : > { %v7766_v3 = vpop.xlane.xlu0 %7765 }
 0x8b2   : > { %v7854_v41 = vadd.f32 -138.62944, %v7766_v3 }
 0x8b4   : > { %v7875_v34 = vsel %vm7866_vm4, %v15815_v39, %v7854_v41 }
 0x8b5   : > { %7892 = vst.msk [vmem:[%s15912_s10 + $0x30] sm:$0xff] %vm7885_vm3, %v7875_v34 }
 0x8bc   : > { %v7775_v21 = vpop.xlane.xlu1 %7774 }
 0x8bd   : > { %v7855_v1 = vadd.f32 -138.62944, %v7775_v21 }
 0x8bf   : > { %v7876_v63 = vsel %vm7866_vm4, %v3845_v45, %v7855_v1 }
 0x8c0   : > { %7893 = vst.msk [vmem:[%s15912_s10 + $0x38] sm:$0xff] %vm7885_vm3, %v7876_v63 }
 0x8c3   : > { %v7784_v35 = vpop.xlane.xlu0 %7783 }
 0x8c4   : > { %v7856_v42 = vadd.f32 -138.62944, %v7784_v35 }
 0x8c6   : > { %v7877_v23 = vsel %vm7866_vm4, %v15828_v7, %v7856_v42 }
 0x8c7   : > { %7894 = vst.msk [vmem:[%s15912_s10 + $0x40] sm:$0xff] %vm7885_vm3, %v7877_v23 }
 0x8ce   : > { %v7793_v39 = vpop.xlane.xlu1 %7792 }
 0x8cf   : > { %v7857_v62 = vadd.f32 -138.62944, %v7793_v39 }
 0x8d1   : > { %v7878_v18 = vsel %vm7866_vm4, %v3853_v49, %v7857_v62 }
 0x8d2   : > { %7895 = vst.msk [vmem:[%s15912_s10 + $0x48] sm:$0xff] %vm7885_vm3, %v7878_v18 }
 0x8d8   : > { %v7802_v61 = vpop.xlane.xlu0 %7801 }
 0x8d9   : > { %v7858_v13 = vadd.f32 -138.62944, %v7802_v61 }
 0x8db   : > { %v7879_v38 = vsel %vm7866_vm4, %v15852_v52, %v7858_v13 }
 0x8dc   : > { %7896 = vst.msk [vmem:[%s15912_s10 + $0x50] sm:$0xff] %vm7885_vm3, %v7879_v38 }
 0x8e0   : > { %v7811_v7 = vpop.xlane.xlu1 %7810 }
 0x8e1   : > { %v7859_v10 = vadd.f32 -138.62944, %v7811_v7 }
 0x8e3   : > { %v7880_v54 = vsel %vm7866_vm4, %v3861_v37, %v7859_v10 }
 0x8e4   : > { %7897 = vst.msk [vmem:[%s15912_s10 + $0x58] sm:$0xff] %vm7885_vm3, %v7880_v54 }
 0x8e9   : > { %v7820_v47 = vpop.xlane.xlu0 %7819 }
 0x8ea   : > { %v7860_v4 = vadd.f32 -138.62944, %v7820_v47 }
 0x8ec   : > { %v7881_v44 = vsel %vm7866_vm4, %v15873_v51, %v7860_v4 }
 0x8ed   : > { %7898 = vst.msk [vmem:[%s15912_s10 + $0x60] sm:$0xff] %vm7885_vm3, %v7881_v44 }
 0x8f5   : > { %v7829_v52 = vpop.xlane.xlu1 %7828 }
 0x8f6   : > { %v7861_v15 = vadd.f32 -138.62944, %v7829_v52 }
 0x8f8   : > { %v7882_v31 = vsel %vm7866_vm4, %v3869_v11, %v7861_v15 }
 0x8f9   : > { %7899 = vst.msk [vmem:[%s15912_s10 + $0x68] sm:$0xff] %vm7885_vm3, %v7882_v31 }
 0x8fc   : > { %v7838_v19 = vpop.xlane.xlu0 %7837 }
 0x8fd   : > { %v7862_v9 = vadd.f32 -138.62944, %v7838_v19 }
 0x900   : > { %v3873_v58 = vpop.xlane.xlu0 %3872 }
 0x901   : > { %v7883_v55 = vsel %vm7866_vm4, %v3873_v58, %v7862_v9 }
 0x902   : > { %7900 = vst.msk [vmem:[%s15912_s10 + $0x70] sm:$0xff] %vm7885_vm3, %v7883_v55 }
 0x907   : > { %v7847_v14 = vpop.xlane.xlu1 %7846 }
 0x908   : > { %v7863_v48 = vadd.f32 -138.62944, %v7847_v14 }
 0x90b   : > { %v3877_v51 = vpop.xlane.xlu1 %3876 }
 0x90c   : > { %v7884_v57 = vsel %vm7866_vm4, %v3877_v51, %v7863_v48 }
 0x90d   : > { %7901 = vst.msk [vmem:[%s15912_s10 + $0x78] sm:$0xff] %vm7885_vm3, %v7884_v57 }
 0x90e PF: > { %s19_s27 = sadd.s32 1, %s10109_s27  }
 0x90f   : > { %p16_p4 = scmp.ge.s32.totalorder %s19_s27, 4  }
 0x911   :  { %18 = sbr.rel (!%p16_p4) target bundleno = 1 (0x1), region = 100 }

</bundles_post_ra>
